<compile_context>
chip_gen: v7x
topology: tpu7x:2x2x1
jax: 0.10.0
libtpu: 0.0.40
codegen_flags: <defaults>
</compile_context>

<pallas_src>
import numpy as np
import jax
import jax.numpy as jnp
from jax.experimental import pallas as pl
from jax.experimental.pallas import tpu as pltpu


# ----------------------------------------------------------------------------
# Fused Pallas kernel: the entire shift-reduce loop in one invocation
# ----------------------------------------------------------------------------
def _spinn_fused_kernel(shift_ref, reduce_ref, wpos_ref, rpos_ref,
                        buftop_ref, buf0_ref, w_trk_ref, b_trk_ref,
                        w_red_ref, b_red_ref, out_ref, stack_ref):
    """Runs the full shift-reduce loop for all batch elements.

    shift_ref  : (N, B, 1) int32 -- 1 where transition == SHIFT (3)
    reduce_ref : (N, B, 1) int32 -- 1 where transition == REDUCE (2)
    wpos_ref   : (N, B, 1) int32 -- deep-stack slot for the shift eviction
                                    (= stack depth at step start - 2)
    rpos_ref   : (N, B, 1) int32 -- deep-stack slot a reduce exposes
                                    (= stack depth at step start - 3, clamped)
    buftop_ref : (N, B, D) f32   -- precomputed buffer top at every step
    buf0_ref   : (B, D)    f32   -- first buffer row (initial stack contents)
    w_trk_ref  : (3H+T, 4T) f32  -- fused tracker LSTMCell weight [Wih ; Whh]
    b_trk_ref  : (1, 4T)    f32
    w_red_ref  : (2H+T, 5H) f32  -- fused reduce weight [Wl ; Wr ; Wt]
    b_red_ref  : (1, 5H)    f32
    out_ref    : (B, H)     f32  -- final top-of-stack h
    stack_ref  : (S, B, D)  f32  -- VMEM scratch: stack entries below the
                                    carried top-2 (slot d = logical depth d)
    """
    N = shift_ref.shape[0]
    B, D = buf0_ref.shape
    H = D // 2
    T = w_trk_ref.shape[1] // 4
    S = stack_ref.shape[0]

    # Defensive zero-init: valid sequences always write a slot before reading
    # it; invalid ones read zeros instead of stale VMEM.
    stack_ref[...] = jnp.zeros_like(stack_ref)

    # stack = [buf0, buf0] initially (matches the reference): carried top-2.
    buf0 = buf0_ref[...]
    th0 = jnp.zeros((B, T), jnp.float32)
    tc0 = jnp.zeros((B, T), jnp.float32)

    def step(i, carry):
        s1, s2, th, tc = carry                      # s1 = top, s2 = second

        is_shift = shift_ref[i] != 0                # (B, 1) bool
        is_reduce = reduce_ref[i] != 0              # (B, 1) bool
        buf_top = buftop_ref[i]                     # (B, D)

        s1h, s1c = s1[:, :H], s1[:, H:]
        s2h, s2c = s2[:, :H], s2[:, H:]

        # --- Tracker LSTMCell: one fused MXU op [x ; h] @ [Wih ; Whh]. ------
        xh = jnp.concatenate([buf_top[:, :H], s1h, s2h, th], axis=1)
        gates = (jnp.dot(xh, w_trk_ref[...],
                         preferred_element_type=jnp.float32) + b_trk_ref[...])
        ig = jax.nn.sigmoid(gates[:, 0 * T:1 * T])
        fg = jax.nn.sigmoid(gates[:, 1 * T:2 * T])
        gg = jnp.tanh(gates[:, 2 * T:3 * T])
        og = jax.nn.sigmoid(gates[:, 3 * T:4 * T])
        tc_n = fg * tc + ig * gg
        th_n = og * jnp.tanh(tc_n)

        # --- Reduce tree-LSTM: one fused MXU op [lh; rh; th] @ [Wl; Wr; Wt].
        rin = jnp.concatenate([s2h, s1h, th_n], axis=1)
        lstm_in = (jnp.dot(rin, w_red_ref[...],
                           preferred_element_type=jnp.float32) + b_red_ref[...])
        a = lstm_in[:, 0 * H:1 * H]
        ii = lstm_in[:, 1 * H:2 * H]
        f1 = lstm_in[:, 2 * H:3 * H]
        f2 = lstm_in[:, 3 * H:4 * H]
        o = lstm_in[:, 4 * H:5 * H]
        rc = (jnp.tanh(a) * jax.nn.sigmoid(ii)
              + jax.nn.sigmoid(f1) * s2c + jax.nn.sigmoid(f2) * s1c)
        rh = jax.nn.sigmoid(o) * jnp.tanh(rc)
        reduced = jnp.concatenate([rh, rc], axis=1)                 # (B, D)

        # --- Deep-stack maintenance on the VMEM scratch ref. ----------------
        # s2 is always the logical depth-(sp-2) element and wpos == sp-2, so
        # the mirror-write below is exactly the shift eviction when shifting
        # and a harmless no-op rewrite for reduce / no-op lanes.
        iota_s = jax.lax.broadcasted_iota(jnp.int32, (S, B, 1), 0)
        wsel = iota_s == wpos_ref[i][None]                          # (S, B, 1)
        stack = jnp.where(wsel, s2[None, :, :], stack_ref[...])
        stack_ref[...] = stack
        # Element exposed by a reduce (logical depth sp-3): one mask-gather.
        rsel = iota_s == rpos_ref[i][None]
        deep = jnp.sum(jnp.where(rsel, stack, 0.0), axis=0)         # (B, D)

        # --- Masked top-2 update (no-op lanes keep their state). ------------
        s1_n = jnp.where(is_shift, buf_top, jnp.where(is_reduce, reduced, s1))
        s2_n = jnp.where(is_shift, s1, jnp.where(is_reduce, deep, s2))
        return (s1_n, s2_n, th_n, tc_n)

    s1, _, _, _ = jax.lax.fori_loop(0, N, step, (buf0, buf0, th0, tc0),
                                    unroll=True)

    # bundle([stack.pop() ...])[0] -> h half of the carried top-of-stack.
    out_ref[...] = s1[:, :H]


def _full_block_spec(shape):
    n = len(shape)
    return pl.BlockSpec(tuple(shape), lambda i, n=n: (0,) * n)


def spinn_forward(params, buffers, transitions):
    """buffers: (L, B, 2H) f32 ; transitions: (N, B) int (3=shift, 2=reduce)."""
    L, B, D = buffers.shape
    H = D // 2
    T = params['whh'].shape[0]
    N = transitions.shape[0]
    S = L  # shifts write deep-stack slots <= L-1 (a shift needs a buffer token)

    buffers = buffers.astype(jnp.float32)
    trans = transitions.astype(jnp.int32)                           # (N, B)
    is_shift = trans == 3
    is_reduce = trans == 2

    # Stack-depth / buffer-pointer trajectories are pure functions of the
    # transitions -> precompute them (and the per-step buffer tops) with XLA
    # outside the kernel, so the kernel never decodes transitions or gathers
    # over the token buffer.
    d_sp = jnp.where(is_shift, 1, jnp.where(is_reduce, -1, 0)).astype(jnp.int32)
    d_bp = jnp.where(is_shift, 1, 0).astype(jnp.int32)
    zeros = jnp.zeros((1, B), jnp.int32)
    sp_before = 2 + jnp.concatenate([zeros, jnp.cumsum(d_sp, axis=0)[:-1]], 0)
    bp_before = L - jnp.concatenate([zeros, jnp.cumsum(d_bp, axis=0)[:-1]], 0)
    wpos = (sp_before - 2).astype(jnp.int32)[:, :, None]            # (N, B, 1)
    rpos = jnp.maximum(sp_before - 3, 0).astype(jnp.int32)[:, :, None]
    buf_idx = jnp.maximum(bp_before - 1, 0)                         # (N, B)
    buf_tops = jnp.take_along_axis(buffers, buf_idx[:, :, None], axis=0)
    buf0 = buffers[0]                                               # (B, D)
    shift_m = is_shift.astype(jnp.int32)[:, :, None]
    reduce_m = is_reduce.astype(jnp.int32)[:, :, None]

    # Trace-time weight fusion -> one resident VMEM slab and one MXU push per
    # sub-module matmul inside the kernel.
    # TODO(synk): cast slabs + activations to bf16 (f32 accumulate) and tile
    # w_red over its 5H columns (with explicit vmem_limit_bytes) for
    # production H/T on v6e/v7x.
    w_trk = jnp.concatenate([params['wih'], params['whh']], axis=0)          # (3H+T, 4T)
    w_red = jnp.concatenate([params['wl'], params['wr'], params['wt']], axis=0)  # (2H+T, 5H)

    args = (shift_m, reduce_m, wpos, rpos, buf_tops, buf0,
            w_trk, params['b'], w_red, params['bl'])
    out = pl.pallas_call(
        _spinn_fused_kernel,
        grid=(1,),
        in_specs=[_full_block_spec(a.shape) for a in args],
        out_specs=_full_block_spec((B, H)),
        out_shape=jax.ShapeDtypeStruct((B, H), jnp.float32),
        scratch_shapes=[pltpu.VMEM((S, B, D), jnp.float32)],
        compiler_params=pltpu.CompilerParams(
            dimension_semantics=("arbitrary",)),
    )(*args)
    return out


# ----------------------------------------------------------------------------
# Pure-numpy reference mirroring the PyTorch list-based semantics
# ----------------------------------------------------------------------------
def spinn_reference(params, buffers, transitions):
    p = {k: np.asarray(v) for k, v in params.items()}
    buffers = np.asarray(buffers)
    transitions = np.asarray(transitions)
    L, B, D = buffers.shape
    H = D // 2
    T = p['whh'].shape[0]

    def sigmoid(z):
        return 1.0 / (1.0 + np.exp(-z))

    bufs = [[buffers[t, b].copy() for t in range(L)] for b in range(B)]
    stacks = [[bufs[b][0], bufs[b][0]] for b in range(B)]
    th = np.zeros((B, T), np.float32)
    tc = np.zeros((B, T), np.float32)

    for step in range(transitions.shape[0]):
        trans = transitions[step]
        buf_h = np.stack([bufs[b][-1][:H] for b in range(B)])
        s1_h = np.stack([stacks[b][-1][:H] for b in range(B)])
        s2_h = np.stack([stacks[b][-2][:H] for b in range(B)])
        x = np.concatenate([buf_h, s1_h, s2_h], axis=1)
        gates = x @ p['wih'] + th @ p['whh'] + p['b']
        ig = sigmoid(gates[:, :T])
        fg = sigmoid(gates[:, T:2 * T])
        gg = np.tanh(gates[:, 2 * T:3 * T])
        og = sigmoid(gates[:, 3 * T:])
        tc = fg * tc + ig * gg
        th = og * np.tanh(tc)

        lefts, rights, tidx = [], [], []
        for b in range(B):
            if trans[b] == 3:
                stacks[b].append(bufs[b].pop())
            elif trans[b] == 2:
                rights.append(stacks[b].pop())
                lefts.append(stacks[b].pop())
                tidx.append(b)
        if rights:
            Lh = np.stack([v[:H] for v in lefts])
            Lc = np.stack([v[H:] for v in lefts])
            Rh = np.stack([v[:H] for v in rights])
            Rc = np.stack([v[H:] for v in rights])
            Th = th[np.array(tidx)]
            lstm_in = Lh @ p['wl'] + p['bl'] + Rh @ p['wr'] + Th @ p['wt']
            a, ii, f1, f2, o = np.split(lstm_in, 5, axis=1)
            c = np.tanh(a) * sigmoid(ii) + sigmoid(f1) * Lc + sigmoid(f2) * Rc
            h = sigmoid(o) * np.tanh(c)
            for k, b in enumerate(tidx):
                stacks[b].append(np.concatenate([h[k], c[k]]))

    return np.stack([stacks[b].pop()[:H] for b in range(B)])


# ----------------------------------------------------------------------------
if __name__ == "__main__":
    B, L, H, T = 2, 8, 32, 32       # batch, seq, d_hidden, d_tracker
    D = 2 * H                       # d_proj

    key = jax.random.PRNGKey(0)
    keys = jax.random.split(key, 8)
    params = {
        'wih': 0.1 * jax.random.normal(keys[0], (3 * H, 4 * T), jnp.float32),
        'whh': 0.1 * jax.random.normal(keys[1], (T, 4 * T), jnp.float32),
        'b':   0.1 * jax.random.normal(keys[2], (1, 4 * T), jnp.float32),
        'wl':  0.1 * jax.random.normal(keys[3], (H, 5 * H), jnp.float32),
        'bl':  0.1 * jax.random.normal(keys[4], (1, 5 * H), jnp.float32),
        'wr':  0.1 * jax.random.normal(keys[5], (H, 5 * H), jnp.float32),
        'wt':  0.1 * jax.random.normal(keys[6], (T, 5 * H), jnp.float32),
    }
    buffers = jax.random.normal(keys[7], (L, B, D), jnp.float32)

    # Valid shift/reduce sequences (3=shift, 2=reduce), 2*L - 3 transitions.
    trans_elem0 = [3, 3, 2, 3, 2, 3, 2, 3, 2, 3, 2, 3, 2]
    trans_elem1 = [3, 3, 3, 2, 2, 3, 2, 3, 2, 3, 2, 3, 2]
    transitions = jnp.array(list(zip(trans_elem0, trans_elem1)), dtype=jnp.int32)

    out = jax.jit(spinn_forward)(params, buffers, transitions)
    out = jax.block_until_ready(out)

    ref = spinn_reference(params, buffers, transitions)
    np.testing.assert_allclose(np.asarray(out), ref, rtol=5e-3, atol=5e-3)
    print("KERNEL_OK")
</pallas_src>

<mosaic_0001>
module attributes {stable_mosaic.version = 11 : i64} {
  func.func @_spinn_fused_kernel(%arg0: i32, %arg1: memref<13x2x1xi32, #tpu.memory_space<vmem>>, %arg2: memref<13x2x1xi32, #tpu.memory_space<vmem>>, %arg3: memref<13x2x1xi32, #tpu.memory_space<vmem>>, %arg4: memref<13x2x1xi32, #tpu.memory_space<vmem>>, %arg5: memref<13x2x64xf32, #tpu.memory_space<vmem>>, %arg6: memref<2x64xf32, #tpu.memory_space<vmem>>, %arg7: memref<128x128xf32, #tpu.memory_space<vmem>>, %arg8: memref<1x128xf32, #tpu.memory_space<vmem>>, %arg9: memref<96x160xf32, #tpu.memory_space<vmem>>, %arg10: memref<1x160xf32, #tpu.memory_space<vmem>>, %arg11: memref<2x32xf32, #tpu.memory_space<vmem>>, %arg12: memref<8x2x64xf32, #tpu.memory_space<vmem>>) attributes {dimension_semantics = [#tpu.dimension_semantics<arbitrary>], iteration_bounds = array<i64: 1>, scalar_prefetch = 0 : i64, scratch_operands = 1 : i64, tpu.core_type = #tpu.core_type<tc>, window_params = [{pipeline_mode = #tpu.pipeline_mode<synchronous>, transform_indices = @transform_0, window_bounds = array<i64: 13, 2, 1>}, {pipeline_mode = #tpu.pipeline_mode<synchronous>, transform_indices = @transform_1, window_bounds = array<i64: 13, 2, 1>}, {pipeline_mode = #tpu.pipeline_mode<synchronous>, transform_indices = @transform_2, window_bounds = array<i64: 13, 2, 1>}, {pipeline_mode = #tpu.pipeline_mode<synchronous>, transform_indices = @transform_3, window_bounds = array<i64: 13, 2, 1>}, {pipeline_mode = #tpu.pipeline_mode<synchronous>, transform_indices = @transform_4, window_bounds = array<i64: 13, 2, 64>}, {pipeline_mode = #tpu.pipeline_mode<synchronous>, transform_indices = @transform_5, window_bounds = array<i64: 2, 64>}, {pipeline_mode = #tpu.pipeline_mode<synchronous>, transform_indices = @transform_6, window_bounds = array<i64: 128, 128>}, {pipeline_mode = #tpu.pipeline_mode<synchronous>, transform_indices = @transform_7, window_bounds = array<i64: 1, 128>}, {pipeline_mode = #tpu.pipeline_mode<synchronous>, transform_indices = @transform_8, window_bounds = array<i64: 96, 160>}, {pipeline_mode = #tpu.pipeline_mode<synchronous>, transform_indices = @transform_9, window_bounds = array<i64: 1, 160>}, {pipeline_mode = #tpu.pipeline_mode<synchronous>, transform_indices = @transform_10, window_bounds = array<i64: 2, 32>}]} {
    %cst = arith.constant 0.000000e+00 : f32
    %0 = vector.broadcast %cst : f32 to vector<8x2x64xf32>
    %c0 = arith.constant 0 : index
    %c0_0 = arith.constant 0 : index
    %c0_1 = arith.constant 0 : index
    %1 = vector.load %arg12[%c0, %c0_0, %c0_1] : memref<8x2x64xf32, #tpu.memory_space<vmem>>, vector<8x2x64xf32>
    tpu.vector_store %arg12[%c0, %c0_0, %c0_1], %0 {strides = array<i32>} : memref<8x2x64xf32, #tpu.memory_space<vmem>>, vector<8x2x64xf32>,
    %c0_2 = arith.constant 0 : index
    %c0_3 = arith.constant 0 : index
    %2 = vector.load %arg6[%c0_2, %c0_3] : memref<2x64xf32, #tpu.memory_space<vmem>>, vector<2x64xf32>
    %cst_4 = arith.constant 0.000000e+00 : f32
    %3 = vector.broadcast %cst_4 : f32 to vector<2x32xf32>
    %cst_5 = arith.constant 0.000000e+00 : f32
    %4 = vector.broadcast %cst_5 : f32 to vector<2x32xf32>
    %c0_i32 = arith.constant 0 : i32
    %5 = arith.index_cast %c0_i32 : i32 to index
    %c0_6 = arith.constant 0 : index
    %c0_7 = arith.constant 0 : index
    %6 = vector.load %arg1[%5, %c0_6, %c0_7] : memref<13x2x1xi32, #tpu.memory_space<vmem>>, vector<1x2x1xi32>
    %7 = vector.shape_cast %6 : vector<1x2x1xi32> to vector<2x1xi32>
    %c0_i32_8 = arith.constant 0 : i32
    %8 = vector.broadcast %c0_i32_8 : i32 to vector<2x1xi32>
    %9 = arith.cmpi ne, %7, %8 : vector<2x1xi32>
    %10 = arith.index_cast %c0_i32 : i32 to index
    %c0_9 = arith.constant 0 : index
    %c0_10 = arith.constant 0 : index
    %11 = vector.load %arg2[%10, %c0_9, %c0_10] : memref<13x2x1xi32, #tpu.memory_space<vmem>>, vector<1x2x1xi32>
    %12 = vector.shape_cast %11 : vector<1x2x1xi32> to vector<2x1xi32>
    %c0_i32_11 = arith.constant 0 : i32
    %13 = vector.broadcast %c0_i32_11 : i32 to vector<2x1xi32>
    %14 = arith.cmpi ne, %12, %13 : vector<2x1xi32>
    %15 = arith.index_cast %c0_i32 : i32 to index
    %c0_12 = arith.constant 0 : index
    %c0_13 = arith.constant 0 : index
    %16 = vector.load %arg5[%15, %c0_12, %c0_13] : memref<13x2x64xf32, #tpu.memory_space<vmem>>, vector<1x2x64xf32>
    %17 = vector.shape_cast %16 : vector<1x2x64xf32> to vector<2x64xf32>
    %18 = vector.extract_strided_slice %2 {offsets = [0, 0], sizes = [2, 32], strides = [1, 1]} : vector<2x64xf32> to vector<2x32xf32>
    %19 = vector.extract_strided_slice %2 {offsets = [0, 32], sizes = [2, 32], strides = [1, 1]} : vector<2x64xf32> to vector<2x32xf32>
    %20 = vector.extract_strided_slice %2 {offsets = [0, 0], sizes = [2, 32], strides = [1, 1]} : vector<2x64xf32> to vector<2x32xf32>
    %21 = vector.extract_strided_slice %2 {offsets = [0, 32], sizes = [2, 32], strides = [1, 1]} : vector<2x64xf32> to vector<2x32xf32>
    %22 = vector.extract_strided_slice %17 {offsets = [0, 0], sizes = [2, 32], strides = [1, 1]} : vector<2x64xf32> to vector<2x32xf32>
    %23 = tpu.concatenate %22, %18, %20, %3 in 1 : vector<2x32xf32>, vector<2x32xf32>, vector<2x32xf32>, vector<2x32xf32> -> vector<2x128xf32>
    %c0_14 = arith.constant 0 : index
    %c0_15 = arith.constant 0 : index
    %24 = vector.load %arg7[%c0_14, %c0_15] : memref<128x128xf32, #tpu.memory_space<vmem>>, vector<128x128xf32>
    %cst_16 = arith.constant dense<0.000000e+00> : vector<2x128xf32>
    %25 = tpu.matmul %23, %24, %cst_16 {dimension_numbers = #tpu.dot_dimension_numbers<[1], [0], [0], [1], [0, 0, 1, 1], [], []>} : vector<2x128xf32>, vector<128x128xf32>, vector<2x128xf32> -> vector<2x128xf32>
    %c0_17 = arith.constant 0 : index
    %c0_18 = arith.constant 0 : index
    %26 = vector.load %arg8[%c0_17, %c0_18] : memref<1x128xf32, #tpu.memory_space<vmem>>, vector<1x128xf32>
    %27 = vector.broadcast %26 : vector<1x128xf32> to vector<2x128xf32>
    %28 = arith.addf %25, %27 : vector<2x128xf32>
    %29 = vector.extract_strided_slice %28 {offsets = [0, 0], sizes = [2, 32], strides = [1, 1]} : vector<2x128xf32> to vector<2x32xf32>
    %30 = arith.negf %29 : vector<2x32xf32>
    %31 = math.exp %30 : vector<2x32xf32>
    %cst_19 = arith.constant 1.000000e+00 : f32
    %32 = vector.broadcast %cst_19 : f32 to vector<2x32xf32>
    %33 = arith.addf %32, %31 : vector<2x32xf32>
    %34 = arith.divf %32, %33 : vector<2x32xf32>
    %35 = vector.extract_strided_slice %28 {offsets = [0, 32], sizes = [2, 32], strides = [1, 1]} : vector<2x128xf32> to vector<2x32xf32>
    %36 = arith.negf %35 : vector<2x32xf32>
    %37 = math.exp %36 : vector<2x32xf32>
    %cst_20 = arith.constant 1.000000e+00 : f32
    %38 = vector.broadcast %cst_20 : f32 to vector<2x32xf32>
    %39 = arith.addf %38, %37 : vector<2x32xf32>
    %40 = arith.divf %38, %39 : vector<2x32xf32>
    %41 = vector.extract_strided_slice %28 {offsets = [0, 64], sizes = [2, 32], strides = [1, 1]} : vector<2x128xf32> to vector<2x32xf32>
    %42 = math.tanh %41 : vector<2x32xf32>
    %43 = vector.extract_strided_slice %28 {offsets = [0, 96], sizes = [2, 32], strides = [1, 1]} : vector<2x128xf32> to vector<2x32xf32>
    %44 = arith.negf %43 : vector<2x32xf32>
    %45 = math.exp %44 : vector<2x32xf32>
    %cst_21 = arith.constant 1.000000e+00 : f32
    %46 = vector.broadcast %cst_21 : f32 to vector<2x32xf32>
    %47 = arith.addf %46, %45 : vector<2x32xf32>
    %48 = arith.divf %46, %47 : vector<2x32xf32>
    %49 = arith.mulf %40, %4 : vector<2x32xf32>
    %50 = arith.mulf %34, %42 : vector<2x32xf32>
    %51 = arith.addf %49, %50 : vector<2x32xf32>
    %52 = math.tanh %51 : vector<2x32xf32>
    %53 = arith.mulf %48, %52 : vector<2x32xf32>
    %54 = tpu.concatenate %20, %18, %53 in 1 : vector<2x32xf32>, vector<2x32xf32>, vector<2x32xf32> -> vector<2x96xf32>
    %c0_22 = arith.constant 0 : index
    %c0_23 = arith.constant 0 : index
    %55 = vector.load %arg9[%c0_22, %c0_23] : memref<96x160xf32, #tpu.memory_space<vmem>>, vector<96x160xf32>
    %cst_24 = arith.constant dense<0.000000e+00> : vector<2x160xf32>
    %56 = tpu.matmul %54, %55, %cst_24 {dimension_numbers = #tpu.dot_dimension_numbers<[1], [0], [0], [1], [0, 0, 1, 1], [], []>} : vector<2x96xf32>, vector<96x160xf32>, vector<2x160xf32> -> vector<2x160xf32>
    %c0_25 = arith.constant 0 : index
    %c0_26 = arith.constant 0 : index
    %57 = vector.load %arg10[%c0_25, %c0_26] : memref<1x160xf32, #tpu.memory_space<vmem>>, vector<1x160xf32>
    %58 = vector.broadcast %57 : vector<1x160xf32> to vector<2x160xf32>
    %59 = arith.addf %56, %58 : vector<2x160xf32>
    %60 = vector.extract_strided_slice %59 {offsets = [0, 0], sizes = [2, 32], strides = [1, 1]} : vector<2x160xf32> to vector<2x32xf32>
    %61 = vector.extract_strided_slice %59 {offsets = [0, 32], sizes = [2, 32], strides = [1, 1]} : vector<2x160xf32> to vector<2x32xf32>
    %62 = vector.extract_strided_slice %59 {offsets = [0, 64], sizes = [2, 32], strides = [1, 1]} : vector<2x160xf32> to vector<2x32xf32>
    %63 = vector.extract_strided_slice %59 {offsets = [0, 96], sizes = [2, 32], strides = [1, 1]} : vector<2x160xf32> to vector<2x32xf32>
    %64 = vector.extract_strided_slice %59 {offsets = [0, 128], sizes = [2, 32], strides = [1, 1]} : vector<2x160xf32> to vector<2x32xf32>
    %65 = math.tanh %60 : vector<2x32xf32>
    %66 = arith.negf %61 : vector<2x32xf32>
    %67 = math.exp %66 : vector<2x32xf32>
    %cst_27 = arith.constant 1.000000e+00 : f32
    %68 = vector.broadcast %cst_27 : f32 to vector<2x32xf32>
    %69 = arith.addf %68, %67 : vector<2x32xf32>
    %70 = arith.divf %68, %69 : vector<2x32xf32>
    %71 = arith.mulf %65, %70 : vector<2x32xf32>
    %72 = arith.negf %62 : vector<2x32xf32>
    %73 = math.exp %72 : vector<2x32xf32>
    %cst_28 = arith.constant 1.000000e+00 : f32
    %74 = vector.broadcast %cst_28 : f32 to vector<2x32xf32>
    %75 = arith.addf %74, %73 : vector<2x32xf32>
    %76 = arith.divf %74, %75 : vector<2x32xf32>
    %77 = arith.mulf %76, %21 : vector<2x32xf32>
    %78 = arith.addf %71, %77 : vector<2x32xf32>
    %79 = arith.negf %63 : vector<2x32xf32>
    %80 = math.exp %79 : vector<2x32xf32>
    %cst_29 = arith.constant 1.000000e+00 : f32
    %81 = vector.broadcast %cst_29 : f32 to vector<2x32xf32>
    %82 = arith.addf %81, %80 : vector<2x32xf32>
    %83 = arith.divf %81, %82 : vector<2x32xf32>
    %84 = arith.mulf %83, %19 : vector<2x32xf32>
    %85 = arith.addf %78, %84 : vector<2x32xf32>
    %86 = arith.negf %64 : vector<2x32xf32>
    %87 = math.exp %86 : vector<2x32xf32>
    %cst_30 = arith.constant 1.000000e+00 : f32
    %88 = vector.broadcast %cst_30 : f32 to vector<2x32xf32>
    %89 = arith.addf %88, %87 : vector<2x32xf32>
    %90 = arith.divf %88, %89 : vector<2x32xf32>
    %91 = math.tanh %85 : vector<2x32xf32>
    %92 = arith.mulf %90, %91 : vector<2x32xf32>
    %93 = tpu.concatenate %92, %85 in 1 : vector<2x32xf32>, vector<2x32xf32> -> vector<2x64xf32>
    %94 = tpu.iota {dimensions = array<i32: 0>} : vector<8x2x1xi32>
    %95 = arith.index_cast %c0_i32 : i32 to index
    %c0_31 = arith.constant 0 : index
    %c0_32 = arith.constant 0 : index
    %96 = vector.load %arg3[%95, %c0_31, %c0_32] : memref<13x2x1xi32, #tpu.memory_space<vmem>>, vector<1x2x1xi32>
    %97 = vector.shape_cast %96 : vector<1x2x1xi32> to vector<2x1xi32>
    %98 = vector.shape_cast %97 : vector<2x1xi32> to vector<1x2x1xi32>
    %99 = vector.broadcast %98 : vector<1x2x1xi32> to vector<8x2x1xi32>
    %100 = arith.cmpi eq, %94, %99 : vector<8x2x1xi32>
    %101 = vector.shape_cast %2 : vector<2x64xf32> to vector<1x2x64xf32>
    %c0_33 = arith.constant 0 : index
    %c0_34 = arith.constant 0 : index
    %c0_35 = arith.constant 0 : index
    %102 = vector.load %arg12[%c0_33, %c0_34, %c0_35] : memref<8x2x64xf32, #tpu.memory_space<vmem>>, vector<8x2x64xf32>
    %103 = vector.shape_cast %100 : vector<8x2x1xi1> to vector<8x2x1xi1>
    %104 = vector.broadcast %103 : vector<8x2x1xi1> to vector<8x2x64xi1>
    %105 = vector.shape_cast %101 : vector<1x2x64xf32> to vector<1x2x64xf32>
    %106 = vector.broadcast %105 : vector<1x2x64xf32> to vector<8x2x64xf32>
    %107 = arith.select %104, %106, %102 : vector<8x2x64xi1>, vector<8x2x64xf32>
    %c0_36 = arith.constant 0 : index
    %c0_37 = arith.constant 0 : index
    %c0_38 = arith.constant 0 : index
    %108 = vector.load %arg12[%c0_36, %c0_37, %c0_38] : memref<8x2x64xf32, #tpu.memory_space<vmem>>, vector<8x2x64xf32>
    tpu.vector_store %arg12[%c0_36, %c0_37, %c0_38], %107 {strides = array<i32>} : memref<8x2x64xf32, #tpu.memory_space<vmem>>, vector<8x2x64xf32>,
    %109 = arith.index_cast %c0_i32 : i32 to index
    %c0_39 = arith.constant 0 : index
    %c0_40 = arith.constant 0 : index
    %110 = vector.load %arg4[%109, %c0_39, %c0_40] : memref<13x2x1xi32, #tpu.memory_space<vmem>>, vector<1x2x1xi32>
    %111 = vector.shape_cast %110 : vector<1x2x1xi32> to vector<2x1xi32>
    %112 = vector.shape_cast %111 : vector<2x1xi32> to vector<1x2x1xi32>
    %113 = vector.broadcast %112 : vector<1x2x1xi32> to vector<8x2x1xi32>
    %114 = arith.cmpi eq, %94, %113 : vector<8x2x1xi32>
    %cst_41 = arith.constant 0.000000e+00 : f32
    %115 = vector.shape_cast %114 : vector<8x2x1xi1> to vector<8x2x1xi1>
    %116 = vector.broadcast %115 : vector<8x2x1xi1> to vector<8x2x64xi1>
    %117 = vector.broadcast %cst_41 : f32 to vector<8x2x64xf32>
    %118 = arith.select %116, %107, %117 : vector<8x2x64xi1>, vector<8x2x64xf32>
    %cst_42 = arith.constant dense<0.000000e+00> : vector<2x64xf32>
    %119 = vector.multi_reduction <add>, %118, %cst_42 [0] : vector<8x2x64xf32> to vector<2x64xf32>
    %120 = vector.shape_cast %14 : vector<2x1xi1> to vector<2x1xi1>
    %121 = vector.broadcast %120 : vector<2x1xi1> to vector<2x64xi1>
    %122 = arith.select %121, %93, %2 : vector<2x64xi1>, vector<2x64xf32>
    %123 = vector.shape_cast %9 : vector<2x1xi1> to vector<2x1xi1>
    %124 = vector.broadcast %123 : vector<2x1xi1> to vector<2x64xi1>
    %125 = arith.select %124, %17, %122 : vector<2x64xi1>, vector<2x64xf32>
    %126 = vector.shape_cast %14 : vector<2x1xi1> to vector<2x1xi1>
    %127 = vector.broadcast %126 : vector<2x1xi1> to vector<2x64xi1>
    %128 = arith.select %127, %119, %2 : vector<2x64xi1>, vector<2x64xf32>
    %129 = vector.shape_cast %9 : vector<2x1xi1> to vector<2x1xi1>
    %130 = vector.broadcast %129 : vector<2x1xi1> to vector<2x64xi1>
    %131 = arith.select %130, %2, %128 : vector<2x64xi1>, vector<2x64xf32>
    %c1_i32 = arith.constant 1 : i32
    %132 = arith.index_cast %c1_i32 : i32 to index
    %c0_43 = arith.constant 0 : index
    %c0_44 = arith.constant 0 : index
    %133 = vector.load %arg1[%132, %c0_43, %c0_44] : memref<13x2x1xi32, #tpu.memory_space<vmem>>, vector<1x2x1xi32>
    %134 = vector.shape_cast %133 : vector<1x2x1xi32> to vector<2x1xi32>
    %c0_i32_45 = arith.constant 0 : i32
    %135 = vector.broadcast %c0_i32_45 : i32 to vector<2x1xi32>
    %136 = arith.cmpi ne, %134, %135 : vector<2x1xi32>
    %137 = arith.index_cast %c1_i32 : i32 to index
    %c0_46 = arith.constant 0 : index
    %c0_47 = arith.constant 0 : index
    %138 = vector.load %arg2[%137, %c0_46, %c0_47] : memref<13x2x1xi32, #tpu.memory_space<vmem>>, vector<1x2x1xi32>
    %139 = vector.shape_cast %138 : vector<1x2x1xi32> to vector<2x1xi32>
    %c0_i32_48 = arith.constant 0 : i32
    %140 = vector.broadcast %c0_i32_48 : i32 to vector<2x1xi32>
    %141 = arith.cmpi ne, %139, %140 : vector<2x1xi32>
    %142 = arith.index_cast %c1_i32 : i32 to index
    %c0_49 = arith.constant 0 : index
    %c0_50 = arith.constant 0 : index
    %143 = vector.load %arg5[%142, %c0_49, %c0_50] : memref<13x2x64xf32, #tpu.memory_space<vmem>>, vector<1x2x64xf32>
    %144 = vector.shape_cast %143 : vector<1x2x64xf32> to vector<2x64xf32>
    %145 = vector.extract_strided_slice %125 {offsets = [0, 0], sizes = [2, 32], strides = [1, 1]} : vector<2x64xf32> to vector<2x32xf32>
    %146 = vector.extract_strided_slice %125 {offsets = [0, 32], sizes = [2, 32], strides = [1, 1]} : vector<2x64xf32> to vector<2x32xf32>
    %147 = vector.extract_strided_slice %131 {offsets = [0, 0], sizes = [2, 32], strides = [1, 1]} : vector<2x64xf32> to vector<2x32xf32>
    %148 = vector.extract_strided_slice %131 {offsets = [0, 32], sizes = [2, 32], strides = [1, 1]} : vector<2x64xf32> to vector<2x32xf32>
    %149 = vector.extract_strided_slice %144 {offsets = [0, 0], sizes = [2, 32], strides = [1, 1]} : vector<2x64xf32> to vector<2x32xf32>
    %150 = tpu.concatenate %149, %145, %147, %53 in 1 : vector<2x32xf32>, vector<2x32xf32>, vector<2x32xf32>, vector<2x32xf32> -> vector<2x128xf32>
    %c0_51 = arith.constant 0 : index
    %c0_52 = arith.constant 0 : index
    %151 = vector.load %arg7[%c0_51, %c0_52] : memref<128x128xf32, #tpu.memory_space<vmem>>, vector<128x128xf32>
    %cst_53 = arith.constant dense<0.000000e+00> : vector<2x128xf32>
    %152 = tpu.matmul %150, %151, %cst_53 {dimension_numbers = #tpu.dot_dimension_numbers<[1], [0], [0], [1], [0, 0, 1, 1], [], []>} : vector<2x128xf32>, vector<128x128xf32>, vector<2x128xf32> -> vector<2x128xf32>
    %c0_54 = arith.constant 0 : index
    %c0_55 = arith.constant 0 : index
    %153 = vector.load %arg8[%c0_54, %c0_55] : memref<1x128xf32, #tpu.memory_space<vmem>>, vector<1x128xf32>
    %154 = vector.broadcast %153 : vector<1x128xf32> to vector<2x128xf32>
    %155 = arith.addf %152, %154 : vector<2x128xf32>
    %156 = vector.extract_strided_slice %155 {offsets = [0, 0], sizes = [2, 32], strides = [1, 1]} : vector<2x128xf32> to vector<2x32xf32>
    %157 = arith.negf %156 : vector<2x32xf32>
    %158 = math.exp %157 : vector<2x32xf32>
    %cst_56 = arith.constant 1.000000e+00 : f32
    %159 = vector.broadcast %cst_56 : f32 to vector<2x32xf32>
    %160 = arith.addf %159, %158 : vector<2x32xf32>
    %161 = arith.divf %159, %160 : vector<2x32xf32>
    %162 = vector.extract_strided_slice %155 {offsets = [0, 32], sizes = [2, 32], strides = [1, 1]} : vector<2x128xf32> to vector<2x32xf32>
    %163 = arith.negf %162 : vector<2x32xf32>
    %164 = math.exp %163 : vector<2x32xf32>
    %cst_57 = arith.constant 1.000000e+00 : f32
    %165 = vector.broadcast %cst_57 : f32 to vector<2x32xf32>
    %166 = arith.addf %165, %164 : vector<2x32xf32>
    %167 = arith.divf %165, %166 : vector<2x32xf32>
    %168 = vector.extract_strided_slice %155 {offsets = [0, 64], sizes = [2, 32], strides = [1, 1]} : vector<2x128xf32> to vector<2x32xf32>
    %169 = math.tanh %168 : vector<2x32xf32>
    %170 = vector.extract_strided_slice %155 {offsets = [0, 96], sizes = [2, 32], strides = [1, 1]} : vector<2x128xf32> to vector<2x32xf32>
    %171 = arith.negf %170 : vector<2x32xf32>
    %172 = math.exp %171 : vector<2x32xf32>
    %cst_58 = arith.constant 1.000000e+00 : f32
    %173 = vector.broadcast %cst_58 : f32 to vector<2x32xf32>
    %174 = arith.addf %173, %172 : vector<2x32xf32>
    %175 = arith.divf %173, %174 : vector<2x32xf32>
    %176 = arith.mulf %167, %51 : vector<2x32xf32>
    %177 = arith.mulf %161, %169 : vector<2x32xf32>
    %178 = arith.addf %176, %177 : vector<2x32xf32>
    %179 = math.tanh %178 : vector<2x32xf32>
    %180 = arith.mulf %175, %179 : vector<2x32xf32>
    %181 = tpu.concatenate %147, %145, %180 in 1 : vector<2x32xf32>, vector<2x32xf32>, vector<2x32xf32> -> vector<2x96xf32>
    %c0_59 = arith.constant 0 : index
    %c0_60 = arith.constant 0 : index
    %182 = vector.load %arg9[%c0_59, %c0_60] : memref<96x160xf32, #tpu.memory_space<vmem>>, vector<96x160xf32>
    %cst_61 = arith.constant dense<0.000000e+00> : vector<2x160xf32>
    %183 = tpu.matmul %181, %182, %cst_61 {dimension_numbers = #tpu.dot_dimension_numbers<[1], [0], [0], [1], [0, 0, 1, 1], [], []>} : vector<2x96xf32>, vector<96x160xf32>, vector<2x160xf32> -> vector<2x160xf32>
    %c0_62 = arith.constant 0 : index
    %c0_63 = arith.constant 0 : index
    %184 = vector.load %arg10[%c0_62, %c0_63] : memref<1x160xf32, #tpu.memory_space<vmem>>, vector<1x160xf32>
    %185 = vector.broadcast %184 : vector<1x160xf32> to vector<2x160xf32>
    %186 = arith.addf %183, %185 : vector<2x160xf32>
    %187 = vector.extract_strided_slice %186 {offsets = [0, 0], sizes = [2, 32], strides = [1, 1]} : vector<2x160xf32> to vector<2x32xf32>
    %188 = vector.extract_strided_slice %186 {offsets = [0, 32], sizes = [2, 32], strides = [1, 1]} : vector<2x160xf32> to vector<2x32xf32>
    %189 = vector.extract_strided_slice %186 {offsets = [0, 64], sizes = [2, 32], strides = [1, 1]} : vector<2x160xf32> to vector<2x32xf32>
    %190 = vector.extract_strided_slice %186 {offsets = [0, 96], sizes = [2, 32], strides = [1, 1]} : vector<2x160xf32> to vector<2x32xf32>
    %191 = vector.extract_strided_slice %186 {offsets = [0, 128], sizes = [2, 32], strides = [1, 1]} : vector<2x160xf32> to vector<2x32xf32>
    %192 = math.tanh %187 : vector<2x32xf32>
    %193 = arith.negf %188 : vector<2x32xf32>
    %194 = math.exp %193 : vector<2x32xf32>
    %cst_64 = arith.constant 1.000000e+00 : f32
    %195 = vector.broadcast %cst_64 : f32 to vector<2x32xf32>
    %196 = arith.addf %195, %194 : vector<2x32xf32>
    %197 = arith.divf %195, %196 : vector<2x32xf32>
    %198 = arith.mulf %192, %197 : vector<2x32xf32>
    %199 = arith.negf %189 : vector<2x32xf32>
    %200 = math.exp %199 : vector<2x32xf32>
    %cst_65 = arith.constant 1.000000e+00 : f32
    %201 = vector.broadcast %cst_65 : f32 to vector<2x32xf32>
    %202 = arith.addf %201, %200 : vector<2x32xf32>
    %203 = arith.divf %201, %202 : vector<2x32xf32>
    %204 = arith.mulf %203, %148 : vector<2x32xf32>
    %205 = arith.addf %198, %204 : vector<2x32xf32>
    %206 = arith.negf %190 : vector<2x32xf32>
    %207 = math.exp %206 : vector<2x32xf32>
    %cst_66 = arith.constant 1.000000e+00 : f32
    %208 = vector.broadcast %cst_66 : f32 to vector<2x32xf32>
    %209 = arith.addf %208, %207 : vector<2x32xf32>
    %210 = arith.divf %208, %209 : vector<2x32xf32>
    %211 = arith.mulf %210, %146 : vector<2x32xf32>
    %212 = arith.addf %205, %211 : vector<2x32xf32>
    %213 = arith.negf %191 : vector<2x32xf32>
    %214 = math.exp %213 : vector<2x32xf32>
    %cst_67 = arith.constant 1.000000e+00 : f32
    %215 = vector.broadcast %cst_67 : f32 to vector<2x32xf32>
    %216 = arith.addf %215, %214 : vector<2x32xf32>
    %217 = arith.divf %215, %216 : vector<2x32xf32>
    %218 = math.tanh %212 : vector<2x32xf32>
    %219 = arith.mulf %217, %218 : vector<2x32xf32>
    %220 = tpu.concatenate %219, %212 in 1 : vector<2x32xf32>, vector<2x32xf32> -> vector<2x64xf32>
    %221 = tpu.iota {dimensions = array<i32: 0>} : vector<8x2x1xi32>
    %222 = arith.index_cast %c1_i32 : i32 to index
    %c0_68 = arith.constant 0 : index
    %c0_69 = arith.constant 0 : index
    %223 = vector.load %arg3[%222, %c0_68, %c0_69] : memref<13x2x1xi32, #tpu.memory_space<vmem>>, vector<1x2x1xi32>
    %224 = vector.shape_cast %223 : vector<1x2x1xi32> to vector<2x1xi32>
    %225 = vector.shape_cast %224 : vector<2x1xi32> to vector<1x2x1xi32>
    %226 = vector.broadcast %225 : vector<1x2x1xi32> to vector<8x2x1xi32>
    %227 = arith.cmpi eq, %221, %226 : vector<8x2x1xi32>
    %228 = vector.shape_cast %131 : vector<2x64xf32> to vector<1x2x64xf32>
    %c0_70 = arith.constant 0 : index
    %c0_71 = arith.constant 0 : index
    %c0_72 = arith.constant 0 : index
    %229 = vector.load %arg12[%c0_70, %c0_71, %c0_72] : memref<8x2x64xf32, #tpu.memory_space<vmem>>, vector<8x2x64xf32>
    %230 = vector.shape_cast %227 : vector<8x2x1xi1> to vector<8x2x1xi1>
    %231 = vector.broadcast %230 : vector<8x2x1xi1> to vector<8x2x64xi1>
    %232 = vector.shape_cast %228 : vector<1x2x64xf32> to vector<1x2x64xf32>
    %233 = vector.broadcast %232 : vector<1x2x64xf32> to vector<8x2x64xf32>
    %234 = arith.select %231, %233, %229 : vector<8x2x64xi1>, vector<8x2x64xf32>
    %c0_73 = arith.constant 0 : index
    %c0_74 = arith.constant 0 : index
    %c0_75 = arith.constant 0 : index
    %235 = vector.load %arg12[%c0_73, %c0_74, %c0_75] : memref<8x2x64xf32, #tpu.memory_space<vmem>>, vector<8x2x64xf32>
    tpu.vector_store %arg12[%c0_73, %c0_74, %c0_75], %234 {strides = array<i32>} : memref<8x2x64xf32, #tpu.memory_space<vmem>>, vector<8x2x64xf32>,
    %236 = arith.index_cast %c1_i32 : i32 to index
    %c0_76 = arith.constant 0 : index
    %c0_77 = arith.constant 0 : index
    %237 = vector.load %arg4[%236, %c0_76, %c0_77] : memref<13x2x1xi32, #tpu.memory_space<vmem>>, vector<1x2x1xi32>
    %238 = vector.shape_cast %237 : vector<1x2x1xi32> to vector<2x1xi32>
    %239 = vector.shape_cast %238 : vector<2x1xi32> to vector<1x2x1xi32>
    %240 = vector.broadcast %239 : vector<1x2x1xi32> to vector<8x2x1xi32>
    %241 = arith.cmpi eq, %221, %240 : vector<8x2x1xi32>
    %cst_78 = arith.constant 0.000000e+00 : f32
    %242 = vector.shape_cast %241 : vector<8x2x1xi1> to vector<8x2x1xi1>
    %243 = vector.broadcast %242 : vector<8x2x1xi1> to vector<8x2x64xi1>
    %244 = vector.broadcast %cst_78 : f32 to vector<8x2x64xf32>
    %245 = arith.select %243, %234, %244 : vector<8x2x64xi1>, vector<8x2x64xf32>
    %cst_79 = arith.constant dense<0.000000e+00> : vector<2x64xf32>
    %246 = vector.multi_reduction <add>, %245, %cst_79 [0] : vector<8x2x64xf32> to vector<2x64xf32>
    %247 = vector.shape_cast %141 : vector<2x1xi1> to vector<2x1xi1>
    %248 = vector.broadcast %247 : vector<2x1xi1> to vector<2x64xi1>
    %249 = arith.select %248, %220, %125 : vector<2x64xi1>, vector<2x64xf32>
    %250 = vector.shape_cast %136 : vector<2x1xi1> to vector<2x1xi1>
    %251 = vector.broadcast %250 : vector<2x1xi1> to vector<2x64xi1>
    %252 = arith.select %251, %144, %249 : vector<2x64xi1>, vector<2x64xf32>
    %253 = vector.shape_cast %141 : vector<2x1xi1> to vector<2x1xi1>
    %254 = vector.broadcast %253 : vector<2x1xi1> to vector<2x64xi1>
    %255 = arith.select %254, %246, %131 : vector<2x64xi1>, vector<2x64xf32>
    %256 = vector.shape_cast %136 : vector<2x1xi1> to vector<2x1xi1>
    %257 = vector.broadcast %256 : vector<2x1xi1> to vector<2x64xi1>
    %258 = arith.select %257, %125, %255 : vector<2x64xi1>, vector<2x64xf32>
    %c2_i32 = arith.constant 2 : i32
    %259 = arith.index_cast %c2_i32 : i32 to index
    %c0_80 = arith.constant 0 : index
    %c0_81 = arith.constant 0 : index
    %260 = vector.load %arg1[%259, %c0_80, %c0_81] : memref<13x2x1xi32, #tpu.memory_space<vmem>>, vector<1x2x1xi32>
    %261 = vector.shape_cast %260 : vector<1x2x1xi32> to vector<2x1xi32>
    %c0_i32_82 = arith.constant 0 : i32
    %262 = vector.broadcast %c0_i32_82 : i32 to vector<2x1xi32>
    %263 = arith.cmpi ne, %261, %262 : vector<2x1xi32>
    %264 = arith.index_cast %c2_i32 : i32 to index
    %c0_83 = arith.constant 0 : index
    %c0_84 = arith.constant 0 : index
    %265 = vector.load %arg2[%264, %c0_83, %c0_84] : memref<13x2x1xi32, #tpu.memory_space<vmem>>, vector<1x2x1xi32>
    %266 = vector.shape_cast %265 : vector<1x2x1xi32> to vector<2x1xi32>
    %c0_i32_85 = arith.constant 0 : i32
    %267 = vector.broadcast %c0_i32_85 : i32 to vector<2x1xi32>
    %268 = arith.cmpi ne, %266, %267 : vector<2x1xi32>
    %269 = arith.index_cast %c2_i32 : i32 to index
    %c0_86 = arith.constant 0 : index
    %c0_87 = arith.constant 0 : index
    %270 = vector.load %arg5[%269, %c0_86, %c0_87] : memref<13x2x64xf32, #tpu.memory_space<vmem>>, vector<1x2x64xf32>
    %271 = vector.shape_cast %270 : vector<1x2x64xf32> to vector<2x64xf32>
    %272 = vector.extract_strided_slice %252 {offsets = [0, 0], sizes = [2, 32], strides = [1, 1]} : vector<2x64xf32> to vector<2x32xf32>
    %273 = vector.extract_strided_slice %252 {offsets = [0, 32], sizes = [2, 32], strides = [1, 1]} : vector<2x64xf32> to vector<2x32xf32>
    %274 = vector.extract_strided_slice %258 {offsets = [0, 0], sizes = [2, 32], strides = [1, 1]} : vector<2x64xf32> to vector<2x32xf32>
    %275 = vector.extract_strided_slice %258 {offsets = [0, 32], sizes = [2, 32], strides = [1, 1]} : vector<2x64xf32> to vector<2x32xf32>
    %276 = vector.extract_strided_slice %271 {offsets = [0, 0], sizes = [2, 32], strides = [1, 1]} : vector<2x64xf32> to vector<2x32xf32>
    %277 = tpu.concatenate %276, %272, %274, %180 in 1 : vector<2x32xf32>, vector<2x32xf32>, vector<2x32xf32>, vector<2x32xf32> -> vector<2x128xf32>
    %c0_88 = arith.constant 0 : index
    %c0_89 = arith.constant 0 : index
    %278 = vector.load %arg7[%c0_88, %c0_89] : memref<128x128xf32, #tpu.memory_space<vmem>>, vector<128x128xf32>
    %cst_90 = arith.constant dense<0.000000e+00> : vector<2x128xf32>
    %279 = tpu.matmul %277, %278, %cst_90 {dimension_numbers = #tpu.dot_dimension_numbers<[1], [0], [0], [1], [0, 0, 1, 1], [], []>} : vector<2x128xf32>, vector<128x128xf32>, vector<2x128xf32> -> vector<2x128xf32>
    %c0_91 = arith.constant 0 : index
    %c0_92 = arith.constant 0 : index
    %280 = vector.load %arg8[%c0_91, %c0_92] : memref<1x128xf32, #tpu.memory_space<vmem>>, vector<1x128xf32>
    %281 = vector.broadcast %280 : vector<1x128xf32> to vector<2x128xf32>
    %282 = arith.addf %279, %281 : vector<2x128xf32>
    %283 = vector.extract_strided_slice %282 {offsets = [0, 0], sizes = [2, 32], strides = [1, 1]} : vector<2x128xf32> to vector<2x32xf32>
    %284 = arith.negf %283 : vector<2x32xf32>
    %285 = math.exp %284 : vector<2x32xf32>
    %cst_93 = arith.constant 1.000000e+00 : f32
    %286 = vector.broadcast %cst_93 : f32 to vector<2x32xf32>
    %287 = arith.addf %286, %285 : vector<2x32xf32>
    %288 = arith.divf %286, %287 : vector<2x32xf32>
    %289 = vector.extract_strided_slice %282 {offsets = [0, 32], sizes = [2, 32], strides = [1, 1]} : vector<2x128xf32> to vector<2x32xf32>
    %290 = arith.negf %289 : vector<2x32xf32>
    %291 = math.exp %290 : vector<2x32xf32>
    %cst_94 = arith.constant 1.000000e+00 : f32
    %292 = vector.broadcast %cst_94 : f32 to vector<2x32xf32>
    %293 = arith.addf %292, %291 : vector<2x32xf32>
    %294 = arith.divf %292, %293 : vector<2x32xf32>
    %295 = vector.extract_strided_slice %282 {offsets = [0, 64], sizes = [2, 32], strides = [1, 1]} : vector<2x128xf32> to vector<2x32xf32>
    %296 = math.tanh %295 : vector<2x32xf32>
    %297 = vector.extract_strided_slice %282 {offsets = [0, 96], sizes = [2, 32], strides = [1, 1]} : vector<2x128xf32> to vector<2x32xf32>
    %298 = arith.negf %297 : vector<2x32xf32>
    %299 = math.exp %298 : vector<2x32xf32>
    %cst_95 = arith.constant 1.000000e+00 : f32
    %300 = vector.broadcast %cst_95 : f32 to vector<2x32xf32>
    %301 = arith.addf %300, %299 : vector<2x32xf32>
    %302 = arith.divf %300, %301 : vector<2x32xf32>
    %303 = arith.mulf %294, %178 : vector<2x32xf32>
    %304 = arith.mulf %288, %296 : vector<2x32xf32>
    %305 = arith.addf %303, %304 : vector<2x32xf32>
    %306 = math.tanh %305 : vector<2x32xf32>
    %307 = arith.mulf %302, %306 : vector<2x32xf32>
    %308 = tpu.concatenate %274, %272, %307 in 1 : vector<2x32xf32>, vector<2x32xf32>, vector<2x32xf32> -> vector<2x96xf32>
    %c0_96 = arith.constant 0 : index
    %c0_97 = arith.constant 0 : index
    %309 = vector.load %arg9[%c0_96, %c0_97] : memref<96x160xf32, #tpu.memory_space<vmem>>, vector<96x160xf32>
    %cst_98 = arith.constant dense<0.000000e+00> : vector<2x160xf32>
    %310 = tpu.matmul %308, %309, %cst_98 {dimension_numbers = #tpu.dot_dimension_numbers<[1], [0], [0], [1], [0, 0, 1, 1], [], []>} : vector<2x96xf32>, vector<96x160xf32>, vector<2x160xf32> -> vector<2x160xf32>
    %c0_99 = arith.constant 0 : index
    %c0_100 = arith.constant 0 : index
    %311 = vector.load %arg10[%c0_99, %c0_100] : memref<1x160xf32, #tpu.memory_space<vmem>>, vector<1x160xf32>
    %312 = vector.broadcast %311 : vector<1x160xf32> to vector<2x160xf32>
    %313 = arith.addf %310, %312 : vector<2x160xf32>
    %314 = vector.extract_strided_slice %313 {offsets = [0, 0], sizes = [2, 32], strides = [1, 1]} : vector<2x160xf32> to vector<2x32xf32>
    %315 = vector.extract_strided_slice %313 {offsets = [0, 32], sizes = [2, 32], strides = [1, 1]} : vector<2x160xf32> to vector<2x32xf32>
    %316 = vector.extract_strided_slice %313 {offsets = [0, 64], sizes = [2, 32], strides = [1, 1]} : vector<2x160xf32> to vector<2x32xf32>
    %317 = vector.extract_strided_slice %313 {offsets = [0, 96], sizes = [2, 32], strides = [1, 1]} : vector<2x160xf32> to vector<2x32xf32>
    %318 = vector.extract_strided_slice %313 {offsets = [0, 128], sizes = [2, 32], strides = [1, 1]} : vector<2x160xf32> to vector<2x32xf32>
    %319 = math.tanh %314 : vector<2x32xf32>
    %320 = arith.negf %315 : vector<2x32xf32>
    %321 = math.exp %320 : vector<2x32xf32>
    %cst_101 = arith.constant 1.000000e+00 : f32
    %322 = vector.broadcast %cst_101 : f32 to vector<2x32xf32>
    %323 = arith.addf %322, %321 : vector<2x32xf32>
    %324 = arith.divf %322, %323 : vector<2x32xf32>
    %325 = arith.mulf %319, %324 : vector<2x32xf32>
    %326 = arith.negf %316 : vector<2x32xf32>
    %327 = math.exp %326 : vector<2x32xf32>
    %cst_102 = arith.constant 1.000000e+00 : f32
    %328 = vector.broadcast %cst_102 : f32 to vector<2x32xf32>
    %329 = arith.addf %328, %327 : vector<2x32xf32>
    %330 = arith.divf %328, %329 : vector<2x32xf32>
    %331 = arith.mulf %330, %275 : vector<2x32xf32>
    %332 = arith.addf %325, %331 : vector<2x32xf32>
    %333 = arith.negf %317 : vector<2x32xf32>
    %334 = math.exp %333 : vector<2x32xf32>
    %cst_103 = arith.constant 1.000000e+00 : f32
    %335 = vector.broadcast %cst_103 : f32 to vector<2x32xf32>
    %336 = arith.addf %335, %334 : vector<2x32xf32>
    %337 = arith.divf %335, %336 : vector<2x32xf32>
    %338 = arith.mulf %337, %273 : vector<2x32xf32>
    %339 = arith.addf %332, %338 : vector<2x32xf32>
    %340 = arith.negf %318 : vector<2x32xf32>
    %341 = math.exp %340 : vector<2x32xf32>
    %cst_104 = arith.constant 1.000000e+00 : f32
    %342 = vector.broadcast %cst_104 : f32 to vector<2x32xf32>
    %343 = arith.addf %342, %341 : vector<2x32xf32>
    %344 = arith.divf %342, %343 : vector<2x32xf32>
    %345 = math.tanh %339 : vector<2x32xf32>
    %346 = arith.mulf %344, %345 : vector<2x32xf32>
    %347 = tpu.concatenate %346, %339 in 1 : vector<2x32xf32>, vector<2x32xf32> -> vector<2x64xf32>
    %348 = tpu.iota {dimensions = array<i32: 0>} : vector<8x2x1xi32>
    %349 = arith.index_cast %c2_i32 : i32 to index
    %c0_105 = arith.constant 0 : index
    %c0_106 = arith.constant 0 : index
    %350 = vector.load %arg3[%349, %c0_105, %c0_106] : memref<13x2x1xi32, #tpu.memory_space<vmem>>, vector<1x2x1xi32>
    %351 = vector.shape_cast %350 : vector<1x2x1xi32> to vector<2x1xi32>
    %352 = vector.shape_cast %351 : vector<2x1xi32> to vector<1x2x1xi32>
    %353 = vector.broadcast %352 : vector<1x2x1xi32> to vector<8x2x1xi32>
    %354 = arith.cmpi eq, %348, %353 : vector<8x2x1xi32>
    %355 = vector.shape_cast %258 : vector<2x64xf32> to vector<1x2x64xf32>
    %c0_107 = arith.constant 0 : index
    %c0_108 = arith.constant 0 : index
    %c0_109 = arith.constant 0 : index
    %356 = vector.load %arg12[%c0_107, %c0_108, %c0_109] : memref<8x2x64xf32, #tpu.memory_space<vmem>>, vector<8x2x64xf32>
    %357 = vector.shape_cast %354 : vector<8x2x1xi1> to vector<8x2x1xi1>
    %358 = vector.broadcast %357 : vector<8x2x1xi1> to vector<8x2x64xi1>
    %359 = vector.shape_cast %355 : vector<1x2x64xf32> to vector<1x2x64xf32>
    %360 = vector.broadcast %359 : vector<1x2x64xf32> to vector<8x2x64xf32>
    %361 = arith.select %358, %360, %356 : vector<8x2x64xi1>, vector<8x2x64xf32>
    %c0_110 = arith.constant 0 : index
    %c0_111 = arith.constant 0 : index
    %c0_112 = arith.constant 0 : index
    %362 = vector.load %arg12[%c0_110, %c0_111, %c0_112] : memref<8x2x64xf32, #tpu.memory_space<vmem>>, vector<8x2x64xf32>
    tpu.vector_store %arg12[%c0_110, %c0_111, %c0_112], %361 {strides = array<i32>} : memref<8x2x64xf32, #tpu.memory_space<vmem>>, vector<8x2x64xf32>,
    %363 = arith.index_cast %c2_i32 : i32 to index
    %c0_113 = arith.constant 0 : index
    %c0_114 = arith.constant 0 : index
    %364 = vector.load %arg4[%363, %c0_113, %c0_114] : memref<13x2x1xi32, #tpu.memory_space<vmem>>, vector<1x2x1xi32>
    %365 = vector.shape_cast %364 : vector<1x2x1xi32> to vector<2x1xi32>
    %366 = vector.shape_cast %365 : vector<2x1xi32> to vector<1x2x1xi32>
    %367 = vector.broadcast %366 : vector<1x2x1xi32> to vector<8x2x1xi32>
    %368 = arith.cmpi eq, %348, %367 : vector<8x2x1xi32>
    %cst_115 = arith.constant 0.000000e+00 : f32
    %369 = vector.shape_cast %368 : vector<8x2x1xi1> to vector<8x2x1xi1>
    %370 = vector.broadcast %369 : vector<8x2x1xi1> to vector<8x2x64xi1>
    %371 = vector.broadcast %cst_115 : f32 to vector<8x2x64xf32>
    %372 = arith.select %370, %361, %371 : vector<8x2x64xi1>, vector<8x2x64xf32>
    %cst_116 = arith.constant dense<0.000000e+00> : vector<2x64xf32>
    %373 = vector.multi_reduction <add>, %372, %cst_116 [0] : vector<8x2x64xf32> to vector<2x64xf32>
    %374 = vector.shape_cast %268 : vector<2x1xi1> to vector<2x1xi1>
    %375 = vector.broadcast %374 : vector<2x1xi1> to vector<2x64xi1>
    %376 = arith.select %375, %347, %252 : vector<2x64xi1>, vector<2x64xf32>
    %377 = vector.shape_cast %263 : vector<2x1xi1> to vector<2x1xi1>
    %378 = vector.broadcast %377 : vector<2x1xi1> to vector<2x64xi1>
    %379 = arith.select %378, %271, %376 : vector<2x64xi1>, vector<2x64xf32>
    %380 = vector.shape_cast %268 : vector<2x1xi1> to vector<2x1xi1>
    %381 = vector.broadcast %380 : vector<2x1xi1> to vector<2x64xi1>
    %382 = arith.select %381, %373, %258 : vector<2x64xi1>, vector<2x64xf32>
    %383 = vector.shape_cast %263 : vector<2x1xi1> to vector<2x1xi1>
    %384 = vector.broadcast %383 : vector<2x1xi1> to vector<2x64xi1>
    %385 = arith.select %384, %252, %382 : vector<2x64xi1>, vector<2x64xf32>
    %c3_i32 = arith.constant 3 : i32
    %386 = arith.index_cast %c3_i32 : i32 to index
    %c0_117 = arith.constant 0 : index
    %c0_118 = arith.constant 0 : index
    %387 = vector.load %arg1[%386, %c0_117, %c0_118] : memref<13x2x1xi32, #tpu.memory_space<vmem>>, vector<1x2x1xi32>
    %388 = vector.shape_cast %387 : vector<1x2x1xi32> to vector<2x1xi32>
    %c0_i32_119 = arith.constant 0 : i32
    %389 = vector.broadcast %c0_i32_119 : i32 to vector<2x1xi32>
    %390 = arith.cmpi ne, %388, %389 : vector<2x1xi32>
    %391 = arith.index_cast %c3_i32 : i32 to index
    %c0_120 = arith.constant 0 : index
    %c0_121 = arith.constant 0 : index
    %392 = vector.load %arg2[%391, %c0_120, %c0_121] : memref<13x2x1xi32, #tpu.memory_space<vmem>>, vector<1x2x1xi32>
    %393 = vector.shape_cast %392 : vector<1x2x1xi32> to vector<2x1xi32>
    %c0_i32_122 = arith.constant 0 : i32
    %394 = vector.broadcast %c0_i32_122 : i32 to vector<2x1xi32>
    %395 = arith.cmpi ne, %393, %394 : vector<2x1xi32>
    %396 = arith.index_cast %c3_i32 : i32 to index
    %c0_123 = arith.constant 0 : index
    %c0_124 = arith.constant 0 : index
    %397 = vector.load %arg5[%396, %c0_123, %c0_124] : memref<13x2x64xf32, #tpu.memory_space<vmem>>, vector<1x2x64xf32>
    %398 = vector.shape_cast %397 : vector<1x2x64xf32> to vector<2x64xf32>
    %399 = vector.extract_strided_slice %379 {offsets = [0, 0], sizes = [2, 32], strides = [1, 1]} : vector<2x64xf32> to vector<2x32xf32>
    %400 = vector.extract_strided_slice %379 {offsets = [0, 32], sizes = [2, 32], strides = [1, 1]} : vector<2x64xf32> to vector<2x32xf32>
    %401 = vector.extract_strided_slice %385 {offsets = [0, 0], sizes = [2, 32], strides = [1, 1]} : vector<2x64xf32> to vector<2x32xf32>
    %402 = vector.extract_strided_slice %385 {offsets = [0, 32], sizes = [2, 32], strides = [1, 1]} : vector<2x64xf32> to vector<2x32xf32>
    %403 = vector.extract_strided_slice %398 {offsets = [0, 0], sizes = [2, 32], strides = [1, 1]} : vector<2x64xf32> to vector<2x32xf32>
    %404 = tpu.concatenate %403, %399, %401, %307 in 1 : vector<2x32xf32>, vector<2x32xf32>, vector<2x32xf32>, vector<2x32xf32> -> vector<2x128xf32>
    %c0_125 = arith.constant 0 : index
    %c0_126 = arith.constant 0 : index
    %405 = vector.load %arg7[%c0_125, %c0_126] : memref<128x128xf32, #tpu.memory_space<vmem>>, vector<128x128xf32>
    %cst_127 = arith.constant dense<0.000000e+00> : vector<2x128xf32>
    %406 = tpu.matmul %404, %405, %cst_127 {dimension_numbers = #tpu.dot_dimension_numbers<[1], [0], [0], [1], [0, 0, 1, 1], [], []>} : vector<2x128xf32>, vector<128x128xf32>, vector<2x128xf32> -> vector<2x128xf32>
    %c0_128 = arith.constant 0 : index
    %c0_129 = arith.constant 0 : index
    %407 = vector.load %arg8[%c0_128, %c0_129] : memref<1x128xf32, #tpu.memory_space<vmem>>, vector<1x128xf32>
    %408 = vector.broadcast %407 : vector<1x128xf32> to vector<2x128xf32>
    %409 = arith.addf %406, %408 : vector<2x128xf32>
    %410 = vector.extract_strided_slice %409 {offsets = [0, 0], sizes = [2, 32], strides = [1, 1]} : vector<2x128xf32> to vector<2x32xf32>
    %411 = arith.negf %410 : vector<2x32xf32>
    %412 = math.exp %411 : vector<2x32xf32>
    %cst_130 = arith.constant 1.000000e+00 : f32
    %413 = vector.broadcast %cst_130 : f32 to vector<2x32xf32>
    %414 = arith.addf %413, %412 : vector<2x32xf32>
    %415 = arith.divf %413, %414 : vector<2x32xf32>
    %416 = vector.extract_strided_slice %409 {offsets = [0, 32], sizes = [2, 32], strides = [1, 1]} : vector<2x128xf32> to vector<2x32xf32>
    %417 = arith.negf %416 : vector<2x32xf32>
    %418 = math.exp %417 : vector<2x32xf32>
    %cst_131 = arith.constant 1.000000e+00 : f32
    %419 = vector.broadcast %cst_131 : f32 to vector<2x32xf32>
    %420 = arith.addf %419, %418 : vector<2x32xf32>
    %421 = arith.divf %419, %420 : vector<2x32xf32>
    %422 = vector.extract_strided_slice %409 {offsets = [0, 64], sizes = [2, 32], strides = [1, 1]} : vector<2x128xf32> to vector<2x32xf32>
    %423 = math.tanh %422 : vector<2x32xf32>
    %424 = vector.extract_strided_slice %409 {offsets = [0, 96], sizes = [2, 32], strides = [1, 1]} : vector<2x128xf32> to vector<2x32xf32>
    %425 = arith.negf %424 : vector<2x32xf32>
    %426 = math.exp %425 : vector<2x32xf32>
    %cst_132 = arith.constant 1.000000e+00 : f32
    %427 = vector.broadcast %cst_132 : f32 to vector<2x32xf32>
    %428 = arith.addf %427, %426 : vector<2x32xf32>
    %429 = arith.divf %427, %428 : vector<2x32xf32>
    %430 = arith.mulf %421, %305 : vector<2x32xf32>
    %431 = arith.mulf %415, %423 : vector<2x32xf32>
    %432 = arith.addf %430, %431 : vector<2x32xf32>
    %433 = math.tanh %432 : vector<2x32xf32>
    %434 = arith.mulf %429, %433 : vector<2x32xf32>
    %435 = tpu.concatenate %401, %399, %434 in 1 : vector<2x32xf32>, vector<2x32xf32>, vector<2x32xf32> -> vector<2x96xf32>
    %c0_133 = arith.constant 0 : index
    %c0_134 = arith.constant 0 : index
    %436 = vector.load %arg9[%c0_133, %c0_134] : memref<96x160xf32, #tpu.memory_space<vmem>>, vector<96x160xf32>
    %cst_135 = arith.constant dense<0.000000e+00> : vector<2x160xf32>
    %437 = tpu.matmul %435, %436, %cst_135 {dimension_numbers = #tpu.dot_dimension_numbers<[1], [0], [0], [1], [0, 0, 1, 1], [], []>} : vector<2x96xf32>, vector<96x160xf32>, vector<2x160xf32> -> vector<2x160xf32>
    %c0_136 = arith.constant 0 : index
    %c0_137 = arith.constant 0 : index
    %438 = vector.load %arg10[%c0_136, %c0_137] : memref<1x160xf32, #tpu.memory_space<vmem>>, vector<1x160xf32>
    %439 = vector.broadcast %438 : vector<1x160xf32> to vector<2x160xf32>
    %440 = arith.addf %437, %439 : vector<2x160xf32>
    %441 = vector.extract_strided_slice %440 {offsets = [0, 0], sizes = [2, 32], strides = [1, 1]} : vector<2x160xf32> to vector<2x32xf32>
    %442 = vector.extract_strided_slice %440 {offsets = [0, 32], sizes = [2, 32], strides = [1, 1]} : vector<2x160xf32> to vector<2x32xf32>
    %443 = vector.extract_strided_slice %440 {offsets = [0, 64], sizes = [2, 32], strides = [1, 1]} : vector<2x160xf32> to vector<2x32xf32>
    %444 = vector.extract_strided_slice %440 {offsets = [0, 96], sizes = [2, 32], strides = [1, 1]} : vector<2x160xf32> to vector<2x32xf32>
    %445 = vector.extract_strided_slice %440 {offsets = [0, 128], sizes = [2, 32], strides = [1, 1]} : vector<2x160xf32> to vector<2x32xf32>
    %446 = math.tanh %441 : vector<2x32xf32>
    %447 = arith.negf %442 : vector<2x32xf32>
    %448 = math.exp %447 : vector<2x32xf32>
    %cst_138 = arith.constant 1.000000e+00 : f32
    %449 = vector.broadcast %cst_138 : f32 to vector<2x32xf32>
    %450 = arith.addf %449, %448 : vector<2x32xf32>
    %451 = arith.divf %449, %450 : vector<2x32xf32>
    %452 = arith.mulf %446, %451 : vector<2x32xf32>
    %453 = arith.negf %443 : vector<2x32xf32>
    %454 = math.exp %453 : vector<2x32xf32>
    %cst_139 = arith.constant 1.000000e+00 : f32
    %455 = vector.broadcast %cst_139 : f32 to vector<2x32xf32>
    %456 = arith.addf %455, %454 : vector<2x32xf32>
    %457 = arith.divf %455, %456 : vector<2x32xf32>
    %458 = arith.mulf %457, %402 : vector<2x32xf32>
    %459 = arith.addf %452, %458 : vector<2x32xf32>
    %460 = arith.negf %444 : vector<2x32xf32>
    %461 = math.exp %460 : vector<2x32xf32>
    %cst_140 = arith.constant 1.000000e+00 : f32
    %462 = vector.broadcast %cst_140 : f32 to vector<2x32xf32>
    %463 = arith.addf %462, %461 : vector<2x32xf32>
    %464 = arith.divf %462, %463 : vector<2x32xf32>
    %465 = arith.mulf %464, %400 : vector<2x32xf32>
    %466 = arith.addf %459, %465 : vector<2x32xf32>
    %467 = arith.negf %445 : vector<2x32xf32>
    %468 = math.exp %467 : vector<2x32xf32>
    %cst_141 = arith.constant 1.000000e+00 : f32
    %469 = vector.broadcast %cst_141 : f32 to vector<2x32xf32>
    %470 = arith.addf %469, %468 : vector<2x32xf32>
    %471 = arith.divf %469, %470 : vector<2x32xf32>
    %472 = math.tanh %466 : vector<2x32xf32>
    %473 = arith.mulf %471, %472 : vector<2x32xf32>
    %474 = tpu.concatenate %473, %466 in 1 : vector<2x32xf32>, vector<2x32xf32> -> vector<2x64xf32>
    %475 = tpu.iota {dimensions = array<i32: 0>} : vector<8x2x1xi32>
    %476 = arith.index_cast %c3_i32 : i32 to index
    %c0_142 = arith.constant 0 : index
    %c0_143 = arith.constant 0 : index
    %477 = vector.load %arg3[%476, %c0_142, %c0_143] : memref<13x2x1xi32, #tpu.memory_space<vmem>>, vector<1x2x1xi32>
    %478 = vector.shape_cast %477 : vector<1x2x1xi32> to vector<2x1xi32>
    %479 = vector.shape_cast %478 : vector<2x1xi32> to vector<1x2x1xi32>
    %480 = vector.broadcast %479 : vector<1x2x1xi32> to vector<8x2x1xi32>
    %481 = arith.cmpi eq, %475, %480 : vector<8x2x1xi32>
    %482 = vector.shape_cast %385 : vector<2x64xf32> to vector<1x2x64xf32>
    %c0_144 = arith.constant 0 : index
    %c0_145 = arith.constant 0 : index
    %c0_146 = arith.constant 0 : index
    %483 = vector.load %arg12[%c0_144, %c0_145, %c0_146] : memref<8x2x64xf32, #tpu.memory_space<vmem>>, vector<8x2x64xf32>
    %484 = vector.shape_cast %481 : vector<8x2x1xi1> to vector<8x2x1xi1>
    %485 = vector.broadcast %484 : vector<8x2x1xi1> to vector<8x2x64xi1>
    %486 = vector.shape_cast %482 : vector<1x2x64xf32> to vector<1x2x64xf32>
    %487 = vector.broadcast %486 : vector<1x2x64xf32> to vector<8x2x64xf32>
    %488 = arith.select %485, %487, %483 : vector<8x2x64xi1>, vector<8x2x64xf32>
    %c0_147 = arith.constant 0 : index
    %c0_148 = arith.constant 0 : index
    %c0_149 = arith.constant 0 : index
    %489 = vector.load %arg12[%c0_147, %c0_148, %c0_149] : memref<8x2x64xf32, #tpu.memory_space<vmem>>, vector<8x2x64xf32>
    tpu.vector_store %arg12[%c0_147, %c0_148, %c0_149], %488 {strides = array<i32>} : memref<8x2x64xf32, #tpu.memory_space<vmem>>, vector<8x2x64xf32>,
    %490 = arith.index_cast %c3_i32 : i32 to index
    %c0_150 = arith.constant 0 : index
    %c0_151 = arith.constant 0 : index
    %491 = vector.load %arg4[%490, %c0_150, %c0_151] : memref<13x2x1xi32, #tpu.memory_space<vmem>>, vector<1x2x1xi32>
    %492 = vector.shape_cast %491 : vector<1x2x1xi32> to vector<2x1xi32>
    %493 = vector.shape_cast %492 : vector<2x1xi32> to vector<1x2x1xi32>
    %494 = vector.broadcast %493 : vector<1x2x1xi32> to vector<8x2x1xi32>
    %495 = arith.cmpi eq, %475, %494 : vector<8x2x1xi32>
    %cst_152 = arith.constant 0.000000e+00 : f32
    %496 = vector.shape_cast %495 : vector<8x2x1xi1> to vector<8x2x1xi1>
    %497 = vector.broadcast %496 : vector<8x2x1xi1> to vector<8x2x64xi1>
    %498 = vector.broadcast %cst_152 : f32 to vector<8x2x64xf32>
    %499 = arith.select %497, %488, %498 : vector<8x2x64xi1>, vector<8x2x64xf32>
    %cst_153 = arith.constant dense<0.000000e+00> : vector<2x64xf32>
    %500 = vector.multi_reduction <add>, %499, %cst_153 [0] : vector<8x2x64xf32> to vector<2x64xf32>
    %501 = vector.shape_cast %395 : vector<2x1xi1> to vector<2x1xi1>
    %502 = vector.broadcast %501 : vector<2x1xi1> to vector<2x64xi1>
    %503 = arith.select %502, %474, %379 : vector<2x64xi1>, vector<2x64xf32>
    %504 = vector.shape_cast %390 : vector<2x1xi1> to vector<2x1xi1>
    %505 = vector.broadcast %504 : vector<2x1xi1> to vector<2x64xi1>
    %506 = arith.select %505, %398, %503 : vector<2x64xi1>, vector<2x64xf32>
    %507 = vector.shape_cast %395 : vector<2x1xi1> to vector<2x1xi1>
    %508 = vector.broadcast %507 : vector<2x1xi1> to vector<2x64xi1>
    %509 = arith.select %508, %500, %385 : vector<2x64xi1>, vector<2x64xf32>
    %510 = vector.shape_cast %390 : vector<2x1xi1> to vector<2x1xi1>
    %511 = vector.broadcast %510 : vector<2x1xi1> to vector<2x64xi1>
    %512 = arith.select %511, %379, %509 : vector<2x64xi1>, vector<2x64xf32>
    %c4_i32 = arith.constant 4 : i32
    %513 = arith.index_cast %c4_i32 : i32 to index
    %c0_154 = arith.constant 0 : index
    %c0_155 = arith.constant 0 : index
    %514 = vector.load %arg1[%513, %c0_154, %c0_155] : memref<13x2x1xi32, #tpu.memory_space<vmem>>, vector<1x2x1xi32>
    %515 = vector.shape_cast %514 : vector<1x2x1xi32> to vector<2x1xi32>
    %c0_i32_156 = arith.constant 0 : i32
    %516 = vector.broadcast %c0_i32_156 : i32 to vector<2x1xi32>
    %517 = arith.cmpi ne, %515, %516 : vector<2x1xi32>
    %518 = arith.index_cast %c4_i32 : i32 to index
    %c0_157 = arith.constant 0 : index
    %c0_158 = arith.constant 0 : index
    %519 = vector.load %arg2[%518, %c0_157, %c0_158] : memref<13x2x1xi32, #tpu.memory_space<vmem>>, vector<1x2x1xi32>
    %520 = vector.shape_cast %519 : vector<1x2x1xi32> to vector<2x1xi32>
    %c0_i32_159 = arith.constant 0 : i32
    %521 = vector.broadcast %c0_i32_159 : i32 to vector<2x1xi32>
    %522 = arith.cmpi ne, %520, %521 : vector<2x1xi32>
    %523 = arith.index_cast %c4_i32 : i32 to index
    %c0_160 = arith.constant 0 : index
    %c0_161 = arith.constant 0 : index
    %524 = vector.load %arg5[%523, %c0_160, %c0_161] : memref<13x2x64xf32, #tpu.memory_space<vmem>>, vector<1x2x64xf32>
    %525 = vector.shape_cast %524 : vector<1x2x64xf32> to vector<2x64xf32>
    %526 = vector.extract_strided_slice %506 {offsets = [0, 0], sizes = [2, 32], strides = [1, 1]} : vector<2x64xf32> to vector<2x32xf32>
    %527 = vector.extract_strided_slice %506 {offsets = [0, 32], sizes = [2, 32], strides = [1, 1]} : vector<2x64xf32> to vector<2x32xf32>
    %528 = vector.extract_strided_slice %512 {offsets = [0, 0], sizes = [2, 32], strides = [1, 1]} : vector<2x64xf32> to vector<2x32xf32>
    %529 = vector.extract_strided_slice %512 {offsets = [0, 32], sizes = [2, 32], strides = [1, 1]} : vector<2x64xf32> to vector<2x32xf32>
    %530 = vector.extract_strided_slice %525 {offsets = [0, 0], sizes = [2, 32], strides = [1, 1]} : vector<2x64xf32> to vector<2x32xf32>
    %531 = tpu.concatenate %530, %526, %528, %434 in 1 : vector<2x32xf32>, vector<2x32xf32>, vector<2x32xf32>, vector<2x32xf32> -> vector<2x128xf32>
    %c0_162 = arith.constant 0 : index
    %c0_163 = arith.constant 0 : index
    %532 = vector.load %arg7[%c0_162, %c0_163] : memref<128x128xf32, #tpu.memory_space<vmem>>, vector<128x128xf32>
    %cst_164 = arith.constant dense<0.000000e+00> : vector<2x128xf32>
    %533 = tpu.matmul %531, %532, %cst_164 {dimension_numbers = #tpu.dot_dimension_numbers<[1], [0], [0], [1], [0, 0, 1, 1], [], []>} : vector<2x128xf32>, vector<128x128xf32>, vector<2x128xf32> -> vector<2x128xf32>
    %c0_165 = arith.constant 0 : index
    %c0_166 = arith.constant 0 : index
    %534 = vector.load %arg8[%c0_165, %c0_166] : memref<1x128xf32, #tpu.memory_space<vmem>>, vector<1x128xf32>
    %535 = vector.broadcast %534 : vector<1x128xf32> to vector<2x128xf32>
    %536 = arith.addf %533, %535 : vector<2x128xf32>
    %537 = vector.extract_strided_slice %536 {offsets = [0, 0], sizes = [2, 32], strides = [1, 1]} : vector<2x128xf32> to vector<2x32xf32>
    %538 = arith.negf %537 : vector<2x32xf32>
    %539 = math.exp %538 : vector<2x32xf32>
    %cst_167 = arith.constant 1.000000e+00 : f32
    %540 = vector.broadcast %cst_167 : f32 to vector<2x32xf32>
    %541 = arith.addf %540, %539 : vector<2x32xf32>
    %542 = arith.divf %540, %541 : vector<2x32xf32>
    %543 = vector.extract_strided_slice %536 {offsets = [0, 32], sizes = [2, 32], strides = [1, 1]} : vector<2x128xf32> to vector<2x32xf32>
    %544 = arith.negf %543 : vector<2x32xf32>
    %545 = math.exp %544 : vector<2x32xf32>
    %cst_168 = arith.constant 1.000000e+00 : f32
    %546 = vector.broadcast %cst_168 : f32 to vector<2x32xf32>
    %547 = arith.addf %546, %545 : vector<2x32xf32>
    %548 = arith.divf %546, %547 : vector<2x32xf32>
    %549 = vector.extract_strided_slice %536 {offsets = [0, 64], sizes = [2, 32], strides = [1, 1]} : vector<2x128xf32> to vector<2x32xf32>
    %550 = math.tanh %549 : vector<2x32xf32>
    %551 = vector.extract_strided_slice %536 {offsets = [0, 96], sizes = [2, 32], strides = [1, 1]} : vector<2x128xf32> to vector<2x32xf32>
    %552 = arith.negf %551 : vector<2x32xf32>
    %553 = math.exp %552 : vector<2x32xf32>
    %cst_169 = arith.constant 1.000000e+00 : f32
    %554 = vector.broadcast %cst_169 : f32 to vector<2x32xf32>
    %555 = arith.addf %554, %553 : vector<2x32xf32>
    %556 = arith.divf %554, %555 : vector<2x32xf32>
    %557 = arith.mulf %548, %432 : vector<2x32xf32>
    %558 = arith.mulf %542, %550 : vector<2x32xf32>
    %559 = arith.addf %557, %558 : vector<2x32xf32>
    %560 = math.tanh %559 : vector<2x32xf32>
    %561 = arith.mulf %556, %560 : vector<2x32xf32>
    %562 = tpu.concatenate %528, %526, %561 in 1 : vector<2x32xf32>, vector<2x32xf32>, vector<2x32xf32> -> vector<2x96xf32>
    %c0_170 = arith.constant 0 : index
    %c0_171 = arith.constant 0 : index
    %563 = vector.load %arg9[%c0_170, %c0_171] : memref<96x160xf32, #tpu.memory_space<vmem>>, vector<96x160xf32>
    %cst_172 = arith.constant dense<0.000000e+00> : vector<2x160xf32>
    %564 = tpu.matmul %562, %563, %cst_172 {dimension_numbers = #tpu.dot_dimension_numbers<[1], [0], [0], [1], [0, 0, 1, 1], [], []>} : vector<2x96xf32>, vector<96x160xf32>, vector<2x160xf32> -> vector<2x160xf32>
    %c0_173 = arith.constant 0 : index
    %c0_174 = arith.constant 0 : index
    %565 = vector.load %arg10[%c0_173, %c0_174] : memref<1x160xf32, #tpu.memory_space<vmem>>, vector<1x160xf32>
    %566 = vector.broadcast %565 : vector<1x160xf32> to vector<2x160xf32>
    %567 = arith.addf %564, %566 : vector<2x160xf32>
    %568 = vector.extract_strided_slice %567 {offsets = [0, 0], sizes = [2, 32], strides = [1, 1]} : vector<2x160xf32> to vector<2x32xf32>
    %569 = vector.extract_strided_slice %567 {offsets = [0, 32], sizes = [2, 32], strides = [1, 1]} : vector<2x160xf32> to vector<2x32xf32>
    %570 = vector.extract_strided_slice %567 {offsets = [0, 64], sizes = [2, 32], strides = [1, 1]} : vector<2x160xf32> to vector<2x32xf32>
    %571 = vector.extract_strided_slice %567 {offsets = [0, 96], sizes = [2, 32], strides = [1, 1]} : vector<2x160xf32> to vector<2x32xf32>
    %572 = vector.extract_strided_slice %567 {offsets = [0, 128], sizes = [2, 32], strides = [1, 1]} : vector<2x160xf32> to vector<2x32xf32>
    %573 = math.tanh %568 : vector<2x32xf32>
    %574 = arith.negf %569 : vector<2x32xf32>
    %575 = math.exp %574 : vector<2x32xf32>
    %cst_175 = arith.constant 1.000000e+00 : f32
    %576 = vector.broadcast %cst_175 : f32 to vector<2x32xf32>
    %577 = arith.addf %576, %575 : vector<2x32xf32>
    %578 = arith.divf %576, %577 : vector<2x32xf32>
    %579 = arith.mulf %573, %578 : vector<2x32xf32>
    %580 = arith.negf %570 : vector<2x32xf32>
    %581 = math.exp %580 : vector<2x32xf32>
    %cst_176 = arith.constant 1.000000e+00 : f32
    %582 = vector.broadcast %cst_176 : f32 to vector<2x32xf32>
    %583 = arith.addf %582, %581 : vector<2x32xf32>
    %584 = arith.divf %582, %583 : vector<2x32xf32>
    %585 = arith.mulf %584, %529 : vector<2x32xf32>
    %586 = arith.addf %579, %585 : vector<2x32xf32>
    %587 = arith.negf %571 : vector<2x32xf32>
    %588 = math.exp %587 : vector<2x32xf32>
    %cst_177 = arith.constant 1.000000e+00 : f32
    %589 = vector.broadcast %cst_177 : f32 to vector<2x32xf32>
    %590 = arith.addf %589, %588 : vector<2x32xf32>
    %591 = arith.divf %589, %590 : vector<2x32xf32>
    %592 = arith.mulf %591, %527 : vector<2x32xf32>
    %593 = arith.addf %586, %592 : vector<2x32xf32>
    %594 = arith.negf %572 : vector<2x32xf32>
    %595 = math.exp %594 : vector<2x32xf32>
    %cst_178 = arith.constant 1.000000e+00 : f32
    %596 = vector.broadcast %cst_178 : f32 to vector<2x32xf32>
    %597 = arith.addf %596, %595 : vector<2x32xf32>
    %598 = arith.divf %596, %597 : vector<2x32xf32>
    %599 = math.tanh %593 : vector<2x32xf32>
    %600 = arith.mulf %598, %599 : vector<2x32xf32>
    %601 = tpu.concatenate %600, %593 in 1 : vector<2x32xf32>, vector<2x32xf32> -> vector<2x64xf32>
    %602 = tpu.iota {dimensions = array<i32: 0>} : vector<8x2x1xi32>
    %603 = arith.index_cast %c4_i32 : i32 to index
    %c0_179 = arith.constant 0 : index
    %c0_180 = arith.constant 0 : index
    %604 = vector.load %arg3[%603, %c0_179, %c0_180] : memref<13x2x1xi32, #tpu.memory_space<vmem>>, vector<1x2x1xi32>
    %605 = vector.shape_cast %604 : vector<1x2x1xi32> to vector<2x1xi32>
    %606 = vector.shape_cast %605 : vector<2x1xi32> to vector<1x2x1xi32>
    %607 = vector.broadcast %606 : vector<1x2x1xi32> to vector<8x2x1xi32>
    %608 = arith.cmpi eq, %602, %607 : vector<8x2x1xi32>
    %609 = vector.shape_cast %512 : vector<2x64xf32> to vector<1x2x64xf32>
    %c0_181 = arith.constant 0 : index
    %c0_182 = arith.constant 0 : index
    %c0_183 = arith.constant 0 : index
    %610 = vector.load %arg12[%c0_181, %c0_182, %c0_183] : memref<8x2x64xf32, #tpu.memory_space<vmem>>, vector<8x2x64xf32>
    %611 = vector.shape_cast %608 : vector<8x2x1xi1> to vector<8x2x1xi1>
    %612 = vector.broadcast %611 : vector<8x2x1xi1> to vector<8x2x64xi1>
    %613 = vector.shape_cast %609 : vector<1x2x64xf32> to vector<1x2x64xf32>
    %614 = vector.broadcast %613 : vector<1x2x64xf32> to vector<8x2x64xf32>
    %615 = arith.select %612, %614, %610 : vector<8x2x64xi1>, vector<8x2x64xf32>
    %c0_184 = arith.constant 0 : index
    %c0_185 = arith.constant 0 : index
    %c0_186 = arith.constant 0 : index
    %616 = vector.load %arg12[%c0_184, %c0_185, %c0_186] : memref<8x2x64xf32, #tpu.memory_space<vmem>>, vector<8x2x64xf32>
    tpu.vector_store %arg12[%c0_184, %c0_185, %c0_186], %615 {strides = array<i32>} : memref<8x2x64xf32, #tpu.memory_space<vmem>>, vector<8x2x64xf32>,
    %617 = arith.index_cast %c4_i32 : i32 to index
    %c0_187 = arith.constant 0 : index
    %c0_188 = arith.constant 0 : index
    %618 = vector.load %arg4[%617, %c0_187, %c0_188] : memref<13x2x1xi32, #tpu.memory_space<vmem>>, vector<1x2x1xi32>
    %619 = vector.shape_cast %618 : vector<1x2x1xi32> to vector<2x1xi32>
    %620 = vector.shape_cast %619 : vector<2x1xi32> to vector<1x2x1xi32>
    %621 = vector.broadcast %620 : vector<1x2x1xi32> to vector<8x2x1xi32>
    %622 = arith.cmpi eq, %602, %621 : vector<8x2x1xi32>
    %cst_189 = arith.constant 0.000000e+00 : f32
    %623 = vector.shape_cast %622 : vector<8x2x1xi1> to vector<8x2x1xi1>
    %624 = vector.broadcast %623 : vector<8x2x1xi1> to vector<8x2x64xi1>
    %625 = vector.broadcast %cst_189 : f32 to vector<8x2x64xf32>
    %626 = arith.select %624, %615, %625 : vector<8x2x64xi1>, vector<8x2x64xf32>
    %cst_190 = arith.constant dense<0.000000e+00> : vector<2x64xf32>
    %627 = vector.multi_reduction <add>, %626, %cst_190 [0] : vector<8x2x64xf32> to vector<2x64xf32>
    %628 = vector.shape_cast %522 : vector<2x1xi1> to vector<2x1xi1>
    %629 = vector.broadcast %628 : vector<2x1xi1> to vector<2x64xi1>
    %630 = arith.select %629, %601, %506 : vector<2x64xi1>, vector<2x64xf32>
    %631 = vector.shape_cast %517 : vector<2x1xi1> to vector<2x1xi1>
    %632 = vector.broadcast %631 : vector<2x1xi1> to vector<2x64xi1>
    %633 = arith.select %632, %525, %630 : vector<2x64xi1>, vector<2x64xf32>
    %634 = vector.shape_cast %522 : vector<2x1xi1> to vector<2x1xi1>
    %635 = vector.broadcast %634 : vector<2x1xi1> to vector<2x64xi1>
    %636 = arith.select %635, %627, %512 : vector<2x64xi1>, vector<2x64xf32>
    %637 = vector.shape_cast %517 : vector<2x1xi1> to vector<2x1xi1>
    %638 = vector.broadcast %637 : vector<2x1xi1> to vector<2x64xi1>
    %639 = arith.select %638, %506, %636 : vector<2x64xi1>, vector<2x64xf32>
    %c5_i32 = arith.constant 5 : i32
    %640 = arith.index_cast %c5_i32 : i32 to index
    %c0_191 = arith.constant 0 : index
    %c0_192 = arith.constant 0 : index
    %641 = vector.load %arg1[%640, %c0_191, %c0_192] : memref<13x2x1xi32, #tpu.memory_space<vmem>>, vector<1x2x1xi32>
    %642 = vector.shape_cast %641 : vector<1x2x1xi32> to vector<2x1xi32>
    %c0_i32_193 = arith.constant 0 : i32
    %643 = vector.broadcast %c0_i32_193 : i32 to vector<2x1xi32>
    %644 = arith.cmpi ne, %642, %643 : vector<2x1xi32>
    %645 = arith.index_cast %c5_i32 : i32 to index
    %c0_194 = arith.constant 0 : index
    %c0_195 = arith.constant 0 : index
    %646 = vector.load %arg2[%645, %c0_194, %c0_195] : memref<13x2x1xi32, #tpu.memory_space<vmem>>, vector<1x2x1xi32>
    %647 = vector.shape_cast %646 : vector<1x2x1xi32> to vector<2x1xi32>
    %c0_i32_196 = arith.constant 0 : i32
    %648 = vector.broadcast %c0_i32_196 : i32 to vector<2x1xi32>
    %649 = arith.cmpi ne, %647, %648 : vector<2x1xi32>
    %650 = arith.index_cast %c5_i32 : i32 to index
    %c0_197 = arith.constant 0 : index
    %c0_198 = arith.constant 0 : index
    %651 = vector.load %arg5[%650, %c0_197, %c0_198] : memref<13x2x64xf32, #tpu.memory_space<vmem>>, vector<1x2x64xf32>
    %652 = vector.shape_cast %651 : vector<1x2x64xf32> to vector<2x64xf32>
    %653 = vector.extract_strided_slice %633 {offsets = [0, 0], sizes = [2, 32], strides = [1, 1]} : vector<2x64xf32> to vector<2x32xf32>
    %654 = vector.extract_strided_slice %633 {offsets = [0, 32], sizes = [2, 32], strides = [1, 1]} : vector<2x64xf32> to vector<2x32xf32>
    %655 = vector.extract_strided_slice %639 {offsets = [0, 0], sizes = [2, 32], strides = [1, 1]} : vector<2x64xf32> to vector<2x32xf32>
    %656 = vector.extract_strided_slice %639 {offsets = [0, 32], sizes = [2, 32], strides = [1, 1]} : vector<2x64xf32> to vector<2x32xf32>
    %657 = vector.extract_strided_slice %652 {offsets = [0, 0], sizes = [2, 32], strides = [1, 1]} : vector<2x64xf32> to vector<2x32xf32>
    %658 = tpu.concatenate %657, %653, %655, %561 in 1 : vector<2x32xf32>, vector<2x32xf32>, vector<2x32xf32>, vector<2x32xf32> -> vector<2x128xf32>
    %c0_199 = arith.constant 0 : index
    %c0_200 = arith.constant 0 : index
    %659 = vector.load %arg7[%c0_199, %c0_200] : memref<128x128xf32, #tpu.memory_space<vmem>>, vector<128x128xf32>
    %cst_201 = arith.constant dense<0.000000e+00> : vector<2x128xf32>
    %660 = tpu.matmul %658, %659, %cst_201 {dimension_numbers = #tpu.dot_dimension_numbers<[1], [0], [0], [1], [0, 0, 1, 1], [], []>} : vector<2x128xf32>, vector<128x128xf32>, vector<2x128xf32> -> vector<2x128xf32>
    %c0_202 = arith.constant 0 : index
    %c0_203 = arith.constant 0 : index
    %661 = vector.load %arg8[%c0_202, %c0_203] : memref<1x128xf32, #tpu.memory_space<vmem>>, vector<1x128xf32>
    %662 = vector.broadcast %661 : vector<1x128xf32> to vector<2x128xf32>
    %663 = arith.addf %660, %662 : vector<2x128xf32>
    %664 = vector.extract_strided_slice %663 {offsets = [0, 0], sizes = [2, 32], strides = [1, 1]} : vector<2x128xf32> to vector<2x32xf32>
    %665 = arith.negf %664 : vector<2x32xf32>
    %666 = math.exp %665 : vector<2x32xf32>
    %cst_204 = arith.constant 1.000000e+00 : f32
    %667 = vector.broadcast %cst_204 : f32 to vector<2x32xf32>
    %668 = arith.addf %667, %666 : vector<2x32xf32>
    %669 = arith.divf %667, %668 : vector<2x32xf32>
    %670 = vector.extract_strided_slice %663 {offsets = [0, 32], sizes = [2, 32], strides = [1, 1]} : vector<2x128xf32> to vector<2x32xf32>
    %671 = arith.negf %670 : vector<2x32xf32>
    %672 = math.exp %671 : vector<2x32xf32>
    %cst_205 = arith.constant 1.000000e+00 : f32
    %673 = vector.broadcast %cst_205 : f32 to vector<2x32xf32>
    %674 = arith.addf %673, %672 : vector<2x32xf32>
    %675 = arith.divf %673, %674 : vector<2x32xf32>
    %676 = vector.extract_strided_slice %663 {offsets = [0, 64], sizes = [2, 32], strides = [1, 1]} : vector<2x128xf32> to vector<2x32xf32>
    %677 = math.tanh %676 : vector<2x32xf32>
    %678 = vector.extract_strided_slice %663 {offsets = [0, 96], sizes = [2, 32], strides = [1, 1]} : vector<2x128xf32> to vector<2x32xf32>
    %679 = arith.negf %678 : vector<2x32xf32>
    %680 = math.exp %679 : vector<2x32xf32>
    %cst_206 = arith.constant 1.000000e+00 : f32
    %681 = vector.broadcast %cst_206 : f32 to vector<2x32xf32>
    %682 = arith.addf %681, %680 : vector<2x32xf32>
    %683 = arith.divf %681, %682 : vector<2x32xf32>
    %684 = arith.mulf %675, %559 : vector<2x32xf32>
    %685 = arith.mulf %669, %677 : vector<2x32xf32>
    %686 = arith.addf %684, %685 : vector<2x32xf32>
    %687 = math.tanh %686 : vector<2x32xf32>
    %688 = arith.mulf %683, %687 : vector<2x32xf32>
    %689 = tpu.concatenate %655, %653, %688 in 1 : vector<2x32xf32>, vector<2x32xf32>, vector<2x32xf32> -> vector<2x96xf32>
    %c0_207 = arith.constant 0 : index
    %c0_208 = arith.constant 0 : index
    %690 = vector.load %arg9[%c0_207, %c0_208] : memref<96x160xf32, #tpu.memory_space<vmem>>, vector<96x160xf32>
    %cst_209 = arith.constant dense<0.000000e+00> : vector<2x160xf32>
    %691 = tpu.matmul %689, %690, %cst_209 {dimension_numbers = #tpu.dot_dimension_numbers<[1], [0], [0], [1], [0, 0, 1, 1], [], []>} : vector<2x96xf32>, vector<96x160xf32>, vector<2x160xf32> -> vector<2x160xf32>
    %c0_210 = arith.constant 0 : index
    %c0_211 = arith.constant 0 : index
    %692 = vector.load %arg10[%c0_210, %c0_211] : memref<1x160xf32, #tpu.memory_space<vmem>>, vector<1x160xf32>
    %693 = vector.broadcast %692 : vector<1x160xf32> to vector<2x160xf32>
    %694 = arith.addf %691, %693 : vector<2x160xf32>
    %695 = vector.extract_strided_slice %694 {offsets = [0, 0], sizes = [2, 32], strides = [1, 1]} : vector<2x160xf32> to vector<2x32xf32>
    %696 = vector.extract_strided_slice %694 {offsets = [0, 32], sizes = [2, 32], strides = [1, 1]} : vector<2x160xf32> to vector<2x32xf32>
    %697 = vector.extract_strided_slice %694 {offsets = [0, 64], sizes = [2, 32], strides = [1, 1]} : vector<2x160xf32> to vector<2x32xf32>
    %698 = vector.extract_strided_slice %694 {offsets = [0, 96], sizes = [2, 32], strides = [1, 1]} : vector<2x160xf32> to vector<2x32xf32>
    %699 = vector.extract_strided_slice %694 {offsets = [0, 128], sizes = [2, 32], strides = [1, 1]} : vector<2x160xf32> to vector<2x32xf32>
    %700 = math.tanh %695 : vector<2x32xf32>
    %701 = arith.negf %696 : vector<2x32xf32>
    %702 = math.exp %701 : vector<2x32xf32>
    %cst_212 = arith.constant 1.000000e+00 : f32
    %703 = vector.broadcast %cst_212 : f32 to vector<2x32xf32>
    %704 = arith.addf %703, %702 : vector<2x32xf32>
    %705 = arith.divf %703, %704 : vector<2x32xf32>
    %706 = arith.mulf %700, %705 : vector<2x32xf32>
    %707 = arith.negf %697 : vector<2x32xf32>
    %708 = math.exp %707 : vector<2x32xf32>
    %cst_213 = arith.constant 1.000000e+00 : f32
    %709 = vector.broadcast %cst_213 : f32 to vector<2x32xf32>
    %710 = arith.addf %709, %708 : vector<2x32xf32>
    %711 = arith.divf %709, %710 : vector<2x32xf32>
    %712 = arith.mulf %711, %656 : vector<2x32xf32>
    %713 = arith.addf %706, %712 : vector<2x32xf32>
    %714 = arith.negf %698 : vector<2x32xf32>
    %715 = math.exp %714 : vector<2x32xf32>
    %cst_214 = arith.constant 1.000000e+00 : f32
    %716 = vector.broadcast %cst_214 : f32 to vector<2x32xf32>
    %717 = arith.addf %716, %715 : vector<2x32xf32>
    %718 = arith.divf %716, %717 : vector<2x32xf32>
    %719 = arith.mulf %718, %654 : vector<2x32xf32>
    %720 = arith.addf %713, %719 : vector<2x32xf32>
    %721 = arith.negf %699 : vector<2x32xf32>
    %722 = math.exp %721 : vector<2x32xf32>
    %cst_215 = arith.constant 1.000000e+00 : f32
    %723 = vector.broadcast %cst_215 : f32 to vector<2x32xf32>
    %724 = arith.addf %723, %722 : vector<2x32xf32>
    %725 = arith.divf %723, %724 : vector<2x32xf32>
    %726 = math.tanh %720 : vector<2x32xf32>
    %727 = arith.mulf %725, %726 : vector<2x32xf32>
    %728 = tpu.concatenate %727, %720 in 1 : vector<2x32xf32>, vector<2x32xf32> -> vector<2x64xf32>
    %729 = tpu.iota {dimensions = array<i32: 0>} : vector<8x2x1xi32>
    %730 = arith.index_cast %c5_i32 : i32 to index
    %c0_216 = arith.constant 0 : index
    %c0_217 = arith.constant 0 : index
    %731 = vector.load %arg3[%730, %c0_216, %c0_217] : memref<13x2x1xi32, #tpu.memory_space<vmem>>, vector<1x2x1xi32>
    %732 = vector.shape_cast %731 : vector<1x2x1xi32> to vector<2x1xi32>
    %733 = vector.shape_cast %732 : vector<2x1xi32> to vector<1x2x1xi32>
    %734 = vector.broadcast %733 : vector<1x2x1xi32> to vector<8x2x1xi32>
    %735 = arith.cmpi eq, %729, %734 : vector<8x2x1xi32>
    %736 = vector.shape_cast %639 : vector<2x64xf32> to vector<1x2x64xf32>
    %c0_218 = arith.constant 0 : index
    %c0_219 = arith.constant 0 : index
    %c0_220 = arith.constant 0 : index
    %737 = vector.load %arg12[%c0_218, %c0_219, %c0_220] : memref<8x2x64xf32, #tpu.memory_space<vmem>>, vector<8x2x64xf32>
    %738 = vector.shape_cast %735 : vector<8x2x1xi1> to vector<8x2x1xi1>
    %739 = vector.broadcast %738 : vector<8x2x1xi1> to vector<8x2x64xi1>
    %740 = vector.shape_cast %736 : vector<1x2x64xf32> to vector<1x2x64xf32>
    %741 = vector.broadcast %740 : vector<1x2x64xf32> to vector<8x2x64xf32>
    %742 = arith.select %739, %741, %737 : vector<8x2x64xi1>, vector<8x2x64xf32>
    %c0_221 = arith.constant 0 : index
    %c0_222 = arith.constant 0 : index
    %c0_223 = arith.constant 0 : index
    %743 = vector.load %arg12[%c0_221, %c0_222, %c0_223] : memref<8x2x64xf32, #tpu.memory_space<vmem>>, vector<8x2x64xf32>
    tpu.vector_store %arg12[%c0_221, %c0_222, %c0_223], %742 {strides = array<i32>} : memref<8x2x64xf32, #tpu.memory_space<vmem>>, vector<8x2x64xf32>,
    %744 = arith.index_cast %c5_i32 : i32 to index
    %c0_224 = arith.constant 0 : index
    %c0_225 = arith.constant 0 : index
    %745 = vector.load %arg4[%744, %c0_224, %c0_225] : memref<13x2x1xi32, #tpu.memory_space<vmem>>, vector<1x2x1xi32>
    %746 = vector.shape_cast %745 : vector<1x2x1xi32> to vector<2x1xi32>
    %747 = vector.shape_cast %746 : vector<2x1xi32> to vector<1x2x1xi32>
    %748 = vector.broadcast %747 : vector<1x2x1xi32> to vector<8x2x1xi32>
    %749 = arith.cmpi eq, %729, %748 : vector<8x2x1xi32>
    %cst_226 = arith.constant 0.000000e+00 : f32
    %750 = vector.shape_cast %749 : vector<8x2x1xi1> to vector<8x2x1xi1>
    %751 = vector.broadcast %750 : vector<8x2x1xi1> to vector<8x2x64xi1>
    %752 = vector.broadcast %cst_226 : f32 to vector<8x2x64xf32>
    %753 = arith.select %751, %742, %752 : vector<8x2x64xi1>, vector<8x2x64xf32>
    %cst_227 = arith.constant dense<0.000000e+00> : vector<2x64xf32>
    %754 = vector.multi_reduction <add>, %753, %cst_227 [0] : vector<8x2x64xf32> to vector<2x64xf32>
    %755 = vector.shape_cast %649 : vector<2x1xi1> to vector<2x1xi1>
    %756 = vector.broadcast %755 : vector<2x1xi1> to vector<2x64xi1>
    %757 = arith.select %756, %728, %633 : vector<2x64xi1>, vector<2x64xf32>
    %758 = vector.shape_cast %644 : vector<2x1xi1> to vector<2x1xi1>
    %759 = vector.broadcast %758 : vector<2x1xi1> to vector<2x64xi1>
    %760 = arith.select %759, %652, %757 : vector<2x64xi1>, vector<2x64xf32>
    %761 = vector.shape_cast %649 : vector<2x1xi1> to vector<2x1xi1>
    %762 = vector.broadcast %761 : vector<2x1xi1> to vector<2x64xi1>
    %763 = arith.select %762, %754, %639 : vector<2x64xi1>, vector<2x64xf32>
    %764 = vector.shape_cast %644 : vector<2x1xi1> to vector<2x1xi1>
    %765 = vector.broadcast %764 : vector<2x1xi1> to vector<2x64xi1>
    %766 = arith.select %765, %633, %763 : vector<2x64xi1>, vector<2x64xf32>
    %c6_i32 = arith.constant 6 : i32
    %767 = arith.index_cast %c6_i32 : i32 to index
    %c0_228 = arith.constant 0 : index
    %c0_229 = arith.constant 0 : index
    %768 = vector.load %arg1[%767, %c0_228, %c0_229] : memref<13x2x1xi32, #tpu.memory_space<vmem>>, vector<1x2x1xi32>
    %769 = vector.shape_cast %768 : vector<1x2x1xi32> to vector<2x1xi32>
    %c0_i32_230 = arith.constant 0 : i32
    %770 = vector.broadcast %c0_i32_230 : i32 to vector<2x1xi32>
    %771 = arith.cmpi ne, %769, %770 : vector<2x1xi32>
    %772 = arith.index_cast %c6_i32 : i32 to index
    %c0_231 = arith.constant 0 : index
    %c0_232 = arith.constant 0 : index
    %773 = vector.load %arg2[%772, %c0_231, %c0_232] : memref<13x2x1xi32, #tpu.memory_space<vmem>>, vector<1x2x1xi32>
    %774 = vector.shape_cast %773 : vector<1x2x1xi32> to vector<2x1xi32>
    %c0_i32_233 = arith.constant 0 : i32
    %775 = vector.broadcast %c0_i32_233 : i32 to vector<2x1xi32>
    %776 = arith.cmpi ne, %774, %775 : vector<2x1xi32>
    %777 = arith.index_cast %c6_i32 : i32 to index
    %c0_234 = arith.constant 0 : index
    %c0_235 = arith.constant 0 : index
    %778 = vector.load %arg5[%777, %c0_234, %c0_235] : memref<13x2x64xf32, #tpu.memory_space<vmem>>, vector<1x2x64xf32>
    %779 = vector.shape_cast %778 : vector<1x2x64xf32> to vector<2x64xf32>
    %780 = vector.extract_strided_slice %760 {offsets = [0, 0], sizes = [2, 32], strides = [1, 1]} : vector<2x64xf32> to vector<2x32xf32>
    %781 = vector.extract_strided_slice %760 {offsets = [0, 32], sizes = [2, 32], strides = [1, 1]} : vector<2x64xf32> to vector<2x32xf32>
    %782 = vector.extract_strided_slice %766 {offsets = [0, 0], sizes = [2, 32], strides = [1, 1]} : vector<2x64xf32> to vector<2x32xf32>
    %783 = vector.extract_strided_slice %766 {offsets = [0, 32], sizes = [2, 32], strides = [1, 1]} : vector<2x64xf32> to vector<2x32xf32>
    %784 = vector.extract_strided_slice %779 {offsets = [0, 0], sizes = [2, 32], strides = [1, 1]} : vector<2x64xf32> to vector<2x32xf32>
    %785 = tpu.concatenate %784, %780, %782, %688 in 1 : vector<2x32xf32>, vector<2x32xf32>, vector<2x32xf32>, vector<2x32xf32> -> vector<2x128xf32>
    %c0_236 = arith.constant 0 : index
    %c0_237 = arith.constant 0 : index
    %786 = vector.load %arg7[%c0_236, %c0_237] : memref<128x128xf32, #tpu.memory_space<vmem>>, vector<128x128xf32>
    %cst_238 = arith.constant dense<0.000000e+00> : vector<2x128xf32>
    %787 = tpu.matmul %785, %786, %cst_238 {dimension_numbers = #tpu.dot_dimension_numbers<[1], [0], [0], [1], [0, 0, 1, 1], [], []>} : vector<2x128xf32>, vector<128x128xf32>, vector<2x128xf32> -> vector<2x128xf32>
    %c0_239 = arith.constant 0 : index
    %c0_240 = arith.constant 0 : index
    %788 = vector.load %arg8[%c0_239, %c0_240] : memref<1x128xf32, #tpu.memory_space<vmem>>, vector<1x128xf32>
    %789 = vector.broadcast %788 : vector<1x128xf32> to vector<2x128xf32>
    %790 = arith.addf %787, %789 : vector<2x128xf32>
    %791 = vector.extract_strided_slice %790 {offsets = [0, 0], sizes = [2, 32], strides = [1, 1]} : vector<2x128xf32> to vector<2x32xf32>
    %792 = arith.negf %791 : vector<2x32xf32>
    %793 = math.exp %792 : vector<2x32xf32>
    %cst_241 = arith.constant 1.000000e+00 : f32
    %794 = vector.broadcast %cst_241 : f32 to vector<2x32xf32>
    %795 = arith.addf %794, %793 : vector<2x32xf32>
    %796 = arith.divf %794, %795 : vector<2x32xf32>
    %797 = vector.extract_strided_slice %790 {offsets = [0, 32], sizes = [2, 32], strides = [1, 1]} : vector<2x128xf32> to vector<2x32xf32>
    %798 = arith.negf %797 : vector<2x32xf32>
    %799 = math.exp %798 : vector<2x32xf32>
    %cst_242 = arith.constant 1.000000e+00 : f32
    %800 = vector.broadcast %cst_242 : f32 to vector<2x32xf32>
    %801 = arith.addf %800, %799 : vector<2x32xf32>
    %802 = arith.divf %800, %801 : vector<2x32xf32>
    %803 = vector.extract_strided_slice %790 {offsets = [0, 64], sizes = [2, 32], strides = [1, 1]} : vector<2x128xf32> to vector<2x32xf32>
    %804 = math.tanh %803 : vector<2x32xf32>
    %805 = vector.extract_strided_slice %790 {offsets = [0, 96], sizes = [2, 32], strides = [1, 1]} : vector<2x128xf32> to vector<2x32xf32>
    %806 = arith.negf %805 : vector<2x32xf32>
    %807 = math.exp %806 : vector<2x32xf32>
    %cst_243 = arith.constant 1.000000e+00 : f32
    %808 = vector.broadcast %cst_243 : f32 to vector<2x32xf32>
    %809 = arith.addf %808, %807 : vector<2x32xf32>
    %810 = arith.divf %808, %809 : vector<2x32xf32>
    %811 = arith.mulf %802, %686 : vector<2x32xf32>
    %812 = arith.mulf %796, %804 : vector<2x32xf32>
    %813 = arith.addf %811, %812 : vector<2x32xf32>
    %814 = math.tanh %813 : vector<2x32xf32>
    %815 = arith.mulf %810, %814 : vector<2x32xf32>
    %816 = tpu.concatenate %782, %780, %815 in 1 : vector<2x32xf32>, vector<2x32xf32>, vector<2x32xf32> -> vector<2x96xf32>
    %c0_244 = arith.constant 0 : index
    %c0_245 = arith.constant 0 : index
    %817 = vector.load %arg9[%c0_244, %c0_245] : memref<96x160xf32, #tpu.memory_space<vmem>>, vector<96x160xf32>
    %cst_246 = arith.constant dense<0.000000e+00> : vector<2x160xf32>
    %818 = tpu.matmul %816, %817, %cst_246 {dimension_numbers = #tpu.dot_dimension_numbers<[1], [0], [0], [1], [0, 0, 1, 1], [], []>} : vector<2x96xf32>, vector<96x160xf32>, vector<2x160xf32> -> vector<2x160xf32>
    %c0_247 = arith.constant 0 : index
    %c0_248 = arith.constant 0 : index
    %819 = vector.load %arg10[%c0_247, %c0_248] : memref<1x160xf32, #tpu.memory_space<vmem>>, vector<1x160xf32>
    %820 = vector.broadcast %819 : vector<1x160xf32> to vector<2x160xf32>
    %821 = arith.addf %818, %820 : vector<2x160xf32>
    %822 = vector.extract_strided_slice %821 {offsets = [0, 0], sizes = [2, 32], strides = [1, 1]} : vector<2x160xf32> to vector<2x32xf32>
    %823 = vector.extract_strided_slice %821 {offsets = [0, 32], sizes = [2, 32], strides = [1, 1]} : vector<2x160xf32> to vector<2x32xf32>
    %824 = vector.extract_strided_slice %821 {offsets = [0, 64], sizes = [2, 32], strides = [1, 1]} : vector<2x160xf32> to vector<2x32xf32>
    %825 = vector.extract_strided_slice %821 {offsets = [0, 96], sizes = [2, 32], strides = [1, 1]} : vector<2x160xf32> to vector<2x32xf32>
    %826 = vector.extract_strided_slice %821 {offsets = [0, 128], sizes = [2, 32], strides = [1, 1]} : vector<2x160xf32> to vector<2x32xf32>
    %827 = math.tanh %822 : vector<2x32xf32>
    %828 = arith.negf %823 : vector<2x32xf32>
    %829 = math.exp %828 : vector<2x32xf32>
    %cst_249 = arith.constant 1.000000e+00 : f32
    %830 = vector.broadcast %cst_249 : f32 to vector<2x32xf32>
    %831 = arith.addf %830, %829 : vector<2x32xf32>
    %832 = arith.divf %830, %831 : vector<2x32xf32>
    %833 = arith.mulf %827, %832 : vector<2x32xf32>
    %834 = arith.negf %824 : vector<2x32xf32>
    %835 = math.exp %834 : vector<2x32xf32>
    %cst_250 = arith.constant 1.000000e+00 : f32
    %836 = vector.broadcast %cst_250 : f32 to vector<2x32xf32>
    %837 = arith.addf %836, %835 : vector<2x32xf32>
    %838 = arith.divf %836, %837 : vector<2x32xf32>
    %839 = arith.mulf %838, %783 : vector<2x32xf32>
    %840 = arith.addf %833, %839 : vector<2x32xf32>
    %841 = arith.negf %825 : vector<2x32xf32>
    %842 = math.exp %841 : vector<2x32xf32>
    %cst_251 = arith.constant 1.000000e+00 : f32
    %843 = vector.broadcast %cst_251 : f32 to vector<2x32xf32>
    %844 = arith.addf %843, %842 : vector<2x32xf32>
    %845 = arith.divf %843, %844 : vector<2x32xf32>
    %846 = arith.mulf %845, %781 : vector<2x32xf32>
    %847 = arith.addf %840, %846 : vector<2x32xf32>
    %848 = arith.negf %826 : vector<2x32xf32>
    %849 = math.exp %848 : vector<2x32xf32>
    %cst_252 = arith.constant 1.000000e+00 : f32
    %850 = vector.broadcast %cst_252 : f32 to vector<2x32xf32>
    %851 = arith.addf %850, %849 : vector<2x32xf32>
    %852 = arith.divf %850, %851 : vector<2x32xf32>
    %853 = math.tanh %847 : vector<2x32xf32>
    %854 = arith.mulf %852, %853 : vector<2x32xf32>
    %855 = tpu.concatenate %854, %847 in 1 : vector<2x32xf32>, vector<2x32xf32> -> vector<2x64xf32>
    %856 = tpu.iota {dimensions = array<i32: 0>} : vector<8x2x1xi32>
    %857 = arith.index_cast %c6_i32 : i32 to index
    %c0_253 = arith.constant 0 : index
    %c0_254 = arith.constant 0 : index
    %858 = vector.load %arg3[%857, %c0_253, %c0_254] : memref<13x2x1xi32, #tpu.memory_space<vmem>>, vector<1x2x1xi32>
    %859 = vector.shape_cast %858 : vector<1x2x1xi32> to vector<2x1xi32>
    %860 = vector.shape_cast %859 : vector<2x1xi32> to vector<1x2x1xi32>
    %861 = vector.broadcast %860 : vector<1x2x1xi32> to vector<8x2x1xi32>
    %862 = arith.cmpi eq, %856, %861 : vector<8x2x1xi32>
    %863 = vector.shape_cast %766 : vector<2x64xf32> to vector<1x2x64xf32>
    %c0_255 = arith.constant 0 : index
    %c0_256 = arith.constant 0 : index
    %c0_257 = arith.constant 0 : index
    %864 = vector.load %arg12[%c0_255, %c0_256, %c0_257] : memref<8x2x64xf32, #tpu.memory_space<vmem>>, vector<8x2x64xf32>
    %865 = vector.shape_cast %862 : vector<8x2x1xi1> to vector<8x2x1xi1>
    %866 = vector.broadcast %865 : vector<8x2x1xi1> to vector<8x2x64xi1>
    %867 = vector.shape_cast %863 : vector<1x2x64xf32> to vector<1x2x64xf32>
    %868 = vector.broadcast %867 : vector<1x2x64xf32> to vector<8x2x64xf32>
    %869 = arith.select %866, %868, %864 : vector<8x2x64xi1>, vector<8x2x64xf32>
    %c0_258 = arith.constant 0 : index
    %c0_259 = arith.constant 0 : index
    %c0_260 = arith.constant 0 : index
    %870 = vector.load %arg12[%c0_258, %c0_259, %c0_260] : memref<8x2x64xf32, #tpu.memory_space<vmem>>, vector<8x2x64xf32>
    tpu.vector_store %arg12[%c0_258, %c0_259, %c0_260], %869 {strides = array<i32>} : memref<8x2x64xf32, #tpu.memory_space<vmem>>, vector<8x2x64xf32>,
    %871 = arith.index_cast %c6_i32 : i32 to index
    %c0_261 = arith.constant 0 : index
    %c0_262 = arith.constant 0 : index
    %872 = vector.load %arg4[%871, %c0_261, %c0_262] : memref<13x2x1xi32, #tpu.memory_space<vmem>>, vector<1x2x1xi32>
    %873 = vector.shape_cast %872 : vector<1x2x1xi32> to vector<2x1xi32>
    %874 = vector.shape_cast %873 : vector<2x1xi32> to vector<1x2x1xi32>
    %875 = vector.broadcast %874 : vector<1x2x1xi32> to vector<8x2x1xi32>
    %876 = arith.cmpi eq, %856, %875 : vector<8x2x1xi32>
    %cst_263 = arith.constant 0.000000e+00 : f32
    %877 = vector.shape_cast %876 : vector<8x2x1xi1> to vector<8x2x1xi1>
    %878 = vector.broadcast %877 : vector<8x2x1xi1> to vector<8x2x64xi1>
    %879 = vector.broadcast %cst_263 : f32 to vector<8x2x64xf32>
    %880 = arith.select %878, %869, %879 : vector<8x2x64xi1>, vector<8x2x64xf32>
    %cst_264 = arith.constant dense<0.000000e+00> : vector<2x64xf32>
    %881 = vector.multi_reduction <add>, %880, %cst_264 [0] : vector<8x2x64xf32> to vector<2x64xf32>
    %882 = vector.shape_cast %776 : vector<2x1xi1> to vector<2x1xi1>
    %883 = vector.broadcast %882 : vector<2x1xi1> to vector<2x64xi1>
    %884 = arith.select %883, %855, %760 : vector<2x64xi1>, vector<2x64xf32>
    %885 = vector.shape_cast %771 : vector<2x1xi1> to vector<2x1xi1>
    %886 = vector.broadcast %885 : vector<2x1xi1> to vector<2x64xi1>
    %887 = arith.select %886, %779, %884 : vector<2x64xi1>, vector<2x64xf32>
    %888 = vector.shape_cast %776 : vector<2x1xi1> to vector<2x1xi1>
    %889 = vector.broadcast %888 : vector<2x1xi1> to vector<2x64xi1>
    %890 = arith.select %889, %881, %766 : vector<2x64xi1>, vector<2x64xf32>
    %891 = vector.shape_cast %771 : vector<2x1xi1> to vector<2x1xi1>
    %892 = vector.broadcast %891 : vector<2x1xi1> to vector<2x64xi1>
    %893 = arith.select %892, %760, %890 : vector<2x64xi1>, vector<2x64xf32>
    %c7_i32 = arith.constant 7 : i32
    %894 = arith.index_cast %c7_i32 : i32 to index
    %c0_265 = arith.constant 0 : index
    %c0_266 = arith.constant 0 : index
    %895 = vector.load %arg1[%894, %c0_265, %c0_266] : memref<13x2x1xi32, #tpu.memory_space<vmem>>, vector<1x2x1xi32>
    %896 = vector.shape_cast %895 : vector<1x2x1xi32> to vector<2x1xi32>
    %c0_i32_267 = arith.constant 0 : i32
    %897 = vector.broadcast %c0_i32_267 : i32 to vector<2x1xi32>
    %898 = arith.cmpi ne, %896, %897 : vector<2x1xi32>
    %899 = arith.index_cast %c7_i32 : i32 to index
    %c0_268 = arith.constant 0 : index
    %c0_269 = arith.constant 0 : index
    %900 = vector.load %arg2[%899, %c0_268, %c0_269] : memref<13x2x1xi32, #tpu.memory_space<vmem>>, vector<1x2x1xi32>
    %901 = vector.shape_cast %900 : vector<1x2x1xi32> to vector<2x1xi32>
    %c0_i32_270 = arith.constant 0 : i32
    %902 = vector.broadcast %c0_i32_270 : i32 to vector<2x1xi32>
    %903 = arith.cmpi ne, %901, %902 : vector<2x1xi32>
    %904 = arith.index_cast %c7_i32 : i32 to index
    %c0_271 = arith.constant 0 : index
    %c0_272 = arith.constant 0 : index
    %905 = vector.load %arg5[%904, %c0_271, %c0_272] : memref<13x2x64xf32, #tpu.memory_space<vmem>>, vector<1x2x64xf32>
    %906 = vector.shape_cast %905 : vector<1x2x64xf32> to vector<2x64xf32>
    %907 = vector.extract_strided_slice %887 {offsets = [0, 0], sizes = [2, 32], strides = [1, 1]} : vector<2x64xf32> to vector<2x32xf32>
    %908 = vector.extract_strided_slice %887 {offsets = [0, 32], sizes = [2, 32], strides = [1, 1]} : vector<2x64xf32> to vector<2x32xf32>
    %909 = vector.extract_strided_slice %893 {offsets = [0, 0], sizes = [2, 32], strides = [1, 1]} : vector<2x64xf32> to vector<2x32xf32>
    %910 = vector.extract_strided_slice %893 {offsets = [0, 32], sizes = [2, 32], strides = [1, 1]} : vector<2x64xf32> to vector<2x32xf32>
    %911 = vector.extract_strided_slice %906 {offsets = [0, 0], sizes = [2, 32], strides = [1, 1]} : vector<2x64xf32> to vector<2x32xf32>
    %912 = tpu.concatenate %911, %907, %909, %815 in 1 : vector<2x32xf32>, vector<2x32xf32>, vector<2x32xf32>, vector<2x32xf32> -> vector<2x128xf32>
    %c0_273 = arith.constant 0 : index
    %c0_274 = arith.constant 0 : index
    %913 = vector.load %arg7[%c0_273, %c0_274] : memref<128x128xf32, #tpu.memory_space<vmem>>, vector<128x128xf32>
    %cst_275 = arith.constant dense<0.000000e+00> : vector<2x128xf32>
    %914 = tpu.matmul %912, %913, %cst_275 {dimension_numbers = #tpu.dot_dimension_numbers<[1], [0], [0], [1], [0, 0, 1, 1], [], []>} : vector<2x128xf32>, vector<128x128xf32>, vector<2x128xf32> -> vector<2x128xf32>
    %c0_276 = arith.constant 0 : index
    %c0_277 = arith.constant 0 : index
    %915 = vector.load %arg8[%c0_276, %c0_277] : memref<1x128xf32, #tpu.memory_space<vmem>>, vector<1x128xf32>
    %916 = vector.broadcast %915 : vector<1x128xf32> to vector<2x128xf32>
    %917 = arith.addf %914, %916 : vector<2x128xf32>
    %918 = vector.extract_strided_slice %917 {offsets = [0, 0], sizes = [2, 32], strides = [1, 1]} : vector<2x128xf32> to vector<2x32xf32>
    %919 = arith.negf %918 : vector<2x32xf32>
    %920 = math.exp %919 : vector<2x32xf32>
    %cst_278 = arith.constant 1.000000e+00 : f32
    %921 = vector.broadcast %cst_278 : f32 to vector<2x32xf32>
    %922 = arith.addf %921, %920 : vector<2x32xf32>
    %923 = arith.divf %921, %922 : vector<2x32xf32>
    %924 = vector.extract_strided_slice %917 {offsets = [0, 32], sizes = [2, 32], strides = [1, 1]} : vector<2x128xf32> to vector<2x32xf32>
    %925 = arith.negf %924 : vector<2x32xf32>
    %926 = math.exp %925 : vector<2x32xf32>
    %cst_279 = arith.constant 1.000000e+00 : f32
    %927 = vector.broadcast %cst_279 : f32 to vector<2x32xf32>
    %928 = arith.addf %927, %926 : vector<2x32xf32>
    %929 = arith.divf %927, %928 : vector<2x32xf32>
    %930 = vector.extract_strided_slice %917 {offsets = [0, 64], sizes = [2, 32], strides = [1, 1]} : vector<2x128xf32> to vector<2x32xf32>
    %931 = math.tanh %930 : vector<2x32xf32>
    %932 = vector.extract_strided_slice %917 {offsets = [0, 96], sizes = [2, 32], strides = [1, 1]} : vector<2x128xf32> to vector<2x32xf32>
    %933 = arith.negf %932 : vector<2x32xf32>
    %934 = math.exp %933 : vector<2x32xf32>
    %cst_280 = arith.constant 1.000000e+00 : f32
    %935 = vector.broadcast %cst_280 : f32 to vector<2x32xf32>
    %936 = arith.addf %935, %934 : vector<2x32xf32>
    %937 = arith.divf %935, %936 : vector<2x32xf32>
    %938 = arith.mulf %929, %813 : vector<2x32xf32>
    %939 = arith.mulf %923, %931 : vector<2x32xf32>
    %940 = arith.addf %938, %939 : vector<2x32xf32>
    %941 = math.tanh %940 : vector<2x32xf32>
    %942 = arith.mulf %937, %941 : vector<2x32xf32>
    %943 = tpu.concatenate %909, %907, %942 in 1 : vector<2x32xf32>, vector<2x32xf32>, vector<2x32xf32> -> vector<2x96xf32>
    %c0_281 = arith.constant 0 : index
    %c0_282 = arith.constant 0 : index
    %944 = vector.load %arg9[%c0_281, %c0_282] : memref<96x160xf32, #tpu.memory_space<vmem>>, vector<96x160xf32>
    %cst_283 = arith.constant dense<0.000000e+00> : vector<2x160xf32>
    %945 = tpu.matmul %943, %944, %cst_283 {dimension_numbers = #tpu.dot_dimension_numbers<[1], [0], [0], [1], [0, 0, 1, 1], [], []>} : vector<2x96xf32>, vector<96x160xf32>, vector<2x160xf32> -> vector<2x160xf32>
    %c0_284 = arith.constant 0 : index
    %c0_285 = arith.constant 0 : index
    %946 = vector.load %arg10[%c0_284, %c0_285] : memref<1x160xf32, #tpu.memory_space<vmem>>, vector<1x160xf32>
    %947 = vector.broadcast %946 : vector<1x160xf32> to vector<2x160xf32>
    %948 = arith.addf %945, %947 : vector<2x160xf32>
    %949 = vector.extract_strided_slice %948 {offsets = [0, 0], sizes = [2, 32], strides = [1, 1]} : vector<2x160xf32> to vector<2x32xf32>
    %950 = vector.extract_strided_slice %948 {offsets = [0, 32], sizes = [2, 32], strides = [1, 1]} : vector<2x160xf32> to vector<2x32xf32>
    %951 = vector.extract_strided_slice %948 {offsets = [0, 64], sizes = [2, 32], strides = [1, 1]} : vector<2x160xf32> to vector<2x32xf32>
    %952 = vector.extract_strided_slice %948 {offsets = [0, 96], sizes = [2, 32], strides = [1, 1]} : vector<2x160xf32> to vector<2x32xf32>
    %953 = vector.extract_strided_slice %948 {offsets = [0, 128], sizes = [2, 32], strides = [1, 1]} : vector<2x160xf32> to vector<2x32xf32>
    %954 = math.tanh %949 : vector<2x32xf32>
    %955 = arith.negf %950 : vector<2x32xf32>
    %956 = math.exp %955 : vector<2x32xf32>
    %cst_286 = arith.constant 1.000000e+00 : f32
    %957 = vector.broadcast %cst_286 : f32 to vector<2x32xf32>
    %958 = arith.addf %957, %956 : vector<2x32xf32>
    %959 = arith.divf %957, %958 : vector<2x32xf32>
    %960 = arith.mulf %954, %959 : vector<2x32xf32>
    %961 = arith.negf %951 : vector<2x32xf32>
    %962 = math.exp %961 : vector<2x32xf32>
    %cst_287 = arith.constant 1.000000e+00 : f32
    %963 = vector.broadcast %cst_287 : f32 to vector<2x32xf32>
    %964 = arith.addf %963, %962 : vector<2x32xf32>
    %965 = arith.divf %963, %964 : vector<2x32xf32>
    %966 = arith.mulf %965, %910 : vector<2x32xf32>
    %967 = arith.addf %960, %966 : vector<2x32xf32>
    %968 = arith.negf %952 : vector<2x32xf32>
    %969 = math.exp %968 : vector<2x32xf32>
    %cst_288 = arith.constant 1.000000e+00 : f32
    %970 = vector.broadcast %cst_288 : f32 to vector<2x32xf32>
    %971 = arith.addf %970, %969 : vector<2x32xf32>
    %972 = arith.divf %970, %971 : vector<2x32xf32>
    %973 = arith.mulf %972, %908 : vector<2x32xf32>
    %974 = arith.addf %967, %973 : vector<2x32xf32>
    %975 = arith.negf %953 : vector<2x32xf32>
    %976 = math.exp %975 : vector<2x32xf32>
    %cst_289 = arith.constant 1.000000e+00 : f32
    %977 = vector.broadcast %cst_289 : f32 to vector<2x32xf32>
    %978 = arith.addf %977, %976 : vector<2x32xf32>
    %979 = arith.divf %977, %978 : vector<2x32xf32>
    %980 = math.tanh %974 : vector<2x32xf32>
    %981 = arith.mulf %979, %980 : vector<2x32xf32>
    %982 = tpu.concatenate %981, %974 in 1 : vector<2x32xf32>, vector<2x32xf32> -> vector<2x64xf32>
    %983 = tpu.iota {dimensions = array<i32: 0>} : vector<8x2x1xi32>
    %984 = arith.index_cast %c7_i32 : i32 to index
    %c0_290 = arith.constant 0 : index
    %c0_291 = arith.constant 0 : index
    %985 = vector.load %arg3[%984, %c0_290, %c0_291] : memref<13x2x1xi32, #tpu.memory_space<vmem>>, vector<1x2x1xi32>
    %986 = vector.shape_cast %985 : vector<1x2x1xi32> to vector<2x1xi32>
    %987 = vector.shape_cast %986 : vector<2x1xi32> to vector<1x2x1xi32>
    %988 = vector.broadcast %987 : vector<1x2x1xi32> to vector<8x2x1xi32>
    %989 = arith.cmpi eq, %983, %988 : vector<8x2x1xi32>
    %990 = vector.shape_cast %893 : vector<2x64xf32> to vector<1x2x64xf32>
    %c0_292 = arith.constant 0 : index
    %c0_293 = arith.constant 0 : index
    %c0_294 = arith.constant 0 : index
    %991 = vector.load %arg12[%c0_292, %c0_293, %c0_294] : memref<8x2x64xf32, #tpu.memory_space<vmem>>, vector<8x2x64xf32>
    %992 = vector.shape_cast %989 : vector<8x2x1xi1> to vector<8x2x1xi1>
    %993 = vector.broadcast %992 : vector<8x2x1xi1> to vector<8x2x64xi1>
    %994 = vector.shape_cast %990 : vector<1x2x64xf32> to vector<1x2x64xf32>
    %995 = vector.broadcast %994 : vector<1x2x64xf32> to vector<8x2x64xf32>
    %996 = arith.select %993, %995, %991 : vector<8x2x64xi1>, vector<8x2x64xf32>
    %c0_295 = arith.constant 0 : index
    %c0_296 = arith.constant 0 : index
    %c0_297 = arith.constant 0 : index
    %997 = vector.load %arg12[%c0_295, %c0_296, %c0_297] : memref<8x2x64xf32, #tpu.memory_space<vmem>>, vector<8x2x64xf32>
    tpu.vector_store %arg12[%c0_295, %c0_296, %c0_297], %996 {strides = array<i32>} : memref<8x2x64xf32, #tpu.memory_space<vmem>>, vector<8x2x64xf32>,
    %998 = arith.index_cast %c7_i32 : i32 to index
    %c0_298 = arith.constant 0 : index
    %c0_299 = arith.constant 0 : index
    %999 = vector.load %arg4[%998, %c0_298, %c0_299] : memref<13x2x1xi32, #tpu.memory_space<vmem>>, vector<1x2x1xi32>
    %1000 = vector.shape_cast %999 : vector<1x2x1xi32> to vector<2x1xi32>
    %1001 = vector.shape_cast %1000 : vector<2x1xi32> to vector<1x2x1xi32>
    %1002 = vector.broadcast %1001 : vector<1x2x1xi32> to vector<8x2x1xi32>
    %1003 = arith.cmpi eq, %983, %1002 : vector<8x2x1xi32>
    %cst_300 = arith.constant 0.000000e+00 : f32
    %1004 = vector.shape_cast %1003 : vector<8x2x1xi1> to vector<8x2x1xi1>
    %1005 = vector.broadcast %1004 : vector<8x2x1xi1> to vector<8x2x64xi1>
    %1006 = vector.broadcast %cst_300 : f32 to vector<8x2x64xf32>
    %1007 = arith.select %1005, %996, %1006 : vector<8x2x64xi1>, vector<8x2x64xf32>
    %cst_301 = arith.constant dense<0.000000e+00> : vector<2x64xf32>
    %1008 = vector.multi_reduction <add>, %1007, %cst_301 [0] : vector<8x2x64xf32> to vector<2x64xf32>
    %1009 = vector.shape_cast %903 : vector<2x1xi1> to vector<2x1xi1>
    %1010 = vector.broadcast %1009 : vector<2x1xi1> to vector<2x64xi1>
    %1011 = arith.select %1010, %982, %887 : vector<2x64xi1>, vector<2x64xf32>
    %1012 = vector.shape_cast %898 : vector<2x1xi1> to vector<2x1xi1>
    %1013 = vector.broadcast %1012 : vector<2x1xi1> to vector<2x64xi1>
    %1014 = arith.select %1013, %906, %1011 : vector<2x64xi1>, vector<2x64xf32>
    %1015 = vector.shape_cast %903 : vector<2x1xi1> to vector<2x1xi1>
    %1016 = vector.broadcast %1015 : vector<2x1xi1> to vector<2x64xi1>
    %1017 = arith.select %1016, %1008, %893 : vector<2x64xi1>, vector<2x64xf32>
    %1018 = vector.shape_cast %898 : vector<2x1xi1> to vector<2x1xi1>
    %1019 = vector.broadcast %1018 : vector<2x1xi1> to vector<2x64xi1>
    %1020 = arith.select %1019, %887, %1017 : vector<2x64xi1>, vector<2x64xf32>
    %c8_i32 = arith.constant 8 : i32
    %1021 = arith.index_cast %c8_i32 : i32 to index
    %c0_302 = arith.constant 0 : index
    %c0_303 = arith.constant 0 : index
    %1022 = vector.load %arg1[%1021, %c0_302, %c0_303] : memref<13x2x1xi32, #tpu.memory_space<vmem>>, vector<1x2x1xi32>
    %1023 = vector.shape_cast %1022 : vector<1x2x1xi32> to vector<2x1xi32>
    %c0_i32_304 = arith.constant 0 : i32
    %1024 = vector.broadcast %c0_i32_304 : i32 to vector<2x1xi32>
    %1025 = arith.cmpi ne, %1023, %1024 : vector<2x1xi32>
    %1026 = arith.index_cast %c8_i32 : i32 to index
    %c0_305 = arith.constant 0 : index
    %c0_306 = arith.constant 0 : index
    %1027 = vector.load %arg2[%1026, %c0_305, %c0_306] : memref<13x2x1xi32, #tpu.memory_space<vmem>>, vector<1x2x1xi32>
    %1028 = vector.shape_cast %1027 : vector<1x2x1xi32> to vector<2x1xi32>
    %c0_i32_307 = arith.constant 0 : i32
    %1029 = vector.broadcast %c0_i32_307 : i32 to vector<2x1xi32>
    %1030 = arith.cmpi ne, %1028, %1029 : vector<2x1xi32>
    %1031 = arith.index_cast %c8_i32 : i32 to index
    %c0_308 = arith.constant 0 : index
    %c0_309 = arith.constant 0 : index
    %1032 = vector.load %arg5[%1031, %c0_308, %c0_309] : memref<13x2x64xf32, #tpu.memory_space<vmem>>, vector<1x2x64xf32>
    %1033 = vector.shape_cast %1032 : vector<1x2x64xf32> to vector<2x64xf32>
    %1034 = vector.extract_strided_slice %1014 {offsets = [0, 0], sizes = [2, 32], strides = [1, 1]} : vector<2x64xf32> to vector<2x32xf32>
    %1035 = vector.extract_strided_slice %1014 {offsets = [0, 32], sizes = [2, 32], strides = [1, 1]} : vector<2x64xf32> to vector<2x32xf32>
    %1036 = vector.extract_strided_slice %1020 {offsets = [0, 0], sizes = [2, 32], strides = [1, 1]} : vector<2x64xf32> to vector<2x32xf32>
    %1037 = vector.extract_strided_slice %1020 {offsets = [0, 32], sizes = [2, 32], strides = [1, 1]} : vector<2x64xf32> to vector<2x32xf32>
    %1038 = vector.extract_strided_slice %1033 {offsets = [0, 0], sizes = [2, 32], strides = [1, 1]} : vector<2x64xf32> to vector<2x32xf32>
    %1039 = tpu.concatenate %1038, %1034, %1036, %942 in 1 : vector<2x32xf32>, vector<2x32xf32>, vector<2x32xf32>, vector<2x32xf32> -> vector<2x128xf32>
    %c0_310 = arith.constant 0 : index
    %c0_311 = arith.constant 0 : index
    %1040 = vector.load %arg7[%c0_310, %c0_311] : memref<128x128xf32, #tpu.memory_space<vmem>>, vector<128x128xf32>
    %cst_312 = arith.constant dense<0.000000e+00> : vector<2x128xf32>
    %1041 = tpu.matmul %1039, %1040, %cst_312 {dimension_numbers = #tpu.dot_dimension_numbers<[1], [0], [0], [1], [0, 0, 1, 1], [], []>} : vector<2x128xf32>, vector<128x128xf32>, vector<2x128xf32> -> vector<2x128xf32>
    %c0_313 = arith.constant 0 : index
    %c0_314 = arith.constant 0 : index
    %1042 = vector.load %arg8[%c0_313, %c0_314] : memref<1x128xf32, #tpu.memory_space<vmem>>, vector<1x128xf32>
    %1043 = vector.broadcast %1042 : vector<1x128xf32> to vector<2x128xf32>
    %1044 = arith.addf %1041, %1043 : vector<2x128xf32>
    %1045 = vector.extract_strided_slice %1044 {offsets = [0, 0], sizes = [2, 32], strides = [1, 1]} : vector<2x128xf32> to vector<2x32xf32>
    %1046 = arith.negf %1045 : vector<2x32xf32>
    %1047 = math.exp %1046 : vector<2x32xf32>
    %cst_315 = arith.constant 1.000000e+00 : f32
    %1048 = vector.broadcast %cst_315 : f32 to vector<2x32xf32>
    %1049 = arith.addf %1048, %1047 : vector<2x32xf32>
    %1050 = arith.divf %1048, %1049 : vector<2x32xf32>
    %1051 = vector.extract_strided_slice %1044 {offsets = [0, 32], sizes = [2, 32], strides = [1, 1]} : vector<2x128xf32> to vector<2x32xf32>
    %1052 = arith.negf %1051 : vector<2x32xf32>
    %1053 = math.exp %1052 : vector<2x32xf32>
    %cst_316 = arith.constant 1.000000e+00 : f32
    %1054 = vector.broadcast %cst_316 : f32 to vector<2x32xf32>
    %1055 = arith.addf %1054, %1053 : vector<2x32xf32>
    %1056 = arith.divf %1054, %1055 : vector<2x32xf32>
    %1057 = vector.extract_strided_slice %1044 {offsets = [0, 64], sizes = [2, 32], strides = [1, 1]} : vector<2x128xf32> to vector<2x32xf32>
    %1058 = math.tanh %1057 : vector<2x32xf32>
    %1059 = vector.extract_strided_slice %1044 {offsets = [0, 96], sizes = [2, 32], strides = [1, 1]} : vector<2x128xf32> to vector<2x32xf32>
    %1060 = arith.negf %1059 : vector<2x32xf32>
    %1061 = math.exp %1060 : vector<2x32xf32>
    %cst_317 = arith.constant 1.000000e+00 : f32
    %1062 = vector.broadcast %cst_317 : f32 to vector<2x32xf32>
    %1063 = arith.addf %1062, %1061 : vector<2x32xf32>
    %1064 = arith.divf %1062, %1063 : vector<2x32xf32>
    %1065 = arith.mulf %1056, %940 : vector<2x32xf32>
    %1066 = arith.mulf %1050, %1058 : vector<2x32xf32>
    %1067 = arith.addf %1065, %1066 : vector<2x32xf32>
    %1068 = math.tanh %1067 : vector<2x32xf32>
    %1069 = arith.mulf %1064, %1068 : vector<2x32xf32>
    %1070 = tpu.concatenate %1036, %1034, %1069 in 1 : vector<2x32xf32>, vector<2x32xf32>, vector<2x32xf32> -> vector<2x96xf32>
    %c0_318 = arith.constant 0 : index
    %c0_319 = arith.constant 0 : index
    %1071 = vector.load %arg9[%c0_318, %c0_319] : memref<96x160xf32, #tpu.memory_space<vmem>>, vector<96x160xf32>
    %cst_320 = arith.constant dense<0.000000e+00> : vector<2x160xf32>
    %1072 = tpu.matmul %1070, %1071, %cst_320 {dimension_numbers = #tpu.dot_dimension_numbers<[1], [0], [0], [1], [0, 0, 1, 1], [], []>} : vector<2x96xf32>, vector<96x160xf32>, vector<2x160xf32> -> vector<2x160xf32>
    %c0_321 = arith.constant 0 : index
    %c0_322 = arith.constant 0 : index
    %1073 = vector.load %arg10[%c0_321, %c0_322] : memref<1x160xf32, #tpu.memory_space<vmem>>, vector<1x160xf32>
    %1074 = vector.broadcast %1073 : vector<1x160xf32> to vector<2x160xf32>
    %1075 = arith.addf %1072, %1074 : vector<2x160xf32>
    %1076 = vector.extract_strided_slice %1075 {offsets = [0, 0], sizes = [2, 32], strides = [1, 1]} : vector<2x160xf32> to vector<2x32xf32>
    %1077 = vector.extract_strided_slice %1075 {offsets = [0, 32], sizes = [2, 32], strides = [1, 1]} : vector<2x160xf32> to vector<2x32xf32>
    %1078 = vector.extract_strided_slice %1075 {offsets = [0, 64], sizes = [2, 32], strides = [1, 1]} : vector<2x160xf32> to vector<2x32xf32>
    %1079 = vector.extract_strided_slice %1075 {offsets = [0, 96], sizes = [2, 32], strides = [1, 1]} : vector<2x160xf32> to vector<2x32xf32>
    %1080 = vector.extract_strided_slice %1075 {offsets = [0, 128], sizes = [2, 32], strides = [1, 1]} : vector<2x160xf32> to vector<2x32xf32>
    %1081 = math.tanh %1076 : vector<2x32xf32>
    %1082 = arith.negf %1077 : vector<2x32xf32>
    %1083 = math.exp %1082 : vector<2x32xf32>
    %cst_323 = arith.constant 1.000000e+00 : f32
    %1084 = vector.broadcast %cst_323 : f32 to vector<2x32xf32>
    %1085 = arith.addf %1084, %1083 : vector<2x32xf32>
    %1086 = arith.divf %1084, %1085 : vector<2x32xf32>
    %1087 = arith.mulf %1081, %1086 : vector<2x32xf32>
    %1088 = arith.negf %1078 : vector<2x32xf32>
    %1089 = math.exp %1088 : vector<2x32xf32>
    %cst_324 = arith.constant 1.000000e+00 : f32
    %1090 = vector.broadcast %cst_324 : f32 to vector<2x32xf32>
    %1091 = arith.addf %1090, %1089 : vector<2x32xf32>
    %1092 = arith.divf %1090, %1091 : vector<2x32xf32>
    %1093 = arith.mulf %1092, %1037 : vector<2x32xf32>
    %1094 = arith.addf %1087, %1093 : vector<2x32xf32>
    %1095 = arith.negf %1079 : vector<2x32xf32>
    %1096 = math.exp %1095 : vector<2x32xf32>
    %cst_325 = arith.constant 1.000000e+00 : f32
    %1097 = vector.broadcast %cst_325 : f32 to vector<2x32xf32>
    %1098 = arith.addf %1097, %1096 : vector<2x32xf32>
    %1099 = arith.divf %1097, %1098 : vector<2x32xf32>
    %1100 = arith.mulf %1099, %1035 : vector<2x32xf32>
    %1101 = arith.addf %1094, %1100 : vector<2x32xf32>
    %1102 = arith.negf %1080 : vector<2x32xf32>
    %1103 = math.exp %1102 : vector<2x32xf32>
    %cst_326 = arith.constant 1.000000e+00 : f32
    %1104 = vector.broadcast %cst_326 : f32 to vector<2x32xf32>
    %1105 = arith.addf %1104, %1103 : vector<2x32xf32>
    %1106 = arith.divf %1104, %1105 : vector<2x32xf32>
    %1107 = math.tanh %1101 : vector<2x32xf32>
    %1108 = arith.mulf %1106, %1107 : vector<2x32xf32>
    %1109 = tpu.concatenate %1108, %1101 in 1 : vector<2x32xf32>, vector<2x32xf32> -> vector<2x64xf32>
    %1110 = tpu.iota {dimensions = array<i32: 0>} : vector<8x2x1xi32>
    %1111 = arith.index_cast %c8_i32 : i32 to index
    %c0_327 = arith.constant 0 : index
    %c0_328 = arith.constant 0 : index
    %1112 = vector.load %arg3[%1111, %c0_327, %c0_328] : memref<13x2x1xi32, #tpu.memory_space<vmem>>, vector<1x2x1xi32>
    %1113 = vector.shape_cast %1112 : vector<1x2x1xi32> to vector<2x1xi32>
    %1114 = vector.shape_cast %1113 : vector<2x1xi32> to vector<1x2x1xi32>
    %1115 = vector.broadcast %1114 : vector<1x2x1xi32> to vector<8x2x1xi32>
    %1116 = arith.cmpi eq, %1110, %1115 : vector<8x2x1xi32>
    %1117 = vector.shape_cast %1020 : vector<2x64xf32> to vector<1x2x64xf32>
    %c0_329 = arith.constant 0 : index
    %c0_330 = arith.constant 0 : index
    %c0_331 = arith.constant 0 : index
    %1118 = vector.load %arg12[%c0_329, %c0_330, %c0_331] : memref<8x2x64xf32, #tpu.memory_space<vmem>>, vector<8x2x64xf32>
    %1119 = vector.shape_cast %1116 : vector<8x2x1xi1> to vector<8x2x1xi1>
    %1120 = vector.broadcast %1119 : vector<8x2x1xi1> to vector<8x2x64xi1>
    %1121 = vector.shape_cast %1117 : vector<1x2x64xf32> to vector<1x2x64xf32>
    %1122 = vector.broadcast %1121 : vector<1x2x64xf32> to vector<8x2x64xf32>
    %1123 = arith.select %1120, %1122, %1118 : vector<8x2x64xi1>, vector<8x2x64xf32>
    %c0_332 = arith.constant 0 : index
    %c0_333 = arith.constant 0 : index
    %c0_334 = arith.constant 0 : index
    %1124 = vector.load %arg12[%c0_332, %c0_333, %c0_334] : memref<8x2x64xf32, #tpu.memory_space<vmem>>, vector<8x2x64xf32>
    tpu.vector_store %arg12[%c0_332, %c0_333, %c0_334], %1123 {strides = array<i32>} : memref<8x2x64xf32, #tpu.memory_space<vmem>>, vector<8x2x64xf32>,
    %1125 = arith.index_cast %c8_i32 : i32 to index
    %c0_335 = arith.constant 0 : index
    %c0_336 = arith.constant 0 : index
    %1126 = vector.load %arg4[%1125, %c0_335, %c0_336] : memref<13x2x1xi32, #tpu.memory_space<vmem>>, vector<1x2x1xi32>
    %1127 = vector.shape_cast %1126 : vector<1x2x1xi32> to vector<2x1xi32>
    %1128 = vector.shape_cast %1127 : vector<2x1xi32> to vector<1x2x1xi32>
    %1129 = vector.broadcast %1128 : vector<1x2x1xi32> to vector<8x2x1xi32>
    %1130 = arith.cmpi eq, %1110, %1129 : vector<8x2x1xi32>
    %cst_337 = arith.constant 0.000000e+00 : f32
    %1131 = vector.shape_cast %1130 : vector<8x2x1xi1> to vector<8x2x1xi1>
    %1132 = vector.broadcast %1131 : vector<8x2x1xi1> to vector<8x2x64xi1>
    %1133 = vector.broadcast %cst_337 : f32 to vector<8x2x64xf32>
    %1134 = arith.select %1132, %1123, %1133 : vector<8x2x64xi1>, vector<8x2x64xf32>
    %cst_338 = arith.constant dense<0.000000e+00> : vector<2x64xf32>
    %1135 = vector.multi_reduction <add>, %1134, %cst_338 [0] : vector<8x2x64xf32> to vector<2x64xf32>
    %1136 = vector.shape_cast %1030 : vector<2x1xi1> to vector<2x1xi1>
    %1137 = vector.broadcast %1136 : vector<2x1xi1> to vector<2x64xi1>
    %1138 = arith.select %1137, %1109, %1014 : vector<2x64xi1>, vector<2x64xf32>
    %1139 = vector.shape_cast %1025 : vector<2x1xi1> to vector<2x1xi1>
    %1140 = vector.broadcast %1139 : vector<2x1xi1> to vector<2x64xi1>
    %1141 = arith.select %1140, %1033, %1138 : vector<2x64xi1>, vector<2x64xf32>
    %1142 = vector.shape_cast %1030 : vector<2x1xi1> to vector<2x1xi1>
    %1143 = vector.broadcast %1142 : vector<2x1xi1> to vector<2x64xi1>
    %1144 = arith.select %1143, %1135, %1020 : vector<2x64xi1>, vector<2x64xf32>
    %1145 = vector.shape_cast %1025 : vector<2x1xi1> to vector<2x1xi1>
    %1146 = vector.broadcast %1145 : vector<2x1xi1> to vector<2x64xi1>
    %1147 = arith.select %1146, %1014, %1144 : vector<2x64xi1>, vector<2x64xf32>
    %c9_i32 = arith.constant 9 : i32
    %1148 = arith.index_cast %c9_i32 : i32 to index
    %c0_339 = arith.constant 0 : index
    %c0_340 = arith.constant 0 : index
    %1149 = vector.load %arg1[%1148, %c0_339, %c0_340] : memref<13x2x1xi32, #tpu.memory_space<vmem>>, vector<1x2x1xi32>
    %1150 = vector.shape_cast %1149 : vector<1x2x1xi32> to vector<2x1xi32>
    %c0_i32_341 = arith.constant 0 : i32
    %1151 = vector.broadcast %c0_i32_341 : i32 to vector<2x1xi32>
    %1152 = arith.cmpi ne, %1150, %1151 : vector<2x1xi32>
    %1153 = arith.index_cast %c9_i32 : i32 to index
    %c0_342 = arith.constant 0 : index
    %c0_343 = arith.constant 0 : index
    %1154 = vector.load %arg2[%1153, %c0_342, %c0_343] : memref<13x2x1xi32, #tpu.memory_space<vmem>>, vector<1x2x1xi32>
    %1155 = vector.shape_cast %1154 : vector<1x2x1xi32> to vector<2x1xi32>
    %c0_i32_344 = arith.constant 0 : i32
    %1156 = vector.broadcast %c0_i32_344 : i32 to vector<2x1xi32>
    %1157 = arith.cmpi ne, %1155, %1156 : vector<2x1xi32>
    %1158 = arith.index_cast %c9_i32 : i32 to index
    %c0_345 = arith.constant 0 : index
    %c0_346 = arith.constant 0 : index
    %1159 = vector.load %arg5[%1158, %c0_345, %c0_346] : memref<13x2x64xf32, #tpu.memory_space<vmem>>, vector<1x2x64xf32>
    %1160 = vector.shape_cast %1159 : vector<1x2x64xf32> to vector<2x64xf32>
    %1161 = vector.extract_strided_slice %1141 {offsets = [0, 0], sizes = [2, 32], strides = [1, 1]} : vector<2x64xf32> to vector<2x32xf32>
    %1162 = vector.extract_strided_slice %1141 {offsets = [0, 32], sizes = [2, 32], strides = [1, 1]} : vector<2x64xf32> to vector<2x32xf32>
    %1163 = vector.extract_strided_slice %1147 {offsets = [0, 0], sizes = [2, 32], strides = [1, 1]} : vector<2x64xf32> to vector<2x32xf32>
    %1164 = vector.extract_strided_slice %1147 {offsets = [0, 32], sizes = [2, 32], strides = [1, 1]} : vector<2x64xf32> to vector<2x32xf32>
    %1165 = vector.extract_strided_slice %1160 {offsets = [0, 0], sizes = [2, 32], strides = [1, 1]} : vector<2x64xf32> to vector<2x32xf32>
    %1166 = tpu.concatenate %1165, %1161, %1163, %1069 in 1 : vector<2x32xf32>, vector<2x32xf32>, vector<2x32xf32>, vector<2x32xf32> -> vector<2x128xf32>
    %c0_347 = arith.constant 0 : index
    %c0_348 = arith.constant 0 : index
    %1167 = vector.load %arg7[%c0_347, %c0_348] : memref<128x128xf32, #tpu.memory_space<vmem>>, vector<128x128xf32>
    %cst_349 = arith.constant dense<0.000000e+00> : vector<2x128xf32>
    %1168 = tpu.matmul %1166, %1167, %cst_349 {dimension_numbers = #tpu.dot_dimension_numbers<[1], [0], [0], [1], [0, 0, 1, 1], [], []>} : vector<2x128xf32>, vector<128x128xf32>, vector<2x128xf32> -> vector<2x128xf32>
    %c0_350 = arith.constant 0 : index
    %c0_351 = arith.constant 0 : index
    %1169 = vector.load %arg8[%c0_350, %c0_351] : memref<1x128xf32, #tpu.memory_space<vmem>>, vector<1x128xf32>
    %1170 = vector.broadcast %1169 : vector<1x128xf32> to vector<2x128xf32>
    %1171 = arith.addf %1168, %1170 : vector<2x128xf32>
    %1172 = vector.extract_strided_slice %1171 {offsets = [0, 0], sizes = [2, 32], strides = [1, 1]} : vector<2x128xf32> to vector<2x32xf32>
    %1173 = arith.negf %1172 : vector<2x32xf32>
    %1174 = math.exp %1173 : vector<2x32xf32>
    %cst_352 = arith.constant 1.000000e+00 : f32
    %1175 = vector.broadcast %cst_352 : f32 to vector<2x32xf32>
    %1176 = arith.addf %1175, %1174 : vector<2x32xf32>
    %1177 = arith.divf %1175, %1176 : vector<2x32xf32>
    %1178 = vector.extract_strided_slice %1171 {offsets = [0, 32], sizes = [2, 32], strides = [1, 1]} : vector<2x128xf32> to vector<2x32xf32>
    %1179 = arith.negf %1178 : vector<2x32xf32>
    %1180 = math.exp %1179 : vector<2x32xf32>
    %cst_353 = arith.constant 1.000000e+00 : f32
    %1181 = vector.broadcast %cst_353 : f32 to vector<2x32xf32>
    %1182 = arith.addf %1181, %1180 : vector<2x32xf32>
    %1183 = arith.divf %1181, %1182 : vector<2x32xf32>
    %1184 = vector.extract_strided_slice %1171 {offsets = [0, 64], sizes = [2, 32], strides = [1, 1]} : vector<2x128xf32> to vector<2x32xf32>
    %1185 = math.tanh %1184 : vector<2x32xf32>
    %1186 = vector.extract_strided_slice %1171 {offsets = [0, 96], sizes = [2, 32], strides = [1, 1]} : vector<2x128xf32> to vector<2x32xf32>
    %1187 = arith.negf %1186 : vector<2x32xf32>
    %1188 = math.exp %1187 : vector<2x32xf32>
    %cst_354 = arith.constant 1.000000e+00 : f32
    %1189 = vector.broadcast %cst_354 : f32 to vector<2x32xf32>
    %1190 = arith.addf %1189, %1188 : vector<2x32xf32>
    %1191 = arith.divf %1189, %1190 : vector<2x32xf32>
    %1192 = arith.mulf %1183, %1067 : vector<2x32xf32>
    %1193 = arith.mulf %1177, %1185 : vector<2x32xf32>
    %1194 = arith.addf %1192, %1193 : vector<2x32xf32>
    %1195 = math.tanh %1194 : vector<2x32xf32>
    %1196 = arith.mulf %1191, %1195 : vector<2x32xf32>
    %1197 = tpu.concatenate %1163, %1161, %1196 in 1 : vector<2x32xf32>, vector<2x32xf32>, vector<2x32xf32> -> vector<2x96xf32>
    %c0_355 = arith.constant 0 : index
    %c0_356 = arith.constant 0 : index
    %1198 = vector.load %arg9[%c0_355, %c0_356] : memref<96x160xf32, #tpu.memory_space<vmem>>, vector<96x160xf32>
    %cst_357 = arith.constant dense<0.000000e+00> : vector<2x160xf32>
    %1199 = tpu.matmul %1197, %1198, %cst_357 {dimension_numbers = #tpu.dot_dimension_numbers<[1], [0], [0], [1], [0, 0, 1, 1], [], []>} : vector<2x96xf32>, vector<96x160xf32>, vector<2x160xf32> -> vector<2x160xf32>
    %c0_358 = arith.constant 0 : index
    %c0_359 = arith.constant 0 : index
    %1200 = vector.load %arg10[%c0_358, %c0_359] : memref<1x160xf32, #tpu.memory_space<vmem>>, vector<1x160xf32>
    %1201 = vector.broadcast %1200 : vector<1x160xf32> to vector<2x160xf32>
    %1202 = arith.addf %1199, %1201 : vector<2x160xf32>
    %1203 = vector.extract_strided_slice %1202 {offsets = [0, 0], sizes = [2, 32], strides = [1, 1]} : vector<2x160xf32> to vector<2x32xf32>
    %1204 = vector.extract_strided_slice %1202 {offsets = [0, 32], sizes = [2, 32], strides = [1, 1]} : vector<2x160xf32> to vector<2x32xf32>
    %1205 = vector.extract_strided_slice %1202 {offsets = [0, 64], sizes = [2, 32], strides = [1, 1]} : vector<2x160xf32> to vector<2x32xf32>
    %1206 = vector.extract_strided_slice %1202 {offsets = [0, 96], sizes = [2, 32], strides = [1, 1]} : vector<2x160xf32> to vector<2x32xf32>
    %1207 = vector.extract_strided_slice %1202 {offsets = [0, 128], sizes = [2, 32], strides = [1, 1]} : vector<2x160xf32> to vector<2x32xf32>
    %1208 = math.tanh %1203 : vector<2x32xf32>
    %1209 = arith.negf %1204 : vector<2x32xf32>
    %1210 = math.exp %1209 : vector<2x32xf32>
    %cst_360 = arith.constant 1.000000e+00 : f32
    %1211 = vector.broadcast %cst_360 : f32 to vector<2x32xf32>
    %1212 = arith.addf %1211, %1210 : vector<2x32xf32>
    %1213 = arith.divf %1211, %1212 : vector<2x32xf32>
    %1214 = arith.mulf %1208, %1213 : vector<2x32xf32>
    %1215 = arith.negf %1205 : vector<2x32xf32>
    %1216 = math.exp %1215 : vector<2x32xf32>
    %cst_361 = arith.constant 1.000000e+00 : f32
    %1217 = vector.broadcast %cst_361 : f32 to vector<2x32xf32>
    %1218 = arith.addf %1217, %1216 : vector<2x32xf32>
    %1219 = arith.divf %1217, %1218 : vector<2x32xf32>
    %1220 = arith.mulf %1219, %1164 : vector<2x32xf32>
    %1221 = arith.addf %1214, %1220 : vector<2x32xf32>
    %1222 = arith.negf %1206 : vector<2x32xf32>
    %1223 = math.exp %1222 : vector<2x32xf32>
    %cst_362 = arith.constant 1.000000e+00 : f32
    %1224 = vector.broadcast %cst_362 : f32 to vector<2x32xf32>
    %1225 = arith.addf %1224, %1223 : vector<2x32xf32>
    %1226 = arith.divf %1224, %1225 : vector<2x32xf32>
    %1227 = arith.mulf %1226, %1162 : vector<2x32xf32>
    %1228 = arith.addf %1221, %1227 : vector<2x32xf32>
    %1229 = arith.negf %1207 : vector<2x32xf32>
    %1230 = math.exp %1229 : vector<2x32xf32>
    %cst_363 = arith.constant 1.000000e+00 : f32
    %1231 = vector.broadcast %cst_363 : f32 to vector<2x32xf32>
    %1232 = arith.addf %1231, %1230 : vector<2x32xf32>
    %1233 = arith.divf %1231, %1232 : vector<2x32xf32>
    %1234 = math.tanh %1228 : vector<2x32xf32>
    %1235 = arith.mulf %1233, %1234 : vector<2x32xf32>
    %1236 = tpu.concatenate %1235, %1228 in 1 : vector<2x32xf32>, vector<2x32xf32> -> vector<2x64xf32>
    %1237 = tpu.iota {dimensions = array<i32: 0>} : vector<8x2x1xi32>
    %1238 = arith.index_cast %c9_i32 : i32 to index
    %c0_364 = arith.constant 0 : index
    %c0_365 = arith.constant 0 : index
    %1239 = vector.load %arg3[%1238, %c0_364, %c0_365] : memref<13x2x1xi32, #tpu.memory_space<vmem>>, vector<1x2x1xi32>
    %1240 = vector.shape_cast %1239 : vector<1x2x1xi32> to vector<2x1xi32>
    %1241 = vector.shape_cast %1240 : vector<2x1xi32> to vector<1x2x1xi32>
    %1242 = vector.broadcast %1241 : vector<1x2x1xi32> to vector<8x2x1xi32>
    %1243 = arith.cmpi eq, %1237, %1242 : vector<8x2x1xi32>
    %1244 = vector.shape_cast %1147 : vector<2x64xf32> to vector<1x2x64xf32>
    %c0_366 = arith.constant 0 : index
    %c0_367 = arith.constant 0 : index
    %c0_368 = arith.constant 0 : index
    %1245 = vector.load %arg12[%c0_366, %c0_367, %c0_368] : memref<8x2x64xf32, #tpu.memory_space<vmem>>, vector<8x2x64xf32>
    %1246 = vector.shape_cast %1243 : vector<8x2x1xi1> to vector<8x2x1xi1>
    %1247 = vector.broadcast %1246 : vector<8x2x1xi1> to vector<8x2x64xi1>
    %1248 = vector.shape_cast %1244 : vector<1x2x64xf32> to vector<1x2x64xf32>
    %1249 = vector.broadcast %1248 : vector<1x2x64xf32> to vector<8x2x64xf32>
    %1250 = arith.select %1247, %1249, %1245 : vector<8x2x64xi1>, vector<8x2x64xf32>
    %c0_369 = arith.constant 0 : index
    %c0_370 = arith.constant 0 : index
    %c0_371 = arith.constant 0 : index
    %1251 = vector.load %arg12[%c0_369, %c0_370, %c0_371] : memref<8x2x64xf32, #tpu.memory_space<vmem>>, vector<8x2x64xf32>
    tpu.vector_store %arg12[%c0_369, %c0_370, %c0_371], %1250 {strides = array<i32>} : memref<8x2x64xf32, #tpu.memory_space<vmem>>, vector<8x2x64xf32>,
    %1252 = arith.index_cast %c9_i32 : i32 to index
    %c0_372 = arith.constant 0 : index
    %c0_373 = arith.constant 0 : index
    %1253 = vector.load %arg4[%1252, %c0_372, %c0_373] : memref<13x2x1xi32, #tpu.memory_space<vmem>>, vector<1x2x1xi32>
    %1254 = vector.shape_cast %1253 : vector<1x2x1xi32> to vector<2x1xi32>
    %1255 = vector.shape_cast %1254 : vector<2x1xi32> to vector<1x2x1xi32>
    %1256 = vector.broadcast %1255 : vector<1x2x1xi32> to vector<8x2x1xi32>
    %1257 = arith.cmpi eq, %1237, %1256 : vector<8x2x1xi32>
    %cst_374 = arith.constant 0.000000e+00 : f32
    %1258 = vector.shape_cast %1257 : vector<8x2x1xi1> to vector<8x2x1xi1>
    %1259 = vector.broadcast %1258 : vector<8x2x1xi1> to vector<8x2x64xi1>
    %1260 = vector.broadcast %cst_374 : f32 to vector<8x2x64xf32>
    %1261 = arith.select %1259, %1250, %1260 : vector<8x2x64xi1>, vector<8x2x64xf32>
    %cst_375 = arith.constant dense<0.000000e+00> : vector<2x64xf32>
    %1262 = vector.multi_reduction <add>, %1261, %cst_375 [0] : vector<8x2x64xf32> to vector<2x64xf32>
    %1263 = vector.shape_cast %1157 : vector<2x1xi1> to vector<2x1xi1>
    %1264 = vector.broadcast %1263 : vector<2x1xi1> to vector<2x64xi1>
    %1265 = arith.select %1264, %1236, %1141 : vector<2x64xi1>, vector<2x64xf32>
    %1266 = vector.shape_cast %1152 : vector<2x1xi1> to vector<2x1xi1>
    %1267 = vector.broadcast %1266 : vector<2x1xi1> to vector<2x64xi1>
    %1268 = arith.select %1267, %1160, %1265 : vector<2x64xi1>, vector<2x64xf32>
    %1269 = vector.shape_cast %1157 : vector<2x1xi1> to vector<2x1xi1>
    %1270 = vector.broadcast %1269 : vector<2x1xi1> to vector<2x64xi1>
    %1271 = arith.select %1270, %1262, %1147 : vector<2x64xi1>, vector<2x64xf32>
    %1272 = vector.shape_cast %1152 : vector<2x1xi1> to vector<2x1xi1>
    %1273 = vector.broadcast %1272 : vector<2x1xi1> to vector<2x64xi1>
    %1274 = arith.select %1273, %1141, %1271 : vector<2x64xi1>, vector<2x64xf32>
    %c10_i32 = arith.constant 10 : i32
    %1275 = arith.index_cast %c10_i32 : i32 to index
    %c0_376 = arith.constant 0 : index
    %c0_377 = arith.constant 0 : index
    %1276 = vector.load %arg1[%1275, %c0_376, %c0_377] : memref<13x2x1xi32, #tpu.memory_space<vmem>>, vector<1x2x1xi32>
    %1277 = vector.shape_cast %1276 : vector<1x2x1xi32> to vector<2x1xi32>
    %c0_i32_378 = arith.constant 0 : i32
    %1278 = vector.broadcast %c0_i32_378 : i32 to vector<2x1xi32>
    %1279 = arith.cmpi ne, %1277, %1278 : vector<2x1xi32>
    %1280 = arith.index_cast %c10_i32 : i32 to index
    %c0_379 = arith.constant 0 : index
    %c0_380 = arith.constant 0 : index
    %1281 = vector.load %arg2[%1280, %c0_379, %c0_380] : memref<13x2x1xi32, #tpu.memory_space<vmem>>, vector<1x2x1xi32>
    %1282 = vector.shape_cast %1281 : vector<1x2x1xi32> to vector<2x1xi32>
    %c0_i32_381 = arith.constant 0 : i32
    %1283 = vector.broadcast %c0_i32_381 : i32 to vector<2x1xi32>
    %1284 = arith.cmpi ne, %1282, %1283 : vector<2x1xi32>
    %1285 = arith.index_cast %c10_i32 : i32 to index
    %c0_382 = arith.constant 0 : index
    %c0_383 = arith.constant 0 : index
    %1286 = vector.load %arg5[%1285, %c0_382, %c0_383] : memref<13x2x64xf32, #tpu.memory_space<vmem>>, vector<1x2x64xf32>
    %1287 = vector.shape_cast %1286 : vector<1x2x64xf32> to vector<2x64xf32>
    %1288 = vector.extract_strided_slice %1268 {offsets = [0, 0], sizes = [2, 32], strides = [1, 1]} : vector<2x64xf32> to vector<2x32xf32>
    %1289 = vector.extract_strided_slice %1268 {offsets = [0, 32], sizes = [2, 32], strides = [1, 1]} : vector<2x64xf32> to vector<2x32xf32>
    %1290 = vector.extract_strided_slice %1274 {offsets = [0, 0], sizes = [2, 32], strides = [1, 1]} : vector<2x64xf32> to vector<2x32xf32>
    %1291 = vector.extract_strided_slice %1274 {offsets = [0, 32], sizes = [2, 32], strides = [1, 1]} : vector<2x64xf32> to vector<2x32xf32>
    %1292 = vector.extract_strided_slice %1287 {offsets = [0, 0], sizes = [2, 32], strides = [1, 1]} : vector<2x64xf32> to vector<2x32xf32>
    %1293 = tpu.concatenate %1292, %1288, %1290, %1196 in 1 : vector<2x32xf32>, vector<2x32xf32>, vector<2x32xf32>, vector<2x32xf32> -> vector<2x128xf32>
    %c0_384 = arith.constant 0 : index
    %c0_385 = arith.constant 0 : index
    %1294 = vector.load %arg7[%c0_384, %c0_385] : memref<128x128xf32, #tpu.memory_space<vmem>>, vector<128x128xf32>
    %cst_386 = arith.constant dense<0.000000e+00> : vector<2x128xf32>
    %1295 = tpu.matmul %1293, %1294, %cst_386 {dimension_numbers = #tpu.dot_dimension_numbers<[1], [0], [0], [1], [0, 0, 1, 1], [], []>} : vector<2x128xf32>, vector<128x128xf32>, vector<2x128xf32> -> vector<2x128xf32>
    %c0_387 = arith.constant 0 : index
    %c0_388 = arith.constant 0 : index
    %1296 = vector.load %arg8[%c0_387, %c0_388] : memref<1x128xf32, #tpu.memory_space<vmem>>, vector<1x128xf32>
    %1297 = vector.broadcast %1296 : vector<1x128xf32> to vector<2x128xf32>
    %1298 = arith.addf %1295, %1297 : vector<2x128xf32>
    %1299 = vector.extract_strided_slice %1298 {offsets = [0, 0], sizes = [2, 32], strides = [1, 1]} : vector<2x128xf32> to vector<2x32xf32>
    %1300 = arith.negf %1299 : vector<2x32xf32>
    %1301 = math.exp %1300 : vector<2x32xf32>
    %cst_389 = arith.constant 1.000000e+00 : f32
    %1302 = vector.broadcast %cst_389 : f32 to vector<2x32xf32>
    %1303 = arith.addf %1302, %1301 : vector<2x32xf32>
    %1304 = arith.divf %1302, %1303 : vector<2x32xf32>
    %1305 = vector.extract_strided_slice %1298 {offsets = [0, 32], sizes = [2, 32], strides = [1, 1]} : vector<2x128xf32> to vector<2x32xf32>
    %1306 = arith.negf %1305 : vector<2x32xf32>
    %1307 = math.exp %1306 : vector<2x32xf32>
    %cst_390 = arith.constant 1.000000e+00 : f32
    %1308 = vector.broadcast %cst_390 : f32 to vector<2x32xf32>
    %1309 = arith.addf %1308, %1307 : vector<2x32xf32>
    %1310 = arith.divf %1308, %1309 : vector<2x32xf32>
    %1311 = vector.extract_strided_slice %1298 {offsets = [0, 64], sizes = [2, 32], strides = [1, 1]} : vector<2x128xf32> to vector<2x32xf32>
    %1312 = math.tanh %1311 : vector<2x32xf32>
    %1313 = vector.extract_strided_slice %1298 {offsets = [0, 96], sizes = [2, 32], strides = [1, 1]} : vector<2x128xf32> to vector<2x32xf32>
    %1314 = arith.negf %1313 : vector<2x32xf32>
    %1315 = math.exp %1314 : vector<2x32xf32>
    %cst_391 = arith.constant 1.000000e+00 : f32
    %1316 = vector.broadcast %cst_391 : f32 to vector<2x32xf32>
    %1317 = arith.addf %1316, %1315 : vector<2x32xf32>
    %1318 = arith.divf %1316, %1317 : vector<2x32xf32>
    %1319 = arith.mulf %1310, %1194 : vector<2x32xf32>
    %1320 = arith.mulf %1304, %1312 : vector<2x32xf32>
    %1321 = arith.addf %1319, %1320 : vector<2x32xf32>
    %1322 = math.tanh %1321 : vector<2x32xf32>
    %1323 = arith.mulf %1318, %1322 : vector<2x32xf32>
    %1324 = tpu.concatenate %1290, %1288, %1323 in 1 : vector<2x32xf32>, vector<2x32xf32>, vector<2x32xf32> -> vector<2x96xf32>
    %c0_392 = arith.constant 0 : index
    %c0_393 = arith.constant 0 : index
    %1325 = vector.load %arg9[%c0_392, %c0_393] : memref<96x160xf32, #tpu.memory_space<vmem>>, vector<96x160xf32>
    %cst_394 = arith.constant dense<0.000000e+00> : vector<2x160xf32>
    %1326 = tpu.matmul %1324, %1325, %cst_394 {dimension_numbers = #tpu.dot_dimension_numbers<[1], [0], [0], [1], [0, 0, 1, 1], [], []>} : vector<2x96xf32>, vector<96x160xf32>, vector<2x160xf32> -> vector<2x160xf32>
    %c0_395 = arith.constant 0 : index
    %c0_396 = arith.constant 0 : index
    %1327 = vector.load %arg10[%c0_395, %c0_396] : memref<1x160xf32, #tpu.memory_space<vmem>>, vector<1x160xf32>
    %1328 = vector.broadcast %1327 : vector<1x160xf32> to vector<2x160xf32>
    %1329 = arith.addf %1326, %1328 : vector<2x160xf32>
    %1330 = vector.extract_strided_slice %1329 {offsets = [0, 0], sizes = [2, 32], strides = [1, 1]} : vector<2x160xf32> to vector<2x32xf32>
    %1331 = vector.extract_strided_slice %1329 {offsets = [0, 32], sizes = [2, 32], strides = [1, 1]} : vector<2x160xf32> to vector<2x32xf32>
    %1332 = vector.extract_strided_slice %1329 {offsets = [0, 64], sizes = [2, 32], strides = [1, 1]} : vector<2x160xf32> to vector<2x32xf32>
    %1333 = vector.extract_strided_slice %1329 {offsets = [0, 96], sizes = [2, 32], strides = [1, 1]} : vector<2x160xf32> to vector<2x32xf32>
    %1334 = vector.extract_strided_slice %1329 {offsets = [0, 128], sizes = [2, 32], strides = [1, 1]} : vector<2x160xf32> to vector<2x32xf32>
    %1335 = math.tanh %1330 : vector<2x32xf32>
    %1336 = arith.negf %1331 : vector<2x32xf32>
    %1337 = math.exp %1336 : vector<2x32xf32>
    %cst_397 = arith.constant 1.000000e+00 : f32
    %1338 = vector.broadcast %cst_397 : f32 to vector<2x32xf32>
    %1339 = arith.addf %1338, %1337 : vector<2x32xf32>
    %1340 = arith.divf %1338, %1339 : vector<2x32xf32>
    %1341 = arith.mulf %1335, %1340 : vector<2x32xf32>
    %1342 = arith.negf %1332 : vector<2x32xf32>
    %1343 = math.exp %1342 : vector<2x32xf32>
    %cst_398 = arith.constant 1.000000e+00 : f32
    %1344 = vector.broadcast %cst_398 : f32 to vector<2x32xf32>
    %1345 = arith.addf %1344, %1343 : vector<2x32xf32>
    %1346 = arith.divf %1344, %1345 : vector<2x32xf32>
    %1347 = arith.mulf %1346, %1291 : vector<2x32xf32>
    %1348 = arith.addf %1341, %1347 : vector<2x32xf32>
    %1349 = arith.negf %1333 : vector<2x32xf32>
    %1350 = math.exp %1349 : vector<2x32xf32>
    %cst_399 = arith.constant 1.000000e+00 : f32
    %1351 = vector.broadcast %cst_399 : f32 to vector<2x32xf32>
    %1352 = arith.addf %1351, %1350 : vector<2x32xf32>
    %1353 = arith.divf %1351, %1352 : vector<2x32xf32>
    %1354 = arith.mulf %1353, %1289 : vector<2x32xf32>
    %1355 = arith.addf %1348, %1354 : vector<2x32xf32>
    %1356 = arith.negf %1334 : vector<2x32xf32>
    %1357 = math.exp %1356 : vector<2x32xf32>
    %cst_400 = arith.constant 1.000000e+00 : f32
    %1358 = vector.broadcast %cst_400 : f32 to vector<2x32xf32>
    %1359 = arith.addf %1358, %1357 : vector<2x32xf32>
    %1360 = arith.divf %1358, %1359 : vector<2x32xf32>
    %1361 = math.tanh %1355 : vector<2x32xf32>
    %1362 = arith.mulf %1360, %1361 : vector<2x32xf32>
    %1363 = tpu.concatenate %1362, %1355 in 1 : vector<2x32xf32>, vector<2x32xf32> -> vector<2x64xf32>
    %1364 = tpu.iota {dimensions = array<i32: 0>} : vector<8x2x1xi32>
    %1365 = arith.index_cast %c10_i32 : i32 to index
    %c0_401 = arith.constant 0 : index
    %c0_402 = arith.constant 0 : index
    %1366 = vector.load %arg3[%1365, %c0_401, %c0_402] : memref<13x2x1xi32, #tpu.memory_space<vmem>>, vector<1x2x1xi32>
    %1367 = vector.shape_cast %1366 : vector<1x2x1xi32> to vector<2x1xi32>
    %1368 = vector.shape_cast %1367 : vector<2x1xi32> to vector<1x2x1xi32>
    %1369 = vector.broadcast %1368 : vector<1x2x1xi32> to vector<8x2x1xi32>
    %1370 = arith.cmpi eq, %1364, %1369 : vector<8x2x1xi32>
    %1371 = vector.shape_cast %1274 : vector<2x64xf32> to vector<1x2x64xf32>
    %c0_403 = arith.constant 0 : index
    %c0_404 = arith.constant 0 : index
    %c0_405 = arith.constant 0 : index
    %1372 = vector.load %arg12[%c0_403, %c0_404, %c0_405] : memref<8x2x64xf32, #tpu.memory_space<vmem>>, vector<8x2x64xf32>
    %1373 = vector.shape_cast %1370 : vector<8x2x1xi1> to vector<8x2x1xi1>
    %1374 = vector.broadcast %1373 : vector<8x2x1xi1> to vector<8x2x64xi1>
    %1375 = vector.shape_cast %1371 : vector<1x2x64xf32> to vector<1x2x64xf32>
    %1376 = vector.broadcast %1375 : vector<1x2x64xf32> to vector<8x2x64xf32>
    %1377 = arith.select %1374, %1376, %1372 : vector<8x2x64xi1>, vector<8x2x64xf32>
    %c0_406 = arith.constant 0 : index
    %c0_407 = arith.constant 0 : index
    %c0_408 = arith.constant 0 : index
    %1378 = vector.load %arg12[%c0_406, %c0_407, %c0_408] : memref<8x2x64xf32, #tpu.memory_space<vmem>>, vector<8x2x64xf32>
    tpu.vector_store %arg12[%c0_406, %c0_407, %c0_408], %1377 {strides = array<i32>} : memref<8x2x64xf32, #tpu.memory_space<vmem>>, vector<8x2x64xf32>,
    %1379 = arith.index_cast %c10_i32 : i32 to index
    %c0_409 = arith.constant 0 : index
    %c0_410 = arith.constant 0 : index
    %1380 = vector.load %arg4[%1379, %c0_409, %c0_410] : memref<13x2x1xi32, #tpu.memory_space<vmem>>, vector<1x2x1xi32>
    %1381 = vector.shape_cast %1380 : vector<1x2x1xi32> to vector<2x1xi32>
    %1382 = vector.shape_cast %1381 : vector<2x1xi32> to vector<1x2x1xi32>
    %1383 = vector.broadcast %1382 : vector<1x2x1xi32> to vector<8x2x1xi32>
    %1384 = arith.cmpi eq, %1364, %1383 : vector<8x2x1xi32>
    %cst_411 = arith.constant 0.000000e+00 : f32
    %1385 = vector.shape_cast %1384 : vector<8x2x1xi1> to vector<8x2x1xi1>
    %1386 = vector.broadcast %1385 : vector<8x2x1xi1> to vector<8x2x64xi1>
    %1387 = vector.broadcast %cst_411 : f32 to vector<8x2x64xf32>
    %1388 = arith.select %1386, %1377, %1387 : vector<8x2x64xi1>, vector<8x2x64xf32>
    %cst_412 = arith.constant dense<0.000000e+00> : vector<2x64xf32>
    %1389 = vector.multi_reduction <add>, %1388, %cst_412 [0] : vector<8x2x64xf32> to vector<2x64xf32>
    %1390 = vector.shape_cast %1284 : vector<2x1xi1> to vector<2x1xi1>
    %1391 = vector.broadcast %1390 : vector<2x1xi1> to vector<2x64xi1>
    %1392 = arith.select %1391, %1363, %1268 : vector<2x64xi1>, vector<2x64xf32>
    %1393 = vector.shape_cast %1279 : vector<2x1xi1> to vector<2x1xi1>
    %1394 = vector.broadcast %1393 : vector<2x1xi1> to vector<2x64xi1>
    %1395 = arith.select %1394, %1287, %1392 : vector<2x64xi1>, vector<2x64xf32>
    %1396 = vector.shape_cast %1284 : vector<2x1xi1> to vector<2x1xi1>
    %1397 = vector.broadcast %1396 : vector<2x1xi1> to vector<2x64xi1>
    %1398 = arith.select %1397, %1389, %1274 : vector<2x64xi1>, vector<2x64xf32>
    %1399 = vector.shape_cast %1279 : vector<2x1xi1> to vector<2x1xi1>
    %1400 = vector.broadcast %1399 : vector<2x1xi1> to vector<2x64xi1>
    %1401 = arith.select %1400, %1268, %1398 : vector<2x64xi1>, vector<2x64xf32>
    %c11_i32 = arith.constant 11 : i32
    %1402 = arith.index_cast %c11_i32 : i32 to index
    %c0_413 = arith.constant 0 : index
    %c0_414 = arith.constant 0 : index
    %1403 = vector.load %arg1[%1402, %c0_413, %c0_414] : memref<13x2x1xi32, #tpu.memory_space<vmem>>, vector<1x2x1xi32>
    %1404 = vector.shape_cast %1403 : vector<1x2x1xi32> to vector<2x1xi32>
    %c0_i32_415 = arith.constant 0 : i32
    %1405 = vector.broadcast %c0_i32_415 : i32 to vector<2x1xi32>
    %1406 = arith.cmpi ne, %1404, %1405 : vector<2x1xi32>
    %1407 = arith.index_cast %c11_i32 : i32 to index
    %c0_416 = arith.constant 0 : index
    %c0_417 = arith.constant 0 : index
    %1408 = vector.load %arg2[%1407, %c0_416, %c0_417] : memref<13x2x1xi32, #tpu.memory_space<vmem>>, vector<1x2x1xi32>
    %1409 = vector.shape_cast %1408 : vector<1x2x1xi32> to vector<2x1xi32>
    %c0_i32_418 = arith.constant 0 : i32
    %1410 = vector.broadcast %c0_i32_418 : i32 to vector<2x1xi32>
    %1411 = arith.cmpi ne, %1409, %1410 : vector<2x1xi32>
    %1412 = arith.index_cast %c11_i32 : i32 to index
    %c0_419 = arith.constant 0 : index
    %c0_420 = arith.constant 0 : index
    %1413 = vector.load %arg5[%1412, %c0_419, %c0_420] : memref<13x2x64xf32, #tpu.memory_space<vmem>>, vector<1x2x64xf32>
    %1414 = vector.shape_cast %1413 : vector<1x2x64xf32> to vector<2x64xf32>
    %1415 = vector.extract_strided_slice %1395 {offsets = [0, 0], sizes = [2, 32], strides = [1, 1]} : vector<2x64xf32> to vector<2x32xf32>
    %1416 = vector.extract_strided_slice %1395 {offsets = [0, 32], sizes = [2, 32], strides = [1, 1]} : vector<2x64xf32> to vector<2x32xf32>
    %1417 = vector.extract_strided_slice %1401 {offsets = [0, 0], sizes = [2, 32], strides = [1, 1]} : vector<2x64xf32> to vector<2x32xf32>
    %1418 = vector.extract_strided_slice %1401 {offsets = [0, 32], sizes = [2, 32], strides = [1, 1]} : vector<2x64xf32> to vector<2x32xf32>
    %1419 = vector.extract_strided_slice %1414 {offsets = [0, 0], sizes = [2, 32], strides = [1, 1]} : vector<2x64xf32> to vector<2x32xf32>
    %1420 = tpu.concatenate %1419, %1415, %1417, %1323 in 1 : vector<2x32xf32>, vector<2x32xf32>, vector<2x32xf32>, vector<2x32xf32> -> vector<2x128xf32>
    %c0_421 = arith.constant 0 : index
    %c0_422 = arith.constant 0 : index
    %1421 = vector.load %arg7[%c0_421, %c0_422] : memref<128x128xf32, #tpu.memory_space<vmem>>, vector<128x128xf32>
    %cst_423 = arith.constant dense<0.000000e+00> : vector<2x128xf32>
    %1422 = tpu.matmul %1420, %1421, %cst_423 {dimension_numbers = #tpu.dot_dimension_numbers<[1], [0], [0], [1], [0, 0, 1, 1], [], []>} : vector<2x128xf32>, vector<128x128xf32>, vector<2x128xf32> -> vector<2x128xf32>
    %c0_424 = arith.constant 0 : index
    %c0_425 = arith.constant 0 : index
    %1423 = vector.load %arg8[%c0_424, %c0_425] : memref<1x128xf32, #tpu.memory_space<vmem>>, vector<1x128xf32>
    %1424 = vector.broadcast %1423 : vector<1x128xf32> to vector<2x128xf32>
    %1425 = arith.addf %1422, %1424 : vector<2x128xf32>
    %1426 = vector.extract_strided_slice %1425 {offsets = [0, 0], sizes = [2, 32], strides = [1, 1]} : vector<2x128xf32> to vector<2x32xf32>
    %1427 = arith.negf %1426 : vector<2x32xf32>
    %1428 = math.exp %1427 : vector<2x32xf32>
    %cst_426 = arith.constant 1.000000e+00 : f32
    %1429 = vector.broadcast %cst_426 : f32 to vector<2x32xf32>
    %1430 = arith.addf %1429, %1428 : vector<2x32xf32>
    %1431 = arith.divf %1429, %1430 : vector<2x32xf32>
    %1432 = vector.extract_strided_slice %1425 {offsets = [0, 32], sizes = [2, 32], strides = [1, 1]} : vector<2x128xf32> to vector<2x32xf32>
    %1433 = arith.negf %1432 : vector<2x32xf32>
    %1434 = math.exp %1433 : vector<2x32xf32>
    %cst_427 = arith.constant 1.000000e+00 : f32
    %1435 = vector.broadcast %cst_427 : f32 to vector<2x32xf32>
    %1436 = arith.addf %1435, %1434 : vector<2x32xf32>
    %1437 = arith.divf %1435, %1436 : vector<2x32xf32>
    %1438 = vector.extract_strided_slice %1425 {offsets = [0, 64], sizes = [2, 32], strides = [1, 1]} : vector<2x128xf32> to vector<2x32xf32>
    %1439 = math.tanh %1438 : vector<2x32xf32>
    %1440 = vector.extract_strided_slice %1425 {offsets = [0, 96], sizes = [2, 32], strides = [1, 1]} : vector<2x128xf32> to vector<2x32xf32>
    %1441 = arith.negf %1440 : vector<2x32xf32>
    %1442 = math.exp %1441 : vector<2x32xf32>
    %cst_428 = arith.constant 1.000000e+00 : f32
    %1443 = vector.broadcast %cst_428 : f32 to vector<2x32xf32>
    %1444 = arith.addf %1443, %1442 : vector<2x32xf32>
    %1445 = arith.divf %1443, %1444 : vector<2x32xf32>
    %1446 = arith.mulf %1437, %1321 : vector<2x32xf32>
    %1447 = arith.mulf %1431, %1439 : vector<2x32xf32>
    %1448 = arith.addf %1446, %1447 : vector<2x32xf32>
    %1449 = math.tanh %1448 : vector<2x32xf32>
    %1450 = arith.mulf %1445, %1449 : vector<2x32xf32>
    %1451 = tpu.concatenate %1417, %1415, %1450 in 1 : vector<2x32xf32>, vector<2x32xf32>, vector<2x32xf32> -> vector<2x96xf32>
    %c0_429 = arith.constant 0 : index
    %c0_430 = arith.constant 0 : index
    %1452 = vector.load %arg9[%c0_429, %c0_430] : memref<96x160xf32, #tpu.memory_space<vmem>>, vector<96x160xf32>
    %cst_431 = arith.constant dense<0.000000e+00> : vector<2x160xf32>
    %1453 = tpu.matmul %1451, %1452, %cst_431 {dimension_numbers = #tpu.dot_dimension_numbers<[1], [0], [0], [1], [0, 0, 1, 1], [], []>} : vector<2x96xf32>, vector<96x160xf32>, vector<2x160xf32> -> vector<2x160xf32>
    %c0_432 = arith.constant 0 : index
    %c0_433 = arith.constant 0 : index
    %1454 = vector.load %arg10[%c0_432, %c0_433] : memref<1x160xf32, #tpu.memory_space<vmem>>, vector<1x160xf32>
    %1455 = vector.broadcast %1454 : vector<1x160xf32> to vector<2x160xf32>
    %1456 = arith.addf %1453, %1455 : vector<2x160xf32>
    %1457 = vector.extract_strided_slice %1456 {offsets = [0, 0], sizes = [2, 32], strides = [1, 1]} : vector<2x160xf32> to vector<2x32xf32>
    %1458 = vector.extract_strided_slice %1456 {offsets = [0, 32], sizes = [2, 32], strides = [1, 1]} : vector<2x160xf32> to vector<2x32xf32>
    %1459 = vector.extract_strided_slice %1456 {offsets = [0, 64], sizes = [2, 32], strides = [1, 1]} : vector<2x160xf32> to vector<2x32xf32>
    %1460 = vector.extract_strided_slice %1456 {offsets = [0, 96], sizes = [2, 32], strides = [1, 1]} : vector<2x160xf32> to vector<2x32xf32>
    %1461 = vector.extract_strided_slice %1456 {offsets = [0, 128], sizes = [2, 32], strides = [1, 1]} : vector<2x160xf32> to vector<2x32xf32>
    %1462 = math.tanh %1457 : vector<2x32xf32>
    %1463 = arith.negf %1458 : vector<2x32xf32>
    %1464 = math.exp %1463 : vector<2x32xf32>
    %cst_434 = arith.constant 1.000000e+00 : f32
    %1465 = vector.broadcast %cst_434 : f32 to vector<2x32xf32>
    %1466 = arith.addf %1465, %1464 : vector<2x32xf32>
    %1467 = arith.divf %1465, %1466 : vector<2x32xf32>
    %1468 = arith.mulf %1462, %1467 : vector<2x32xf32>
    %1469 = arith.negf %1459 : vector<2x32xf32>
    %1470 = math.exp %1469 : vector<2x32xf32>
    %cst_435 = arith.constant 1.000000e+00 : f32
    %1471 = vector.broadcast %cst_435 : f32 to vector<2x32xf32>
    %1472 = arith.addf %1471, %1470 : vector<2x32xf32>
    %1473 = arith.divf %1471, %1472 : vector<2x32xf32>
    %1474 = arith.mulf %1473, %1418 : vector<2x32xf32>
    %1475 = arith.addf %1468, %1474 : vector<2x32xf32>
    %1476 = arith.negf %1460 : vector<2x32xf32>
    %1477 = math.exp %1476 : vector<2x32xf32>
    %cst_436 = arith.constant 1.000000e+00 : f32
    %1478 = vector.broadcast %cst_436 : f32 to vector<2x32xf32>
    %1479 = arith.addf %1478, %1477 : vector<2x32xf32>
    %1480 = arith.divf %1478, %1479 : vector<2x32xf32>
    %1481 = arith.mulf %1480, %1416 : vector<2x32xf32>
    %1482 = arith.addf %1475, %1481 : vector<2x32xf32>
    %1483 = arith.negf %1461 : vector<2x32xf32>
    %1484 = math.exp %1483 : vector<2x32xf32>
    %cst_437 = arith.constant 1.000000e+00 : f32
    %1485 = vector.broadcast %cst_437 : f32 to vector<2x32xf32>
    %1486 = arith.addf %1485, %1484 : vector<2x32xf32>
    %1487 = arith.divf %1485, %1486 : vector<2x32xf32>
    %1488 = math.tanh %1482 : vector<2x32xf32>
    %1489 = arith.mulf %1487, %1488 : vector<2x32xf32>
    %1490 = tpu.concatenate %1489, %1482 in 1 : vector<2x32xf32>, vector<2x32xf32> -> vector<2x64xf32>
    %1491 = tpu.iota {dimensions = array<i32: 0>} : vector<8x2x1xi32>
    %1492 = arith.index_cast %c11_i32 : i32 to index
    %c0_438 = arith.constant 0 : index
    %c0_439 = arith.constant 0 : index
    %1493 = vector.load %arg3[%1492, %c0_438, %c0_439] : memref<13x2x1xi32, #tpu.memory_space<vmem>>, vector<1x2x1xi32>
    %1494 = vector.shape_cast %1493 : vector<1x2x1xi32> to vector<2x1xi32>
    %1495 = vector.shape_cast %1494 : vector<2x1xi32> to vector<1x2x1xi32>
    %1496 = vector.broadcast %1495 : vector<1x2x1xi32> to vector<8x2x1xi32>
    %1497 = arith.cmpi eq, %1491, %1496 : vector<8x2x1xi32>
    %1498 = vector.shape_cast %1401 : vector<2x64xf32> to vector<1x2x64xf32>
    %c0_440 = arith.constant 0 : index
    %c0_441 = arith.constant 0 : index
    %c0_442 = arith.constant 0 : index
    %1499 = vector.load %arg12[%c0_440, %c0_441, %c0_442] : memref<8x2x64xf32, #tpu.memory_space<vmem>>, vector<8x2x64xf32>
    %1500 = vector.shape_cast %1497 : vector<8x2x1xi1> to vector<8x2x1xi1>
    %1501 = vector.broadcast %1500 : vector<8x2x1xi1> to vector<8x2x64xi1>
    %1502 = vector.shape_cast %1498 : vector<1x2x64xf32> to vector<1x2x64xf32>
    %1503 = vector.broadcast %1502 : vector<1x2x64xf32> to vector<8x2x64xf32>
    %1504 = arith.select %1501, %1503, %1499 : vector<8x2x64xi1>, vector<8x2x64xf32>
    %c0_443 = arith.constant 0 : index
    %c0_444 = arith.constant 0 : index
    %c0_445 = arith.constant 0 : index
    %1505 = vector.load %arg12[%c0_443, %c0_444, %c0_445] : memref<8x2x64xf32, #tpu.memory_space<vmem>>, vector<8x2x64xf32>
    tpu.vector_store %arg12[%c0_443, %c0_444, %c0_445], %1504 {strides = array<i32>} : memref<8x2x64xf32, #tpu.memory_space<vmem>>, vector<8x2x64xf32>,
    %1506 = arith.index_cast %c11_i32 : i32 to index
    %c0_446 = arith.constant 0 : index
    %c0_447 = arith.constant 0 : index
    %1507 = vector.load %arg4[%1506, %c0_446, %c0_447] : memref<13x2x1xi32, #tpu.memory_space<vmem>>, vector<1x2x1xi32>
    %1508 = vector.shape_cast %1507 : vector<1x2x1xi32> to vector<2x1xi32>
    %1509 = vector.shape_cast %1508 : vector<2x1xi32> to vector<1x2x1xi32>
    %1510 = vector.broadcast %1509 : vector<1x2x1xi32> to vector<8x2x1xi32>
    %1511 = arith.cmpi eq, %1491, %1510 : vector<8x2x1xi32>
    %cst_448 = arith.constant 0.000000e+00 : f32
    %1512 = vector.shape_cast %1511 : vector<8x2x1xi1> to vector<8x2x1xi1>
    %1513 = vector.broadcast %1512 : vector<8x2x1xi1> to vector<8x2x64xi1>
    %1514 = vector.broadcast %cst_448 : f32 to vector<8x2x64xf32>
    %1515 = arith.select %1513, %1504, %1514 : vector<8x2x64xi1>, vector<8x2x64xf32>
    %cst_449 = arith.constant dense<0.000000e+00> : vector<2x64xf32>
    %1516 = vector.multi_reduction <add>, %1515, %cst_449 [0] : vector<8x2x64xf32> to vector<2x64xf32>
    %1517 = vector.shape_cast %1411 : vector<2x1xi1> to vector<2x1xi1>
    %1518 = vector.broadcast %1517 : vector<2x1xi1> to vector<2x64xi1>
    %1519 = arith.select %1518, %1490, %1395 : vector<2x64xi1>, vector<2x64xf32>
    %1520 = vector.shape_cast %1406 : vector<2x1xi1> to vector<2x1xi1>
    %1521 = vector.broadcast %1520 : vector<2x1xi1> to vector<2x64xi1>
    %1522 = arith.select %1521, %1414, %1519 : vector<2x64xi1>, vector<2x64xf32>
    %1523 = vector.shape_cast %1411 : vector<2x1xi1> to vector<2x1xi1>
    %1524 = vector.broadcast %1523 : vector<2x1xi1> to vector<2x64xi1>
    %1525 = arith.select %1524, %1516, %1401 : vector<2x64xi1>, vector<2x64xf32>
    %1526 = vector.shape_cast %1406 : vector<2x1xi1> to vector<2x1xi1>
    %1527 = vector.broadcast %1526 : vector<2x1xi1> to vector<2x64xi1>
    %1528 = arith.select %1527, %1395, %1525 : vector<2x64xi1>, vector<2x64xf32>
    %c12_i32 = arith.constant 12 : i32
    %1529 = arith.index_cast %c12_i32 : i32 to index
    %c0_450 = arith.constant 0 : index
    %c0_451 = arith.constant 0 : index
    %1530 = vector.load %arg1[%1529, %c0_450, %c0_451] : memref<13x2x1xi32, #tpu.memory_space<vmem>>, vector<1x2x1xi32>
    %1531 = vector.shape_cast %1530 : vector<1x2x1xi32> to vector<2x1xi32>
    %c0_i32_452 = arith.constant 0 : i32
    %1532 = vector.broadcast %c0_i32_452 : i32 to vector<2x1xi32>
    %1533 = arith.cmpi ne, %1531, %1532 : vector<2x1xi32>
    %1534 = arith.index_cast %c12_i32 : i32 to index
    %c0_453 = arith.constant 0 : index
    %c0_454 = arith.constant 0 : index
    %1535 = vector.load %arg2[%1534, %c0_453, %c0_454] : memref<13x2x1xi32, #tpu.memory_space<vmem>>, vector<1x2x1xi32>
    %1536 = vector.shape_cast %1535 : vector<1x2x1xi32> to vector<2x1xi32>
    %c0_i32_455 = arith.constant 0 : i32
    %1537 = vector.broadcast %c0_i32_455 : i32 to vector<2x1xi32>
    %1538 = arith.cmpi ne, %1536, %1537 : vector<2x1xi32>
    %1539 = arith.index_cast %c12_i32 : i32 to index
    %c0_456 = arith.constant 0 : index
    %c0_457 = arith.constant 0 : index
    %1540 = vector.load %arg5[%1539, %c0_456, %c0_457] : memref<13x2x64xf32, #tpu.memory_space<vmem>>, vector<1x2x64xf32>
    %1541 = vector.shape_cast %1540 : vector<1x2x64xf32> to vector<2x64xf32>
    %1542 = vector.extract_strided_slice %1522 {offsets = [0, 0], sizes = [2, 32], strides = [1, 1]} : vector<2x64xf32> to vector<2x32xf32>
    %1543 = vector.extract_strided_slice %1522 {offsets = [0, 32], sizes = [2, 32], strides = [1, 1]} : vector<2x64xf32> to vector<2x32xf32>
    %1544 = vector.extract_strided_slice %1528 {offsets = [0, 0], sizes = [2, 32], strides = [1, 1]} : vector<2x64xf32> to vector<2x32xf32>
    %1545 = vector.extract_strided_slice %1528 {offsets = [0, 32], sizes = [2, 32], strides = [1, 1]} : vector<2x64xf32> to vector<2x32xf32>
    %1546 = vector.extract_strided_slice %1541 {offsets = [0, 0], sizes = [2, 32], strides = [1, 1]} : vector<2x64xf32> to vector<2x32xf32>
    %1547 = tpu.concatenate %1546, %1542, %1544, %1450 in 1 : vector<2x32xf32>, vector<2x32xf32>, vector<2x32xf32>, vector<2x32xf32> -> vector<2x128xf32>
    %c0_458 = arith.constant 0 : index
    %c0_459 = arith.constant 0 : index
    %1548 = vector.load %arg7[%c0_458, %c0_459] : memref<128x128xf32, #tpu.memory_space<vmem>>, vector<128x128xf32>
    %cst_460 = arith.constant dense<0.000000e+00> : vector<2x128xf32>
    %1549 = tpu.matmul %1547, %1548, %cst_460 {dimension_numbers = #tpu.dot_dimension_numbers<[1], [0], [0], [1], [0, 0, 1, 1], [], []>} : vector<2x128xf32>, vector<128x128xf32>, vector<2x128xf32> -> vector<2x128xf32>
    %c0_461 = arith.constant 0 : index
    %c0_462 = arith.constant 0 : index
    %1550 = vector.load %arg8[%c0_461, %c0_462] : memref<1x128xf32, #tpu.memory_space<vmem>>, vector<1x128xf32>
    %1551 = vector.broadcast %1550 : vector<1x128xf32> to vector<2x128xf32>
    %1552 = arith.addf %1549, %1551 : vector<2x128xf32>
    %1553 = vector.extract_strided_slice %1552 {offsets = [0, 0], sizes = [2, 32], strides = [1, 1]} : vector<2x128xf32> to vector<2x32xf32>
    %1554 = arith.negf %1553 : vector<2x32xf32>
    %1555 = math.exp %1554 : vector<2x32xf32>
    %cst_463 = arith.constant 1.000000e+00 : f32
    %1556 = vector.broadcast %cst_463 : f32 to vector<2x32xf32>
    %1557 = arith.addf %1556, %1555 : vector<2x32xf32>
    %1558 = arith.divf %1556, %1557 : vector<2x32xf32>
    %1559 = vector.extract_strided_slice %1552 {offsets = [0, 32], sizes = [2, 32], strides = [1, 1]} : vector<2x128xf32> to vector<2x32xf32>
    %1560 = arith.negf %1559 : vector<2x32xf32>
    %1561 = math.exp %1560 : vector<2x32xf32>
    %cst_464 = arith.constant 1.000000e+00 : f32
    %1562 = vector.broadcast %cst_464 : f32 to vector<2x32xf32>
    %1563 = arith.addf %1562, %1561 : vector<2x32xf32>
    %1564 = arith.divf %1562, %1563 : vector<2x32xf32>
    %1565 = vector.extract_strided_slice %1552 {offsets = [0, 64], sizes = [2, 32], strides = [1, 1]} : vector<2x128xf32> to vector<2x32xf32>
    %1566 = math.tanh %1565 : vector<2x32xf32>
    %1567 = vector.extract_strided_slice %1552 {offsets = [0, 96], sizes = [2, 32], strides = [1, 1]} : vector<2x128xf32> to vector<2x32xf32>
    %1568 = arith.negf %1567 : vector<2x32xf32>
    %1569 = math.exp %1568 : vector<2x32xf32>
    %cst_465 = arith.constant 1.000000e+00 : f32
    %1570 = vector.broadcast %cst_465 : f32 to vector<2x32xf32>
    %1571 = arith.addf %1570, %1569 : vector<2x32xf32>
    %1572 = arith.divf %1570, %1571 : vector<2x32xf32>
    %1573 = arith.mulf %1564, %1448 : vector<2x32xf32>
    %1574 = arith.mulf %1558, %1566 : vector<2x32xf32>
    %1575 = arith.addf %1573, %1574 : vector<2x32xf32>
    %1576 = math.tanh %1575 : vector<2x32xf32>
    %1577 = arith.mulf %1572, %1576 : vector<2x32xf32>
    %1578 = tpu.concatenate %1544, %1542, %1577 in 1 : vector<2x32xf32>, vector<2x32xf32>, vector<2x32xf32> -> vector<2x96xf32>
    %c0_466 = arith.constant 0 : index
    %c0_467 = arith.constant 0 : index
    %1579 = vector.load %arg9[%c0_466, %c0_467] : memref<96x160xf32, #tpu.memory_space<vmem>>, vector<96x160xf32>
    %cst_468 = arith.constant dense<0.000000e+00> : vector<2x160xf32>
    %1580 = tpu.matmul %1578, %1579, %cst_468 {dimension_numbers = #tpu.dot_dimension_numbers<[1], [0], [0], [1], [0, 0, 1, 1], [], []>} : vector<2x96xf32>, vector<96x160xf32>, vector<2x160xf32> -> vector<2x160xf32>
    %c0_469 = arith.constant 0 : index
    %c0_470 = arith.constant 0 : index
    %1581 = vector.load %arg10[%c0_469, %c0_470] : memref<1x160xf32, #tpu.memory_space<vmem>>, vector<1x160xf32>
    %1582 = vector.broadcast %1581 : vector<1x160xf32> to vector<2x160xf32>
    %1583 = arith.addf %1580, %1582 : vector<2x160xf32>
    %1584 = vector.extract_strided_slice %1583 {offsets = [0, 0], sizes = [2, 32], strides = [1, 1]} : vector<2x160xf32> to vector<2x32xf32>
    %1585 = vector.extract_strided_slice %1583 {offsets = [0, 32], sizes = [2, 32], strides = [1, 1]} : vector<2x160xf32> to vector<2x32xf32>
    %1586 = vector.extract_strided_slice %1583 {offsets = [0, 64], sizes = [2, 32], strides = [1, 1]} : vector<2x160xf32> to vector<2x32xf32>
    %1587 = vector.extract_strided_slice %1583 {offsets = [0, 96], sizes = [2, 32], strides = [1, 1]} : vector<2x160xf32> to vector<2x32xf32>
    %1588 = vector.extract_strided_slice %1583 {offsets = [0, 128], sizes = [2, 32], strides = [1, 1]} : vector<2x160xf32> to vector<2x32xf32>
    %1589 = math.tanh %1584 : vector<2x32xf32>
    %1590 = arith.negf %1585 : vector<2x32xf32>
    %1591 = math.exp %1590 : vector<2x32xf32>
    %cst_471 = arith.constant 1.000000e+00 : f32
    %1592 = vector.broadcast %cst_471 : f32 to vector<2x32xf32>
    %1593 = arith.addf %1592, %1591 : vector<2x32xf32>
    %1594 = arith.divf %1592, %1593 : vector<2x32xf32>
    %1595 = arith.mulf %1589, %1594 : vector<2x32xf32>
    %1596 = arith.negf %1586 : vector<2x32xf32>
    %1597 = math.exp %1596 : vector<2x32xf32>
    %cst_472 = arith.constant 1.000000e+00 : f32
    %1598 = vector.broadcast %cst_472 : f32 to vector<2x32xf32>
    %1599 = arith.addf %1598, %1597 : vector<2x32xf32>
    %1600 = arith.divf %1598, %1599 : vector<2x32xf32>
    %1601 = arith.mulf %1600, %1545 : vector<2x32xf32>
    %1602 = arith.addf %1595, %1601 : vector<2x32xf32>
    %1603 = arith.negf %1587 : vector<2x32xf32>
    %1604 = math.exp %1603 : vector<2x32xf32>
    %cst_473 = arith.constant 1.000000e+00 : f32
    %1605 = vector.broadcast %cst_473 : f32 to vector<2x32xf32>
    %1606 = arith.addf %1605, %1604 : vector<2x32xf32>
    %1607 = arith.divf %1605, %1606 : vector<2x32xf32>
    %1608 = arith.mulf %1607, %1543 : vector<2x32xf32>
    %1609 = arith.addf %1602, %1608 : vector<2x32xf32>
    %1610 = arith.negf %1588 : vector<2x32xf32>
    %1611 = math.exp %1610 : vector<2x32xf32>
    %cst_474 = arith.constant 1.000000e+00 : f32
    %1612 = vector.broadcast %cst_474 : f32 to vector<2x32xf32>
    %1613 = arith.addf %1612, %1611 : vector<2x32xf32>
    %1614 = arith.divf %1612, %1613 : vector<2x32xf32>
    %1615 = math.tanh %1609 : vector<2x32xf32>
    %1616 = arith.mulf %1614, %1615 : vector<2x32xf32>
    %1617 = tpu.concatenate %1616, %1609 in 1 : vector<2x32xf32>, vector<2x32xf32> -> vector<2x64xf32>
    %1618 = tpu.iota {dimensions = array<i32: 0>} : vector<8x2x1xi32>
    %1619 = arith.index_cast %c12_i32 : i32 to index
    %c0_475 = arith.constant 0 : index
    %c0_476 = arith.constant 0 : index
    %1620 = vector.load %arg3[%1619, %c0_475, %c0_476] : memref<13x2x1xi32, #tpu.memory_space<vmem>>, vector<1x2x1xi32>
    %1621 = vector.shape_cast %1620 : vector<1x2x1xi32> to vector<2x1xi32>
    %1622 = vector.shape_cast %1621 : vector<2x1xi32> to vector<1x2x1xi32>
    %1623 = vector.broadcast %1622 : vector<1x2x1xi32> to vector<8x2x1xi32>
    %1624 = arith.cmpi eq, %1618, %1623 : vector<8x2x1xi32>
    %1625 = vector.shape_cast %1528 : vector<2x64xf32> to vector<1x2x64xf32>
    %c0_477 = arith.constant 0 : index
    %c0_478 = arith.constant 0 : index
    %c0_479 = arith.constant 0 : index
    %1626 = vector.load %arg12[%c0_477, %c0_478, %c0_479] : memref<8x2x64xf32, #tpu.memory_space<vmem>>, vector<8x2x64xf32>
    %1627 = vector.shape_cast %1624 : vector<8x2x1xi1> to vector<8x2x1xi1>
    %1628 = vector.broadcast %1627 : vector<8x2x1xi1> to vector<8x2x64xi1>
    %1629 = vector.shape_cast %1625 : vector<1x2x64xf32> to vector<1x2x64xf32>
    %1630 = vector.broadcast %1629 : vector<1x2x64xf32> to vector<8x2x64xf32>
    %1631 = arith.select %1628, %1630, %1626 : vector<8x2x64xi1>, vector<8x2x64xf32>
    %c0_480 = arith.constant 0 : index
    %c0_481 = arith.constant 0 : index
    %c0_482 = arith.constant 0 : index
    %1632 = vector.load %arg12[%c0_480, %c0_481, %c0_482] : memref<8x2x64xf32, #tpu.memory_space<vmem>>, vector<8x2x64xf32>
    tpu.vector_store %arg12[%c0_480, %c0_481, %c0_482], %1631 {strides = array<i32>} : memref<8x2x64xf32, #tpu.memory_space<vmem>>, vector<8x2x64xf32>,
    %1633 = arith.index_cast %c12_i32 : i32 to index
    %c0_483 = arith.constant 0 : index
    %c0_484 = arith.constant 0 : index
    %1634 = vector.load %arg4[%1633, %c0_483, %c0_484] : memref<13x2x1xi32, #tpu.memory_space<vmem>>, vector<1x2x1xi32>
    %1635 = vector.shape_cast %1634 : vector<1x2x1xi32> to vector<2x1xi32>
    %1636 = vector.shape_cast %1635 : vector<2x1xi32> to vector<1x2x1xi32>
    %1637 = vector.broadcast %1636 : vector<1x2x1xi32> to vector<8x2x1xi32>
    %1638 = arith.cmpi eq, %1618, %1637 : vector<8x2x1xi32>
    %cst_485 = arith.constant 0.000000e+00 : f32
    %1639 = vector.shape_cast %1638 : vector<8x2x1xi1> to vector<8x2x1xi1>
    %1640 = vector.broadcast %1639 : vector<8x2x1xi1> to vector<8x2x64xi1>
    %1641 = vector.broadcast %cst_485 : f32 to vector<8x2x64xf32>
    %1642 = arith.select %1640, %1631, %1641 : vector<8x2x64xi1>, vector<8x2x64xf32>
    %cst_486 = arith.constant dense<0.000000e+00> : vector<2x64xf32>
    %1643 = vector.multi_reduction <add>, %1642, %cst_486 [0] : vector<8x2x64xf32> to vector<2x64xf32>
    %1644 = vector.shape_cast %1538 : vector<2x1xi1> to vector<2x1xi1>
    %1645 = vector.broadcast %1644 : vector<2x1xi1> to vector<2x64xi1>
    %1646 = arith.select %1645, %1617, %1522 : vector<2x64xi1>, vector<2x64xf32>
    %1647 = vector.shape_cast %1533 : vector<2x1xi1> to vector<2x1xi1>
    %1648 = vector.broadcast %1647 : vector<2x1xi1> to vector<2x64xi1>
    %1649 = arith.select %1648, %1541, %1646 : vector<2x64xi1>, vector<2x64xf32>
    %1650 = vector.shape_cast %1538 : vector<2x1xi1> to vector<2x1xi1>
    %1651 = vector.broadcast %1650 : vector<2x1xi1> to vector<2x64xi1>
    %1652 = arith.select %1651, %1643, %1528 : vector<2x64xi1>, vector<2x64xf32>
    %1653 = vector.shape_cast %1533 : vector<2x1xi1> to vector<2x1xi1>
    %1654 = vector.broadcast %1653 : vector<2x1xi1> to vector<2x64xi1>
    %1655 = arith.select %1654, %1522, %1652 : vector<2x64xi1>, vector<2x64xf32>
    %c13_i32 = arith.constant 13 : i32
    %1656 = vector.extract_strided_slice %1649 {offsets = [0, 0], sizes = [2, 32], strides = [1, 1]} : vector<2x64xf32> to vector<2x32xf32>
    %c0_487 = arith.constant 0 : index
    %c0_488 = arith.constant 0 : index
    %1657 = vector.load %arg11[%c0_487, %c0_488] : memref<2x32xf32, #tpu.memory_space<vmem>>, vector<2x32xf32>
    tpu.vector_store %arg11[%c0_487, %c0_488], %1656 {strides = array<i32>} : memref<2x32xf32, #tpu.memory_space<vmem>>, vector<2x32xf32>,
    return
  }
  func.func @transform_0(%arg0: i32) -> (i32, i32, i32) {
    %c0_i32 = arith.constant 0 : i32
    %c0_i32_0 = arith.constant 0 : i32
    %c0_i32_1 = arith.constant 0 : i32
    %c0_i32_2 = arith.constant 0 : i32
    return %c0_i32, %c0_i32_0, %c0_i32_1 : i32, i32, i32
  }
  func.func @transform_1(%arg0: i32) -> (i32, i32, i32) {
    %c0_i32 = arith.constant 0 : i32
    %c0_i32_0 = arith.constant 0 : i32
    %c0_i32_1 = arith.constant 0 : i32
    %c0_i32_2 = arith.constant 0 : i32
    return %c0_i32, %c0_i32_0, %c0_i32_1 : i32, i32, i32
  }
  func.func @transform_2(%arg0: i32) -> (i32, i32, i32) {
    %c0_i32 = arith.constant 0 : i32
    %c0_i32_0 = arith.constant 0 : i32
    %c0_i32_1 = arith.constant 0 : i32
    %c0_i32_2 = arith.constant 0 : i32
    return %c0_i32, %c0_i32_0, %c0_i32_1 : i32, i32, i32
  }
  func.func @transform_3(%arg0: i32) -> (i32, i32, i32) {
    %c0_i32 = arith.constant 0 : i32
    %c0_i32_0 = arith.constant 0 : i32
    %c0_i32_1 = arith.constant 0 : i32
    %c0_i32_2 = arith.constant 0 : i32
    return %c0_i32, %c0_i32_0, %c0_i32_1 : i32, i32, i32
  }
  func.func @transform_4(%arg0: i32) -> (i32, i32, i32) {
    %c0_i32 = arith.constant 0 : i32
    %c0_i32_0 = arith.constant 0 : i32
    %c0_i32_1 = arith.constant 0 : i32
    %c0_i32_2 = arith.constant 0 : i32
    return %c0_i32, %c0_i32_0, %c0_i32_1 : i32, i32, i32
  }
  func.func @transform_5(%arg0: i32) -> (i32, i32) {
    %c0_i32 = arith.constant 0 : i32
    %c0_i32_0 = arith.constant 0 : i32
    %c0_i32_1 = arith.constant 0 : i32
    return %c0_i32, %c0_i32_0 : i32, i32
  }
  func.func @transform_6(%arg0: i32) -> (i32, i32) {
    %c0_i32 = arith.constant 0 : i32
    %c0_i32_0 = arith.constant 0 : i32
    %c0_i32_1 = arith.constant 0 : i32
    return %c0_i32, %c0_i32_0 : i32, i32
  }
  func.func @transform_7(%arg0: i32) -> (i32, i32) {
    %c0_i32 = arith.constant 0 : i32
    %c0_i32_0 = arith.constant 0 : i32
    %c0_i32_1 = arith.constant 0 : i32
    return %c0_i32, %c0_i32_0 : i32, i32
  }
  func.func @transform_8(%arg0: i32) -> (i32, i32) {
    %c0_i32 = arith.constant 0 : i32
    %c0_i32_0 = arith.constant 0 : i32
    %c0_i32_1 = arith.constant 0 : i32
    return %c0_i32, %c0_i32_0 : i32, i32
  }
  func.func @transform_9(%arg0: i32) -> (i32, i32) {
    %c0_i32 = arith.constant 0 : i32
    %c0_i32_0 = arith.constant 0 : i32
    %c0_i32_1 = arith.constant 0 : i32
    return %c0_i32, %c0_i32_0 : i32, i32
  }
  func.func @transform_10(%arg0: i32) -> (i32, i32) {
    %c0_i32 = arith.constant 0 : i32
    %c0_i32_0 = arith.constant 0 : i32
    %c0_i32_1 = arith.constant 0 : i32
    return %c0_i32, %c0_i32_0 : i32, i32
  }
}

</mosaic_0001>

<bundles_post_ra>
// kernel: spinn_forward.1
= control target key start
LH: loop header
LB: loop body
LE: loop exit
PB: predicated region body
PF: predicated region fallthrough
CT: control target
= control target key end

     0   :  { %s7625_s17 = smov 32   ;;  %v7626_v2 = vmov 0.0|0.0   ;;  %vm7627_vm0 = vmmov 0   ;;  %v7628_v7 = vmov 0.0   ;;  %s7629_s23 = smov 64   ;;  %s10544_s0 = inlined_call_operand.vmem [shape: s32[13,2,1], index: 0, kind: input, shape index: {}]   ;;  %s10545_s1 = inlined_call_operand.vmem [shape: s32[13,2,1], index: 1, kind: input, shape index: {}]   ;;  %s10546_s2 = inlined_call_operand.vmem [shape: s32[13,2,1], index: 2, kind: input, shape index: {}]   ;;  %s10547_s3 = inlined_call_operand.vmem [shape: s32[13,2,1], index: 3, kind: input, shape index: {}]   ;;  %s10548_s4 = inlined_call_operand.vmem [shape: f32[13,2,64], index: 4, kind: input, shape index: {}]   ;;  %s10549_s5 = inlined_call_operand.vmem [shape: f32[2,64], index: 5, kind: input, shape index: {}]   ;;  %s10550_s6 = inlined_call_operand.vmem [shape: f32[128,128], index: 6, kind: input, shape index: {}]   ;;  %s10551_s7 = inlined_call_operand.vmem [shape: f32[1,128], index: 7, kind: input, shape index: {}]   ;;  %s10552_s8 = inlined_call_operand.vmem [shape: f32[96,160], index: 8, kind: input, shape index: {}]   ;;  %s10553_s9 = inlined_call_operand.vmem [shape: f32[1,160], index: 9, kind: input, shape index: {}]   ;;  %s10554_s10 = inlined_call_operand.hbm [shape: f32[2,32], index: 10, kind: output, shape index: {}]  }
   0x1   :  { %v7691_v0 = vld [vmem:[%s10549_s5] sm:$0x3]  ;;  %6707 = vmatprep.subr.bf16.mxu0 %v7626_v2  ;;  %v65_v3 = vld [vmem:[%s10550_s6 + $0x8] sm:$0xff]  ;;  %v66_v4 = vld [vmem:[%s10550_s6 + $0x10] sm:$0xff]  ;;  %6284 = vmatprep.mubr.msk.f32.mxu0 %vm7627_vm0, %v7628_v7 }
   0x2   :  { %v64_v1 = vld [vmem:[%s10550_s6] sm:$0xff]  ;;  %52 = vrot.lane.b32.xlu0 %v7691_v0, %s7625_s17  ;;  %v67_v5 = vld [vmem:[%s10550_s6 + $0x18] sm:$0xff]  ;;  %290 = vmatprep.mubr.f32.mxu1 %v7628_v7  ;;  %v69_v10 = vld [vmem:[%s10550_s6 + $0x28] sm:$0xff] }
   0x3   :  { %v7708_v6 = vpack.c.bf16 %v65_v3, %v64_v1  ;;  %v7714_v8 = vpack.c.bf16 %v67_v5, %v66_v4  ;;  %v68_v9 = vld [vmem:[%s10550_s6 + $0x20] sm:$0xff] }
   0x5   :  { %6709 = vmatpush3.bf16.msra.mxu0 %v7708_v6 }
   0x6   :  { %55 = vrot.lane.b32.xlu0 %v7691_v0, %s7629_s23  ;;  %6710 = vmatprep.subr.bf16.mxu0 %v7626_v2 }
   0x7   :  { %15 = vsyncpa [#allocation4], 0  ;;  %v7726_v11 = vpack.c.bf16 %v69_v10, %v68_v9  ;;  %v70_v12 = vld [vmem:[%s10550_s6 + $0x30] sm:$0xff]  ;;  %v71_v13 = vld [vmem:[%s10550_s6 + $0x38] sm:$0xff]  ;;  %vm58_vm1 = vcmask 261120   ;;  %vm60_vm2 = vcmask 523264  }
   0x8   :  { %v7736_v14 = vpack.c.bf16 %v71_v13, %v70_v12  ;;  %v72_v15 = vld [vmem:[%s10550_s6 + $0x40] sm:$0xff]  ;;  %v73_v16 = vld [vmem:[%s10550_s6 + $0x48] sm:$0xff]  ;;  %v74_v18 = vld [vmem:[%s10550_s6 + $0x50] sm:$0xff]  ;;  %vm62_vm3 = vcmask 785408   ;;  %s7630_s24 = smov 96   ;;  %vm36_vm9 = vcmask 517120  }
   0x9   :  { %6712 = vmatpush3.bf16.msra.mxu0 %v7714_v8  ;;  %v7746_v17 = vpack.c.bf16 %v73_v16, %v72_v15  ;;  %v75_v19 = vld [vmem:[%s10550_s6 + $0x58] sm:$0xff]  ;;  %v76_v21 = vld [vmem:[%s10550_s6 + $0x60] sm:$0xff]  ;;  %v77_v22 = vld [vmem:[%s10550_s6 + $0x68] sm:$0xff]  ;;  %37 = vst.msk [vmem:[#allocation2] sm:$0x3] %vm36_vm9, %v7628_v7 }
   0xa   :  { %6713 = vmatprep.subr.bf16.mxu0 %v7626_v2  ;;  %v7756_v20 = vpack.c.bf16 %v75_v19, %v74_v18  ;;  %v7766_v23 = vpack.c.bf16 %v77_v22, %v76_v21  ;;  %v78_v24 = vld [vmem:[%s10550_s6 + $0x70] sm:$0xff]  ;;  %v79_v25 = vld [vmem:[%s10550_s6 + $0x78] sm:$0xff]  ;;  %v7785_v28 = vld [vmem:[%s10548_s4] sm:$0x3]  ;;  %38 = vst.msk [vmem:[#allocation2 + $0x2] sm:$0x3] %vm36_vm9, %v7628_v7 }
   0xb   :  { %v7776_v26 = vpack.c.bf16 %v79_v25, %v78_v24  ;;  %v7799_v32 = vld [vmem:[%s10551_s7] ss:$0 sm:$0xff]  ;;  %v188_v46 = vld [vmem:[%s10552_s8 + $0x8] sm:$0xff]  ;;  %v190_v47 = vld [vmem:[%s10552_s8 + $0x18] sm:$0xff]  ;;  %39 = vst.msk [vmem:[#allocation2 + $0x4] sm:$0x3] %vm36_vm9, %v7628_v7 }
   0xc   :  { %v187_v48 = vld [vmem:[%s10552_s8] sm:$0xff]  ;;  %v6731_v49 = vpack.c.bf16 %v190_v47, %v188_v46  ;;  %v189_v50 = vld [vmem:[%s10552_s8 + $0x10] sm:$0xff]  ;;  %v192_v51 = vld [vmem:[%s10552_s8 + $0x28] sm:$0xff]  ;;  %40 = vst.msk [vmem:[#allocation2 + $0x6] sm:$0x3] %vm36_vm9, %v7628_v7 }
   0xd   :  { %6715 = vmatpush3.bf16.msra.mxu0 %v7726_v11  ;;  %v194_v52 = vld [vmem:[%s10552_s8 + $0x38] sm:$0xff]  ;;  %v6733_v53 = vpack.c.bf16 %v189_v50, %v187_v48  ;;  %v191_v55 = vld [vmem:[%s10552_s8 + $0x20] sm:$0xff]  ;;  %v193_v56 = vld [vmem:[%s10552_s8 + $0x30] sm:$0xff]  ;;  %41 = vst.msk [vmem:[#allocation2 + $0x8] sm:$0x3] %vm36_vm9, %v7628_v7 }
   0xe   :  { %6716 = vmatprep.subr.bf16.mxu0 %v7626_v2  ;;  %v6735_v54 = vpack.c.bf16 %v194_v52, %v192_v51  ;;  %v196_v57 = vld [vmem:[%s10552_s8 + $0x48] sm:$0xff]  ;;  %6732 = vmatprep.subr.bf16.mxu1 %v6731_v49  ;;  %v198_v58 = vld [vmem:[%s10552_s8 + $0x58] sm:$0xff]  ;;  %v6737_v59 = vpack.c.bf16 %v193_v56, %v191_v55  ;;  %v195_v61 = vld [vmem:[%s10552_s8 + $0x40] sm:$0xff]  ;;  %42 = vst.msk [vmem:[#allocation2 + $0xa] sm:$0x3] %vm36_vm9, %v7628_v7 }
   0xf   :  { %6734 = vmatpush1.bf16.msra.mxu1 %v6733_v53  ;;  %v6739_v60 = vpack.c.bf16 %v198_v58, %v196_v57  ;;  %v197_v62 = vld [vmem:[%s10552_s8 + $0x50] sm:$0xff]  ;;  %v200_v63 = vld [vmem:[%s10552_s8 + $0x68] sm:$0xff]  ;;  %v202_v1 = vld [vmem:[%s10552_s8 + $0x78] sm:$0xff]  ;;  %43 = vst.msk [vmem:[#allocation2 + $0xc] sm:$0x3] %vm36_vm9, %v7628_v7 }
  0x10   :  { %6736 = vmatprep.subr.bf16.mxu1 %v6735_v54  ;;  %v6741_v3 = vpack.c.bf16 %v197_v62, %v195_v61  ;;  %v6743_v4 = vpack.c.bf16 %v202_v1, %v200_v63  ;;  %v199_v5 = vld [vmem:[%s10552_s8 + $0x60] sm:$0xff]  ;;  %v201_v9 = vld [vmem:[%s10552_s8 + $0x70] sm:$0xff]  ;;  %v204_v12 = vld [vmem:[%s10552_s8 + $0x88] sm:$0xff]  ;;  %44 = vst.msk [vmem:[#allocation2 + $0xe] sm:$0x3] %vm36_vm9, %v7628_v7 }
  0x11   :  { %6718 = vmatpush3.bf16.msra.mxu0 %v7736_v14  ;;  %v206_v13 = vld [vmem:[%s10552_s8 + $0x98] sm:$0xff]  ;;  %v6745_v15 = vpack.c.bf16 %v201_v9, %v199_v5  ;;  %v203_v18 = vld [vmem:[%s10552_s8 + $0x80] sm:$0xff]  ;;  %v205_v19 = vld [vmem:[%s10552_s8 + $0x90] sm:$0xff] }
  0x12   :  { %6719 = vmatprep.subr.bf16.mxu0 %v7626_v2  ;;  %v6747_v16 = vpack.c.bf16 %v206_v13, %v204_v12  ;;  %v208_v21 = vld [vmem:[%s10552_s8 + $0xa8] sm:$0xff]  ;;  %v210_v22 = vld [vmem:[%s10552_s8 + $0xb8] sm:$0xff]  ;;  %v6749_v24 = vpack.c.bf16 %v205_v19, %v203_v18  ;;  %v7940_v47 = vld [vmem:[%s10547_s3] sm:$0x3] }
  0x13   :  { %6738 = vmatpush1.bf16.msra.mxu1 %v6737_v59  ;;  %v6751_v25 = vpack.c.bf16 %v210_v22, %v208_v21  ;;  %vm408_vm6 = vcmp.eq.s32.totalorder %v7940_v47, 0  ;;  %vm409_vm8 = vcmp.eq.s32.totalorder %v7940_v47, 1  ;;  %vm410_vm11 = vcmp.eq.s32.totalorder %v7940_v47, 2  ;;  %v46_v1 = vld [vmem:[%s10544_s0] sm:$0x3] }
  0x14   :  { %6740 = vmatprep.subr.bf16.mxu1 %v6739_v60  ;;  %vm411_vm13 = vcmp.eq.s32.totalorder %v7940_v47, 3  ;;  %vm412_vm15 = vcmp.eq.s32.totalorder %v7940_v47, 4 }
  0x15   :  { %6721 = vmatpush3.bf16.msra.mxu0 %v7746_v17 }
  0x16   :  { %6722 = vmatprep.subr.bf16.mxu0 %v7626_v2 }
  0x17   :  { %6742 = vmatpush1.bf16.msra.mxu1 %v6741_v3 }
  0x18   :  { %6744 = vmatprep.subr.bf16.mxu1 %v6743_v4 }
  0x19   :  { %6724 = vmatpush3.bf16.msra.mxu0 %v7756_v20 }
  0x1a   :  { %6725 = vmatprep.subr.bf16.mxu0 %v7626_v2 }
  0x1b   :  { %6746 = vmatpush1.bf16.msra.mxu1 %v6745_v15 }
  0x1c   :  { %6748 = vmatprep.subr.bf16.mxu1 %v6747_v16 }
  0x1d   :  { %6727 = vmatpush3.bf16.msra.mxu0 %v7766_v23 }
  0x1e   :  { %6728 = vmatprep.subr.bf16.mxu0 %v7626_v2 }
  0x1f   :  { %6750 = vmatpush1.bf16.msra.mxu1 %v6749_v24 }
  0x20   :  { %6752 = vmatprep.subr.bf16.mxu1 %v6751_v25 }
  0x21   :  { %6730 = vmatpush3.bf16.msra.mxu0 %v7776_v26 }
  0x22   :  { %6780 = vmatprep.subr.bf16.mxu0 %v6731_v49 }
  0x74   :  { %v7780_v27 = vpop.permute.xlu0 %52 }
  0x75   :  { %v59_v30 = vsel %vm58_vm1, %v7785_v28, %v7780_v27 }
  0x78   :  { %v7787_v29 = vpop.permute.xlu0 %55 }
  0x79   :  { %v61_v31 = vsel %vm60_vm2, %v59_v30, %v7787_v29  ;;  %v207_v30 = vld [vmem:[%s10552_s8 + $0xa0] sm:$0xff] }
  0x7a   :  { %6285 = vmatmul.mubr.msk.f32.vlgmr.msra.gmra.mrb[0].mxu0 %vm62_vm3, %v61_v31  ;;  %v209_v31 = vld [vmem:[%s10552_s8 + $0xb0] sm:$0xff] }
  0x7b   :  { %738 = vmatprep.mubr.f32.mxu0 %v7628_v7  ;;  %6782 = vmatpush1.bf16.msra.mxu0 %v6733_v53 }
  0x7c   :  { %6784 = vmatprep.subr.bf16.mxu0 %v6735_v54 }
  0x7f   :  { %6786 = vmatpush1.bf16.msra.mxu0 %v6737_v59 }
  0x80   :  { %6788 = vmatprep.subr.bf16.mxu0 %v6739_v60  ;;  %v48_v60 = vld [vmem:[%s10545_s1] sm:$0x3] }
  0x83   :  { %6790 = vmatpush1.bf16.msra.mxu0 %v6741_v3 }
  0x84   :  { %6792 = vmatprep.subr.bf16.mxu0 %v6743_v4 }
  0x87   :  { %6794 = vmatpush1.bf16.msra.mxu0 %v6745_v15 }
  0x88   :  { %6796 = vmatprep.subr.bf16.mxu0 %v6747_v16 }
  0x8b   :  { %6798 = vmatpush1.bf16.msra.mxu0 %v6749_v24 }
  0x8c   :  { %6800 = vmatprep.subr.bf16.mxu0 %v6751_v25 }
 0x14d   :  { %v153_v33 = vpop.f32.mrb[0].mxu0 }
 0x14e   :  { %v154_v34 = vadd.f32 %v7799_v32, %v153_v33  ;;  %v6286_v35 = vpop.f32.mrb[1].mxu0  ;;  %v6753_v33 = vpack.c.bf16 %v209_v31, %v207_v30 }
 0x150   :  { %7341 = vtanh.f32 %v154_v34  ;;  %v5908_v37 = vmul.f32 -1.442695, %v154_v34  ;;  %6754 = vmatpush1.bf16.msra.mxu1 %v6753_v33  ;;  %6802 = vmatpush1.bf16.msra.mxu0 %v6753_v33  ;;  %v343_v33 = vld [vmem:[#allocation2] sm:$0x3] }
 0x151   :  { %6755 = vmatprep.subr.bf16.mxu1 %v7626_v2  ;;  %6803 = vmatprep.subr.bf16.mxu0 %v7626_v2 }
 0x152   :  { %7343 = vpow2.f32 %v5908_v37 }
 0x15a   :  { %v7342_v36 = vpop.eup %7341 }
 0x15b   :  { %166 = vrot.lane.b32.xlu1 %v7342_v36, %s7629_s23  ;;  %v185_v36 = vsel %vm58_vm1, %v7691_v0, %v7780_v27 }
 0x15c   :  { %v7344_v38 = vpop.eup %7343 }
 0x15d   :  { %v160_v39 = vadd.f32 1.0, %v7344_v38 }
 0x15f   :  { %7345 = vrcp.f32 %v160_v39 }
 0x169   :  { %v7803_v40 = vpop.eup %7345 }
 0x16a   :  { %v164_v43 = vmul.f32 0.0, %v7803_v40 }
 0x1cd   :  { %v167_v41 = vpop.permute.xlu1 %166 }
 0x1ce   :  { %v169_v42 = vmul.f32 %v7803_v40, %v167_v41 }
 0x1d0   :  { %171 = vrot.lane.b32.xlu1 %v169_v42, %s7625_s17 }
 0x242   :  { %v172_v44 = vpop.permute.xlu1 %171 }
 0x243   :  { %v7808_v45 = vadd.f32 %v172_v44, %v164_v43  ;;  %v334_v43 = vld [vmem:[%s10546_s2] sm:$0x3] }
 0x244   :  { %vm335_vm4 = vcmp.eq.s32.totalorder %v334_v43, 0  ;;  %vm336_vm5 = vcmp.eq.s32.totalorder %v334_v43, 1  ;;  %vm337_vm7 = vcmp.eq.s32.totalorder %v334_v43, 2  ;;  %vm338_vm10 = vcmp.eq.s32.totalorder %v334_v43, 3 }
 0x245   :  { %7347 = vtanh.f32 %v7808_v45  ;;  %vm339_vm12 = vcmp.eq.s32.totalorder %v334_v43, 4  ;;  %vm340_vm14 = vcmp.eq.s32.totalorder %v334_v43, 5 }
 0x24f   :  { %v7348_v10 = vpop.eup %7347 }
 0x250   :  { %177 = vrot.lane.b32.xlu0 %v7348_v10, %s7629_s23 }
 0x2c2   :  { %v178_v34 = vpop.permute.xlu0 %177 }
 0x2c3   :  { %v7887_v35 = vmul.f32 %v7803_v40, %v178_v34 }
 0x2c5   :  { %182 = vrot.lane.b32.xlu1 %v7887_v35, %s7630_s24 }
 0x337   :  { %v183_v37 = vpop.permute.xlu1 %182 }
 0x338   :  { %v186_v38 = vsel %vm60_vm2, %v185_v36, %v183_v37  ;;  %v344_v37 = vld [vmem:[#allocation2 + $0x2] sm:$0x3] }
 0x339   :  { %5909 = vmatmul.mubr.msk.f32.vlgmr.msra.gmra.mrb[0].mxu1 %vm62_vm3, %v186_v38 }
 0x33a   :  { %6757 = vmatpush3.bf16.msra.mxu1 %v7708_v6  ;;  %6319 = vmatprep.mubr.msk.f32.mxu1 %vm7627_vm0, %v7628_v7  ;;  %v7631_v6 = vmov 0  }
 0x33b   :  { %6758 = vmatprep.subr.bf16.mxu1 %v7626_v2  ;;  %7339 = vset.pattern.permute.xlu1 %v7631_v6  ;;  %v351_v49 = vsel %vm335_vm4, 1, %v7631_v6  ;;  %v352_v50 = vsel %vm336_vm5, 1, %v7631_v6  ;;  %v353_v51 = vsel %vm337_vm7, 1, %v7631_v6  ;;  %v354_v52 = vsel %vm338_vm10, 1, %v7631_v6 }
 0x33c   :  { %7340 = vset.pattern.permute.xlu0 %v7631_v6  ;;  %v418_v53 = vsel %vm410_vm11, 1, %v7631_v6  ;;  %v355_v54 = vsel %vm339_vm12, 1, %v7631_v6  ;;  %v419_v55 = vsel %vm411_vm13, 1, %v7631_v6  ;;  %v356_v56 = vsel %vm340_vm14, 1, %v7631_v6 }
 0x33d   :  { %vm341_vm4 = vcmp.eq.s32.totalorder %v334_v43, 6  ;;  %v420_v57 = vsel %vm412_vm15, 1, %v7631_v6  ;;  %vm413_vm5 = vcmp.eq.s32.totalorder %v7940_v47, 5  ;;  %vm414_vm7 = vcmp.eq.s32.totalorder %v7940_v47, 6 }
 0x33e   :  { %6760 = vmatpush3.bf16.msra.mxu1 %v7714_v8  ;;  %v213_v8 = vlaneseq  ;;  %v357_v58 = vsel %vm341_vm4, 1, %v7631_v6  ;;  %v421_v59 = vsel %vm413_vm5, 1, %v7631_v6  ;;  %v422_v62 = vsel %vm414_vm7, 1, %v7631_v6 }
 0x33f   :  { %6761 = vmatprep.subr.bf16.mxu1 %v7626_v2  ;;  %vm415_vm10 = vcmp.eq.s32.totalorder %v7940_v47, 7  ;;  %vm47_vm11 = vcmp.ne.s32.totalorder %v46_v1, 0 }
 0x340   :  { %v423_v3 = vsel %vm415_vm10, 1, %v7631_v6  ;;  %v485_v4 = vsel %vm47_vm11, 1, %v7631_v6 }
 0x342   :  { %6763 = vmatpush3.bf16.msra.mxu1 %v7726_v11  ;;  %v7915_v11 = vshrl.u32 %v213_v8, 7 }
 0x343   :  { %6764 = vmatprep.subr.bf16.mxu1 %v7626_v2 }
 0x344   :  { %v7994_v5 = vsub.s32 1, %v7915_v11 }
 0x346   :  { %6766 = vmatpush3.bf16.msra.mxu1 %v7736_v14  ;;  %v7918_v14 = vsub.s32 0, %v7915_v11 }
 0x347   :  { %6767 = vmatprep.subr.bf16.mxu1 %v7626_v2 }
 0x34a   :  { %6769 = vmatpush3.bf16.msra.mxu1 %v7746_v17  ;;  %v7923_v17 = vld [vmem:[%s10553_s9] sm:$0x3] }
 0x34b   :  { %6770 = vmatprep.subr.bf16.mxu1 %v7626_v2  ;;  %v220_v9 = vrot.slane %v7923_v17, %v7994_v5 }
 0x34e   :  { %6772 = vmatpush3.bf16.msra.mxu1 %v7756_v20  ;;  %v216_v20 = vrot.slane %v7923_v17, %v7918_v14 }
 0x34f   :  { %6773 = vmatprep.subr.bf16.mxu1 %v7626_v2 }
 0x352   :  { %6775 = vmatpush3.bf16.msra.mxu1 %v7766_v23 }
 0x353   :  { %6776 = vmatprep.subr.bf16.mxu1 %v7626_v2 }
 0x356   :  { %6778 = vmatpush3.bf16.msra.mxu1 %v7776_v26 }
 0x40c   :  { %v292_v23 = vpop.f32.mrb[0].mxu1 }
 0x40d   :  { %v7927_v26 = vadd.f32 %v292_v23, %v216_v20  ;;  %v7929_v39 = vpop.f32.mrb[1].mxu1  ;;  %v345_v20 = vld [vmem:[#allocation2 + $0x4] sm:$0x3] }
 0x40e   :  { %v295_v10 = vadd.f32 %v7929_v39, %v220_v9 }
 0x40f   :  { %v5910_v40 = vmul.f32 -1.442695, %v7927_v26 }
 0x410   :  { %v5911_v12 = vmul.f32 -1.442695, %v295_v10 }
 0x411   :  { %7349 = vpow2.f32 %v5910_v40 }
 0x41b   :  { %v7350_v41 = vpop.eup %7349 }
 0x41c   :  { %v301_v42 = vadd.f32 1.0, %v7350_v41 }
 0x41e   :  { %7351 = vrcp.f32 %v301_v42  ;;  %v346_v42 = vld [vmem:[#allocation2 + $0x6] sm:$0x3] }
 0x41f   :  { %7353 = vpow2.f32 %v5911_v12  ;;  %v350_v12 = vld [vmem:[#allocation2 + $0xe] sm:$0x3] }
 0x420   :  { %7355 = vtanh.f32 %v7927_v26 }
 0x428   :  { %v7352_v44 = vpop.eup %7351 }
 0x429   :  { %305 = vrot.lane.b32.xlu0 %v7352_v44, %s7630_s24  ;;  %v309_v46 = vmul.f32 %v7352_v44, %v7780_v27  ;;  %v315_v48 = vmul.f32 %v7352_v44, %v7787_v29  ;;  %v416_v27 = vsel %vm408_vm6, 1, %v7631_v6  ;;  %v417_v29 = vsel %vm409_vm8, 1, %v7631_v6  ;;  %v7354_v13 = vpop.eup %7353 }
 0x42a   :  { %vm342_vm6 = vcmp.eq.s32.totalorder %v334_v43, 7  ;;  %vm49_vm8 = vcmp.ne.s32.totalorder %v48_v60, 0  ;;  %v7356_v15 = vpop.eup %7355  ;;  %v324_v19 = vadd.f32 1.0, %v7354_v13 }
 0x42b   :  { %311 = vrot.lane.b32.xlu1 %v309_v46, %s7629_s23  ;;  %v358_v61 = vsel %vm342_vm6, 1, %v7631_v6  ;;  %v479_v63 = vsel %vm49_vm8, 1, %v7631_v6 }
 0x42c   :  { %7357 = vrcp.f32 %v324_v19 }
 0x42d   :  { %317 = vrot.lane.b32.xlu0 %v315_v48, %s7625_s17 }
 0x42f   :  { %360 = vperm.xlu1 %7339, %v351_v49  }
 0x431   :  { %363 = vperm.xlu0 %7340, %v352_v50   ;;  %v347_v50 = vld [vmem:[#allocation2 + $0x8] sm:$0x3] }
 0x433   :  { %425 = vperm.xlu1 %7339, %v416_v27  }
 0x435   :  { %366 = vperm.xlu0 %7340, %v353_v51  }
 0x436   :  { %v7358_v30 = vpop.eup %7357 }
 0x437   :  { %428 = vperm.xlu1 %7339, %v417_v29  }
 0x439   :  { %369 = vperm.xlu0 %7340, %v354_v52  }
 0x43b   :  { %431 = vperm.xlu1 %7339, %v418_v53  }
 0x43d   :  { %372 = vperm.xlu0 %7340, %v355_v54  }
 0x43f   :  { %434 = vperm.xlu1 %7339, %v419_v55   ;;  %v348_v55 = vld [vmem:[#allocation2 + $0xa] sm:$0x3] }
 0x441   :  { %375 = vperm.xlu0 %7340, %v356_v56  }
 0x443   :  { %437 = vperm.xlu1 %7339, %v420_v57  }
 0x445   :  { %378 = vperm.xlu0 %7340, %v357_v58  }
 0x447   :  { %440 = vperm.xlu1 %7339, %v421_v59  }
 0x449   :  { %381 = vperm.xlu0 %7340, %v358_v61  }
 0x44b   :  { %443 = vperm.xlu1 %7339, %v422_v62   ;;  %v349_v62 = vld [vmem:[#allocation2 + $0xc] sm:$0x3] }
 0x44d   :  { %481 = vperm.xlu0 %7340, %v479_v63  }
 0x44f   :  { %446 = vperm.xlu1 %7339, %v423_v3  }
 0x453   :  { %487 = vperm.xlu1 %7339, %v485_v4  }
 0x49b   :  { %v306_v16 = vpop.permute.xlu0 %305 }
 0x49c   :  { %v308_v18 = vmul.f32 %v7356_v15, %v306_v16 }
 0x49d   :  { %v312_v21 = vpop.permute.xlu1 %311 }
 0x49e   :  { %v314_v22 = vadd.f32 %v312_v21, %v308_v18 }
 0x49f   :  { %v318_v24 = vpop.permute.xlu0 %317 }
 0x4a0   :  { %v320_v25 = vadd.f32 %v318_v24, %v314_v22 }
 0x4a2   :  { %7359 = vtanh.f32 %v320_v25  ;;  %330 = vrot.lane.b32.xlu0 %v320_v25, %s7625_s17 }
 0x4ac   :  { %v7360_v31 = vpop.eup %7359 }
 0x4ad   :  { %v8001_v34 = vmul.f32 %v7360_v31, %v7358_v30 }
 0x4ae   :  { %v361_v36 = vpop.permute.xlu1 %360 }
 0x4af   :  { %vm383_vm12 = vcmp.eq.s32.totalorder %v361_v36, 1 }
 0x4b0   :  { %v391_v38 = vsel %vm383_vm12, %v7691_v0, %v343_v33  ;;  %v364_v8 = vpop.permute.xlu0 %363 }
 0x4b1   :  { %399 = vst.msk [vmem:[#allocation2] sm:$0x3] %vm36_vm9, %v391_v38  ;;  %vm384_vm13 = vcmp.eq.s32.totalorder %v364_v8, 1 }
 0x4b2   :  { %v426_v11 = vpop.permute.xlu1 %425  ;;  %v392_v17 = vsel %vm384_vm13, %v7691_v0, %v344_v37 }
 0x4b3   :  { %vm448_vm14 = vcmp.eq.s32.totalorder %v426_v11, 1  ;;  %400 = vst.msk [vmem:[#allocation2 + $0x2] sm:$0x3] %vm36_vm9, %v392_v17 }
 0x4b4   :  { %v456_v23 = vsel %vm448_vm14, %v391_v38, 0.0  ;;  %v367_v26 = vpop.permute.xlu0 %366 }
 0x4b5   :  { %vm385_vm15 = vcmp.eq.s32.totalorder %v367_v26, 1  ;;  %v464_v41 = vsel %vm36_vm9, %v456_v23, 0.0 }
 0x4b6   :  { %v429_v39 = vpop.permute.xlu1 %428  ;;  %v393_v40 = vsel %vm385_vm15, %v7691_v0, %v345_v20 }
 0x4b7   :  { %vm449_vm4 = vcmp.eq.s32.totalorder %v429_v39, 1  ;;  %401 = vst.msk [vmem:[#allocation2 + $0x4] sm:$0x3] %vm36_vm9, %v393_v40  ;;  %v8044_v39 = vld [vmem:[%s10548_s4 + $0x2] sm:$0x3] }
 0x4b8   :  { %v457_v43 = vsel %vm449_vm4, %v392_v17, 0.0  ;;  %v370_v44 = vpop.permute.xlu0 %369 }
 0x4b9   :  { %v465_v46 = vsel %vm36_vm9, %v457_v43, 0.0  ;;  %vm386_vm5 = vcmp.eq.s32.totalorder %v370_v44, 1 }
 0x4ba   :  { %v466_v47 = vadd.f32 %v465_v46, %v464_v41  ;;  %v432_v48 = vpop.permute.xlu1 %431  ;;  %v394_v49 = vsel %vm386_vm5, %v7691_v0, %v346_v42 }
 0x4bb   :  { %vm450_vm6 = vcmp.eq.s32.totalorder %v432_v48, 1  ;;  %402 = vst.msk [vmem:[#allocation2 + $0x6] sm:$0x3] %vm36_vm9, %v394_v49 }
 0x4bc   :  { %v458_v27 = vsel %vm450_vm6, %v393_v40, 0.0  ;;  %v373_v51 = vpop.permute.xlu0 %372 }
 0x4bd   :  { %v467_v29 = vsel %vm36_vm9, %v458_v27, 0.0  ;;  %vm387_vm7 = vcmp.eq.s32.totalorder %v373_v51, 1 }
 0x4be   :  { %v468_v52 = vadd.f32 %v467_v29, %v466_v47  ;;  %v435_v53 = vpop.permute.xlu1 %434  ;;  %v395_v54 = vsel %vm387_vm7, %v7691_v0, %v347_v50 }
 0x4bf   :  { %vm451_vm8 = vcmp.eq.s32.totalorder %v435_v53, 1  ;;  %403 = vst.msk [vmem:[#allocation2 + $0x8] sm:$0x3] %vm36_vm9, %v395_v54 }
 0x4c0   :  { %v459_v56 = vsel %vm451_vm8, %v394_v49, 0.0  ;;  %v376_v57 = vpop.permute.xlu0 %375 }
 0x4c1   :  { %v469_v58 = vsel %vm36_vm9, %v459_v56, 0.0  ;;  %vm388_vm10 = vcmp.eq.s32.totalorder %v376_v57, 1  ;;  %v8077_v57 = vld [vmem:[%s10553_s9] sm:$0x3] }
 0x4c2   :  { %v470_v59 = vadd.f32 %v469_v58, %v468_v52  ;;  %v438_v60 = vpop.permute.xlu1 %437  ;;  %v396_v61 = vsel %vm388_vm10, %v7691_v0, %v348_v55  ;;  %v664_v58 = vrot.slane %v8077_v57, %v7918_v14 }
 0x4c3   :  { %vm452_vm11 = vcmp.eq.s32.totalorder %v438_v60, 1  ;;  %404 = vst.msk [vmem:[#allocation2 + $0xa] sm:$0x3] %vm36_vm9, %v396_v61 }
 0x4c4   :  { %v460_v63 = vsel %vm452_vm11, %v395_v54, 0.0  ;;  %v379_v1 = vpop.permute.xlu0 %378 }
 0x4c5   :  { %v471_v3 = vsel %vm36_vm9, %v460_v63, 0.0  ;;  %vm389_vm12 = vcmp.eq.s32.totalorder %v379_v1, 1 }
 0x4c6   :  { %v472_v4 = vadd.f32 %v471_v3, %v470_v59  ;;  %v441_v9 = vpop.permute.xlu1 %440  ;;  %v397_v10 = vsel %vm389_vm12, %v7691_v0, %v349_v62  ;;  %v5920_v3 = vld [vmem:[%s10546_s2 + $0x2] sm:$0x3] }
 0x4c7   :  { %vm453_vm13 = vcmp.eq.s32.totalorder %v441_v9, 1  ;;  %405 = vst.msk [vmem:[#allocation2 + $0xc] sm:$0x3] %vm36_vm9, %v397_v10  ;;  %vm790_vm7 = vcmp.eq.s32.totalorder %v5920_v3, 0  ;;  %vm791_vm8 = vcmp.eq.s32.totalorder %v5920_v3, 1  ;;  %vm792_vm12 = vcmp.eq.s32.totalorder %v5920_v3, 2 }
 0x4c8   :  { %v461_v13 = vsel %vm453_vm13, %v396_v61, 0.0  ;;  %v382_v15 = vpop.permute.xlu0 %381 }
 0x4c9   :  { %v473_v16 = vsel %vm36_vm9, %v461_v13, 0.0  ;;  %vm390_vm14 = vcmp.eq.s32.totalorder %v382_v15, 1  ;;  %v5921_v13 = vld [vmem:[%s10547_s3 + $0x2] sm:$0x3] }
 0x4ca   :  { %v474_v18 = vadd.f32 %v473_v16, %v472_v4  ;;  %v444_v19 = vpop.permute.xlu1 %443  ;;  %v398_v21 = vsel %vm390_vm14, %v7691_v0, %v350_v12  ;;  %v806_v16 = vsel %vm790_vm7, 1, %v7631_v6  ;;  %vm864_vm10 = vcmp.eq.s32.totalorder %v5921_v13, 0 }
 0x4cb   :  { %vm454_vm15 = vcmp.eq.s32.totalorder %v444_v19, 1  ;;  %406 = vst.msk [vmem:[#allocation2 + $0xe] sm:$0x3] %vm36_vm9, %v398_v21  ;;  %vm865_vm11 = vcmp.eq.s32.totalorder %v5921_v13, 1  ;;  %v872_v19 = vsel %vm864_vm10, 1, %v7631_v6  ;;  %vm866_vm13 = vcmp.eq.s32.totalorder %v5921_v13, 2 }
 0x4cc   :  { %v462_v22 = vsel %vm454_vm15, %v397_v10, 0.0  ;;  %v482_v31 = vpop.permute.xlu0 %481  ;;  %vm793_vm14 = vcmp.eq.s32.totalorder %v5920_v3, 3  ;;  %vm867_vm15 = vcmp.eq.s32.totalorder %v5921_v13, 3  ;;  %vm869_vm7 = vcmp.eq.s32.totalorder %v5921_v13, 5 }
 0x4cd   :  { %v475_v24 = vsel %vm36_vm9, %v462_v22, 0.0  ;;  %vm483_vm5 = vcmp.eq.s32.totalorder %v482_v31, 1  ;;  %v808_v22 = vsel %vm792_vm12, 1, %v7631_v6  ;;  %vm870_vm10 = vcmp.eq.s32.totalorder %v5921_v13, 6 }
 0x4ce   :  { %v476_v25 = vadd.f32 %v475_v24, %v474_v18  ;;  %v447_v30 = vpop.permute.xlu1 %446  ;;  %v807_v18 = vsel %vm791_vm8, 1, %v7631_v6  ;;  %v874_v24 = vsel %vm866_vm13, 1, %v7631_v6  ;;  %vm796_vm8 = vcmp.eq.s32.totalorder %v5920_v3, 6 }
 0x4cf   :  { %vm455_vm4 = vcmp.eq.s32.totalorder %v447_v30, 1  ;;  %v875_v30 = vsel %vm867_vm15, 1, %v7631_v6  ;;  %vm871_vm12 = vcmp.eq.s32.totalorder %v5921_v13, 7 }
 0x4d0   :  { %v463_v33 = vsel %vm455_vm4, %v398_v21, 0.0  ;;  %v873_v21 = vsel %vm865_vm11, 1, %v7631_v6  ;;  %vm794_vm4 = vcmp.eq.s32.totalorder %v5920_v3, 4  ;;  %vm797_vm11 = vcmp.eq.s32.totalorder %v5920_v3, 7 }
 0x4d1   :  { %v477_v36 = vsel %vm36_vm9, %v463_v33, 0.0  ;;  %v810_v31 = vsel %vm794_vm4, 1, %v7631_v6 }
 0x4d2   :  { %v478_v37 = vadd.f32 %v477_v36, %v476_v25  ;;  %v488_v38 = vpop.permute.xlu1 %487  ;;  %v809_v25 = vsel %vm793_vm14, 1, %v7631_v6 }
 0x4d3   :  { %vm489_vm6 = vcmp.eq.s32.totalorder %v488_v38, 1  ;;  %v812_v38 = vsel %vm796_vm8, 1, %v7631_v6 }
 0x4d4   :  { %v491_v8 = vsel %vm483_vm5, %v478_v37, %v7691_v0  ;;  %v877_v37 = vsel %vm869_vm7, 1, %v7631_v6 }
 0x4d5   :  { %v8029_v11 = vsel %vm489_vm6, %v7691_v0, %v491_v8  ;;  %v878_v8 = vsel %vm870_vm10, 1, %v7631_v6 }
 0x4d6   :  { %506 = vrot.lane.b32.xlu0 %v8029_v11, %s7629_s23 }
 0x514   :  { %v331_v17 = vpop.permute.xlu0 %330 }
 0x515   :  { %v333_v20 = vsel %vm58_vm1, %v8001_v34, %v331_v17  ;;  %v5913_v17 = vld [vmem:[%s10545_s1 + $0x2] sm:$0x3] }
 0x516   :  { %v484_v23 = vsel %vm483_vm5, %v333_v20, %v7691_v0  ;;  %vm868_vm5 = vcmp.eq.s32.totalorder %v5921_v13, 4  ;;  %v813_v20 = vsel %vm797_vm11, 1, %v7631_v6  ;;  %vm498_vm13 = vcmp.ne.s32.totalorder %v5913_v17, 0 }
 0x517   :  { %v8037_v26 = vsel %vm489_vm6, %v7785_v28, %v484_v23  ;;  %vm795_vm6 = vcmp.eq.s32.totalorder %v5920_v3, 5  ;;  %v876_v33 = vsel %vm868_vm5, 1, %v7631_v6  ;;  %v5912_v23 = vld [vmem:[%s10544_s0 + $0x2] sm:$0x3] }
 0x518   :  { %502 = vrot.lane.b32.xlu1 %v8037_v26, %s7625_s17  ;;  %v811_v36 = vsel %vm795_vm6, 1, %v7631_v6  ;;  %vm495_vm14 = vcmp.ne.s32.totalorder %v5912_v23, 0 }
 0x548   :  { %v507_v41 = vpop.permute.xlu0 %506 }
 0x58a   :  { %v503_v40 = vpop.permute.xlu1 %502 }
 0x58b   :  { %v509_v42 = vsel %vm58_vm1, %v8044_v39, %v503_v40 }
 0x58c   :  { %v510_v34 = vsel %vm60_vm2, %v509_v42, %v507_v41  ;;  %v935_v41 = vsel %vm498_vm13, 1, %v7631_v6  ;;  %v941_v42 = vsel %vm495_vm14, 1, %v7631_v6 }
 0x58d   :  { %v511_v0 = vsel %vm62_vm3, %v510_v34, %v7887_v35  ;;  %v668_v34 = vrot.slane %v8077_v57, %v7994_v5  ;;  %v799_v57 = vld [vmem:[#allocation2 + $0x2] sm:$0x3] }
 0x58e   :  { %6320 = vmatmul.mubr.f32.vlgmr.msra.gmra.mrb[2].mxu1 %v511_v0 }
 0x58f   :  { %1194 = vmatprep.mubr.f32.mxu1 %v7628_v7 }
 0x661   :  { %v601_v28 = vpop.f32.mrb[2].mxu1 }
 0x662   :  { %v602_v43 = vadd.f32 %v7799_v32, %v601_v28  ;;  %v6321_v44 = vpop.f32.mrb[3].mxu1 }
 0x664   :  { %7361 = vtanh.f32 %v602_v43  ;;  %v5916_v47 = vmul.f32 -1.442695, %v602_v43 }
 0x666   :  { %7363 = vpow2.f32 %v5916_v47 }
 0x66e   :  { %v7362_v46 = vpop.eup %7361 }
 0x66f   :  { %614 = vrot.lane.b32.xlu1 %v7362_v46, %s7629_s23 }
 0x670   :  { %v7364_v48 = vpop.eup %7363 }
 0x671   :  { %v608_v49 = vadd.f32 1.0, %v7364_v48 }
 0x673   :  { %7365 = vrcp.f32 %v608_v49 }
 0x67d   :  { %v7366_v50 = vpop.eup %7365 }
 0x67e   :  { %v612_v35 = vmul.f32 %v7366_v50, %v7808_v45  ;;  %v633_v45 = vsel %vm58_vm1, %v8029_v11, %v503_v40  ;;  %v879_v40 = vsel %vm871_vm12, 1, %v7631_v6 }
 0x6e1   :  { %v615_v27 = vpop.permute.xlu1 %614 }
 0x6e2   :  { %v617_v51 = vmul.f32 %v7366_v50, %v615_v27 }
 0x6e4   :  { %619 = vrot.lane.b32.xlu0 %v617_v51, %s7625_s17 }
 0x756   :  { %v620_v29 = vpop.permute.xlu0 %619 }
 0x757   :  { %v8056_v52 = vadd.f32 %v620_v29, %v612_v35 }
 0x759   :  { %7367 = vtanh.f32 %v8056_v52 }
 0x763   :  { %v7368_v32 = vpop.eup %7367 }
 0x764   :  { %625 = vrot.lane.b32.xlu1 %v7368_v32, %s7629_s23 }
 0x768   :  { %757 = vrot.lane.b32.xlu1 %v8029_v11, %s7625_s17 }
 0x7d6   :  { %v626_v53 = vpop.permute.xlu1 %625 }
 0x7d7   :  { %v8062_v54 = vmul.f32 %v7366_v50, %v626_v53 }
 0x7d9   :  { %630 = vrot.lane.b32.xlu0 %v8062_v54, %s7630_s24 }
 0x7da   :  { %v758_v9 = vpop.permute.xlu1 %757 }
 0x7dd   :  { %766 = vrot.lane.b32.xlu0 %v8037_v26, %s7629_s23 }
 0x84b   :  { %v631_v55 = vpop.permute.xlu0 %630 }
 0x84c   :  { %v634_v56 = vsel %vm60_vm2, %v633_v45, %v631_v55  ;;  %v798_v45 = vld [vmem:[#allocation2] sm:$0x3] }
 0x84d   :  { %5917 = vmatmul.mubr.msk.f32.vlgmr.msra.gmra.mrb[2].mxu0 %vm62_vm3, %v634_v56 }
 0x84e   :  { %6354 = vmatprep.mubr.msk.f32.mxu0 %vm7627_vm0, %v7628_v7 }
 0x84f   :  { %v767_v12 = vpop.permute.xlu0 %766 }
 0x920   :  { %v740_v59 = vpop.f32.mrb[2].mxu0 }
 0x921   :  { %v8081_v60 = vadd.f32 %v740_v59, %v664_v58  ;;  %v8083_v61 = vpop.f32.mrb[3].mxu0 }
 0x922   :  { %v743_v0 = vadd.f32 %v8083_v61, %v668_v34  ;;  %v970_v34 = vld [vmem:[%s10550_s6 + $0x10] sm:$0xff] }
 0x923   :  { %v5918_v62 = vmul.f32 -1.442695, %v8081_v60 }
 0x924   :  { %v5919_v28 = vmul.f32 -1.442695, %v743_v0  ;;  %v804_v0 = vld [vmem:[#allocation2 + $0xc] sm:$0x3] }
 0x925   :  { %7369 = vpow2.f32 %v5918_v62  ;;  %v800_v62 = vld [vmem:[#allocation2 + $0x4] sm:$0x3] }
 0x92f   :  { %v7370_v63 = vpop.eup %7369 }
 0x930   :  { %v749_v1 = vadd.f32 1.0, %v7370_v63 }
 0x932   :  { %7371 = vrcp.f32 %v749_v1 }
 0x933   :  { %7373 = vpow2.f32 %v5919_v28 }
 0x934   :  { %7375 = vtanh.f32 %v8081_v60 }
 0x93c   :  { %v7372_v4 = vpop.eup %7371 }
 0x93d   :  { %753 = vrot.lane.b32.xlu1 %v7372_v4, %s7630_s24  ;;  %v760_v10 = vmul.f32 %v7372_v4, %v758_v9  ;;  %v769_v15 = vmul.f32 %v7372_v4, %v767_v12  ;;  %v7374_v43 = vpop.eup %7373  ;;  %v801_v4 = vld [vmem:[#allocation2 + $0x6] sm:$0x3] }
 0x93e   :  { %v7376_v44 = vpop.eup %7375  ;;  %v778_v48 = vadd.f32 1.0, %v7374_v43 }
 0x93f   :  { %762 = vrot.lane.b32.xlu0 %v760_v10, %s7629_s23 }
 0x940   :  { %7377 = vrcp.f32 %v778_v48 }
 0x941   :  { %771 = vrot.lane.b32.xlu1 %v769_v15, %s7625_s17  ;;  %v802_v15 = vld [vmem:[#allocation2 + $0x8] sm:$0x3] }
 0x943   :  { %815 = vperm.xlu0 %7340, %v806_v16  }
 0x945   :  { %818 = vperm.xlu1 %7339, %v807_v18  }
 0x947   :  { %881 = vperm.xlu0 %7340, %v872_v19  }
 0x949   :  { %884 = vperm.xlu1 %7339, %v873_v21  }
 0x94a   :  { %v7378_v35 = vpop.eup %7377 }
 0x94b   :  { %821 = vperm.xlu0 %7340, %v808_v22  }
 0x94d   :  { %887 = vperm.xlu1 %7339, %v874_v24  }
 0x94f   :  { %824 = vperm.xlu0 %7340, %v809_v25  }
 0x951   :  { %890 = vperm.xlu1 %7339, %v875_v30   ;;  %v803_v30 = vld [vmem:[#allocation2 + $0xa] sm:$0x3] }
 0x953   :  { %827 = vperm.xlu0 %7340, %v810_v31  }
 0x955   :  { %893 = vperm.xlu1 %7339, %v876_v33  }
 0x957   :  { %830 = vperm.xlu0 %7340, %v811_v36  }
 0x959   :  { %896 = vperm.xlu1 %7339, %v877_v37  }
 0x95b   :  { %833 = vperm.xlu0 %7340, %v812_v38  }
 0x95d   :  { %899 = vperm.xlu1 %7339, %v878_v8  }
 0x95f   :  { %836 = vperm.xlu0 %7340, %v813_v20  }
 0x961   :  { %902 = vperm.xlu1 %7339, %v879_v40  }
 0x963   :  { %937 = vperm.xlu0 %7340, %v935_v41   ;;  %v968_v41 = vld [vmem:[%s10550_s6] sm:$0xff] }
 0x965   :  { %943 = vperm.xlu1 %7339, %v941_v42   ;;  %v969_v42 = vld [vmem:[%s10550_s6 + $0x8] sm:$0xff] }
 0x966   :  { %v8152_v43 = vpack.c.bf16 %v969_v42, %v968_v41 }
 0x968   :  { %6805 = vmatpush3.bf16.msra.mxu0 %v8152_v43 }
 0x969   :  { %6806 = vmatprep.subr.bf16.mxu0 %v7626_v2 }
 0x9af   :  { %v754_v46 = vpop.permute.xlu1 %753 }
 0x9b0   :  { %v756_v47 = vmul.f32 %v7376_v44, %v754_v46  ;;  %v971_v44 = vld [vmem:[%s10550_s6 + $0x18] sm:$0xff] }
 0x9b1   :  { %v763_v49 = vpop.permute.xlu0 %762 }
 0x9b2   :  { %v765_v50 = vadd.f32 %v763_v49, %v756_v47 }
 0x9b3   :  { %v772_v27 = vpop.permute.xlu1 %771 }
 0x9b4   :  { %v774_v51 = vadd.f32 %v772_v27, %v765_v50  ;;  %v8161_v50 = vpack.c.bf16 %v971_v44, %v970_v34 }
 0x9b6   :  { %7379 = vtanh.f32 %v774_v51  ;;  %784 = vrot.lane.b32.xlu0 %v774_v51, %s7625_s17  ;;  %6808 = vmatpush3.bf16.msra.mxu0 %v8161_v50 }
 0x9b7   :  { %6809 = vmatprep.subr.bf16.mxu0 %v7626_v2 }
 0x9c0   :  { %v7380_v29 = vpop.eup %7379 }
 0x9c1   :  { %v8124_v32 = vmul.f32 %v7380_v29, %v7378_v35  ;;  %v972_v29 = vld [vmem:[%s10550_s6 + $0x20] sm:$0xff] }
 0x9c2   :  { %v816_v53 = vpop.permute.xlu0 %815 }
 0x9c3   :  { %vm838_vm15 = vcmp.eq.s32.totalorder %v816_v53, 1  ;;  %v973_v53 = vld [vmem:[%s10550_s6 + $0x28] sm:$0xff] }
 0x9c4   :  { %v819_v55 = vpop.permute.xlu1 %818  ;;  %v846_v56 = vsel %vm838_vm15, %v8029_v11, %v798_v45  ;;  %v805_v45 = vld [vmem:[#allocation2 + $0xe] sm:$0x3] }
 0x9c5   :  { %vm839_vm4 = vcmp.eq.s32.totalorder %v819_v55, 1  ;;  %854 = vst.msk [vmem:[#allocation2] sm:$0x3] %vm36_vm9, %v846_v56 }
 0x9c6   :  { %v882_v58 = vpop.permute.xlu0 %881  ;;  %v847_v59 = vsel %vm839_vm4, %v8029_v11, %v799_v57 }
 0x9c7   :  { %855 = vst.msk [vmem:[#allocation2 + $0x2] sm:$0x3] %vm36_vm9, %v847_v59  ;;  %vm904_vm8 = vcmp.eq.s32.totalorder %v882_v58, 1 }
 0x9c8   :  { %v885_v60 = vpop.permute.xlu1 %884  ;;  %v912_v16 = vsel %vm904_vm8, %v846_v56, 0.0 }
 0x9c9   :  { %vm905_vm6 = vcmp.eq.s32.totalorder %v885_v60, 1  ;;  %v920_v31 = vsel %vm36_vm9, %v912_v16, 0.0 }
 0x9ca   :  { %v822_v61 = vpop.permute.xlu0 %821  ;;  %v913_v12 = vsel %vm905_vm6, %v847_v59, 0.0  ;;  %v8174_v59 = vpack.c.bf16 %v973_v53, %v972_v29  ;;  %v1094_v29 = vld [vmem:[%s10552_s8 + $0x18] sm:$0xff]  ;;  %v1091_v53 = vld [vmem:[%s10552_s8] sm:$0xff] }
 0x9cb   :  { %vm840_vm5 = vcmp.eq.s32.totalorder %v822_v61, 1  ;;  %v921_v22 = vsel %vm36_vm9, %v913_v12, 0.0 }
 0x9cc   :  { %v888_v63 = vpop.permute.xlu1 %887  ;;  %v848_v1 = vsel %vm840_vm5, %v8029_v11, %v800_v62  ;;  %v922_v36 = vadd.f32 %v921_v22, %v920_v31  ;;  %6811 = vmatpush3.bf16.msra.mxu0 %v8174_v59  ;;  %v980_v22 = vld [vmem:[%s10550_s6 + $0x60] sm:$0xff]  ;;  %v983_v31 = vld [vmem:[%s10550_s6 + $0x78] sm:$0xff] }
 0x9cd   :  { %856 = vst.msk [vmem:[#allocation2 + $0x4] sm:$0x3] %vm36_vm9, %v848_v1  ;;  %vm906_vm10 = vcmp.eq.s32.totalorder %v888_v63, 1  ;;  %v974_v63 = vld [vmem:[%s10550_s6 + $0x30] sm:$0xff]  ;;  %6812 = vmatprep.subr.bf16.mxu0 %v7626_v2 }
 0x9ce   :  { %v825_v3 = vpop.permute.xlu0 %824  ;;  %v914_v18 = vsel %vm906_vm10, %v848_v1, 0.0  ;;  %v975_v1 = vld [vmem:[%s10550_s6 + $0x38] sm:$0xff] }
 0x9cf   :  { %vm841_vm7 = vcmp.eq.s32.totalorder %v825_v3, 1  ;;  %v923_v33 = vsel %vm36_vm9, %v914_v18, 0.0  ;;  %v978_v18 = vld [vmem:[%s10550_s6 + $0x50] sm:$0xff] }
 0x9d0   :  { %v891_v9 = vpop.permute.xlu1 %890  ;;  %v849_v10 = vsel %vm841_vm7, %v8029_v11, %v801_v4  ;;  %v924_v20 = vadd.f32 %v923_v33, %v922_v36 }
 0x9d1   :  { %857 = vst.msk [vmem:[#allocation2 + $0x6] sm:$0x3] %vm36_vm9, %v849_v10  ;;  %vm907_vm11 = vcmp.eq.s32.totalorder %v891_v9, 1 }
 0x9d2   :  { %v828_v13 = vpop.permute.xlu0 %827  ;;  %v915_v24 = vsel %vm907_vm11, %v849_v10, 0.0  ;;  %v8185_v10 = vpack.c.bf16 %v975_v1, %v974_v63  ;;  %v1102_v63 = vld [vmem:[%s10552_s8 + $0x58] sm:$0xff] }
 0x9d3   :  { %vm842_vm12 = vcmp.eq.s32.totalorder %v828_v13, 1  ;;  %v925_v17 = vsel %vm36_vm9, %v915_v24, 0.0  ;;  %v976_v13 = vld [vmem:[%s10550_s6 + $0x40] sm:$0xff]  ;;  %v981_v24 = vld [vmem:[%s10550_s6 + $0x68] sm:$0xff] }
 0x9d4   :  { %v894_v19 = vpop.permute.xlu1 %893  ;;  %v850_v21 = vsel %vm842_vm12, %v8029_v11, %v802_v15  ;;  %v926_v46 = vadd.f32 %v925_v17, %v924_v20  ;;  %v977_v15 = vld [vmem:[%s10550_s6 + $0x48] sm:$0xff]  ;;  %6814 = vmatpush3.bf16.msra.mxu0 %v8185_v10  ;;  %v8250_v17 = vld [vmem:[%s10548_s4 + $0x4] sm:$0x3] }
 0x9d5   :  { %858 = vst.msk [vmem:[#allocation2 + $0x8] sm:$0x3] %vm36_vm9, %v850_v21  ;;  %vm908_vm13 = vcmp.eq.s32.totalorder %v894_v19, 1  ;;  %6815 = vmatprep.subr.bf16.mxu0 %v7626_v2  ;;  %v979_v19 = vld [vmem:[%s10550_s6 + $0x58] sm:$0xff] }
 0x9d6   :  { %v831_v25 = vpop.permute.xlu0 %830  ;;  %v916_v37 = vsel %vm908_vm13, %v850_v21, 0.0  ;;  %v8213_v21 = vpack.c.bf16 %v979_v19, %v978_v18 }
 0x9d7   :  { %vm843_vm14 = vcmp.eq.s32.totalorder %v831_v25, 1  ;;  %v927_v28 = vsel %vm36_vm9, %v916_v37, 0.0  ;;  %v8223_v25 = vpack.c.bf16 %v981_v24, %v980_v22  ;;  %v1103_v22 = vld [vmem:[%s10552_s8 + $0x60] sm:$0xff]  ;;  %v1105_v24 = vld [vmem:[%s10552_s8 + $0x70] sm:$0xff] }
 0x9d8   :  { %v897_v38 = vpop.permute.xlu1 %896  ;;  %v851_v8 = vsel %vm843_vm14, %v8029_v11, %v803_v30  ;;  %v928_v27 = vadd.f32 %v927_v28, %v926_v46  ;;  %v982_v30 = vld [vmem:[%s10550_s6 + $0x70] sm:$0xff] }
 0x9d9   :  { %859 = vst.msk [vmem:[#allocation2 + $0xa] sm:$0x3] %vm36_vm9, %v851_v8  ;;  %vm909_vm15 = vcmp.eq.s32.totalorder %v897_v38, 1  ;;  %v8234_v33 = vpack.c.bf16 %v983_v31, %v982_v30  ;;  %v1108_v30 = vld [vmem:[%s10552_s8 + $0x88] sm:$0xff]  ;;  %v1110_v31 = vld [vmem:[%s10552_s8 + $0x98] sm:$0xff] }
 0x9da   :  { %v917_v23 = vsel %vm909_vm15, %v851_v8, 0.0  ;;  %v834_v40 = vpop.permute.xlu0 %833 }
 0x9db   :  { %vm844_vm4 = vcmp.eq.s32.totalorder %v834_v40, 1  ;;  %v929_v49 = vsel %vm36_vm9, %v917_v23, 0.0  ;;  %v8264_v40 = vld [vmem:[%s10551_s7] ss:$0 sm:$0xff] }
 0x9dc   :  { %v900_v47 = vpop.permute.xlu1 %899  ;;  %v852_v48 = vsel %vm844_vm4, %v8029_v11, %v804_v0  ;;  %v930_v56 = vadd.f32 %v929_v49, %v928_v27 }
 0x9dd   :  { %860 = vst.msk [vmem:[#allocation2 + $0xc] sm:$0x3] %vm36_vm9, %v852_v48  ;;  %vm910_vm5 = vcmp.eq.s32.totalorder %v900_v47, 1 }
 0x9de   :  { %v918_v51 = vsel %vm910_vm5, %v852_v48, 0.0  ;;  %v837_v35 = vpop.permute.xlu0 %836 }
 0x9df   :  { %v931_v55 = vsel %vm36_vm9, %v918_v51, 0.0  ;;  %vm845_vm6 = vcmp.eq.s32.totalorder %v837_v35, 1  ;;  %v1092_v35 = vld [vmem:[%s10552_s8 + $0x8] sm:$0xff] }
 0x9e0   :  { %v903_v57 = vpop.permute.xlu1 %902  ;;  %v853_v58 = vsel %vm845_vm6, %v8029_v11, %v805_v45  ;;  %v932_v60 = vadd.f32 %v931_v55, %v930_v56  ;;  %v6827_v45 = vpack.c.bf16 %v1094_v29, %v1092_v35  ;;  %v1096_v55 = vld [vmem:[%s10552_s8 + $0x28] sm:$0xff]  ;;  %v1098_v56 = vld [vmem:[%s10552_s8 + $0x38] sm:$0xff]  ;;  %v5931_v29 = vld [vmem:[%s10547_s3 + $0x4] sm:$0x3] }
 0x9e1   :  { %861 = vst.msk [vmem:[#allocation2 + $0xe] sm:$0x3] %vm36_vm9, %v853_v58  ;;  %vm911_vm7 = vcmp.eq.s32.totalorder %v903_v57, 1  ;;  %vm1320_vm13 = vcmp.eq.s32.totalorder %v5931_v29, 0  ;;  %vm1321_vm14 = vcmp.eq.s32.totalorder %v5931_v29, 1  ;;  %vm1322_vm4 = vcmp.eq.s32.totalorder %v5931_v29, 2 }
 0x9e2   :  { %v919_v61 = vsel %vm911_vm7, %v853_v58, 0.0  ;;  %v938_v62 = vpop.permute.xlu0 %937  ;;  %v6831_v58 = vpack.c.bf16 %v1098_v56, %v1096_v55  ;;  %6828 = vmatprep.subr.bf16.mxu1 %v6827_v45  ;;  %v1328_v55 = vsel %vm1320_vm13, 1, %v7631_v6  ;;  %v1329_v56 = vsel %vm1321_vm14, 1, %v7631_v6 }
 0x9e3   :  { %v933_v3 = vsel %vm36_vm9, %v919_v61, 0.0  ;;  %vm939_vm8 = vcmp.eq.s32.totalorder %v938_v62, 1  ;;  %v1097_v61 = vld [vmem:[%s10552_s8 + $0x30] sm:$0xff]  ;;  %v1100_v62 = vld [vmem:[%s10552_s8 + $0x48] sm:$0xff]  ;;  %vm1323_vm6 = vcmp.eq.s32.totalorder %v5931_v29, 3  ;;  %vm1326_vm13 = vcmp.eq.s32.totalorder %v5931_v29, 6 }
 0x9e4   :  { %v934_v4 = vadd.f32 %v933_v3, %v932_v60  ;;  %v944_v9 = vpop.permute.xlu1 %943  ;;  %v1095_v60 = vld [vmem:[%s10552_s8 + $0x20] sm:$0xff]  ;;  %v6835_v3 = vpack.c.bf16 %v1102_v63, %v1100_v62 }
 0x9e5   :  { %vm945_vm10 = vcmp.eq.s32.totalorder %v944_v9, 1  ;;  %v6833_v1 = vpack.c.bf16 %v1097_v61, %v1095_v60  ;;  %v1101_v9 = vld [vmem:[%s10552_s8 + $0x50] sm:$0xff]  ;;  %v1331_v61 = vsel %vm1323_vm6, 1, %v7631_v6 }
 0x9e6   :  { %v947_v12 = vsel %vm939_vm8, %v934_v4, %v8029_v11  ;;  %v8203_v11 = vpack.c.bf16 %v977_v15, %v976_v13  ;;  %v1099_v4 = vld [vmem:[%s10552_s8 + $0x40] sm:$0xff]  ;;  %v1104_v13 = vld [vmem:[%s10552_s8 + $0x68] sm:$0xff]  ;;  %v1106_v15 = vld [vmem:[%s10552_s8 + $0x78] sm:$0xff] }
 0x9e7   :  { %v8198_v16 = vsel %vm945_vm10, %v8037_v26, %v947_v12  ;;  %v6837_v18 = vpack.c.bf16 %v1101_v9, %v1099_v4  ;;  %v6839_v19 = vpack.c.bf16 %v1106_v15, %v1104_v13  ;;  %v1334_v9 = vsel %vm1326_vm13, 1, %v7631_v6  ;;  %v5922_v15 = vld [vmem:[%s10544_s0 + $0x4] sm:$0x3] }
 0x9e8   :  { %962 = vrot.lane.b32.xlu0 %v8198_v16, %s7629_s23  ;;  %6817 = vmatpush3.bf16.msra.mxu0 %v8203_v11 }
 0x9e9   :  { %6818 = vmatprep.subr.bf16.mxu0 %v7626_v2 }
 0x9ec   :  { %6820 = vmatpush3.bf16.msra.mxu0 %v8213_v21 }
 0x9ed   :  { %6821 = vmatprep.subr.bf16.mxu0 %v7626_v2 }
 0x9f0   :  { %6823 = vmatpush3.bf16.msra.mxu0 %v8223_v25 }
 0x9f1   :  { %6824 = vmatprep.subr.bf16.mxu0 %v7626_v2 }
 0x9f4   :  { %6826 = vmatpush3.bf16.msra.mxu0 %v8234_v33 }
 0x9f5   :  { %6876 = vmatprep.subr.bf16.mxu0 %v6827_v45 }
 0xa28   :  { %v785_v36 = vpop.permute.xlu0 %784 }
 0xa29   :  { %v787_v37 = vsel %vm58_vm1, %v8124_v32, %v785_v36  ;;  %v6841_v36 = vpack.c.bf16 %v1105_v24, %v1103_v22 }
 0xa2a   :  { %v940_v38 = vsel %vm939_vm8, %v787_v37, %v8037_v26  ;;  %v6843_v37 = vpack.c.bf16 %v1110_v31, %v1108_v30  ;;  %vm1324_vm8 = vcmp.eq.s32.totalorder %v5931_v29, 4 }
 0xa2b   :  { %v8243_v8 = vsel %vm945_vm10, %v8044_v39, %v940_v38  ;;  %v1107_v38 = vld [vmem:[%s10552_s8 + $0x80] sm:$0xff]  ;;  %v1332_v63 = vsel %vm1324_vm8, 1, %v7631_v6 }
 0xa2c   :  { %958 = vrot.lane.b32.xlu1 %v8243_v8, %s7625_s17 }
 0xa5a   :  { %v963_v23 = vpop.permute.xlu0 %962 }
 0xa9e   :  { %v8252_v20 = vpop.permute.xlu1 %958 }
 0xa9f   :  { %v965_v32 = vsel %vm58_vm1, %v8250_v17, %v8252_v20 }
 0xaa0   :  { %v966_v26 = vsel %vm60_vm2, %v965_v32, %v963_v23  ;;  %v1109_v23 = vld [vmem:[%s10552_s8 + $0x90] sm:$0xff]  ;;  %v1112_v32 = vld [vmem:[%s10552_s8 + $0xa8] sm:$0xff] }
 0xaa1   :  { %v967_v39 = vsel %vm62_vm3, %v966_v26, %v8062_v54  ;;  %v1114_v26 = vld [vmem:[%s10552_s8 + $0xb8] sm:$0xff] }
 0xaa2   :  { %6355 = vmatmul.mubr.f32.vlgmr.msra.gmra.mrb[4].mxu0 %v967_v39  ;;  %v6845_v39 = vpack.c.bf16 %v1109_v23, %v1107_v38 }
 0xaa3   :  { %1650 = vmatprep.mubr.f32.mxu0 %v7628_v7 }
 0xb75   :  { %v1057_v41 = vpop.f32.mrb[4].mxu0 }
 0xb76   :  { %v1058_v42 = vadd.f32 %v8264_v40, %v1057_v41  ;;  %v6356_v34 = vpop.f32.mrb[5].mxu0  ;;  %v6847_v41 = vpack.c.bf16 %v1114_v26, %v1112_v32 }
 0xb77   :  { %v1113_v34 = vld [vmem:[%s10552_s8 + $0xb0] sm:$0xff] }
 0xb78   :  { %7381 = vtanh.f32 %v1058_v42  ;;  %v5926_v28 = vmul.f32 -1.442695, %v1058_v42  ;;  %v1111_v42 = vld [vmem:[%s10552_s8 + $0xa0] sm:$0xff] }
 0xb7a   :  { %7383 = vpow2.f32 %v5926_v28 }
 0xb82   :  { %v7382_v0 = vpop.eup %7381 }
 0xb83   :  { %1070 = vrot.lane.b32.xlu1 %v7382_v0, %s7629_s23  ;;  %v6849_v0 = vpack.c.bf16 %v1113_v34, %v1111_v42 }
 0xb84   :  { %v7384_v44 = vpop.eup %7383 }
 0xb85   :  { %v1064_v54 = vadd.f32 1.0, %v7384_v44 }
 0xb87   :  { %7385 = vrcp.f32 %v1064_v54  ;;  %v1089_v54 = vsel %vm58_vm1, %v8198_v16, %v8252_v20 }
 0xb91   :  { %v8268_v46 = vpop.eup %7385 }
 0xb92   :  { %v1068_v49 = vmul.f32 %v8268_v46, %v8056_v52  ;;  %v1093_v52 = vld [vmem:[%s10552_s8 + $0x10] sm:$0xff] }
 0xb93   :  { %v6829_v57 = vpack.c.bf16 %v1093_v52, %v1091_v53 }
 0xb95   :  { %6830 = vmatpush1.bf16.msra.mxu1 %v6829_v57  ;;  %6878 = vmatpush1.bf16.msra.mxu0 %v6829_v57 }
 0xb96   :  { %6832 = vmatprep.subr.bf16.mxu1 %v6831_v58  ;;  %6880 = vmatprep.subr.bf16.mxu0 %v6831_v58  ;;  %v1330_v58 = vsel %vm1322_vm4, 1, %v7631_v6 }
 0xb99   :  { %6834 = vmatpush1.bf16.msra.mxu1 %v6833_v1  ;;  %6882 = vmatpush1.bf16.msra.mxu0 %v6833_v1 }
 0xb9a   :  { %6836 = vmatprep.subr.bf16.mxu1 %v6835_v3  ;;  %6884 = vmatprep.subr.bf16.mxu0 %v6835_v3 }
 0xb9d   :  { %6838 = vmatpush1.bf16.msra.mxu1 %v6837_v18  ;;  %6886 = vmatpush1.bf16.msra.mxu0 %v6837_v18 }
 0xb9e   :  { %6840 = vmatprep.subr.bf16.mxu1 %v6839_v19  ;;  %6888 = vmatprep.subr.bf16.mxu0 %v6839_v19 }
 0xba1   :  { %6842 = vmatpush1.bf16.msra.mxu1 %v6841_v36  ;;  %6890 = vmatpush1.bf16.msra.mxu0 %v6841_v36 }
 0xba2   :  { %6844 = vmatprep.subr.bf16.mxu1 %v6843_v37  ;;  %6892 = vmatprep.subr.bf16.mxu0 %v6843_v37 }
 0xba5   :  { %6846 = vmatpush1.bf16.msra.mxu1 %v6845_v39  ;;  %6894 = vmatpush1.bf16.msra.mxu0 %v6845_v39 }
 0xba6   :  { %6848 = vmatprep.subr.bf16.mxu1 %v6847_v41  ;;  %6896 = vmatprep.subr.bf16.mxu0 %v6847_v41 }
 0xba9   :  { %6850 = vmatpush1.bf16.msra.mxu1 %v6849_v0  ;;  %6898 = vmatpush1.bf16.msra.mxu0 %v6849_v0 }
 0xbaa   :  { %6851 = vmatprep.subr.bf16.mxu1 %v7626_v2  ;;  %6899 = vmatprep.subr.bf16.mxu0 %v7626_v2 }
 0xbf5   :  { %v1071_v47 = vpop.permute.xlu1 %1070 }
 0xbf6   :  { %v1073_v48 = vmul.f32 %v8268_v46, %v1071_v47 }
 0xbf8   :  { %1075 = vrot.lane.b32.xlu0 %v1073_v48, %s7625_s17 }
 0xc6a   :  { %v1076_v27 = vpop.permute.xlu0 %1075 }
 0xc6b   :  { %v8274_v51 = vadd.f32 %v1076_v27, %v1068_v49 }
 0xc6d   :  { %7387 = vtanh.f32 %v8274_v51 }
 0xc77   :  { %v7388_v12 = vpop.eup %7387 }
 0xc78   :  { %1081 = vrot.lane.b32.xlu1 %v7388_v12, %s7629_s23  ;;  %v5923_v12 = vld [vmem:[%s10545_s1 + $0x4] sm:$0x3] }
 0xc79   :  { %vm954_vm4 = vcmp.ne.s32.totalorder %v5923_v12, 0 }
 0xc7a   :  { %v1391_v19 = vsel %vm954_vm4, 1, %v7631_v6 }
 0xc7c   :  { %1213 = vrot.lane.b32.xlu1 %v8198_v16, %s7625_s17 }
 0xcea   :  { %v1082_v28 = vpop.permute.xlu1 %1081 }
 0xceb   :  { %v8355_v44 = vmul.f32 %v8268_v46, %v1082_v28 }
 0xced   :  { %1086 = vrot.lane.b32.xlu0 %v8355_v44, %s7630_s24 }
 0xcee   :  { %v1214_v49 = vpop.permute.xlu1 %1213 }
 0xcf1   :  { %1222 = vrot.lane.b32.xlu0 %v8243_v8, %s7629_s23 }
 0xd5f   :  { %v1087_v47 = vpop.permute.xlu0 %1086 }
 0xd60   :  { %v1090_v48 = vsel %vm60_vm2, %v1089_v54, %v1087_v47  ;;  %v1254_v47 = vld [vmem:[#allocation2] sm:$0x3] }
 0xd61   :  { %5927 = vmatmul.mubr.msk.f32.vlgmr.msra.gmra.mrb[4].mxu1 %vm62_vm3, %v1090_v48 }
 0xd62   :  { %6853 = vmatpush3.bf16.msra.mxu1 %v8152_v43  ;;  %6389 = vmatprep.mubr.msk.f32.mxu1 %vm7627_vm0, %v7628_v7  ;;  %v8386_v43 = vld [vmem:[%s10553_s9] sm:$0x3] }
 0xd63   :  { %6854 = vmatprep.subr.bf16.mxu1 %v7626_v2  ;;  %v1223_v35 = vpop.permute.xlu0 %1222  ;;  %v1124_v24 = vrot.slane %v8386_v43, %v7994_v5 }
 0xd66   :  { %6856 = vmatpush3.bf16.msra.mxu1 %v8161_v50  ;;  %v1120_v50 = vrot.slane %v8386_v43, %v7918_v14 }
 0xd67   :  { %6857 = vmatprep.subr.bf16.mxu1 %v7626_v2 }
 0xd6a   :  { %6859 = vmatpush3.bf16.msra.mxu1 %v8174_v59 }
 0xd6b   :  { %6860 = vmatprep.subr.bf16.mxu1 %v7626_v2 }
 0xd6e   :  { %6862 = vmatpush3.bf16.msra.mxu1 %v8185_v10 }
 0xd6f   :  { %6863 = vmatprep.subr.bf16.mxu1 %v7626_v2 }
 0xd72   :  { %6865 = vmatpush3.bf16.msra.mxu1 %v8203_v11 }
 0xd73   :  { %6866 = vmatprep.subr.bf16.mxu1 %v7626_v2 }
 0xd76   :  { %6868 = vmatpush3.bf16.msra.mxu1 %v8213_v21 }
 0xd77   :  { %6869 = vmatprep.subr.bf16.mxu1 %v7626_v2 }
 0xd7a   :  { %6871 = vmatpush3.bf16.msra.mxu1 %v8223_v25 }
 0xd7b   :  { %6872 = vmatprep.subr.bf16.mxu1 %v7626_v2 }
 0xd7e   :  { %6874 = vmatpush3.bf16.msra.mxu1 %v8234_v33  ;;  %v5930_v33 = vld [vmem:[%s10546_s2 + $0x4] sm:$0x3] }
 0xd7f   :  { %vm1246_vm11 = vcmp.eq.s32.totalorder %v5930_v33, 0  ;;  %vm1247_vm12 = vcmp.eq.s32.totalorder %v5930_v33, 1  ;;  %vm1248_vm15 = vcmp.eq.s32.totalorder %v5930_v33, 2  ;;  %vm1249_vm5 = vcmp.eq.s32.totalorder %v5930_v33, 3 }
 0xd80   :  { %v1262_v45 = vsel %vm1246_vm11, 1, %v7631_v6  ;;  %v1263_v52 = vsel %vm1247_vm12, 1, %v7631_v6  ;;  %v1264_v57 = vsel %vm1248_vm15, 1, %v7631_v6  ;;  %v1265_v60 = vsel %vm1249_vm5, 1, %v7631_v6 }
 0xd81   :  { %vm1250_vm7 = vcmp.eq.s32.totalorder %v5930_v33, 4  ;;  %vm1251_vm10 = vcmp.eq.s32.totalorder %v5930_v33, 5  ;;  %vm1325_vm11 = vcmp.eq.s32.totalorder %v5931_v29, 5  ;;  %vm1252_vm12 = vcmp.eq.s32.totalorder %v5930_v33, 6 }
 0xd82   :  { %v1266_v62 = vsel %vm1250_vm7, 1, %v7631_v6  ;;  %v1267_v1 = vsel %vm1251_vm10, 1, %v7631_v6  ;;  %v1333_v3 = vsel %vm1325_vm11, 1, %v7631_v6  ;;  %v1268_v4 = vsel %vm1252_vm12, 1, %v7631_v6 }
 0xd83   :  { %vm1253_vm14 = vcmp.eq.s32.totalorder %v5930_v33, 7  ;;  %vm1327_vm15 = vcmp.eq.s32.totalorder %v5931_v29, 7  ;;  %vm951_vm5 = vcmp.ne.s32.totalorder %v5922_v15, 0 }
 0xd84   :  { %v1269_v13 = vsel %vm1253_vm14, 1, %v7631_v6  ;;  %v1335_v18 = vsel %vm1327_vm15, 1, %v7631_v6  ;;  %v1397_v22 = vsel %vm951_vm5, 1, %v7631_v6 }
 0xe34   :  { %v1196_v59 = vpop.f32.mrb[4].mxu1 }
 0xe35   :  { %v8390_v10 = vadd.f32 %v1196_v59, %v1120_v50  ;;  %v8392_v11 = vpop.f32.mrb[5].mxu1  ;;  %v1255_v50 = vld [vmem:[#allocation2 + $0x2] sm:$0x3] }
 0xe36   :  { %v1199_v30 = vadd.f32 %v8392_v11, %v1124_v24  ;;  %v1260_v24 = vld [vmem:[#allocation2 + $0xc] sm:$0x3] }
 0xe37   :  { %v5928_v21 = vmul.f32 -1.442695, %v8390_v10 }
 0xe38   :  { %v5929_v31 = vmul.f32 -1.442695, %v1199_v30 }
 0xe39   :  { %7389 = vpow2.f32 %v5928_v21 }
 0xe43   :  { %v7390_v25 = vpop.eup %7389 }
 0xe44   :  { %v1205_v20 = vadd.f32 1.0, %v7390_v25  ;;  %v1256_v25 = vld [vmem:[#allocation2 + $0x4] sm:$0x3] }
 0xe46   :  { %7391 = vrcp.f32 %v1205_v20 }
 0xe47   :  { %7393 = vpow2.f32 %v5929_v31 }
 0xe48   :  { %7395 = vtanh.f32 %v8390_v10 }
 0xe50   :  { %v7392_v46 = vpop.eup %7391 }
 0xe51   :  { %1209 = vrot.lane.b32.xlu1 %v7392_v46, %s7630_s24  ;;  %v1216_v27 = vmul.f32 %v7392_v46, %v1214_v49  ;;  %v1225_v53 = vmul.f32 %v7392_v46, %v1223_v35  ;;  %v7394_v36 = vpop.eup %7393  ;;  %v1257_v49 = vld [vmem:[#allocation2 + $0x6] sm:$0x3] }
 0xe52   :  { %v7396_v37 = vpop.eup %7395  ;;  %v1234_v32 = vadd.f32 1.0, %v7394_v36 }
 0xe53   :  { %1218 = vrot.lane.b32.xlu0 %v1216_v27, %s7629_s23 }
 0xe54   :  { %7397 = vrcp.f32 %v1234_v32 }
 0xe55   :  { %1227 = vrot.lane.b32.xlu1 %v1225_v53, %s7625_s17 }
 0xe57   :  { %1271 = vperm.xlu0 %7340, %v1262_v45   ;;  %v1258_v45 = vld [vmem:[#allocation2 + $0x8] sm:$0x3] }
 0xe59   :  { %1274 = vperm.xlu1 %7339, %v1263_v52  }
 0xe5b   :  { %1337 = vperm.xlu0 %7340, %v1328_v55  }
 0xe5d   :  { %1340 = vperm.xlu1 %7339, %v1329_v56  }
 0xe5e   :  { %v7398_v34 = vpop.eup %7397 }
 0xe5f   :  { %1277 = vperm.xlu0 %7340, %v1264_v57  }
 0xe61   :  { %1343 = vperm.xlu1 %7339, %v1330_v58  }
 0xe63   :  { %1280 = vperm.xlu0 %7340, %v1265_v60  }
 0xe65   :  { %1346 = vperm.xlu1 %7339, %v1331_v61  }
 0xe67   :  { %1283 = vperm.xlu0 %7340, %v1266_v62  }
 0xe69   :  { %1349 = vperm.xlu1 %7339, %v1332_v63  }
 0xe6b   :  { %1286 = vperm.xlu0 %7340, %v1267_v1   ;;  %v1259_v1 = vld [vmem:[#allocation2 + $0xa] sm:$0x3] }
 0xe6d   :  { %1352 = vperm.xlu1 %7339, %v1333_v3  }
 0xe6f   :  { %1289 = vperm.xlu0 %7340, %v1268_v4  }
 0xe71   :  { %1355 = vperm.xlu1 %7339, %v1334_v9  }
 0xe73   :  { %1292 = vperm.xlu0 %7340, %v1269_v13  }
 0xe75   :  { %1358 = vperm.xlu1 %7339, %v1335_v18  }
 0xe77   :  { %1393 = vperm.xlu0 %7340, %v1391_v19  }
 0xe79   :  { %1399 = vperm.xlu1 %7339, %v1397_v22  }
 0xec3   :  { %v1210_v38 = vpop.permute.xlu1 %1209 }
 0xec4   :  { %v1212_v23 = vmul.f32 %v7396_v37, %v1210_v38 }
 0xec5   :  { %v1219_v26 = vpop.permute.xlu0 %1218 }
 0xec6   :  { %v1221_v39 = vadd.f32 %v1219_v26, %v1212_v23 }
 0xec7   :  { %v1228_v41 = vpop.permute.xlu1 %1227 }
 0xec8   :  { %v1230_v42 = vadd.f32 %v1228_v41, %v1221_v39  ;;  %v1261_v39 = vld [vmem:[#allocation2 + $0xe] sm:$0x3] }
 0xeca   :  { %7399 = vtanh.f32 %v1230_v42  ;;  %1240 = vrot.lane.b32.xlu0 %v1230_v42, %s7625_s17 }
 0xed4   :  { %v7400_v0 = vpop.eup %7399 }
 0xed5   :  { %v8433_v28 = vmul.f32 %v7400_v0, %v7398_v34 }
 0xed6   :  { %v1272_v54 = vpop.permute.xlu0 %1271 }
 0xed7   :  { %vm1294_vm6 = vcmp.eq.s32.totalorder %v1272_v54, 1 }
 0xed8   :  { %v1275_v48 = vpop.permute.xlu1 %1274  ;;  %v1302_v43 = vsel %vm1294_vm6, %v8198_v16, %v1254_v47 }
 0xed9   :  { %vm1295_vm7 = vcmp.eq.s32.totalorder %v1275_v48, 1  ;;  %1310 = vst.msk [vmem:[#allocation2] sm:$0x3] %vm36_vm9, %v1302_v43 }
 0xeda   :  { %v1338_v59 = vpop.permute.xlu0 %1337  ;;  %v1303_v10 = vsel %vm1295_vm7, %v8198_v16, %v1255_v50 }
 0xedb   :  { %1311 = vst.msk [vmem:[#allocation2 + $0x2] sm:$0x3] %vm36_vm9, %v1303_v10  ;;  %vm1360_vm12 = vcmp.eq.s32.totalorder %v1338_v59, 1 }
 0xedc   :  { %v1341_v11 = vpop.permute.xlu1 %1340  ;;  %v1368_v52 = vsel %vm1360_vm12, %v1302_v43, 0.0 }
 0xedd   :  { %vm1361_vm10 = vcmp.eq.s32.totalorder %v1341_v11, 1  ;;  %v1376_v62 = vsel %vm36_vm9, %v1368_v52, 0.0 }
 0xede   :  { %v1278_v21 = vpop.permute.xlu0 %1277  ;;  %v1369_v29 = vsel %vm1361_vm10, %v1303_v10, 0.0 }
 0xedf   :  { %vm1296_vm8 = vcmp.eq.s32.totalorder %v1278_v21, 1  ;;  %v1377_v58 = vsel %vm36_vm9, %v1369_v29, 0.0 }
 0xee0   :  { %v1344_v20 = vpop.permute.xlu1 %1343  ;;  %v1304_v33 = vsel %vm1296_vm8, %v8198_v16, %v1256_v25  ;;  %v1378_v3 = vadd.f32 %v1377_v58, %v1376_v62 }
 0xee1   :  { %1312 = vst.msk [vmem:[#allocation2 + $0x4] sm:$0x3] %vm36_vm9, %v1304_v33  ;;  %vm1362_vm13 = vcmp.eq.s32.totalorder %v1344_v20, 1 }
 0xee2   :  { %v1281_v46 = vpop.permute.xlu0 %1280  ;;  %v1370_v55 = vsel %vm1362_vm13, %v1304_v33, 0.0 }
 0xee3   :  { %vm1297_vm11 = vcmp.eq.s32.totalorder %v1281_v46, 1  ;;  %v1379_v63 = vsel %vm36_vm9, %v1370_v55, 0.0 }
 0xee4   :  { %v1347_v27 = vpop.permute.xlu1 %1346  ;;  %v1305_v35 = vsel %vm1297_vm11, %v8198_v16, %v1257_v49  ;;  %v1380_v15 = vadd.f32 %v1379_v63, %v1378_v3  ;;  %v8509_v3 = vld [vmem:[%s10553_s9] sm:$0x3] }
 0xee5   :  { %1313 = vst.msk [vmem:[#allocation2 + $0x6] sm:$0x3] %vm36_vm9, %v1305_v35  ;;  %vm1363_vm14 = vcmp.eq.s32.totalorder %v1347_v27, 1 }
 0xee6   :  { %v1284_v53 = vpop.permute.xlu0 %1283  ;;  %v1371_v60 = vsel %vm1363_vm14, %v1305_v35, 0.0 }
 0xee7   :  { %vm1298_vm15 = vcmp.eq.s32.totalorder %v1284_v53, 1  ;;  %v1381_v13 = vsel %vm36_vm9, %v1371_v60, 0.0 }
 0xee8   :  { %v1350_v56 = vpop.permute.xlu1 %1349  ;;  %v1306_v57 = vsel %vm1298_vm15, %v8198_v16, %v1258_v45  ;;  %v1382_v30 = vadd.f32 %v1381_v13, %v1380_v15 }
 0xee9   :  { %1314 = vst.msk [vmem:[#allocation2 + $0x8] sm:$0x3] %vm36_vm9, %v1306_v57  ;;  %vm1364_vm4 = vcmp.eq.s32.totalorder %v1350_v56, 1 }
 0xeea   :  { %v1287_v61 = vpop.permute.xlu0 %1286  ;;  %v1372_v4 = vsel %vm1364_vm4, %v1306_v57, 0.0 }
 0xeeb   :  { %vm1299_vm5 = vcmp.eq.s32.totalorder %v1287_v61, 1  ;;  %v1383_v22 = vsel %vm36_vm9, %v1372_v4, 0.0  ;;  %v1576_v4 = vrot.slane %v8509_v3, %v7918_v14 }
 0xeec   :  { %v1353_v9 = vpop.permute.xlu1 %1352  ;;  %v1307_v12 = vsel %vm1299_vm5, %v8198_v16, %v1259_v1  ;;  %v1384_v38 = vadd.f32 %v1383_v22, %v1382_v30  ;;  %v5940_v22 = vld [vmem:[%s10546_s2 + $0x6] sm:$0x3] }
 0xeed   :  { %1315 = vst.msk [vmem:[#allocation2 + $0xa] sm:$0x3] %vm36_vm9, %v1307_v12  ;;  %vm1365_vm6 = vcmp.eq.s32.totalorder %v1353_v9, 1  ;;  %vm1702_vm14 = vcmp.eq.s32.totalorder %v5940_v22, 0  ;;  %vm1703_vm15 = vcmp.eq.s32.totalorder %v5940_v22, 1 }
 0xeee   :  { %v1373_v18 = vsel %vm1365_vm6, %v1307_v12, 0.0  ;;  %v1290_v19 = vpop.permute.xlu0 %1289  ;;  %vm1704_vm6 = vcmp.eq.s32.totalorder %v5940_v22, 2 }
 0xeef   :  { %vm1300_vm7 = vcmp.eq.s32.totalorder %v1290_v19, 1  ;;  %v1385_v37 = vsel %vm36_vm9, %v1373_v18, 0.0 }
 0xef0   :  { %v1356_v31 = vpop.permute.xlu1 %1355  ;;  %v1308_v36 = vsel %vm1300_vm7, %v8198_v16, %v1260_v24  ;;  %v1386_v41 = vadd.f32 %v1385_v37, %v1384_v38  ;;  %v5941_v37 = vld [vmem:[%s10547_s3 + $0x6] sm:$0x3] }
 0xef1   :  { %1316 = vst.msk [vmem:[#allocation2 + $0xc] sm:$0x3] %vm36_vm9, %v1308_v36  ;;  %vm1366_vm8 = vcmp.eq.s32.totalorder %v1356_v31, 1  ;;  %vm1776_vm4 = vcmp.eq.s32.totalorder %v5941_v37, 0  ;;  %vm1777_vm5 = vcmp.eq.s32.totalorder %v5941_v37, 1  ;;  %vm1778_vm7 = vcmp.eq.s32.totalorder %v5941_v37, 2 }
 0xef2   :  { %v1374_v23 = vsel %vm1366_vm8, %v1308_v36, 0.0  ;;  %v1293_v32 = vpop.permute.xlu0 %1292  ;;  %vm1705_vm8 = vcmp.eq.s32.totalorder %v5940_v22, 3 }
 0xef3   :  { %v1387_v26 = vsel %vm36_vm9, %v1374_v23, 0.0  ;;  %vm1301_vm10 = vcmp.eq.s32.totalorder %v1293_v32, 1  ;;  %v1718_v23 = vsel %vm1702_vm14, 1, %v7631_v6  ;;  %v1719_v32 = vsel %vm1703_vm15, 1, %v7631_v6 }
 0xef4   :  { %v1359_v42 = vpop.permute.xlu1 %1358  ;;  %v1309_v34 = vsel %vm1301_vm10, %v8198_v16, %v1261_v39  ;;  %v1388_v0 = vadd.f32 %v1387_v26, %v1386_v41  ;;  %v1784_v26 = vsel %vm1776_vm4, 1, %v7631_v6  ;;  %v1785_v39 = vsel %vm1777_vm5, 1, %v7631_v6 }
 0xef5   :  { %1317 = vst.msk [vmem:[#allocation2 + $0xe] sm:$0x3] %vm36_vm9, %v1309_v34  ;;  %vm1367_vm11 = vcmp.eq.s32.totalorder %v1359_v42, 1  ;;  %v1720_v41 = vsel %vm1704_vm6, 1, %v7631_v6  ;;  %v1786_v42 = vsel %vm1778_vm7, 1, %v7631_v6  ;;  %vm1779_vm10 = vcmp.eq.s32.totalorder %v5941_v37, 3 }
 0xef6   :  { %v1375_v54 = vsel %vm1367_vm11, %v1309_v34, 0.0  ;;  %v1394_v47 = vpop.permute.xlu0 %1393  ;;  %v1721_v34 = vsel %vm1705_vm8, 1, %v7631_v6  ;;  %vm1706_vm11 = vcmp.eq.s32.totalorder %v5940_v22, 4  ;;  %vm1781_vm14 = vcmp.eq.s32.totalorder %v5941_v37, 5 }
 0xef7   :  { %v1389_v48 = vsel %vm36_vm9, %v1375_v54, 0.0  ;;  %vm1395_vm12 = vcmp.eq.s32.totalorder %v1394_v47, 1  ;;  %v1722_v54 = vsel %vm1706_vm11, 1, %v7631_v6  ;;  %vm1708_vm15 = vcmp.eq.s32.totalorder %v5940_v22, 6 }
 0xef8   :  { %v1390_v43 = vadd.f32 %v1389_v48, %v1388_v0  ;;  %v1400_v50 = vpop.permute.xlu1 %1399  ;;  %v1787_v0 = vsel %vm1779_vm10, 1, %v7631_v6  ;;  %vm1782_vm4 = vcmp.eq.s32.totalorder %v5941_v37, 6  ;;  %vm1709_vm5 = vcmp.eq.s32.totalorder %v5940_v22, 7 }
 0xef9   :  { %vm1401_vm13 = vcmp.eq.s32.totalorder %v1400_v50, 1  ;;  %v1724_v50 = vsel %vm1708_vm15, 1, %v7631_v6  ;;  %vm1783_vm6 = vcmp.eq.s32.totalorder %v5941_v37, 7 }
 0xefa   :  { %v1403_v59 = vsel %vm1395_vm12, %v1390_v43, %v8198_v16  ;;  %v8476_v16 = vld [vmem:[%s10548_s4 + $0x6] sm:$0x3]  ;;  %v1789_v43 = vsel %vm1781_vm14, 1, %v7631_v6 }
 0xefb   :  { %v8461_v10 = vsel %vm1401_vm13, %v8243_v8, %v1403_v59  ;;  %v1790_v59 = vsel %vm1782_vm4, 1, %v7631_v6 }
 0xefc   :  { %1418 = vrot.lane.b32.xlu0 %v8461_v10, %s7629_s23 }
 0xf3c   :  { %v1241_v11 = vpop.permute.xlu0 %1240 }
 0xf3d   :  { %v1243_v21 = vsel %vm58_vm1, %v8433_v28, %v1241_v11  ;;  %v5933_v11 = vld [vmem:[%s10545_s1 + $0x6] sm:$0x3] }
 0xf3e   :  { %v1396_v25 = vsel %vm1395_vm12, %v1243_v21, %v8243_v8  ;;  %vm1780_vm12 = vcmp.eq.s32.totalorder %v5941_v37, 4  ;;  %v1725_v21 = vsel %vm1709_vm5, 1, %v7631_v6  ;;  %vm1410_vm7 = vcmp.ne.s32.totalorder %v5933_v11, 0 }
 0xf3f   :  { %v8469_v20 = vsel %vm1401_vm13, %v8250_v17, %v1396_v25  ;;  %vm1707_vm13 = vcmp.eq.s32.totalorder %v5940_v22, 5  ;;  %v1788_v47 = vsel %vm1780_vm12, 1, %v7631_v6  ;;  %v5932_v25 = vld [vmem:[%s10544_s0 + $0x6] sm:$0x3] }
 0xf40   :  { %1414 = vrot.lane.b32.xlu1 %v8469_v20, %s7625_s17  ;;  %v1723_v48 = vsel %vm1707_vm13, 1, %v7631_v6  ;;  %vm1407_vm8 = vcmp.ne.s32.totalorder %v5932_v25, 0 }
 0xf6e   :  { %v1419_v46 = vpop.permute.xlu0 %1418 }
 0xfb2   :  { %v1415_v33 = vpop.permute.xlu1 %1414 }
 0xfb3   :  { %v1421_v49 = vsel %vm58_vm1, %v8476_v16, %v1415_v33 }
 0xfb4   :  { %v1422_v28 = vsel %vm60_vm2, %v1421_v49, %v1419_v46  ;;  %v1847_v46 = vsel %vm1410_vm7, 1, %v7631_v6  ;;  %v1853_v49 = vsel %vm1407_vm8, 1, %v7631_v6 }
 0xfb5   :  { %v1423_v8 = vsel %vm62_vm3, %v1422_v28, %v8355_v44  ;;  %v1580_v28 = vrot.slane %v8509_v3, %v7994_v5  ;;  %v1711_v3 = vld [vmem:[#allocation2 + $0x2] sm:$0x3] }
 0xfb6   :  { %6390 = vmatmul.mubr.f32.vlgmr.msra.gmra.mrb[6].mxu1 %v1423_v8 }
 0xfb7   :  { %2106 = vmatprep.mubr.f32.mxu1 %v7628_v7 }
0x1089   :  { %v1513_v17 = vpop.f32.mrb[6].mxu1 }
0x108a   :  { %v1514_v27 = vadd.f32 %v8264_v40, %v1513_v17  ;;  %v6391_v35 = vpop.f32.mrb[7].mxu1 }
0x108c   :  { %7401 = vtanh.f32 %v1514_v27  ;;  %v5936_v53 = vmul.f32 -1.442695, %v1514_v27 }
0x108e   :  { %7403 = vpow2.f32 %v5936_v53 }
0x1096   :  { %v7402_v29 = vpop.eup %7401 }
0x1097   :  { %1526 = vrot.lane.b32.xlu1 %v7402_v29, %s7629_s23 }
0x1098   :  { %v7404_v45 = vpop.eup %7403 }
0x1099   :  { %v1520_v52 = vadd.f32 1.0, %v7404_v45 }
0x109b   :  { %7405 = vrcp.f32 %v1520_v52 }
0x10a5   :  { %v7406_v55 = vpop.eup %7405 }
0x10a6   :  { %v1524_v44 = vmul.f32 %v7406_v55, %v8274_v51  ;;  %v1545_v51 = vsel %vm58_vm1, %v8461_v10, %v1415_v33  ;;  %v1791_v33 = vsel %vm1783_vm6, 1, %v7631_v6 }
0x1109   :  { %v1527_v56 = vpop.permute.xlu1 %1526 }
0x110a   :  { %v1529_v57 = vmul.f32 %v7406_v55, %v1527_v56 }
0x110c   :  { %1531 = vrot.lane.b32.xlu0 %v1529_v57, %s7625_s17 }
0x117e   :  { %v1532_v58 = vpop.permute.xlu0 %1531 }
0x117f   :  { %v8488_v60 = vadd.f32 %v1532_v58, %v1524_v44 }
0x1181   :  { %7407 = vtanh.f32 %v8488_v60 }
0x118b   :  { %v7408_v40 = vpop.eup %7407 }
0x118c   :  { %1537 = vrot.lane.b32.xlu1 %v7408_v40, %s7629_s23 }
0x1190   :  { %1669 = vrot.lane.b32.xlu1 %v8461_v10, %s7625_s17 }
0x11fe   :  { %v1538_v61 = vpop.permute.xlu1 %1537 }
0x11ff   :  { %v8494_v62 = vmul.f32 %v7406_v55, %v1538_v61 }
0x1201   :  { %1542 = vrot.lane.b32.xlu0 %v8494_v62, %s7630_s24 }
0x1202   :  { %v1670_v30 = vpop.permute.xlu1 %1669 }
0x1205   :  { %1678 = vrot.lane.b32.xlu0 %v8469_v20, %s7629_s23 }
0x1273   :  { %v1543_v63 = vpop.permute.xlu0 %1542 }
0x1274   :  { %v1546_v1 = vsel %vm60_vm2, %v1545_v51, %v1543_v63  ;;  %v1710_v51 = vld [vmem:[#allocation2] sm:$0x3] }
0x1275   :  { %5937 = vmatmul.mubr.msk.f32.vlgmr.msra.gmra.mrb[6].mxu0 %vm62_vm3, %v1546_v1 }
0x1276   :  { %6424 = vmatprep.mubr.msk.f32.mxu0 %vm7627_vm0, %v7628_v7 }
0x1277   :  { %v1679_v36 = vpop.permute.xlu0 %1678 }
0x1348   :  { %v1652_v9 = vpop.f32.mrb[6].mxu0 }
0x1349   :  { %v8513_v12 = vadd.f32 %v1652_v9, %v1576_v4  ;;  %v8515_v13 = vpop.f32.mrb[7].mxu0 }
0x134a   :  { %v1655_v8 = vadd.f32 %v8515_v13, %v1580_v28  ;;  %v1882_v28 = vld [vmem:[%s10550_s6 + $0x10] sm:$0xff] }
0x134b   :  { %v5938_v15 = vmul.f32 -1.442695, %v8513_v12 }
0x134c   :  { %v5939_v17 = vmul.f32 -1.442695, %v1655_v8 }
0x134d   :  { %7409 = vpow2.f32 %v5938_v15  ;;  %v1712_v15 = vld [vmem:[#allocation2 + $0x4] sm:$0x3] }
0x1357   :  { %v7410_v18 = vpop.eup %7409 }
0x1358   :  { %v1661_v19 = vadd.f32 1.0, %v7410_v18 }
0x135a   :  { %7411 = vrcp.f32 %v1661_v19 }
0x135b   :  { %7413 = vpow2.f32 %v5939_v17  ;;  %v1716_v17 = vld [vmem:[#allocation2 + $0xc] sm:$0x3] }
0x135c   :  { %7415 = vtanh.f32 %v8513_v12 }
0x1364   :  { %v7412_v24 = vpop.eup %7411 }
0x1365   :  { %1665 = vrot.lane.b32.xlu1 %v7412_v24, %s7630_s24  ;;  %v1672_v31 = vmul.f32 %v7412_v24, %v1670_v30  ;;  %v1681_v38 = vmul.f32 %v7412_v24, %v1679_v36  ;;  %v7414_v27 = vpop.eup %7413  ;;  %v1713_v24 = vld [vmem:[#allocation2 + $0x6] sm:$0x3] }
0x1366   :  { %v7416_v35 = vpop.eup %7415  ;;  %v1690_v45 = vadd.f32 1.0, %v7414_v27 }
0x1367   :  { %1674 = vrot.lane.b32.xlu0 %v1672_v31, %s7629_s23 }
0x1368   :  { %7417 = vrcp.f32 %v1690_v45 }
0x1369   :  { %1683 = vrot.lane.b32.xlu1 %v1681_v38, %s7625_s17  ;;  %v1714_v38 = vld [vmem:[#allocation2 + $0x8] sm:$0x3] }
0x136b   :  { %1727 = vperm.xlu0 %7340, %v1718_v23  }
0x136d   :  { %1730 = vperm.xlu1 %7339, %v1719_v32  }
0x136f   :  { %1793 = vperm.xlu0 %7340, %v1784_v26  }
0x1371   :  { %1796 = vperm.xlu1 %7339, %v1785_v39  }
0x1372   :  { %v7418_v44 = vpop.eup %7417 }
0x1373   :  { %1733 = vperm.xlu0 %7340, %v1720_v41  }
0x1375   :  { %1799 = vperm.xlu1 %7339, %v1786_v42  }
0x1377   :  { %1736 = vperm.xlu0 %7340, %v1721_v34  }
0x1379   :  { %1802 = vperm.xlu1 %7339, %v1787_v0  }
0x137b   :  { %1739 = vperm.xlu0 %7340, %v1722_v54  }
0x137d   :  { %1805 = vperm.xlu1 %7339, %v1788_v47   ;;  %v1715_v47 = vld [vmem:[#allocation2 + $0xa] sm:$0x3] }
0x137f   :  { %1742 = vperm.xlu0 %7340, %v1723_v48  }
0x1381   :  { %1808 = vperm.xlu1 %7339, %v1789_v43  }
0x1383   :  { %1745 = vperm.xlu0 %7340, %v1724_v50  }
0x1385   :  { %1811 = vperm.xlu1 %7339, %v1790_v59  }
0x1387   :  { %1748 = vperm.xlu0 %7340, %v1725_v21  }
0x1389   :  { %1814 = vperm.xlu1 %7339, %v1791_v33  }
0x138b   :  { %1849 = vperm.xlu0 %7340, %v1847_v46   ;;  %v1880_v46 = vld [vmem:[%s10550_s6] sm:$0xff] }
0x138d   :  { %1855 = vperm.xlu1 %7339, %v1853_v49   ;;  %v1881_v49 = vld [vmem:[%s10550_s6 + $0x8] sm:$0xff] }
0x138e   :  { %v8584_v27 = vpack.c.bf16 %v1881_v49, %v1880_v46 }
0x1390   :  { %6901 = vmatpush3.bf16.msra.mxu0 %v8584_v27 }
0x1391   :  { %6902 = vmatprep.subr.bf16.mxu0 %v7626_v2 }
0x13d7   :  { %v1666_v29 = vpop.permute.xlu1 %1665 }
0x13d8   :  { %v1668_v53 = vmul.f32 %v7416_v35, %v1666_v29  ;;  %v1883_v35 = vld [vmem:[%s10550_s6 + $0x18] sm:$0xff] }
0x13d9   :  { %v1675_v52 = vpop.permute.xlu0 %1674 }
0x13da   :  { %v1677_v55 = vadd.f32 %v1675_v52, %v1668_v53 }
0x13db   :  { %v1684_v56 = vpop.permute.xlu1 %1683 }
0x13dc   :  { %v1686_v57 = vadd.f32 %v1684_v56, %v1677_v55  ;;  %v8593_v55 = vpack.c.bf16 %v1883_v35, %v1882_v28 }
0x13de   :  { %7419 = vtanh.f32 %v1686_v57  ;;  %1696 = vrot.lane.b32.xlu0 %v1686_v57, %s7625_s17  ;;  %6904 = vmatpush3.bf16.msra.mxu0 %v8593_v55 }
0x13df   :  { %6905 = vmatprep.subr.bf16.mxu0 %v7626_v2 }
0x13e8   :  { %v7420_v58 = vpop.eup %7419 }
0x13e9   :  { %v8556_v40 = vmul.f32 %v7420_v58, %v7418_v44  ;;  %v1884_v58 = vld [vmem:[%s10550_s6 + $0x20] sm:$0xff] }
0x13ea   :  { %v1728_v61 = vpop.permute.xlu0 %1727 }
0x13eb   :  { %vm1750_vm10 = vcmp.eq.s32.totalorder %v1728_v61, 1  ;;  %v1885_v61 = vld [vmem:[%s10550_s6 + $0x28] sm:$0xff] }
0x13ec   :  { %v1731_v63 = vpop.permute.xlu1 %1730  ;;  %v1758_v1 = vsel %vm1750_vm10, %v8461_v10, %v1710_v51 }
0x13ed   :  { %vm1751_vm11 = vcmp.eq.s32.totalorder %v1731_v63, 1  ;;  %1766 = vst.msk [vmem:[#allocation2] sm:$0x3] %vm36_vm9, %v1758_v1  ;;  %v1717_v63 = vld [vmem:[#allocation2 + $0xe] sm:$0x3] }
0x13ee   :  { %v1794_v4 = vpop.permute.xlu0 %1793  ;;  %v1759_v9 = vsel %vm1751_vm11, %v8461_v10, %v1711_v3 }
0x13ef   :  { %1767 = vst.msk [vmem:[#allocation2 + $0x2] sm:$0x3] %vm36_vm9, %v1759_v9  ;;  %vm1816_vm15 = vcmp.eq.s32.totalorder %v1794_v4, 1 }
0x13f0   :  { %v1797_v12 = vpop.permute.xlu1 %1796  ;;  %v1824_v23 = vsel %vm1816_vm15, %v1758_v1, 0.0 }
0x13f1   :  { %vm1817_vm13 = vcmp.eq.s32.totalorder %v1797_v12, 1  ;;  %v1832_v0 = vsel %vm36_vm9, %v1824_v23, 0.0 }
0x13f2   :  { %v1734_v13 = vpop.permute.xlu0 %1733  ;;  %v1825_v36 = vsel %vm1817_vm13, %v1759_v9, 0.0  ;;  %v8606_v9 = vpack.c.bf16 %v1885_v61, %v1884_v58  ;;  %v2006_v58 = vld [vmem:[%s10552_s8 + $0x18] sm:$0xff]  ;;  %v2003_v61 = vld [vmem:[%s10552_s8] sm:$0xff] }
0x13f3   :  { %vm1752_vm12 = vcmp.eq.s32.totalorder %v1734_v13, 1  ;;  %v1833_v41 = vsel %vm36_vm9, %v1825_v36, 0.0 }
0x13f4   :  { %v1800_v18 = vpop.permute.xlu1 %1799  ;;  %v1760_v19 = vsel %vm1752_vm12, %v8461_v10, %v1712_v15  ;;  %v1834_v48 = vadd.f32 %v1833_v41, %v1832_v0  ;;  %6907 = vmatpush3.bf16.msra.mxu0 %v8606_v9  ;;  %v1892_v41 = vld [vmem:[%s10550_s6 + $0x60] sm:$0xff]  ;;  %v1894_v0 = vld [vmem:[%s10550_s6 + $0x70] sm:$0xff] }
0x13f5   :  { %1768 = vst.msk [vmem:[#allocation2 + $0x4] sm:$0x3] %vm36_vm9, %v1760_v19  ;;  %vm1818_vm4 = vcmp.eq.s32.totalorder %v1800_v18, 1  ;;  %v1886_v18 = vld [vmem:[%s10550_s6 + $0x30] sm:$0xff]  ;;  %6908 = vmatprep.subr.bf16.mxu0 %v7626_v2 }
0x13f6   :  { %v1737_v22 = vpop.permute.xlu0 %1736  ;;  %v1826_v32 = vsel %vm1818_vm4, %v1760_v19, 0.0  ;;  %v1887_v19 = vld [vmem:[%s10550_s6 + $0x38] sm:$0xff] }
0x13f7   :  { %vm1753_vm14 = vcmp.eq.s32.totalorder %v1737_v22, 1  ;;  %v1835_v54 = vsel %vm36_vm9, %v1826_v32, 0.0  ;;  %v1890_v32 = vld [vmem:[%s10550_s6 + $0x50] sm:$0xff] }
0x13f8   :  { %v1803_v30 = vpop.permute.xlu1 %1802  ;;  %v1761_v31 = vsel %vm1753_vm14, %v8461_v10, %v1713_v24  ;;  %v1836_v21 = vadd.f32 %v1835_v54, %v1834_v48  ;;  %v1895_v54 = vld [vmem:[%s10550_s6 + $0x78] sm:$0xff] }
0x13f9   :  { %1769 = vst.msk [vmem:[#allocation2 + $0x6] sm:$0x3] %vm36_vm9, %v1761_v31  ;;  %vm1819_vm5 = vcmp.eq.s32.totalorder %v1803_v30, 1 }
0x13fa   :  { %v1740_v37 = vpop.permute.xlu0 %1739  ;;  %v1827_v42 = vsel %vm1819_vm5, %v1761_v31, 0.0  ;;  %v8617_v31 = vpack.c.bf16 %v1887_v19, %v1886_v18  ;;  %v2014_v18 = vld [vmem:[%s10552_s8 + $0x58] sm:$0xff] }
0x13fb   :  { %vm1754_vm6 = vcmp.eq.s32.totalorder %v1740_v37, 1  ;;  %v1837_v11 = vsel %vm36_vm9, %v1827_v42, 0.0  ;;  %v1888_v37 = vld [vmem:[%s10550_s6 + $0x40] sm:$0xff]  ;;  %v1893_v42 = vld [vmem:[%s10550_s6 + $0x68] sm:$0xff] }
0x13fc   :  { %v1806_v26 = vpop.permute.xlu1 %1805  ;;  %v1762_v39 = vsel %vm1754_vm6, %v8461_v10, %v1714_v38  ;;  %v1838_v29 = vadd.f32 %v1837_v11, %v1836_v21  ;;  %v1889_v38 = vld [vmem:[%s10550_s6 + $0x48] sm:$0xff]  ;;  %6910 = vmatpush3.bf16.msra.mxu0 %v8617_v31 }
0x13fd   :  { %1770 = vst.msk [vmem:[#allocation2 + $0x8] sm:$0x3] %vm36_vm9, %v1762_v39  ;;  %vm1820_vm7 = vcmp.eq.s32.totalorder %v1806_v26, 1  ;;  %6911 = vmatprep.subr.bf16.mxu0 %v7626_v2  ;;  %v1891_v26 = vld [vmem:[%s10550_s6 + $0x58] sm:$0xff]  ;;  %v8682_v11 = vld [vmem:[%s10548_s4 + $0x8] sm:$0x3] }
0x13fe   :  { %v1743_v34 = vpop.permute.xlu0 %1742  ;;  %v1828_v43 = vsel %vm1820_vm7, %v1762_v39, 0.0  ;;  %v8645_v39 = vpack.c.bf16 %v1891_v26, %v1890_v32 }
0x13ff   :  { %vm1755_vm8 = vcmp.eq.s32.totalorder %v1743_v34, 1  ;;  %v1839_v8 = vsel %vm36_vm9, %v1828_v43, 0.0  ;;  %v8655_v34 = vpack.c.bf16 %v1893_v42, %v1892_v41  ;;  %v2015_v41 = vld [vmem:[%s10552_s8 + $0x60] sm:$0xff]  ;;  %v2017_v42 = vld [vmem:[%s10552_s8 + $0x70] sm:$0xff] }
0x1400   :  { %v1809_v50 = vpop.permute.xlu1 %1808  ;;  %v1763_v59 = vsel %vm1755_vm8, %v8461_v10, %v1715_v47  ;;  %v1840_v56 = vadd.f32 %v1839_v8, %v1838_v29  ;;  %v8666_v47 = vpack.c.bf16 %v1895_v54, %v1894_v0  ;;  %v2020_v0 = vld [vmem:[%s10552_s8 + $0x88] sm:$0xff]  ;;  %v2022_v54 = vld [vmem:[%s10552_s8 + $0x98] sm:$0xff] }
0x1401   :  { %1771 = vst.msk [vmem:[#allocation2 + $0xa] sm:$0x3] %vm36_vm9, %v1763_v59  ;;  %vm1821_vm10 = vcmp.eq.s32.totalorder %v1809_v50, 1 }
0x1402   :  { %v1829_v25 = vsel %vm1821_vm10, %v1763_v59, 0.0  ;;  %v1746_v33 = vpop.permute.xlu0 %1745 }
0x1403   :  { %vm1756_vm11 = vcmp.eq.s32.totalorder %v1746_v33, 1  ;;  %v1841_v52 = vsel %vm36_vm9, %v1829_v25, 0.0  ;;  %v8696_v33 = vld [vmem:[%s10551_s7] ss:$0 sm:$0xff] }
0x1404   :  { %v1812_v53 = vpop.permute.xlu1 %1811  ;;  %v1764_v45 = vsel %vm1756_vm11, %v8461_v10, %v1716_v17  ;;  %v1842_v1 = vadd.f32 %v1841_v52, %v1840_v56 }
0x1405   :  { %1772 = vst.msk [vmem:[#allocation2 + $0xc] sm:$0x3] %vm36_vm9, %v1764_v45  ;;  %vm1822_vm12 = vcmp.eq.s32.totalorder %v1812_v53, 1 }
0x1406   :  { %v1830_v57 = vsel %vm1822_vm12, %v1764_v45, 0.0  ;;  %v1749_v44 = vpop.permute.xlu0 %1748 }
0x1407   :  { %v1843_v51 = vsel %vm36_vm9, %v1830_v57, 0.0  ;;  %vm1757_vm13 = vcmp.eq.s32.totalorder %v1749_v44, 1  ;;  %v2004_v44 = vld [vmem:[%s10552_s8 + $0x8] sm:$0xff] }
0x1408   :  { %v1815_v3 = vpop.permute.xlu1 %1814  ;;  %v1765_v4 = vsel %vm1757_vm13, %v8461_v10, %v1717_v63  ;;  %v1844_v12 = vadd.f32 %v1843_v51, %v1842_v1  ;;  %v6923_v51 = vpack.c.bf16 %v2006_v58, %v2004_v44  ;;  %v2008_v63 = vld [vmem:[%s10552_s8 + $0x28] sm:$0xff]  ;;  %v2010_v1 = vld [vmem:[%s10552_s8 + $0x38] sm:$0xff] }
0x1409   :  { %1773 = vst.msk [vmem:[#allocation2 + $0xe] sm:$0x3] %vm36_vm9, %v1765_v4  ;;  %vm1823_vm14 = vcmp.eq.s32.totalorder %v1815_v3, 1  ;;  %v5951_v58 = vld [vmem:[%s10547_s3 + $0x8] sm:$0x3] }
0x140a   :  { %v1831_v13 = vsel %vm1823_vm14, %v1765_v4, 0.0  ;;  %v1850_v15 = vpop.permute.xlu0 %1849  ;;  %v6927_v4 = vpack.c.bf16 %v2010_v1, %v2008_v63  ;;  %6924 = vmatprep.subr.bf16.mxu1 %v6923_v51  ;;  %vm2232_vm7 = vcmp.eq.s32.totalorder %v5951_v58, 0  ;;  %vm2233_vm8 = vcmp.eq.s32.totalorder %v5951_v58, 1 }
0x140b   :  { %v1845_v22 = vsel %vm36_vm9, %v1831_v13, 0.0  ;;  %vm1851_vm15 = vcmp.eq.s32.totalorder %v1850_v15, 1  ;;  %v2009_v13 = vld [vmem:[%s10552_s8 + $0x30] sm:$0xff]  ;;  %v2012_v15 = vld [vmem:[%s10552_s8 + $0x48] sm:$0xff]  ;;  %v2240_v63 = vsel %vm2232_vm7, 1, %v7631_v6  ;;  %v2241_v1 = vsel %vm2233_vm8, 1, %v7631_v6 }
0x140c   :  { %v1846_v24 = vadd.f32 %v1845_v22, %v1844_v12  ;;  %v1856_v30 = vpop.permute.xlu1 %1855  ;;  %v2007_v12 = vld [vmem:[%s10552_s8 + $0x20] sm:$0xff]  ;;  %v6931_v22 = vpack.c.bf16 %v2014_v18, %v2012_v15  ;;  %vm2234_vm11 = vcmp.eq.s32.totalorder %v5951_v58, 2  ;;  %vm2235_vm13 = vcmp.eq.s32.totalorder %v5951_v58, 3 }
0x140d   :  { %vm1857_vm4 = vcmp.eq.s32.totalorder %v1856_v30, 1  ;;  %v6929_v19 = vpack.c.bf16 %v2009_v13, %v2007_v12  ;;  %v2013_v30 = vld [vmem:[%s10552_s8 + $0x50] sm:$0xff]  ;;  %v2243_v13 = vsel %vm2235_vm13, 1, %v7631_v6  ;;  %vm2238_vm7 = vcmp.eq.s32.totalorder %v5951_v58, 6 }
0x140e   :  { %v1859_v36 = vsel %vm1851_vm15, %v1846_v24, %v8461_v10  ;;  %v8635_v10 = vpack.c.bf16 %v1889_v38, %v1888_v37  ;;  %v2011_v24 = vld [vmem:[%s10552_s8 + $0x40] sm:$0xff]  ;;  %v2016_v37 = vld [vmem:[%s10552_s8 + $0x68] sm:$0xff]  ;;  %v2018_v38 = vld [vmem:[%s10552_s8 + $0x78] sm:$0xff] }
0x140f   :  { %v8630_v23 = vsel %vm1857_vm4, %v8469_v20, %v1859_v36  ;;  %v6933_v32 = vpack.c.bf16 %v2013_v30, %v2011_v24  ;;  %v6935_v26 = vpack.c.bf16 %v2018_v38, %v2016_v37  ;;  %v2246_v30 = vsel %vm2238_vm7, 1, %v7631_v6  ;;  %v5942_v38 = vld [vmem:[%s10544_s0 + $0x8] sm:$0x3] }
0x1410   :  { %1874 = vrot.lane.b32.xlu0 %v8630_v23, %s7629_s23  ;;  %6913 = vmatpush3.bf16.msra.mxu0 %v8635_v10 }
0x1411   :  { %6914 = vmatprep.subr.bf16.mxu0 %v7626_v2 }
0x1414   :  { %6916 = vmatpush3.bf16.msra.mxu0 %v8645_v39 }
0x1415   :  { %6917 = vmatprep.subr.bf16.mxu0 %v7626_v2 }
0x1418   :  { %6919 = vmatpush3.bf16.msra.mxu0 %v8655_v34 }
0x1419   :  { %6920 = vmatprep.subr.bf16.mxu0 %v7626_v2 }
0x141c   :  { %6922 = vmatpush3.bf16.msra.mxu0 %v8666_v47 }
0x141d   :  { %6972 = vmatprep.subr.bf16.mxu0 %v6923_v51 }
0x1450   :  { %v1697_v48 = vpop.permute.xlu0 %1696 }
0x1451   :  { %v1699_v43 = vsel %vm58_vm1, %v8556_v40, %v1697_v48  ;;  %v6937_v48 = vpack.c.bf16 %v2017_v42, %v2015_v41 }
0x1452   :  { %v1852_v50 = vsel %vm1851_vm15, %v1699_v43, %v8469_v20  ;;  %v6939_v43 = vpack.c.bf16 %v2022_v54, %v2020_v0  ;;  %vm2236_vm15 = vcmp.eq.s32.totalorder %v5951_v58, 4 }
0x1453   :  { %v8675_v59 = vsel %vm1857_vm4, %v8476_v16, %v1852_v50  ;;  %v2019_v50 = vld [vmem:[%s10552_s8 + $0x80] sm:$0xff]  ;;  %v2244_v18 = vsel %vm2236_vm15, 1, %v7631_v6 }
0x1454   :  { %1870 = vrot.lane.b32.xlu1 %v8675_v59, %s7625_s17 }
0x1482   :  { %v1875_v25 = vpop.permute.xlu0 %1874 }
0x14c6   :  { %v8684_v21 = vpop.permute.xlu1 %1870 }
0x14c7   :  { %v1877_v40 = vsel %vm58_vm1, %v8682_v11, %v8684_v21 }
0x14c8   :  { %v1878_v20 = vsel %vm60_vm2, %v1877_v40, %v1875_v25  ;;  %v2021_v25 = vld [vmem:[%s10552_s8 + $0x90] sm:$0xff]  ;;  %v2024_v40 = vld [vmem:[%s10552_s8 + $0xa8] sm:$0xff] }
0x14c9   :  { %v1879_v16 = vsel %vm62_vm3, %v1878_v20, %v8494_v62  ;;  %v2026_v20 = vld [vmem:[%s10552_s8 + $0xb8] sm:$0xff] }
0x14ca   :  { %6425 = vmatmul.mubr.f32.vlgmr.msra.gmra.mrb[8].mxu0 %v1879_v16  ;;  %v6941_v16 = vpack.c.bf16 %v2021_v25, %v2019_v50 }
0x14cb   :  { %2562 = vmatprep.mubr.f32.mxu0 %v7628_v7 }
0x159d   :  { %v1969_v46 = vpop.f32.mrb[8].mxu0 }
0x159e   :  { %v1970_v49 = vadd.f32 %v8696_v33, %v1969_v46  ;;  %v6426_v28 = vpop.f32.mrb[9].mxu0  ;;  %v6943_v46 = vpack.c.bf16 %v2026_v20, %v2024_v40 }
0x159f   :  { %v2025_v28 = vld [vmem:[%s10552_s8 + $0xb0] sm:$0xff] }
0x15a0   :  { %7421 = vtanh.f32 %v1970_v49  ;;  %v5946_v17 = vmul.f32 -1.442695, %v1970_v49  ;;  %v2023_v49 = vld [vmem:[%s10552_s8 + $0xa0] sm:$0xff] }
0x15a2   :  { %7423 = vpow2.f32 %v5946_v17 }
0x15aa   :  { %v7422_v8 = vpop.eup %7421 }
0x15ab   :  { %1982 = vrot.lane.b32.xlu1 %v7422_v8, %s7629_s23  ;;  %v6945_v8 = vpack.c.bf16 %v2025_v28, %v2023_v49 }
0x15ac   :  { %v7424_v35 = vpop.eup %7423 }
0x15ad   :  { %v1976_v62 = vadd.f32 1.0, %v7424_v35 }
0x15af   :  { %7425 = vrcp.f32 %v1976_v62  ;;  %v2001_v62 = vsel %vm58_vm1, %v8630_v23, %v8684_v21 }
0x15b9   :  { %v8700_v29 = vpop.eup %7425 }
0x15ba   :  { %v1980_v52 = vmul.f32 %v8700_v29, %v8488_v60  ;;  %v2005_v60 = vld [vmem:[%s10552_s8 + $0x10] sm:$0xff] }
0x15bb   :  { %v6925_v3 = vpack.c.bf16 %v2005_v60, %v2003_v61 }
0x15bd   :  { %6926 = vmatpush1.bf16.msra.mxu1 %v6925_v3  ;;  %6974 = vmatpush1.bf16.msra.mxu0 %v6925_v3 }
0x15be   :  { %6928 = vmatprep.subr.bf16.mxu1 %v6927_v4  ;;  %6976 = vmatprep.subr.bf16.mxu0 %v6927_v4  ;;  %v2242_v4 = vsel %vm2234_vm11, 1, %v7631_v6 }
0x15c1   :  { %6930 = vmatpush1.bf16.msra.mxu1 %v6929_v19  ;;  %6978 = vmatpush1.bf16.msra.mxu0 %v6929_v19 }
0x15c2   :  { %6932 = vmatprep.subr.bf16.mxu1 %v6931_v22  ;;  %6980 = vmatprep.subr.bf16.mxu0 %v6931_v22 }
0x15c5   :  { %6934 = vmatpush1.bf16.msra.mxu1 %v6933_v32  ;;  %6982 = vmatpush1.bf16.msra.mxu0 %v6933_v32 }
0x15c6   :  { %6936 = vmatprep.subr.bf16.mxu1 %v6935_v26  ;;  %6984 = vmatprep.subr.bf16.mxu0 %v6935_v26 }
0x15c9   :  { %6938 = vmatpush1.bf16.msra.mxu1 %v6937_v48  ;;  %6986 = vmatpush1.bf16.msra.mxu0 %v6937_v48 }
0x15ca   :  { %6940 = vmatprep.subr.bf16.mxu1 %v6939_v43  ;;  %6988 = vmatprep.subr.bf16.mxu0 %v6939_v43 }
0x15cd   :  { %6942 = vmatpush1.bf16.msra.mxu1 %v6941_v16  ;;  %6990 = vmatpush1.bf16.msra.mxu0 %v6941_v16 }
0x15ce   :  { %6944 = vmatprep.subr.bf16.mxu1 %v6943_v46  ;;  %6992 = vmatprep.subr.bf16.mxu0 %v6943_v46 }
0x15d1   :  { %6946 = vmatpush1.bf16.msra.mxu1 %v6945_v8  ;;  %6994 = vmatpush1.bf16.msra.mxu0 %v6945_v8 }
0x15d2   :  { %6947 = vmatprep.subr.bf16.mxu1 %v7626_v2  ;;  %6995 = vmatprep.subr.bf16.mxu0 %v7626_v2 }
0x161d   :  { %v1983_v53 = vpop.permute.xlu1 %1982 }
0x161e   :  { %v1985_v45 = vmul.f32 %v8700_v29, %v1983_v53 }
0x1620   :  { %1987 = vrot.lane.b32.xlu0 %v1985_v45, %s7625_s17 }
0x1692   :  { %v1988_v56 = vpop.permute.xlu0 %1987 }
0x1693   :  { %v8706_v57 = vadd.f32 %v1988_v56, %v1980_v52 }
0x1695   :  { %7427 = vtanh.f32 %v8706_v57 }
0x169f   :  { %v7428_v36 = vpop.eup %7427 }
0x16a0   :  { %1993 = vrot.lane.b32.xlu1 %v7428_v36, %s7629_s23  ;;  %v5943_v36 = vld [vmem:[%s10545_s1 + $0x8] sm:$0x3] }
0x16a1   :  { %vm1866_vm11 = vcmp.ne.s32.totalorder %v5943_v36, 0 }
0x16a2   :  { %v2303_v26 = vsel %vm1866_vm11, 1, %v7631_v6 }
0x16a4   :  { %2125 = vrot.lane.b32.xlu1 %v8630_v23, %s7625_s17 }
0x1712   :  { %v1994_v17 = vpop.permute.xlu1 %1993 }
0x1713   :  { %v8787_v35 = vmul.f32 %v8700_v29, %v1994_v17 }
0x1715   :  { %1998 = vrot.lane.b32.xlu0 %v8787_v35, %s7630_s24 }
0x1716   :  { %v2126_v52 = vpop.permute.xlu1 %2125 }
0x1719   :  { %2134 = vrot.lane.b32.xlu0 %v8675_v59, %s7629_s23 }
0x1787   :  { %v1999_v53 = vpop.permute.xlu0 %1998 }
0x1788   :  { %v2002_v45 = vsel %vm60_vm2, %v2001_v62, %v1999_v53  ;;  %v2166_v53 = vld [vmem:[#allocation2] sm:$0x3] }
0x1789   :  { %5947 = vmatmul.mubr.msk.f32.vlgmr.msra.gmra.mrb[8].mxu1 %vm62_vm3, %v2002_v45 }
0x178a   :  { %6949 = vmatpush3.bf16.msra.mxu1 %v8584_v27  ;;  %6459 = vmatprep.mubr.msk.f32.mxu1 %vm7627_vm0, %v7628_v7  ;;  %v8818_v27 = vld [vmem:[%s10553_s9] sm:$0x3] }
0x178b   :  { %6950 = vmatprep.subr.bf16.mxu1 %v7626_v2  ;;  %v2135_v44 = vpop.permute.xlu0 %2134  ;;  %v2036_v42 = vrot.slane %v8818_v27, %v7994_v5 }
0x178e   :  { %6952 = vmatpush3.bf16.msra.mxu1 %v8593_v55  ;;  %v2032_v55 = vrot.slane %v8818_v27, %v7918_v14 }
0x178f   :  { %6953 = vmatprep.subr.bf16.mxu1 %v7626_v2 }
0x1792   :  { %6955 = vmatpush3.bf16.msra.mxu1 %v8606_v9 }
0x1793   :  { %6956 = vmatprep.subr.bf16.mxu1 %v7626_v2 }
0x1796   :  { %6958 = vmatpush3.bf16.msra.mxu1 %v8617_v31 }
0x1797   :  { %6959 = vmatprep.subr.bf16.mxu1 %v7626_v2 }
0x179a   :  { %6961 = vmatpush3.bf16.msra.mxu1 %v8635_v10 }
0x179b   :  { %6962 = vmatprep.subr.bf16.mxu1 %v7626_v2 }
0x179e   :  { %6964 = vmatpush3.bf16.msra.mxu1 %v8645_v39 }
0x179f   :  { %6965 = vmatprep.subr.bf16.mxu1 %v7626_v2 }
0x17a2   :  { %6967 = vmatpush3.bf16.msra.mxu1 %v8655_v34 }
0x17a3   :  { %6968 = vmatprep.subr.bf16.mxu1 %v7626_v2 }
0x17a6   :  { %6970 = vmatpush3.bf16.msra.mxu1 %v8666_v47  ;;  %v5950_v47 = vld [vmem:[%s10546_s2 + $0x8] sm:$0x3] }
0x17a7   :  { %vm2158_vm5 = vcmp.eq.s32.totalorder %v5950_v47, 0  ;;  %vm2159_vm6 = vcmp.eq.s32.totalorder %v5950_v47, 1  ;;  %vm2160_vm10 = vcmp.eq.s32.totalorder %v5950_v47, 2  ;;  %vm2161_vm12 = vcmp.eq.s32.totalorder %v5950_v47, 3 }
0x17a8   :  { %v2174_v51 = vsel %vm2158_vm5, 1, %v7631_v6  ;;  %v2175_v60 = vsel %vm2159_vm6, 1, %v7631_v6  ;;  %v2176_v3 = vsel %vm2160_vm10, 1, %v7631_v6  ;;  %v2177_v12 = vsel %vm2161_vm12, 1, %v7631_v6 }
0x17a9   :  { %vm2162_vm14 = vcmp.eq.s32.totalorder %v5950_v47, 4  ;;  %vm2163_vm4 = vcmp.eq.s32.totalorder %v5950_v47, 5  ;;  %vm2237_vm5 = vcmp.eq.s32.totalorder %v5951_v58, 5  ;;  %vm2164_vm6 = vcmp.eq.s32.totalorder %v5950_v47, 6 }
0x17aa   :  { %v2178_v15 = vsel %vm2162_vm14, 1, %v7631_v6  ;;  %v2179_v19 = vsel %vm2163_vm4, 1, %v7631_v6  ;;  %v2245_v22 = vsel %vm2237_vm5, 1, %v7631_v6  ;;  %v2180_v24 = vsel %vm2164_vm6, 1, %v7631_v6 }
0x17ab   :  { %vm2165_vm8 = vcmp.eq.s32.totalorder %v5950_v47, 7  ;;  %vm2239_vm10 = vcmp.eq.s32.totalorder %v5951_v58, 7  ;;  %vm1863_vm12 = vcmp.ne.s32.totalorder %v5942_v38, 0 }
0x17ac   :  { %v2181_v37 = vsel %vm2165_vm8, 1, %v7631_v6  ;;  %v2247_v32 = vsel %vm2239_vm10, 1, %v7631_v6  ;;  %v2309_v41 = vsel %vm1863_vm12, 1, %v7631_v6 }
0x185c   :  { %v2108_v9 = vpop.f32.mrb[8].mxu1 }
0x185d   :  { %v8822_v31 = vadd.f32 %v2108_v9, %v2032_v55  ;;  %v8824_v10 = vpop.f32.mrb[9].mxu1  ;;  %v2167_v55 = vld [vmem:[#allocation2 + $0x2] sm:$0x3] }
0x185e   :  { %v2111_v0 = vadd.f32 %v8824_v10, %v2036_v42  ;;  %v2172_v42 = vld [vmem:[#allocation2 + $0xc] sm:$0x3] }
0x185f   :  { %v5948_v39 = vmul.f32 -1.442695, %v8822_v31 }
0x1860   :  { %v5949_v54 = vmul.f32 -1.442695, %v2111_v0 }
0x1861   :  { %7429 = vpow2.f32 %v5948_v39 }
0x186b   :  { %v7430_v34 = vpop.eup %7429 }
0x186c   :  { %v2117_v21 = vadd.f32 1.0, %v7430_v34  ;;  %v2168_v34 = vld [vmem:[#allocation2 + $0x4] sm:$0x3] }
0x186e   :  { %7431 = vrcp.f32 %v2117_v21 }
0x186f   :  { %7433 = vpow2.f32 %v5949_v54 }
0x1870   :  { %7435 = vtanh.f32 %v8822_v31 }
0x1878   :  { %v7432_v29 = vpop.eup %7431 }
0x1879   :  { %2121 = vrot.lane.b32.xlu1 %v7432_v29, %s7630_s24  ;;  %v2128_v56 = vmul.f32 %v7432_v29, %v2126_v52  ;;  %v2137_v61 = vmul.f32 %v7432_v29, %v2135_v44  ;;  %v7434_v48 = vpop.eup %7433  ;;  %v2169_v52 = vld [vmem:[#allocation2 + $0x6] sm:$0x3] }
0x187a   :  { %v7436_v43 = vpop.eup %7435  ;;  %v2146_v40 = vadd.f32 1.0, %v7434_v48 }
0x187b   :  { %2130 = vrot.lane.b32.xlu0 %v2128_v56, %s7629_s23 }
0x187c   :  { %7437 = vrcp.f32 %v2146_v40 }
0x187d   :  { %2139 = vrot.lane.b32.xlu1 %v2137_v61, %s7625_s17 }
0x187f   :  { %2183 = vperm.xlu0 %7340, %v2174_v51   ;;  %v2170_v51 = vld [vmem:[#allocation2 + $0x8] sm:$0x3] }
0x1881   :  { %2186 = vperm.xlu1 %7339, %v2175_v60  }
0x1883   :  { %2249 = vperm.xlu0 %7340, %v2240_v63  }
0x1885   :  { %2252 = vperm.xlu1 %7339, %v2241_v1  }
0x1886   :  { %v7438_v28 = vpop.eup %7437 }
0x1887   :  { %2189 = vperm.xlu0 %7340, %v2176_v3  }
0x1889   :  { %2255 = vperm.xlu1 %7339, %v2242_v4  }
0x188b   :  { %2192 = vperm.xlu0 %7340, %v2177_v12  }
0x188d   :  { %2258 = vperm.xlu1 %7339, %v2243_v13  }
0x188f   :  { %2195 = vperm.xlu0 %7340, %v2178_v15  }
0x1891   :  { %2261 = vperm.xlu1 %7339, %v2244_v18  }
0x1893   :  { %2198 = vperm.xlu0 %7340, %v2179_v19   ;;  %v2171_v19 = vld [vmem:[#allocation2 + $0xa] sm:$0x3] }
0x1895   :  { %2264 = vperm.xlu1 %7339, %v2245_v22  }
0x1897   :  { %2201 = vperm.xlu0 %7340, %v2180_v24  }
0x1899   :  { %2267 = vperm.xlu1 %7339, %v2246_v30  }
0x189b   :  { %2204 = vperm.xlu0 %7340, %v2181_v37  }
0x189d   :  { %2270 = vperm.xlu1 %7339, %v2247_v32  }
0x189f   :  { %2305 = vperm.xlu0 %7340, %v2303_v26  }
0x18a1   :  { %2311 = vperm.xlu1 %7339, %v2309_v41  }
0x18eb   :  { %v2122_v50 = vpop.permute.xlu1 %2121 }
0x18ec   :  { %v2124_v25 = vmul.f32 %v7436_v43, %v2122_v50 }
0x18ed   :  { %v2131_v20 = vpop.permute.xlu0 %2130 }
0x18ee   :  { %v2133_v16 = vadd.f32 %v2131_v20, %v2124_v25 }
0x18ef   :  { %v2140_v46 = vpop.permute.xlu1 %2139 }
0x18f0   :  { %v2142_v49 = vadd.f32 %v2140_v46, %v2133_v16  ;;  %v2173_v16 = vld [vmem:[#allocation2 + $0xe] sm:$0x3] }
0x18f2   :  { %7439 = vtanh.f32 %v2142_v49  ;;  %2152 = vrot.lane.b32.xlu0 %v2142_v49, %s7625_s17 }
0x18fc   :  { %v7440_v8 = vpop.eup %7439 }
0x18fd   :  { %v8865_v17 = vmul.f32 %v7440_v8, %v7438_v28 }
0x18fe   :  { %v2184_v62 = vpop.permute.xlu0 %2183 }
0x18ff   :  { %vm2206_vm13 = vcmp.eq.s32.totalorder %v2184_v62, 1 }
0x1900   :  { %v2187_v45 = vpop.permute.xlu1 %2186  ;;  %v2214_v27 = vsel %vm2206_vm13, %v8630_v23, %v2166_v53 }
0x1901   :  { %vm2207_vm14 = vcmp.eq.s32.totalorder %v2187_v45, 1  ;;  %2222 = vst.msk [vmem:[#allocation2] sm:$0x3] %vm36_vm9, %v2214_v27 }
0x1902   :  { %v2250_v9 = vpop.permute.xlu0 %2249  ;;  %v2215_v31 = vsel %vm2207_vm14, %v8630_v23, %v2167_v55 }
0x1903   :  { %2223 = vst.msk [vmem:[#allocation2 + $0x2] sm:$0x3] %vm36_vm9, %v2215_v31  ;;  %vm2272_vm6 = vcmp.eq.s32.totalorder %v2250_v9, 1 }
0x1904   :  { %v2253_v10 = vpop.permute.xlu1 %2252  ;;  %v2280_v60 = vsel %vm2272_vm6, %v2214_v27, 0.0 }
0x1905   :  { %vm2273_vm4 = vcmp.eq.s32.totalorder %v2253_v10, 1  ;;  %v2288_v15 = vsel %vm36_vm9, %v2280_v60, 0.0 }
0x1906   :  { %v2190_v39 = vpop.permute.xlu0 %2189  ;;  %v2281_v58 = vsel %vm2273_vm4, %v2215_v31, 0.0 }
0x1907   :  { %vm2208_vm15 = vcmp.eq.s32.totalorder %v2190_v39, 1  ;;  %v2289_v4 = vsel %vm36_vm9, %v2281_v58, 0.0 }
0x1908   :  { %v2256_v21 = vpop.permute.xlu1 %2255  ;;  %v2216_v47 = vsel %vm2208_vm15, %v8630_v23, %v2168_v34  ;;  %v2290_v22 = vadd.f32 %v2289_v4, %v2288_v15 }
0x1909   :  { %2224 = vst.msk [vmem:[#allocation2 + $0x4] sm:$0x3] %vm36_vm9, %v2216_v47  ;;  %vm2274_vm7 = vcmp.eq.s32.totalorder %v2256_v21, 1 }
0x190a   :  { %v2193_v29 = vpop.permute.xlu0 %2192  ;;  %v2282_v63 = vsel %vm2274_vm7, %v2216_v47, 0.0 }
0x190b   :  { %vm2209_vm5 = vcmp.eq.s32.totalorder %v2193_v29, 1  ;;  %v2291_v18 = vsel %vm36_vm9, %v2282_v63, 0.0 }
0x190c   :  { %v2259_v56 = vpop.permute.xlu1 %2258  ;;  %v2217_v44 = vsel %vm2209_vm5, %v8630_v23, %v2169_v52  ;;  %v2292_v38 = vadd.f32 %v2291_v18, %v2290_v22  ;;  %v8941_v22 = vld [vmem:[%s10553_s9] sm:$0x3] }
0x190d   :  { %2225 = vst.msk [vmem:[#allocation2 + $0x6] sm:$0x3] %vm36_vm9, %v2217_v44  ;;  %vm2275_vm8 = vcmp.eq.s32.totalorder %v2259_v56, 1 }
0x190e   :  { %v2196_v61 = vpop.permute.xlu0 %2195  ;;  %v2283_v12 = vsel %vm2275_vm8, %v2217_v44, 0.0 }
0x190f   :  { %vm2210_vm10 = vcmp.eq.s32.totalorder %v2196_v61, 1  ;;  %v2293_v37 = vsel %vm36_vm9, %v2283_v12, 0.0 }
0x1910   :  { %v2262_v1 = vpop.permute.xlu1 %2261  ;;  %v2218_v3 = vsel %vm2210_vm10, %v8630_v23, %v2170_v51  ;;  %v2294_v0 = vadd.f32 %v2293_v37, %v2292_v38 }
0x1911   :  { %2226 = vst.msk [vmem:[#allocation2 + $0x8] sm:$0x3] %vm36_vm9, %v2218_v3  ;;  %vm2276_vm11 = vcmp.eq.s32.totalorder %v2262_v1, 1 }
0x1912   :  { %v2199_v13 = vpop.permute.xlu0 %2198  ;;  %v2284_v24 = vsel %vm2276_vm11, %v2218_v3, 0.0 }
0x1913   :  { %vm2211_vm12 = vcmp.eq.s32.totalorder %v2199_v13, 1  ;;  %v2295_v41 = vsel %vm36_vm9, %v2284_v24, 0.0  ;;  %v2488_v24 = vrot.slane %v8941_v22, %v7918_v14 }
0x1914   :  { %v2265_v30 = vpop.permute.xlu1 %2264  ;;  %v2219_v36 = vsel %vm2211_vm12, %v8630_v23, %v2171_v19  ;;  %v2296_v50 = vadd.f32 %v2295_v41, %v2294_v0  ;;  %v5960_v41 = vld [vmem:[%s10546_s2 + $0xa] sm:$0x3] }
0x1915   :  { %2227 = vst.msk [vmem:[#allocation2 + $0xa] sm:$0x3] %vm36_vm9, %v2219_v36  ;;  %vm2277_vm13 = vcmp.eq.s32.totalorder %v2265_v30, 1  ;;  %vm2614_vm8 = vcmp.eq.s32.totalorder %v5960_v41, 0  ;;  %vm2615_vm10 = vcmp.eq.s32.totalorder %v5960_v41, 1 }
0x1916   :  { %v2285_v32 = vsel %vm2277_vm13, %v2219_v36, 0.0  ;;  %v2202_v26 = vpop.permute.xlu0 %2201  ;;  %vm2616_vm13 = vcmp.eq.s32.totalorder %v5960_v41, 2 }
0x1917   :  { %vm2212_vm14 = vcmp.eq.s32.totalorder %v2202_v26, 1  ;;  %v2297_v43 = vsel %vm36_vm9, %v2285_v32, 0.0 }
0x1918   :  { %v2268_v54 = vpop.permute.xlu1 %2267  ;;  %v2220_v48 = vsel %vm2212_vm14, %v8630_v23, %v2172_v42  ;;  %v2298_v46 = vadd.f32 %v2297_v43, %v2296_v50  ;;  %v5961_v43 = vld [vmem:[%s10547_s3 + $0xa] sm:$0x3] }
0x1919   :  { %2228 = vst.msk [vmem:[#allocation2 + $0xc] sm:$0x3] %vm36_vm9, %v2220_v48  ;;  %vm2278_vm15 = vcmp.eq.s32.totalorder %v2268_v54, 1  ;;  %vm2688_vm11 = vcmp.eq.s32.totalorder %v5961_v43, 0  ;;  %vm2689_vm12 = vcmp.eq.s32.totalorder %v5961_v43, 1  ;;  %vm2690_vm14 = vcmp.eq.s32.totalorder %v5961_v43, 2 }
0x191a   :  { %v2286_v25 = vsel %vm2278_vm15, %v2220_v48, 0.0  ;;  %v2205_v40 = vpop.permute.xlu0 %2204  ;;  %vm2617_vm15 = vcmp.eq.s32.totalorder %v5960_v41, 3 }
0x191b   :  { %v2299_v20 = vsel %vm36_vm9, %v2286_v25, 0.0  ;;  %vm2213_vm4 = vcmp.eq.s32.totalorder %v2205_v40, 1  ;;  %v2630_v25 = vsel %vm2614_vm8, 1, %v7631_v6  ;;  %v2631_v40 = vsel %vm2615_vm10, 1, %v7631_v6 }
0x191c   :  { %v2271_v49 = vpop.permute.xlu1 %2270  ;;  %v2221_v28 = vsel %vm2213_vm4, %v8630_v23, %v2173_v16  ;;  %v2300_v8 = vadd.f32 %v2299_v20, %v2298_v46  ;;  %v2696_v20 = vsel %vm2688_vm11, 1, %v7631_v6  ;;  %v2697_v16 = vsel %vm2689_vm12, 1, %v7631_v6 }
0x191d   :  { %2229 = vst.msk [vmem:[#allocation2 + $0xe] sm:$0x3] %vm36_vm9, %v2221_v28  ;;  %vm2279_vm5 = vcmp.eq.s32.totalorder %v2271_v49, 1  ;;  %v2632_v46 = vsel %vm2616_vm13, 1, %v7631_v6  ;;  %v2698_v49 = vsel %vm2690_vm14, 1, %v7631_v6  ;;  %vm2691_vm4 = vcmp.eq.s32.totalorder %v5961_v43, 3 }
0x191e   :  { %v2287_v62 = vsel %vm2279_vm5, %v2221_v28, 0.0  ;;  %v2306_v53 = vpop.permute.xlu0 %2305  ;;  %v2633_v28 = vsel %vm2617_vm15, 1, %v7631_v6  ;;  %vm2618_vm5 = vcmp.eq.s32.totalorder %v5960_v41, 4  ;;  %vm2693_vm8 = vcmp.eq.s32.totalorder %v5961_v43, 5 }
0x191f   :  { %v2301_v45 = vsel %vm36_vm9, %v2287_v62, 0.0  ;;  %vm2307_vm6 = vcmp.eq.s32.totalorder %v2306_v53, 1  ;;  %v2634_v62 = vsel %vm2618_vm5, 1, %v7631_v6  ;;  %vm2620_vm10 = vcmp.eq.s32.totalorder %v5960_v41, 6 }
0x1920   :  { %v2302_v27 = vadd.f32 %v2301_v45, %v2300_v8  ;;  %v2312_v55 = vpop.permute.xlu1 %2311  ;;  %v2699_v8 = vsel %vm2691_vm4, 1, %v7631_v6  ;;  %vm2694_vm11 = vcmp.eq.s32.totalorder %v5961_v43, 6  ;;  %vm2621_vm12 = vcmp.eq.s32.totalorder %v5960_v41, 7 }
0x1921   :  { %vm2313_vm7 = vcmp.eq.s32.totalorder %v2312_v55, 1  ;;  %v2636_v55 = vsel %vm2620_vm10, 1, %v7631_v6  ;;  %vm2695_vm13 = vcmp.eq.s32.totalorder %v5961_v43, 7 }
0x1922   :  { %v2315_v9 = vsel %vm2307_vm6, %v2302_v27, %v8630_v23  ;;  %v8908_v23 = vld [vmem:[%s10548_s4 + $0xa] sm:$0x3]  ;;  %v2701_v27 = vsel %vm2693_vm8, 1, %v7631_v6 }
0x1923   :  { %v8893_v31 = vsel %vm2313_vm7, %v8675_v59, %v2315_v9  ;;  %v2702_v9 = vsel %vm2694_vm11, 1, %v7631_v6 }
0x1924   :  { %2330 = vrot.lane.b32.xlu0 %v8893_v31, %s7629_s23 }
0x1964   :  { %v2153_v10 = vpop.permute.xlu0 %2152 }
0x1965   :  { %v2155_v39 = vsel %vm58_vm1, %v8865_v17, %v2153_v10  ;;  %v5953_v10 = vld [vmem:[%s10545_s1 + $0xa] sm:$0x3] }
0x1966   :  { %v2308_v34 = vsel %vm2307_vm6, %v2155_v39, %v8675_v59  ;;  %vm2692_vm6 = vcmp.eq.s32.totalorder %v5961_v43, 4  ;;  %v2637_v39 = vsel %vm2621_vm12, 1, %v7631_v6  ;;  %vm2322_vm14 = vcmp.ne.s32.totalorder %v5953_v10, 0 }
0x1967   :  { %v8901_v21 = vsel %vm2313_vm7, %v8682_v11, %v2308_v34  ;;  %vm2619_vm7 = vcmp.eq.s32.totalorder %v5960_v41, 5  ;;  %v2700_v53 = vsel %vm2692_vm6, 1, %v7631_v6  ;;  %v5952_v34 = vld [vmem:[%s10544_s0 + $0xa] sm:$0x3] }
0x1968   :  { %2326 = vrot.lane.b32.xlu1 %v8901_v21, %s7625_s17  ;;  %v2635_v45 = vsel %vm2619_vm7, 1, %v7631_v6  ;;  %vm2319_vm15 = vcmp.ne.s32.totalorder %v5952_v34, 0 }
0x1996   :  { %v2331_v29 = vpop.permute.xlu0 %2330 }
0x19da   :  { %v2327_v47 = vpop.permute.xlu1 %2326 }
0x19db   :  { %v2333_v52 = vsel %vm58_vm1, %v8908_v23, %v2327_v47 }
0x19dc   :  { %v2334_v17 = vsel %vm60_vm2, %v2333_v52, %v2331_v29  ;;  %v2759_v29 = vsel %vm2322_vm14, 1, %v7631_v6  ;;  %v2765_v52 = vsel %vm2319_vm15, 1, %v7631_v6 }
0x19dd   :  { %v2335_v59 = vsel %vm62_vm3, %v2334_v17, %v8787_v35  ;;  %v2492_v17 = vrot.slane %v8941_v22, %v7994_v5  ;;  %v2623_v22 = vld [vmem:[#allocation2 + $0x2] sm:$0x3] }
0x19de   :  { %6460 = vmatmul.mubr.f32.vlgmr.msra.gmra.mrb[10].mxu1 %v2335_v59 }
0x19df   :  { %3018 = vmatprep.mubr.f32.mxu1 %v7628_v7 }
0x1ab1   :  { %v2425_v11 = vpop.f32.mrb[10].mxu1 }
0x1ab2   :  { %v2426_v56 = vadd.f32 %v8696_v33, %v2425_v11  ;;  %v6461_v44 = vpop.f32.mrb[11].mxu1 }
0x1ab4   :  { %7441 = vtanh.f32 %v2426_v56  ;;  %v5956_v61 = vmul.f32 -1.442695, %v2426_v56 }
0x1ab6   :  { %7443 = vpow2.f32 %v5956_v61 }
0x1abe   :  { %v7442_v58 = vpop.eup %7441 }
0x1abf   :  { %2438 = vrot.lane.b32.xlu1 %v7442_v58, %s7629_s23 }
0x1ac0   :  { %v7444_v51 = vpop.eup %7443 }
0x1ac1   :  { %v2432_v60 = vadd.f32 1.0, %v7444_v51 }
0x1ac3   :  { %7445 = vrcp.f32 %v2432_v60 }
0x1acd   :  { %v7446_v63 = vpop.eup %7445 }
0x1ace   :  { %v2436_v35 = vmul.f32 %v7446_v63, %v8706_v57  ;;  %v2457_v57 = vsel %vm58_vm1, %v8893_v31, %v2327_v47  ;;  %v2703_v47 = vsel %vm2695_vm13, 1, %v7631_v6 }
0x1b31   :  { %v2439_v1 = vpop.permute.xlu1 %2438 }
0x1b32   :  { %v2441_v3 = vmul.f32 %v7446_v63, %v2439_v1 }
0x1b34   :  { %2443 = vrot.lane.b32.xlu0 %v2441_v3, %s7625_s17 }
0x1ba6   :  { %v2444_v4 = vpop.permute.xlu0 %2443 }
0x1ba7   :  { %v8920_v12 = vadd.f32 %v2444_v4, %v2436_v35 }
0x1ba9   :  { %7447 = vtanh.f32 %v8920_v12 }
0x1bb3   :  { %v7448_v33 = vpop.eup %7447 }
0x1bb4   :  { %2449 = vrot.lane.b32.xlu1 %v7448_v33, %s7629_s23 }
0x1bb8   :  { %2581 = vrot.lane.b32.xlu1 %v8893_v31, %s7625_s17 }
0x1c26   :  { %v2450_v13 = vpop.permute.xlu1 %2449 }
0x1c27   :  { %v8926_v15 = vmul.f32 %v7446_v63, %v2450_v13 }
0x1c29   :  { %2454 = vrot.lane.b32.xlu0 %v8926_v15, %s7630_s24 }
0x1c2a   :  { %v2582_v0 = vpop.permute.xlu1 %2581 }
0x1c2d   :  { %2590 = vrot.lane.b32.xlu0 %v8901_v21, %s7629_s23 }
0x1c9b   :  { %v2455_v18 = vpop.permute.xlu0 %2454 }
0x1c9c   :  { %v2458_v19 = vsel %vm60_vm2, %v2457_v57, %v2455_v18  ;;  %v2622_v57 = vld [vmem:[#allocation2] sm:$0x3] }
0x1c9d   :  { %5957 = vmatmul.mubr.msk.f32.vlgmr.msra.gmra.mrb[10].mxu0 %vm62_vm3, %v2458_v19 }
0x1c9e   :  { %6494 = vmatprep.mubr.msk.f32.mxu0 %vm7627_vm0, %v7628_v7 }
0x1c9f   :  { %v2591_v48 = vpop.permute.xlu0 %2590 }
0x1d70   :  { %v2564_v30 = vpop.f32.mrb[10].mxu0 }
0x1d71   :  { %v8945_v36 = vadd.f32 %v2564_v30, %v2488_v24  ;;  %v8947_v37 = vpop.f32.mrb[11].mxu0 }
0x1d72   :  { %v2567_v59 = vadd.f32 %v8947_v37, %v2492_v17  ;;  %v2794_v17 = vld [vmem:[%s10550_s6 + $0x10] sm:$0xff] }
0x1d73   :  { %v5958_v38 = vmul.f32 -1.442695, %v8945_v36 }
0x1d74   :  { %v5959_v11 = vmul.f32 -1.442695, %v2567_v59 }
0x1d75   :  { %7449 = vpow2.f32 %v5958_v38  ;;  %v2624_v38 = vld [vmem:[#allocation2 + $0x4] sm:$0x3] }
0x1d7f   :  { %v7450_v32 = vpop.eup %7449 }
0x1d80   :  { %v2573_v26 = vadd.f32 1.0, %v7450_v32 }
0x1d82   :  { %7451 = vrcp.f32 %v2573_v26 }
0x1d83   :  { %7453 = vpow2.f32 %v5959_v11  ;;  %v2628_v11 = vld [vmem:[#allocation2 + $0xc] sm:$0x3] }
0x1d84   :  { %7455 = vtanh.f32 %v8945_v36 }
0x1d8c   :  { %v7452_v42 = vpop.eup %7451 }
0x1d8d   :  { %2577 = vrot.lane.b32.xlu1 %v7452_v42, %s7630_s24  ;;  %v2584_v54 = vmul.f32 %v7452_v42, %v2582_v0  ;;  %v2593_v50 = vmul.f32 %v7452_v42, %v2591_v48  ;;  %v7454_v56 = vpop.eup %7453  ;;  %v2625_v42 = vld [vmem:[#allocation2 + $0x6] sm:$0x3] }
0x1d8e   :  { %v7456_v44 = vpop.eup %7455  ;;  %v2602_v51 = vadd.f32 1.0, %v7454_v56 }
0x1d8f   :  { %2586 = vrot.lane.b32.xlu0 %v2584_v54, %s7629_s23 }
0x1d90   :  { %7457 = vrcp.f32 %v2602_v51 }
0x1d91   :  { %2595 = vrot.lane.b32.xlu1 %v2593_v50, %s7625_s17  ;;  %v2626_v50 = vld [vmem:[#allocation2 + $0x8] sm:$0x3] }
0x1d93   :  { %2639 = vperm.xlu0 %7340, %v2630_v25  }
0x1d95   :  { %2642 = vperm.xlu1 %7339, %v2631_v40  }
0x1d97   :  { %2705 = vperm.xlu0 %7340, %v2696_v20  }
0x1d99   :  { %2708 = vperm.xlu1 %7339, %v2697_v16  }
0x1d9a   :  { %v7458_v35 = vpop.eup %7457 }
0x1d9b   :  { %2645 = vperm.xlu0 %7340, %v2632_v46  }
0x1d9d   :  { %2711 = vperm.xlu1 %7339, %v2698_v49  }
0x1d9f   :  { %2648 = vperm.xlu0 %7340, %v2633_v28  }
0x1da1   :  { %2714 = vperm.xlu1 %7339, %v2699_v8  }
0x1da3   :  { %2651 = vperm.xlu0 %7340, %v2634_v62  }
0x1da5   :  { %2717 = vperm.xlu1 %7339, %v2700_v53   ;;  %v2627_v53 = vld [vmem:[#allocation2 + $0xa] sm:$0x3] }
0x1da7   :  { %2654 = vperm.xlu0 %7340, %v2635_v45  }
0x1da9   :  { %2720 = vperm.xlu1 %7339, %v2701_v27  }
0x1dab   :  { %2657 = vperm.xlu0 %7340, %v2636_v55  }
0x1dad   :  { %2723 = vperm.xlu1 %7339, %v2702_v9  }
0x1daf   :  { %2660 = vperm.xlu0 %7340, %v2637_v39  }
0x1db1   :  { %2726 = vperm.xlu1 %7339, %v2703_v47  }
0x1db3   :  { %2761 = vperm.xlu0 %7340, %v2759_v29   ;;  %v2792_v29 = vld [vmem:[%s10550_s6] sm:$0xff] }
0x1db5   :  { %2767 = vperm.xlu1 %7339, %v2765_v52   ;;  %v2793_v52 = vld [vmem:[%s10550_s6 + $0x8] sm:$0xff] }
0x1db6   :  { %v9016_v56 = vpack.c.bf16 %v2793_v52, %v2792_v29 }
0x1db8   :  { %6997 = vmatpush3.bf16.msra.mxu0 %v9016_v56 }
0x1db9   :  { %6998 = vmatprep.subr.bf16.mxu0 %v7626_v2 }
0x1dff   :  { %v2578_v58 = vpop.permute.xlu1 %2577 }
0x1e00   :  { %v2580_v61 = vmul.f32 %v7456_v44, %v2578_v58  ;;  %v2795_v44 = vld [vmem:[%s10550_s6 + $0x18] sm:$0xff] }
0x1e01   :  { %v2587_v60 = vpop.permute.xlu0 %2586 }
0x1e02   :  { %v2589_v63 = vadd.f32 %v2587_v60, %v2580_v61 }
0x1e03   :  { %v2596_v1 = vpop.permute.xlu1 %2595 }
0x1e04   :  { %v2598_v3 = vadd.f32 %v2596_v1, %v2589_v63  ;;  %v9025_v63 = vpack.c.bf16 %v2795_v44, %v2794_v17 }
0x1e06   :  { %7459 = vtanh.f32 %v2598_v3  ;;  %2608 = vrot.lane.b32.xlu0 %v2598_v3, %s7625_s17  ;;  %7000 = vmatpush3.bf16.msra.mxu0 %v9025_v63 }
0x1e07   :  { %7001 = vmatprep.subr.bf16.mxu0 %v7626_v2 }
0x1e10   :  { %v7460_v4 = vpop.eup %7459 }
0x1e11   :  { %v8988_v33 = vmul.f32 %v7460_v4, %v7458_v35  ;;  %v2796_v4 = vld [vmem:[%s10550_s6 + $0x20] sm:$0xff] }
0x1e12   :  { %v2640_v13 = vpop.permute.xlu0 %2639 }
0x1e13   :  { %vm2662_vm4 = vcmp.eq.s32.totalorder %v2640_v13, 1  ;;  %v2797_v13 = vld [vmem:[%s10550_s6 + $0x28] sm:$0xff] }
0x1e14   :  { %v2643_v18 = vpop.permute.xlu1 %2642  ;;  %v2670_v19 = vsel %vm2662_vm4, %v8893_v31, %v2622_v57 }
0x1e15   :  { %vm2663_vm5 = vcmp.eq.s32.totalorder %v2643_v18, 1  ;;  %2678 = vst.msk [vmem:[#allocation2] sm:$0x3] %vm36_vm9, %v2670_v19  ;;  %v2629_v18 = vld [vmem:[#allocation2 + $0xe] sm:$0x3] }
0x1e16   :  { %v2706_v24 = vpop.permute.xlu0 %2705  ;;  %v2671_v30 = vsel %vm2663_vm5, %v8893_v31, %v2623_v22 }
0x1e17   :  { %2679 = vst.msk [vmem:[#allocation2 + $0x2] sm:$0x3] %vm36_vm9, %v2671_v30  ;;  %vm2728_vm10 = vcmp.eq.s32.totalorder %v2706_v24, 1 }
0x1e18   :  { %v2709_v36 = vpop.permute.xlu1 %2708  ;;  %v2736_v25 = vsel %vm2728_vm10, %v2670_v19, 0.0 }
0x1e19   :  { %vm2729_vm7 = vcmp.eq.s32.totalorder %v2709_v36, 1  ;;  %v2744_v8 = vsel %vm36_vm9, %v2736_v25, 0.0 }
0x1e1a   :  { %v2646_v37 = vpop.permute.xlu0 %2645  ;;  %v2737_v48 = vsel %vm2729_vm7, %v2671_v30, 0.0  ;;  %v9038_v30 = vpack.c.bf16 %v2797_v13, %v2796_v4  ;;  %v2918_v4 = vld [vmem:[%s10552_s8 + $0x18] sm:$0xff]  ;;  %v2915_v13 = vld [vmem:[%s10552_s8] sm:$0xff] }
0x1e1b   :  { %vm2664_vm6 = vcmp.eq.s32.totalorder %v2646_v37, 1  ;;  %v2745_v46 = vsel %vm36_vm9, %v2737_v48, 0.0 }
0x1e1c   :  { %v2712_v32 = vpop.permute.xlu1 %2711  ;;  %v2672_v26 = vsel %vm2664_vm6, %v8893_v31, %v2624_v38  ;;  %v2746_v45 = vadd.f32 %v2745_v46, %v2744_v8  ;;  %7003 = vmatpush3.bf16.msra.mxu0 %v9038_v30  ;;  %v2804_v46 = vld [vmem:[%s10550_s6 + $0x60] sm:$0xff]  ;;  %v2806_v8 = vld [vmem:[%s10550_s6 + $0x70] sm:$0xff] }
0x1e1d   :  { %2680 = vst.msk [vmem:[#allocation2 + $0x4] sm:$0x3] %vm36_vm9, %v2672_v26  ;;  %vm2730_vm11 = vcmp.eq.s32.totalorder %v2712_v32, 1  ;;  %v2798_v32 = vld [vmem:[%s10550_s6 + $0x30] sm:$0xff]  ;;  %7004 = vmatprep.subr.bf16.mxu0 %v7626_v2 }
0x1e1e   :  { %v2649_v41 = vpop.permute.xlu0 %2648  ;;  %v2738_v40 = vsel %vm2730_vm11, %v2672_v26, 0.0  ;;  %v2799_v26 = vld [vmem:[%s10550_s6 + $0x38] sm:$0xff] }
0x1e1f   :  { %vm2665_vm8 = vcmp.eq.s32.totalorder %v2649_v41, 1  ;;  %v2747_v62 = vsel %vm36_vm9, %v2738_v40, 0.0  ;;  %v2802_v40 = vld [vmem:[%s10550_s6 + $0x50] sm:$0xff] }
0x1e20   :  { %v2715_v0 = vpop.permute.xlu1 %2714  ;;  %v2673_v54 = vsel %vm2665_vm8, %v8893_v31, %v2625_v42  ;;  %v2748_v39 = vadd.f32 %v2747_v62, %v2746_v45  ;;  %v2807_v62 = vld [vmem:[%s10550_s6 + $0x78] sm:$0xff] }
0x1e21   :  { %2681 = vst.msk [vmem:[#allocation2 + $0x6] sm:$0x3] %vm36_vm9, %v2673_v54  ;;  %vm2731_vm12 = vcmp.eq.s32.totalorder %v2715_v0, 1 }
0x1e22   :  { %v2652_v43 = vpop.permute.xlu0 %2651  ;;  %v2739_v49 = vsel %vm2731_vm12, %v2673_v54, 0.0  ;;  %v9049_v54 = vpack.c.bf16 %v2799_v26, %v2798_v32  ;;  %v2926_v32 = vld [vmem:[%s10552_s8 + $0x58] sm:$0xff] }
0x1e23   :  { %vm2666_vm13 = vcmp.eq.s32.totalorder %v2652_v43, 1  ;;  %v2749_v10 = vsel %vm36_vm9, %v2739_v49, 0.0  ;;  %v2800_v43 = vld [vmem:[%s10550_s6 + $0x40] sm:$0xff]  ;;  %v2805_v49 = vld [vmem:[%s10550_s6 + $0x68] sm:$0xff] }
0x1e24   :  { %v2718_v20 = vpop.permute.xlu1 %2717  ;;  %v2674_v16 = vsel %vm2666_vm13, %v8893_v31, %v2626_v50  ;;  %v2750_v58 = vadd.f32 %v2749_v10, %v2748_v39  ;;  %v2801_v50 = vld [vmem:[%s10550_s6 + $0x48] sm:$0xff]  ;;  %7006 = vmatpush3.bf16.msra.mxu0 %v9049_v54 }
0x1e25   :  { %2682 = vst.msk [vmem:[#allocation2 + $0x8] sm:$0x3] %vm36_vm9, %v2674_v16  ;;  %vm2732_vm14 = vcmp.eq.s32.totalorder %v2718_v20, 1  ;;  %7007 = vmatprep.subr.bf16.mxu0 %v7626_v2  ;;  %v2803_v20 = vld [vmem:[%s10550_s6 + $0x58] sm:$0xff]  ;;  %v9114_v10 = vld [vmem:[%s10548_s4 + $0xc] sm:$0x3] }
0x1e26   :  { %v2655_v28 = vpop.permute.xlu0 %2654  ;;  %v2740_v27 = vsel %vm2732_vm14, %v2674_v16, 0.0  ;;  %v9077_v16 = vpack.c.bf16 %v2803_v20, %v2802_v40 }
0x1e27   :  { %vm2667_vm15 = vcmp.eq.s32.totalorder %v2655_v28, 1  ;;  %v2751_v59 = vsel %vm36_vm9, %v2740_v27, 0.0  ;;  %v9087_v28 = vpack.c.bf16 %v2805_v49, %v2804_v46  ;;  %v2927_v46 = vld [vmem:[%s10552_s8 + $0x60] sm:$0xff]  ;;  %v2929_v49 = vld [vmem:[%s10552_s8 + $0x70] sm:$0xff] }
0x1e28   :  { %v2721_v55 = vpop.permute.xlu1 %2720  ;;  %v2675_v9 = vsel %vm2667_vm15, %v8893_v31, %v2627_v53  ;;  %v2752_v1 = vadd.f32 %v2751_v59, %v2750_v58  ;;  %v9098_v53 = vpack.c.bf16 %v2807_v62, %v2806_v8  ;;  %v2932_v8 = vld [vmem:[%s10552_s8 + $0x88] sm:$0xff]  ;;  %v2934_v62 = vld [vmem:[%s10552_s8 + $0x98] sm:$0xff] }
0x1e29   :  { %2683 = vst.msk [vmem:[#allocation2 + $0xa] sm:$0x3] %vm36_vm9, %v2675_v9  ;;  %vm2733_vm4 = vcmp.eq.s32.totalorder %v2721_v55, 1 }
0x1e2a   :  { %v2741_v34 = vsel %vm2733_vm4, %v2675_v9, 0.0  ;;  %v2658_v47 = vpop.permute.xlu0 %2657 }
0x1e2b   :  { %vm2668_vm5 = vcmp.eq.s32.totalorder %v2658_v47, 1  ;;  %v2753_v60 = vsel %vm36_vm9, %v2741_v34, 0.0  ;;  %v9128_v47 = vld [vmem:[%s10551_s7] ss:$0 sm:$0xff] }
0x1e2c   :  { %v2724_v61 = vpop.permute.xlu1 %2723  ;;  %v2676_v51 = vsel %vm2668_vm5, %v8893_v31, %v2628_v11  ;;  %v2754_v19 = vadd.f32 %v2753_v60, %v2752_v1 }
0x1e2d   :  { %2684 = vst.msk [vmem:[#allocation2 + $0xc] sm:$0x3] %vm36_vm9, %v2676_v51  ;;  %vm2734_vm6 = vcmp.eq.s32.totalorder %v2724_v61, 1 }
0x1e2e   :  { %v2742_v3 = vsel %vm2734_vm6, %v2676_v51, 0.0  ;;  %v2661_v35 = vpop.permute.xlu0 %2660 }
0x1e2f   :  { %v2755_v57 = vsel %vm36_vm9, %v2742_v3, 0.0  ;;  %vm2669_vm7 = vcmp.eq.s32.totalorder %v2661_v35, 1  ;;  %v2916_v35 = vld [vmem:[%s10552_s8 + $0x8] sm:$0xff] }
0x1e30   :  { %v2727_v22 = vpop.permute.xlu1 %2726  ;;  %v2677_v24 = vsel %vm2669_vm7, %v8893_v31, %v2629_v18  ;;  %v2756_v36 = vadd.f32 %v2755_v57, %v2754_v19  ;;  %v7019_v57 = vpack.c.bf16 %v2918_v4, %v2916_v35  ;;  %v2920_v18 = vld [vmem:[%s10552_s8 + $0x28] sm:$0xff]  ;;  %v2922_v19 = vld [vmem:[%s10552_s8 + $0x38] sm:$0xff] }
0x1e31   :  { %2685 = vst.msk [vmem:[#allocation2 + $0xe] sm:$0x3] %vm36_vm9, %v2677_v24  ;;  %vm2735_vm8 = vcmp.eq.s32.totalorder %v2727_v22, 1  ;;  %v5971_v4 = vld [vmem:[%s10547_s3 + $0xc] sm:$0x3] }
0x1e32   :  { %v2743_v37 = vsel %vm2735_vm8, %v2677_v24, 0.0  ;;  %v2762_v38 = vpop.permute.xlu0 %2761  ;;  %v7023_v24 = vpack.c.bf16 %v2922_v19, %v2920_v18  ;;  %7020 = vmatprep.subr.bf16.mxu1 %v7019_v57  ;;  %vm3144_vm14 = vcmp.eq.s32.totalorder %v5971_v4, 0  ;;  %vm3145_vm15 = vcmp.eq.s32.totalorder %v5971_v4, 1 }
0x1e33   :  { %v2757_v41 = vsel %vm36_vm9, %v2743_v37, 0.0  ;;  %vm2763_vm10 = vcmp.eq.s32.totalorder %v2762_v38, 1  ;;  %v2921_v37 = vld [vmem:[%s10552_s8 + $0x30] sm:$0xff]  ;;  %v2924_v38 = vld [vmem:[%s10552_s8 + $0x48] sm:$0xff]  ;;  %v3152_v18 = vsel %vm3144_vm14, 1, %v7631_v6  ;;  %v3153_v19 = vsel %vm3145_vm15, 1, %v7631_v6 }
0x1e34   :  { %v2758_v42 = vadd.f32 %v2757_v41, %v2756_v36  ;;  %v2768_v0 = vpop.permute.xlu1 %2767  ;;  %v2919_v36 = vld [vmem:[%s10552_s8 + $0x20] sm:$0xff]  ;;  %v7027_v41 = vpack.c.bf16 %v2926_v32, %v2924_v38  ;;  %vm3146_vm5 = vcmp.eq.s32.totalorder %v5971_v4, 2  ;;  %vm3147_vm7 = vcmp.eq.s32.totalorder %v5971_v4, 3 }
0x1e35   :  { %vm2769_vm11 = vcmp.eq.s32.totalorder %v2768_v0, 1  ;;  %v7025_v26 = vpack.c.bf16 %v2921_v37, %v2919_v36  ;;  %v2925_v0 = vld [vmem:[%s10552_s8 + $0x50] sm:$0xff]  ;;  %v3155_v37 = vsel %vm3147_vm7, 1, %v7631_v6  ;;  %vm3150_vm14 = vcmp.eq.s32.totalorder %v5971_v4, 6 }
0x1e36   :  { %v2771_v48 = vsel %vm2763_vm10, %v2758_v42, %v8893_v31  ;;  %v9067_v31 = vpack.c.bf16 %v2801_v50, %v2800_v43  ;;  %v2923_v42 = vld [vmem:[%s10552_s8 + $0x40] sm:$0xff]  ;;  %v2928_v43 = vld [vmem:[%s10552_s8 + $0x68] sm:$0xff]  ;;  %v2930_v50 = vld [vmem:[%s10552_s8 + $0x78] sm:$0xff] }
0x1e37   :  { %v9062_v25 = vsel %vm2769_vm11, %v8901_v21, %v2771_v48  ;;  %v7029_v40 = vpack.c.bf16 %v2925_v0, %v2923_v42  ;;  %v7031_v20 = vpack.c.bf16 %v2930_v50, %v2928_v43  ;;  %v3158_v0 = vsel %vm3150_vm14, 1, %v7631_v6  ;;  %v5962_v50 = vld [vmem:[%s10544_s0 + $0xc] sm:$0x3] }
0x1e38   :  { %2786 = vrot.lane.b32.xlu0 %v9062_v25, %s7629_s23  ;;  %7009 = vmatpush3.bf16.msra.mxu0 %v9067_v31 }
0x1e39   :  { %7010 = vmatprep.subr.bf16.mxu0 %v7626_v2 }
0x1e3c   :  { %7012 = vmatpush3.bf16.msra.mxu0 %v9077_v16 }
0x1e3d   :  { %7013 = vmatprep.subr.bf16.mxu0 %v7626_v2 }
0x1e40   :  { %7015 = vmatpush3.bf16.msra.mxu0 %v9087_v28 }
0x1e41   :  { %7016 = vmatprep.subr.bf16.mxu0 %v7626_v2 }
0x1e44   :  { %7018 = vmatpush3.bf16.msra.mxu0 %v9098_v53 }
0x1e45   :  { %7068 = vmatprep.subr.bf16.mxu0 %v7019_v57 }
0x1e78   :  { %v2609_v45 = vpop.permute.xlu0 %2608 }
0x1e79   :  { %v2611_v27 = vsel %vm58_vm1, %v8988_v33, %v2609_v45  ;;  %v7033_v45 = vpack.c.bf16 %v2929_v49, %v2927_v46 }
0x1e7a   :  { %v2764_v55 = vsel %vm2763_vm10, %v2611_v27, %v8901_v21  ;;  %v7035_v27 = vpack.c.bf16 %v2934_v62, %v2932_v8  ;;  %vm3148_vm10 = vcmp.eq.s32.totalorder %v5971_v4, 4 }
0x1e7b   :  { %v9107_v9 = vsel %vm2769_vm11, %v8908_v23, %v2764_v55  ;;  %v2931_v55 = vld [vmem:[%s10552_s8 + $0x80] sm:$0xff]  ;;  %v3156_v32 = vsel %vm3148_vm10, 1, %v7631_v6 }
0x1e7c   :  { %2782 = vrot.lane.b32.xlu1 %v9107_v9, %s7625_s17 }
0x1eaa   :  { %v2787_v34 = vpop.permute.xlu0 %2786 }
0x1eee   :  { %v9116_v39 = vpop.permute.xlu1 %2782 }
0x1eef   :  { %v2789_v33 = vsel %vm58_vm1, %v9114_v10, %v9116_v39 }
0x1ef0   :  { %v2790_v21 = vsel %vm60_vm2, %v2789_v33, %v2787_v34  ;;  %v2933_v34 = vld [vmem:[%s10552_s8 + $0x90] sm:$0xff]  ;;  %v2936_v33 = vld [vmem:[%s10552_s8 + $0xa8] sm:$0xff] }
0x1ef1   :  { %v2791_v23 = vsel %vm62_vm3, %v2790_v21, %v8926_v15  ;;  %v2938_v21 = vld [vmem:[%s10552_s8 + $0xb8] sm:$0xff] }
0x1ef2   :  { %6495 = vmatmul.mubr.f32.vlgmr.msra.gmra.mrb[12].mxu0 %v2791_v23  ;;  %v7037_v23 = vpack.c.bf16 %v2933_v34, %v2931_v55 }
0x1ef3   :  { %3474 = vmatprep.mubr.f32.mxu0 %v7628_v7 }
0x1fc5   :  { %v2881_v29 = vpop.f32.mrb[12].mxu0 }
0x1fc6   :  { %v2882_v52 = vadd.f32 %v9128_v47, %v2881_v29  ;;  %v6496_v17 = vpop.f32.mrb[13].mxu0  ;;  %v7039_v29 = vpack.c.bf16 %v2938_v21, %v2936_v33 }
0x1fc7   :  { %v2937_v17 = vld [vmem:[%s10552_s8 + $0xb0] sm:$0xff] }
0x1fc8   :  { %7461 = vtanh.f32 %v2882_v52  ;;  %v5966_v11 = vmul.f32 -1.442695, %v2882_v52  ;;  %v2935_v52 = vld [vmem:[%s10552_s8 + $0xa0] sm:$0xff] }
0x1fca   :  { %7463 = vpow2.f32 %v5966_v11 }
0x1fd2   :  { %v7462_v59 = vpop.eup %7461 }
0x1fd3   :  { %2894 = vrot.lane.b32.xlu1 %v7462_v59, %s7629_s23  ;;  %v7041_v59 = vpack.c.bf16 %v2937_v17, %v2935_v52 }
0x1fd4   :  { %v7464_v44 = vpop.eup %7463 }
0x1fd5   :  { %v2888_v15 = vadd.f32 1.0, %v7464_v44 }
0x1fd7   :  { %7465 = vrcp.f32 %v2888_v15  ;;  %v2913_v15 = vsel %vm58_vm1, %v9062_v25, %v9116_v39 }
0x1fe1   :  { %v9132_v58 = vpop.eup %7465 }
0x1fe2   :  { %v2892_v60 = vmul.f32 %v9132_v58, %v8920_v12  ;;  %v2917_v12 = vld [vmem:[%s10552_s8 + $0x10] sm:$0xff] }
0x1fe3   :  { %v7021_v22 = vpack.c.bf16 %v2917_v12, %v2915_v13 }
0x1fe5   :  { %7022 = vmatpush1.bf16.msra.mxu1 %v7021_v22  ;;  %7070 = vmatpush1.bf16.msra.mxu0 %v7021_v22 }
0x1fe6   :  { %7024 = vmatprep.subr.bf16.mxu1 %v7023_v24  ;;  %7072 = vmatprep.subr.bf16.mxu0 %v7023_v24  ;;  %v3154_v24 = vsel %vm3146_vm5, 1, %v7631_v6 }
0x1fe9   :  { %7026 = vmatpush1.bf16.msra.mxu1 %v7025_v26  ;;  %7074 = vmatpush1.bf16.msra.mxu0 %v7025_v26 }
0x1fea   :  { %7028 = vmatprep.subr.bf16.mxu1 %v7027_v41  ;;  %7076 = vmatprep.subr.bf16.mxu0 %v7027_v41 }
0x1fed   :  { %7030 = vmatpush1.bf16.msra.mxu1 %v7029_v40  ;;  %7078 = vmatpush1.bf16.msra.mxu0 %v7029_v40 }
0x1fee   :  { %7032 = vmatprep.subr.bf16.mxu1 %v7031_v20  ;;  %7080 = vmatprep.subr.bf16.mxu0 %v7031_v20 }
0x1ff1   :  { %7034 = vmatpush1.bf16.msra.mxu1 %v7033_v45  ;;  %7082 = vmatpush1.bf16.msra.mxu0 %v7033_v45 }
0x1ff2   :  { %7036 = vmatprep.subr.bf16.mxu1 %v7035_v27  ;;  %7084 = vmatprep.subr.bf16.mxu0 %v7035_v27 }
0x1ff5   :  { %7038 = vmatpush1.bf16.msra.mxu1 %v7037_v23  ;;  %7086 = vmatpush1.bf16.msra.mxu0 %v7037_v23 }
0x1ff6   :  { %7040 = vmatprep.subr.bf16.mxu1 %v7039_v29  ;;  %7088 = vmatprep.subr.bf16.mxu0 %v7039_v29 }
0x1ff9   :  { %7042 = vmatpush1.bf16.msra.mxu1 %v7041_v59  ;;  %7090 = vmatpush1.bf16.msra.mxu0 %v7041_v59 }
0x1ffa   :  { %7043 = vmatprep.subr.bf16.mxu1 %v7626_v2  ;;  %7091 = vmatprep.subr.bf16.mxu0 %v7626_v2 }
0x2045   :  { %v2895_v61 = vpop.permute.xlu1 %2894 }
0x2046   :  { %v2897_v51 = vmul.f32 %v9132_v58, %v2895_v61 }
0x2048   :  { %2899 = vrot.lane.b32.xlu0 %v2897_v51, %s7625_s17 }
0x20ba   :  { %v2900_v1 = vpop.permute.xlu0 %2899 }
0x20bb   :  { %v9138_v3 = vadd.f32 %v2900_v1, %v2892_v60 }
0x20bd   :  { %7467 = vtanh.f32 %v9138_v3 }
0x20c7   :  { %v7468_v48 = vpop.eup %7467 }
0x20c8   :  { %2905 = vrot.lane.b32.xlu1 %v7468_v48, %s7629_s23  ;;  %v5963_v48 = vld [vmem:[%s10545_s1 + $0xc] sm:$0x3] }
0x20c9   :  { %vm2778_vm5 = vcmp.ne.s32.totalorder %v5963_v48, 0 }
0x20ca   :  { %v3215_v20 = vsel %vm2778_vm5, 1, %v7631_v6 }
0x20cc   :  { %3037 = vrot.lane.b32.xlu1 %v9062_v25, %s7625_s17 }
0x213a   :  { %v2906_v11 = vpop.permute.xlu1 %2905 }
0x213b   :  { %v9219_v44 = vmul.f32 %v9132_v58, %v2906_v11 }
0x213d   :  { %2910 = vrot.lane.b32.xlu0 %v9219_v44, %s7630_s24 }
0x213e   :  { %v3038_v60 = vpop.permute.xlu1 %3037 }
0x2141   :  { %3046 = vrot.lane.b32.xlu0 %v9107_v9, %s7629_s23 }
0x21af   :  { %v2911_v61 = vpop.permute.xlu0 %2910 }
0x21b0   :  { %v2914_v51 = vsel %vm60_vm2, %v2913_v15, %v2911_v61  ;;  %v3078_v61 = vld [vmem:[#allocation2] sm:$0x3] }
0x21b1   :  { %5967 = vmatmul.mubr.msk.f32.vlgmr.msra.gmra.mrb[12].mxu1 %vm62_vm3, %v2914_v51 }
0x21b2   :  { %7045 = vmatpush3.bf16.msra.mxu1 %v9016_v56  ;;  %6529 = vmatprep.mubr.msk.f32.mxu1 %vm7627_vm0, %v7628_v7  ;;  %v9250_v56 = vld [vmem:[%s10553_s9] sm:$0x3] }
0x21b3   :  { %7046 = vmatprep.subr.bf16.mxu1 %v7626_v2  ;;  %v3047_v35 = vpop.permute.xlu0 %3046  ;;  %v2948_v49 = vrot.slane %v9250_v56, %v7994_v5 }
0x21b6   :  { %7048 = vmatpush3.bf16.msra.mxu1 %v9025_v63  ;;  %v2944_v63 = vrot.slane %v9250_v56, %v7918_v14 }
0x21b7   :  { %7049 = vmatprep.subr.bf16.mxu1 %v7626_v2 }
0x21ba   :  { %7051 = vmatpush3.bf16.msra.mxu1 %v9038_v30 }
0x21bb   :  { %7052 = vmatprep.subr.bf16.mxu1 %v7626_v2 }
0x21be   :  { %7054 = vmatpush3.bf16.msra.mxu1 %v9049_v54 }
0x21bf   :  { %7055 = vmatprep.subr.bf16.mxu1 %v7626_v2 }
0x21c2   :  { %7057 = vmatpush3.bf16.msra.mxu1 %v9067_v31 }
0x21c3   :  { %7058 = vmatprep.subr.bf16.mxu1 %v7626_v2 }
0x21c6   :  { %7060 = vmatpush3.bf16.msra.mxu1 %v9077_v16 }
0x21c7   :  { %7061 = vmatprep.subr.bf16.mxu1 %v7626_v2 }
0x21ca   :  { %7063 = vmatpush3.bf16.msra.mxu1 %v9087_v28 }
0x21cb   :  { %7064 = vmatprep.subr.bf16.mxu1 %v7626_v2 }
0x21ce   :  { %7066 = vmatpush3.bf16.msra.mxu1 %v9098_v53  ;;  %v5970_v53 = vld [vmem:[%s10546_s2 + $0xc] sm:$0x3] }
0x21cf   :  { %vm3070_vm12 = vcmp.eq.s32.totalorder %v5970_v53, 0  ;;  %vm3071_vm13 = vcmp.eq.s32.totalorder %v5970_v53, 1  ;;  %vm3072_vm4 = vcmp.eq.s32.totalorder %v5970_v53, 2  ;;  %vm3073_vm6 = vcmp.eq.s32.totalorder %v5970_v53, 3 }
0x21d0   :  { %v3086_v57 = vsel %vm3070_vm12, 1, %v7631_v6  ;;  %v3087_v12 = vsel %vm3071_vm13, 1, %v7631_v6  ;;  %v3088_v22 = vsel %vm3072_vm4, 1, %v7631_v6  ;;  %v3089_v36 = vsel %vm3073_vm6, 1, %v7631_v6 }
0x21d1   :  { %vm3074_vm8 = vcmp.eq.s32.totalorder %v5970_v53, 4  ;;  %vm3075_vm11 = vcmp.eq.s32.totalorder %v5970_v53, 5  ;;  %vm3149_vm12 = vcmp.eq.s32.totalorder %v5971_v4, 5  ;;  %vm3076_vm13 = vcmp.eq.s32.totalorder %v5970_v53, 6 }
0x21d2   :  { %v3090_v38 = vsel %vm3074_vm8, 1, %v7631_v6  ;;  %v3091_v26 = vsel %vm3075_vm11, 1, %v7631_v6  ;;  %v3157_v41 = vsel %vm3149_vm12, 1, %v7631_v6  ;;  %v3092_v42 = vsel %vm3076_vm13, 1, %v7631_v6 }
0x21d3   :  { %vm3077_vm15 = vcmp.eq.s32.totalorder %v5970_v53, 7  ;;  %vm3151_vm4 = vcmp.eq.s32.totalorder %v5971_v4, 7  ;;  %vm2775_vm6 = vcmp.ne.s32.totalorder %v5962_v50, 0 }
0x21d4   :  { %v3093_v43 = vsel %vm3077_vm15, 1, %v7631_v6  ;;  %v3159_v40 = vsel %vm3151_vm4, 1, %v7631_v6  ;;  %v3221_v46 = vsel %vm2775_vm6, 1, %v7631_v6 }
0x2284   :  { %v3020_v30 = vpop.f32.mrb[12].mxu1 }
0x2285   :  { %v9254_v54 = vadd.f32 %v3020_v30, %v2944_v63  ;;  %v9256_v31 = vpop.f32.mrb[13].mxu1  ;;  %v3079_v63 = vld [vmem:[#allocation2 + $0x2] sm:$0x3] }
0x2286   :  { %v3023_v8 = vadd.f32 %v9256_v31, %v2948_v49  ;;  %v3084_v49 = vld [vmem:[#allocation2 + $0xc] sm:$0x3] }
0x2287   :  { %v5968_v16 = vmul.f32 -1.442695, %v9254_v54 }
0x2288   :  { %v5969_v62 = vmul.f32 -1.442695, %v3023_v8 }
0x2289   :  { %7469 = vpow2.f32 %v5968_v16 }
0x2293   :  { %v7470_v28 = vpop.eup %7469 }
0x2294   :  { %v3029_v39 = vadd.f32 1.0, %v7470_v28  ;;  %v3080_v28 = vld [vmem:[#allocation2 + $0x4] sm:$0x3] }
0x2296   :  { %7471 = vrcp.f32 %v3029_v39 }
0x2297   :  { %7473 = vpow2.f32 %v5969_v62 }
0x2298   :  { %7475 = vtanh.f32 %v9254_v54 }
0x22a0   :  { %v7472_v58 = vpop.eup %7471 }
0x22a1   :  { %3033 = vrot.lane.b32.xlu1 %v7472_v58, %s7630_s24  ;;  %v3040_v1 = vmul.f32 %v7472_v58, %v3038_v60  ;;  %v3049_v13 = vmul.f32 %v7472_v58, %v3047_v35  ;;  %v7474_v45 = vpop.eup %7473  ;;  %v3081_v60 = vld [vmem:[#allocation2 + $0x6] sm:$0x3] }
0x22a2   :  { %v7476_v27 = vpop.eup %7475  ;;  %v3058_v33 = vadd.f32 1.0, %v7474_v45 }
0x22a3   :  { %3042 = vrot.lane.b32.xlu0 %v3040_v1, %s7629_s23 }
0x22a4   :  { %7477 = vrcp.f32 %v3058_v33 }
0x22a5   :  { %3051 = vrot.lane.b32.xlu1 %v3049_v13, %s7625_s17 }
0x22a7   :  { %3095 = vperm.xlu0 %7340, %v3086_v57   ;;  %v3082_v57 = vld [vmem:[#allocation2 + $0x8] sm:$0x3] }
0x22a9   :  { %3098 = vperm.xlu1 %7339, %v3087_v12  }
0x22ab   :  { %3161 = vperm.xlu0 %7340, %v3152_v18  }
0x22ad   :  { %3164 = vperm.xlu1 %7339, %v3153_v19  }
0x22ae   :  { %v7478_v17 = vpop.eup %7477 }
0x22af   :  { %3101 = vperm.xlu0 %7340, %v3088_v22  }
0x22b1   :  { %3167 = vperm.xlu1 %7339, %v3154_v24  }
0x22b3   :  { %3104 = vperm.xlu0 %7340, %v3089_v36  }
0x22b5   :  { %3170 = vperm.xlu1 %7339, %v3155_v37  }
0x22b7   :  { %3107 = vperm.xlu0 %7340, %v3090_v38  }
0x22b9   :  { %3173 = vperm.xlu1 %7339, %v3156_v32  }
0x22bb   :  { %3110 = vperm.xlu0 %7340, %v3091_v26   ;;  %v3083_v26 = vld [vmem:[#allocation2 + $0xa] sm:$0x3] }
0x22bd   :  { %3176 = vperm.xlu1 %7339, %v3157_v41  }
0x22bf   :  { %3113 = vperm.xlu0 %7340, %v3092_v42  }
0x22c1   :  { %3179 = vperm.xlu1 %7339, %v3158_v0  }
0x22c3   :  { %3116 = vperm.xlu0 %7340, %v3093_v43  }
0x22c5   :  { %3182 = vperm.xlu1 %7339, %v3159_v40  }
0x22c7   :  { %3217 = vperm.xlu0 %7340, %v3215_v20  }
0x22c9   :  { %3223 = vperm.xlu1 %7339, %v3221_v46  }
0x2313   :  { %v3034_v55 = vpop.permute.xlu1 %3033 }
0x2314   :  { %v3036_v34 = vmul.f32 %v7476_v27, %v3034_v55 }
0x2315   :  { %v3043_v21 = vpop.permute.xlu0 %3042 }
0x2316   :  { %v3045_v23 = vadd.f32 %v3043_v21, %v3036_v34 }
0x2317   :  { %v3052_v29 = vpop.permute.xlu1 %3051 }
0x2318   :  { %v3054_v52 = vadd.f32 %v3052_v29, %v3045_v23  ;;  %v3085_v23 = vld [vmem:[#allocation2 + $0xe] sm:$0x3] }
0x231a   :  { %7479 = vtanh.f32 %v3054_v52  ;;  %3064 = vrot.lane.b32.xlu0 %v3054_v52, %s7625_s17 }
0x2324   :  { %v7480_v59 = vpop.eup %7479 }
0x2325   :  { %v9297_v11 = vmul.f32 %v7480_v59, %v7478_v17 }
0x2326   :  { %v3096_v15 = vpop.permute.xlu0 %3095 }
0x2327   :  { %vm3118_vm7 = vcmp.eq.s32.totalorder %v3096_v15, 1 }
0x2328   :  { %v3099_v51 = vpop.permute.xlu1 %3098  ;;  %v3126_v56 = vsel %vm3118_vm7, %v9062_v25, %v3078_v61 }
0x2329   :  { %vm3119_vm8 = vcmp.eq.s32.totalorder %v3099_v51, 1  ;;  %3134 = vst.msk [vmem:[#allocation2] sm:$0x3] %vm36_vm9, %v3126_v56 }
0x232a   :  { %v3162_v30 = vpop.permute.xlu0 %3161  ;;  %v3127_v54 = vsel %vm3119_vm8, %v9062_v25, %v3079_v63 }
0x232b   :  { %3135 = vst.msk [vmem:[#allocation2 + $0x2] sm:$0x3] %vm36_vm9, %v3127_v54  ;;  %vm3184_vm13 = vcmp.eq.s32.totalorder %v3162_v30, 1 }
0x232c   :  { %v3165_v31 = vpop.permute.xlu1 %3164  ;;  %v3192_v12 = vsel %vm3184_vm13, %v3126_v56, 0.0 }
0x232d   :  { %vm3185_vm11 = vcmp.eq.s32.totalorder %v3165_v31, 1  ;;  %v3200_v38 = vsel %vm36_vm9, %v3192_v12, 0.0 }
0x232e   :  { %v3102_v16 = vpop.permute.xlu0 %3101  ;;  %v3193_v4 = vsel %vm3185_vm11, %v3127_v54, 0.0 }
0x232f   :  { %vm3120_vm10 = vcmp.eq.s32.totalorder %v3102_v16, 1  ;;  %v3201_v24 = vsel %vm36_vm9, %v3193_v4, 0.0 }
0x2330   :  { %v3168_v39 = vpop.permute.xlu1 %3167  ;;  %v3128_v53 = vsel %vm3120_vm10, %v9062_v25, %v3080_v28  ;;  %v3202_v41 = vadd.f32 %v3201_v24, %v3200_v38 }
0x2331   :  { %3136 = vst.msk [vmem:[#allocation2 + $0x4] sm:$0x3] %vm36_vm9, %v3128_v53  ;;  %vm3186_vm14 = vcmp.eq.s32.totalorder %v3168_v39, 1 }
0x2332   :  { %v3105_v58 = vpop.permute.xlu0 %3104  ;;  %v3194_v18 = vsel %vm3186_vm14, %v3128_v53, 0.0 }
0x2333   :  { %vm3121_vm12 = vcmp.eq.s32.totalorder %v3105_v58, 1  ;;  %v3203_v32 = vsel %vm36_vm9, %v3194_v18, 0.0 }
0x2334   :  { %v3171_v1 = vpop.permute.xlu1 %3170  ;;  %v3129_v35 = vsel %vm3121_vm12, %v9062_v25, %v3081_v60  ;;  %v3204_v50 = vadd.f32 %v3203_v32, %v3202_v41  ;;  %v9373_v41 = vld [vmem:[%s10553_s9] sm:$0x3] }
0x2335   :  { %3137 = vst.msk [vmem:[#allocation2 + $0x6] sm:$0x3] %vm36_vm9, %v3129_v35  ;;  %vm3187_vm15 = vcmp.eq.s32.totalorder %v3171_v1, 1 }
0x2336   :  { %v3108_v13 = vpop.permute.xlu0 %3107  ;;  %v3195_v36 = vsel %vm3187_vm15, %v3129_v35, 0.0 }
0x2337   :  { %vm3122_vm4 = vcmp.eq.s32.totalorder %v3108_v13, 1  ;;  %v3205_v43 = vsel %vm36_vm9, %v3195_v36, 0.0 }
0x2338   :  { %v3174_v19 = vpop.permute.xlu1 %3173  ;;  %v3130_v22 = vsel %vm3122_vm4, %v9062_v25, %v3082_v57  ;;  %v3206_v8 = vadd.f32 %v3205_v43, %v3204_v50 }
0x2339   :  { %3138 = vst.msk [vmem:[#allocation2 + $0x8] sm:$0x3] %vm36_vm9, %v3130_v22  ;;  %vm3188_vm5 = vcmp.eq.s32.totalorder %v3174_v19, 1 }
0x233a   :  { %v3111_v37 = vpop.permute.xlu0 %3110  ;;  %v3196_v42 = vsel %vm3188_vm5, %v3130_v22, 0.0 }
0x233b   :  { %vm3123_vm6 = vcmp.eq.s32.totalorder %v3111_v37, 1  ;;  %v3207_v46 = vsel %vm36_vm9, %v3196_v42, 0.0  ;;  %v3400_v42 = vrot.slane %v9373_v41, %v7918_v14 }
0x233c   :  { %v3177_v0 = vpop.permute.xlu1 %3176  ;;  %v3131_v48 = vsel %vm3123_vm6, %v9062_v25, %v3083_v26  ;;  %v3208_v55 = vadd.f32 %v3207_v46, %v3206_v8  ;;  %v5980_v46 = vld [vmem:[%s10546_s2 + $0xe] sm:$0x3] }
0x233d   :  { %3139 = vst.msk [vmem:[#allocation2 + $0xa] sm:$0x3] %vm36_vm9, %v3131_v48  ;;  %vm3189_vm7 = vcmp.eq.s32.totalorder %v3177_v0, 1  ;;  %vm3526_vm15 = vcmp.eq.s32.totalorder %v5980_v46, 0  ;;  %vm3527_vm4 = vcmp.eq.s32.totalorder %v5980_v46, 1 }
0x233e   :  { %v3197_v40 = vsel %vm3189_vm7, %v3131_v48, 0.0  ;;  %v3114_v20 = vpop.permute.xlu0 %3113  ;;  %vm3528_vm7 = vcmp.eq.s32.totalorder %v5980_v46, 2 }
0x233f   :  { %vm3124_vm8 = vcmp.eq.s32.totalorder %v3114_v20, 1  ;;  %v3209_v27 = vsel %vm36_vm9, %v3197_v40, 0.0 }
0x2340   :  { %v3180_v62 = vpop.permute.xlu1 %3179  ;;  %v3132_v45 = vsel %vm3124_vm8, %v9062_v25, %v3084_v49  ;;  %v3210_v29 = vadd.f32 %v3209_v27, %v3208_v55  ;;  %v5981_v27 = vld [vmem:[%s10547_s3 + $0xe] sm:$0x3] }
0x2341   :  { %3140 = vst.msk [vmem:[#allocation2 + $0xc] sm:$0x3] %vm36_vm9, %v3132_v45  ;;  %vm3190_vm10 = vcmp.eq.s32.totalorder %v3180_v62, 1  ;;  %vm3600_vm5 = vcmp.eq.s32.totalorder %v5981_v27, 0  ;;  %vm3601_vm6 = vcmp.eq.s32.totalorder %v5981_v27, 1  ;;  %vm3602_vm8 = vcmp.eq.s32.totalorder %v5981_v27, 2 }
0x2342   :  { %v3198_v34 = vsel %vm3190_vm10, %v3132_v45, 0.0  ;;  %v3117_v33 = vpop.permute.xlu0 %3116  ;;  %vm3529_vm10 = vcmp.eq.s32.totalorder %v5980_v46, 3 }
0x2343   :  { %v3211_v21 = vsel %vm36_vm9, %v3198_v34, 0.0  ;;  %vm3125_vm11 = vcmp.eq.s32.totalorder %v3117_v33, 1  ;;  %v3542_v34 = vsel %vm3526_vm15, 1, %v7631_v6  ;;  %v3543_v33 = vsel %vm3527_vm4, 1, %v7631_v6 }
0x2344   :  { %v3183_v52 = vpop.permute.xlu1 %3182  ;;  %v3133_v17 = vsel %vm3125_vm11, %v9062_v25, %v3085_v23  ;;  %v3212_v59 = vadd.f32 %v3211_v21, %v3210_v29  ;;  %v3608_v21 = vsel %vm3600_vm5, 1, %v7631_v6  ;;  %v3609_v23 = vsel %vm3601_vm6, 1, %v7631_v6 }
0x2345   :  { %3141 = vst.msk [vmem:[#allocation2 + $0xe] sm:$0x3] %vm36_vm9, %v3133_v17  ;;  %vm3191_vm12 = vcmp.eq.s32.totalorder %v3183_v52, 1  ;;  %v3544_v29 = vsel %vm3528_vm7, 1, %v7631_v6  ;;  %v3610_v52 = vsel %vm3602_vm8, 1, %v7631_v6  ;;  %vm3603_vm11 = vcmp.eq.s32.totalorder %v5981_v27, 3 }
0x2346   :  { %v3199_v15 = vsel %vm3191_vm12, %v3133_v17, 0.0  ;;  %v3218_v61 = vpop.permute.xlu0 %3217  ;;  %v3545_v17 = vsel %vm3529_vm10, 1, %v7631_v6  ;;  %vm3530_vm12 = vcmp.eq.s32.totalorder %v5980_v46, 4  ;;  %vm3605_vm15 = vcmp.eq.s32.totalorder %v5981_v27, 5 }
0x2347   :  { %v3213_v51 = vsel %vm36_vm9, %v3199_v15, 0.0  ;;  %vm3219_vm13 = vcmp.eq.s32.totalorder %v3218_v61, 1  ;;  %v3546_v15 = vsel %vm3530_vm12, 1, %v7631_v6  ;;  %vm3532_vm4 = vcmp.eq.s32.totalorder %v5980_v46, 6 }
0x2348   :  { %v3214_v56 = vadd.f32 %v3213_v51, %v3212_v59  ;;  %v3224_v63 = vpop.permute.xlu1 %3223  ;;  %v3611_v59 = vsel %vm3603_vm11, 1, %v7631_v6  ;;  %vm3606_vm5 = vcmp.eq.s32.totalorder %v5981_v27, 6  ;;  %vm3533_vm6 = vcmp.eq.s32.totalorder %v5980_v46, 7 }
0x2349   :  { %vm3225_vm14 = vcmp.eq.s32.totalorder %v3224_v63, 1  ;;  %v3548_v63 = vsel %vm3532_vm4, 1, %v7631_v6  ;;  %vm3607_vm7 = vcmp.eq.s32.totalorder %v5981_v27, 7 }
0x234a   :  { %v3227_v30 = vsel %vm3219_vm13, %v3214_v56, %v9062_v25  ;;  %v9340_v25 = vld [vmem:[%s10548_s4 + $0xe] sm:$0x3]  ;;  %v3613_v56 = vsel %vm3605_vm15, 1, %v7631_v6 }
0x234b   :  { %v9325_v54 = vsel %vm3225_vm14, %v9107_v9, %v3227_v30  ;;  %v3614_v30 = vsel %vm3606_vm5, 1, %v7631_v6 }
0x234c   :  { %3242 = vrot.lane.b32.xlu0 %v9325_v54, %s7629_s23 }
0x238c   :  { %v3065_v31 = vpop.permute.xlu0 %3064 }
0x238d   :  { %v3067_v16 = vsel %vm58_vm1, %v9297_v11, %v3065_v31  ;;  %v5973_v31 = vld [vmem:[%s10545_s1 + $0xe] sm:$0x3] }
0x238e   :  { %v3220_v28 = vsel %vm3219_vm13, %v3067_v16, %v9107_v9  ;;  %vm3604_vm13 = vcmp.eq.s32.totalorder %v5981_v27, 4  ;;  %v3549_v16 = vsel %vm3533_vm6, 1, %v7631_v6  ;;  %vm3234_vm8 = vcmp.ne.s32.totalorder %v5973_v31, 0 }
0x238f   :  { %v9333_v39 = vsel %vm3225_vm14, %v9114_v10, %v3220_v28  ;;  %vm3531_vm14 = vcmp.eq.s32.totalorder %v5980_v46, 5  ;;  %v3612_v61 = vsel %vm3604_vm13, 1, %v7631_v6  ;;  %v5972_v28 = vld [vmem:[%s10544_s0 + $0xe] sm:$0x3] }
0x2390   :  { %3238 = vrot.lane.b32.xlu1 %v9333_v39, %s7625_s17  ;;  %v3547_v51 = vsel %vm3531_vm14, 1, %v7631_v6  ;;  %vm3231_vm10 = vcmp.ne.s32.totalorder %v5972_v28, 0 }
0x23be   :  { %v3243_v58 = vpop.permute.xlu0 %3242 }
0x2402   :  { %v3239_v53 = vpop.permute.xlu1 %3238 }
0x2403   :  { %v3245_v60 = vsel %vm58_vm1, %v9340_v25, %v3239_v53 }
0x2404   :  { %v3246_v11 = vsel %vm60_vm2, %v3245_v60, %v3243_v58  ;;  %v3671_v58 = vsel %vm3234_vm8, 1, %v7631_v6  ;;  %v3677_v60 = vsel %vm3231_vm10, 1, %v7631_v6 }
0x2405   :  { %v3247_v9 = vsel %vm62_vm3, %v3246_v11, %v9219_v44  ;;  %v3404_v11 = vrot.slane %v9373_v41, %v7994_v5  ;;  %v3535_v41 = vld [vmem:[#allocation2 + $0x2] sm:$0x3] }
0x2406   :  { %6530 = vmatmul.mubr.f32.vlgmr.msra.gmra.mrb[14].mxu1 %v3247_v9 }
0x2407   :  { %3930 = vmatprep.mubr.f32.mxu1 %v7628_v7 }
0x24d9   :  { %v3337_v10 = vpop.f32.mrb[14].mxu1 }
0x24da   :  { %v3338_v1 = vadd.f32 %v9128_v47, %v3337_v10  ;;  %v6531_v35 = vpop.f32.mrb[15].mxu1 }
0x24dc   :  { %7481 = vtanh.f32 %v3338_v1  ;;  %v5976_v13 = vmul.f32 -1.442695, %v3338_v1 }
0x24de   :  { %7483 = vpow2.f32 %v5976_v13 }
0x24e6   :  { %v7482_v4 = vpop.eup %7481 }
0x24e7   :  { %3350 = vrot.lane.b32.xlu1 %v7482_v4, %s7629_s23 }
0x24e8   :  { %v7484_v57 = vpop.eup %7483 }
0x24e9   :  { %v3344_v12 = vadd.f32 1.0, %v7484_v57 }
0x24eb   :  { %7485 = vrcp.f32 %v3344_v12 }
0x24f5   :  { %v7486_v18 = vpop.eup %7485 }
0x24f6   :  { %v3348_v44 = vmul.f32 %v7486_v18, %v9138_v3  ;;  %v3369_v3 = vsel %vm58_vm1, %v9325_v54, %v3239_v53  ;;  %v3615_v53 = vsel %vm3607_vm7, 1, %v7631_v6 }
0x2559   :  { %v3351_v19 = vpop.permute.xlu1 %3350 }
0x255a   :  { %v3353_v22 = vmul.f32 %v7486_v18, %v3351_v19 }
0x255c   :  { %3355 = vrot.lane.b32.xlu0 %v3353_v22, %s7625_s17 }
0x25ce   :  { %v3356_v24 = vpop.permute.xlu0 %3355 }
0x25cf   :  { %v9352_v36 = vadd.f32 %v3356_v24, %v3348_v44 }
0x25d1   :  { %7487 = vtanh.f32 %v9352_v36 }
0x25db   :  { %v7488_v47 = vpop.eup %7487 }
0x25dc   :  { %3361 = vrot.lane.b32.xlu1 %v7488_v47, %s7629_s23 }
0x25e0   :  { %3493 = vrot.lane.b32.xlu1 %v9325_v54, %s7625_s17 }
0x264e   :  { %v3362_v37 = vpop.permute.xlu1 %3361 }
0x264f   :  { %v9358_v38 = vmul.f32 %v7486_v18, %v3362_v37 }
0x2651   :  { %3366 = vrot.lane.b32.xlu0 %v9358_v38, %s7630_s24 }
0x2652   :  { %v3494_v8 = vpop.permute.xlu1 %3493 }
0x2655   :  { %3502 = vrot.lane.b32.xlu0 %v9333_v39, %s7629_s23 }
0x26c3   :  { %v3367_v32 = vpop.permute.xlu0 %3366 }
0x26c4   :  { %v3370_v26 = vsel %vm60_vm2, %v3369_v3, %v3367_v32  ;;  %v3534_v3 = vld [vmem:[#allocation2] sm:$0x3] }
0x26c5   :  { %5977 = vmatmul.mubr.msk.f32.vlgmr.msra.gmra.mrb[14].mxu0 %vm62_vm3, %v3370_v26 }
0x26c6   :  { %6564 = vmatprep.mubr.msk.f32.mxu0 %vm7627_vm0, %v7628_v7 }
0x26c7   :  { %v3503_v45 = vpop.permute.xlu0 %3502 }
0x2798   :  { %v3476_v0 = vpop.f32.mrb[14].mxu0 }
0x2799   :  { %v9377_v48 = vadd.f32 %v3476_v0, %v3400_v42  ;;  %v9379_v43 = vpop.f32.mrb[15].mxu0 }
0x279a   :  { %v3479_v9 = vadd.f32 %v9379_v43, %v3404_v11  ;;  %v3706_v11 = vld [vmem:[%s10550_s6 + $0x10] sm:$0xff] }
0x279b   :  { %v5978_v50 = vmul.f32 -1.442695, %v9377_v48 }
0x279c   :  { %v5979_v10 = vmul.f32 -1.442695, %v3479_v9 }
0x279d   :  { %7489 = vpow2.f32 %v5978_v50  ;;  %v3536_v50 = vld [vmem:[#allocation2 + $0x4] sm:$0x3] }
0x27a7   :  { %v7490_v40 = vpop.eup %7489 }
0x27a8   :  { %v3485_v20 = vadd.f32 1.0, %v7490_v40 }
0x27aa   :  { %7491 = vrcp.f32 %v3485_v20 }
0x27ab   :  { %7493 = vpow2.f32 %v5979_v10  ;;  %v3540_v10 = vld [vmem:[#allocation2 + $0xc] sm:$0x3] }
0x27ac   :  { %7495 = vtanh.f32 %v9377_v48 }
0x27b4   :  { %v7492_v49 = vpop.eup %7491 }
0x27b5   :  { %3489 = vrot.lane.b32.xlu1 %v7492_v49, %s7630_s24  ;;  %v3496_v62 = vmul.f32 %v7492_v49, %v3494_v8  ;;  %v3505_v55 = vmul.f32 %v7492_v49, %v3503_v45  ;;  %v7494_v1 = vpop.eup %7493  ;;  %v3537_v49 = vld [vmem:[#allocation2 + $0x6] sm:$0x3] }
0x27b6   :  { %v7496_v35 = vpop.eup %7495  ;;  %v3514_v57 = vadd.f32 1.0, %v7494_v1 }
0x27b7   :  { %3498 = vrot.lane.b32.xlu0 %v3496_v62, %s7629_s23 }
0x27b8   :  { %7497 = vrcp.f32 %v3514_v57 }
0x27b9   :  { %3507 = vrot.lane.b32.xlu1 %v3505_v55, %s7625_s17  ;;  %v3538_v55 = vld [vmem:[#allocation2 + $0x8] sm:$0x3] }
0x27bb   :  { %3551 = vperm.xlu0 %7340, %v3542_v34  }
0x27bd   :  { %3554 = vperm.xlu1 %7339, %v3543_v33  }
0x27bf   :  { %3617 = vperm.xlu0 %7340, %v3608_v21  }
0x27c1   :  { %3620 = vperm.xlu1 %7339, %v3609_v23  }
0x27c2   :  { %v7498_v44 = vpop.eup %7497 }
0x27c3   :  { %3557 = vperm.xlu0 %7340, %v3544_v29  }
0x27c5   :  { %3623 = vperm.xlu1 %7339, %v3610_v52  }
0x27c7   :  { %3560 = vperm.xlu0 %7340, %v3545_v17  }
0x27c9   :  { %3626 = vperm.xlu1 %7339, %v3611_v59  }
0x27cb   :  { %3563 = vperm.xlu0 %7340, %v3546_v15  }
0x27cd   :  { %3629 = vperm.xlu1 %7339, %v3612_v61   ;;  %v3539_v61 = vld [vmem:[#allocation2 + $0xa] sm:$0x3] }
0x27cf   :  { %3566 = vperm.xlu0 %7340, %v3547_v51  }
0x27d1   :  { %3632 = vperm.xlu1 %7339, %v3613_v56  }
0x27d3   :  { %3569 = vperm.xlu0 %7340, %v3548_v63  }
0x27d5   :  { %3635 = vperm.xlu1 %7339, %v3614_v30  }
0x27d7   :  { %3572 = vperm.xlu0 %7340, %v3549_v16  }
0x27d9   :  { %3638 = vperm.xlu1 %7339, %v3615_v53  }
0x27db   :  { %3673 = vperm.xlu0 %7340, %v3671_v58   ;;  %v3704_v58 = vld [vmem:[%s10550_s6] sm:$0xff] }
0x27dd   :  { %3679 = vperm.xlu1 %7339, %v3677_v60   ;;  %v3705_v60 = vld [vmem:[%s10550_s6 + $0x8] sm:$0xff] }
0x27de   :  { %v9448_v1 = vpack.c.bf16 %v3705_v60, %v3704_v58 }
0x27e0   :  { %7093 = vmatpush3.bf16.msra.mxu0 %v9448_v1 }
0x27e1   :  { %7094 = vmatprep.subr.bf16.mxu0 %v7626_v2 }
0x2827   :  { %v3490_v4 = vpop.permute.xlu1 %3489 }
0x2828   :  { %v3492_v13 = vmul.f32 %v7496_v35, %v3490_v4  ;;  %v3707_v35 = vld [vmem:[%s10550_s6 + $0x18] sm:$0xff] }
0x2829   :  { %v3499_v12 = vpop.permute.xlu0 %3498 }
0x282a   :  { %v3501_v18 = vadd.f32 %v3499_v12, %v3492_v13 }
0x282b   :  { %v3508_v19 = vpop.permute.xlu1 %3507 }
0x282c   :  { %v3510_v22 = vadd.f32 %v3508_v19, %v3501_v18  ;;  %v9457_v18 = vpack.c.bf16 %v3707_v35, %v3706_v11 }
0x282e   :  { %7499 = vtanh.f32 %v3510_v22  ;;  %3520 = vrot.lane.b32.xlu0 %v3510_v22, %s7625_s17  ;;  %7096 = vmatpush3.bf16.msra.mxu0 %v9457_v18 }
0x282f   :  { %7097 = vmatprep.subr.bf16.mxu0 %v7626_v2 }
0x2838   :  { %v7500_v24 = vpop.eup %7499 }
0x2839   :  { %v9420_v47 = vmul.f32 %v7500_v24, %v7498_v44  ;;  %v3708_v24 = vld [vmem:[%s10550_s6 + $0x20] sm:$0xff] }
0x283a   :  { %v3552_v37 = vpop.permute.xlu0 %3551 }
0x283b   :  { %vm3574_vm11 = vcmp.eq.s32.totalorder %v3552_v37, 1  ;;  %v3709_v37 = vld [vmem:[%s10550_s6 + $0x28] sm:$0xff] }
0x283c   :  { %v3555_v32 = vpop.permute.xlu1 %3554  ;;  %v3582_v26 = vsel %vm3574_vm11, %v9325_v54, %v3534_v3 }
0x283d   :  { %vm3575_vm12 = vcmp.eq.s32.totalorder %v3555_v32, 1  ;;  %3590 = vst.msk [vmem:[#allocation2] sm:$0x3] %vm36_vm9, %v3582_v26  ;;  %v3541_v32 = vld [vmem:[#allocation2 + $0xe] sm:$0x3] }
0x283e   :  { %v3618_v42 = vpop.permute.xlu0 %3617  ;;  %v3583_v0 = vsel %vm3575_vm12, %v9325_v54, %v3535_v41 }
0x283f   :  { %3591 = vst.msk [vmem:[#allocation2 + $0x2] sm:$0x3] %vm36_vm9, %v3583_v0  ;;  %vm3640_vm4 = vcmp.eq.s32.totalorder %v3618_v42, 1 }
0x2840   :  { %v3621_v48 = vpop.permute.xlu1 %3620  ;;  %v3648_v34 = vsel %vm3640_vm4, %v3582_v26, 0.0 }
0x2841   :  { %vm3641_vm14 = vcmp.eq.s32.totalorder %v3621_v48, 1  ;;  %v3656_v59 = vsel %vm36_vm9, %v3648_v34, 0.0 }
0x2842   :  { %v3558_v43 = vpop.permute.xlu0 %3557  ;;  %v3649_v45 = vsel %vm3641_vm14, %v3583_v0, 0.0  ;;  %v9470_v0 = vpack.c.bf16 %v3709_v37, %v3708_v24  ;;  %v3830_v24 = vld [vmem:[%s10552_s8 + $0x18] sm:$0xff]  ;;  %v3827_v37 = vld [vmem:[%s10552_s8] sm:$0xff] }
0x2843   :  { %vm3576_vm13 = vcmp.eq.s32.totalorder %v3558_v43, 1  ;;  %v3657_v29 = vsel %vm36_vm9, %v3649_v45, 0.0 }
0x2844   :  { %v3624_v40 = vpop.permute.xlu1 %3623  ;;  %v3584_v20 = vsel %vm3576_vm13, %v9325_v54, %v3536_v50  ;;  %v3658_v51 = vadd.f32 %v3657_v29, %v3656_v59  ;;  %7099 = vmatpush3.bf16.msra.mxu0 %v9470_v0  ;;  %v3716_v29 = vld [vmem:[%s10550_s6 + $0x60] sm:$0xff]  ;;  %v3718_v59 = vld [vmem:[%s10550_s6 + $0x70] sm:$0xff] }
0x2845   :  { %3592 = vst.msk [vmem:[#allocation2 + $0x4] sm:$0x3] %vm36_vm9, %v3584_v20  ;;  %vm3642_vm5 = vcmp.eq.s32.totalorder %v3624_v40, 1  ;;  %v3710_v40 = vld [vmem:[%s10550_s6 + $0x30] sm:$0xff]  ;;  %7100 = vmatprep.subr.bf16.mxu0 %v7626_v2 }
0x2846   :  { %v3561_v46 = vpop.permute.xlu0 %3560  ;;  %v3650_v33 = vsel %vm3642_vm5, %v3584_v20, 0.0  ;;  %v3711_v20 = vld [vmem:[%s10550_s6 + $0x38] sm:$0xff] }
0x2847   :  { %vm3577_vm15 = vcmp.eq.s32.totalorder %v3561_v46, 1  ;;  %v3659_v15 = vsel %vm36_vm9, %v3650_v33, 0.0  ;;  %v3714_v33 = vld [vmem:[%s10550_s6 + $0x50] sm:$0xff] }
0x2848   :  { %v3627_v8 = vpop.permute.xlu1 %3626  ;;  %v3585_v62 = vsel %vm3577_vm15, %v9325_v54, %v3537_v49  ;;  %v3660_v16 = vadd.f32 %v3659_v15, %v3658_v51  ;;  %v3719_v15 = vld [vmem:[%s10550_s6 + $0x78] sm:$0xff] }
0x2849   :  { %3593 = vst.msk [vmem:[#allocation2 + $0x6] sm:$0x3] %vm36_vm9, %v3585_v62  ;;  %vm3643_vm6 = vcmp.eq.s32.totalorder %v3627_v8, 1 }
0x284a   :  { %v3564_v27 = vpop.permute.xlu0 %3563  ;;  %v3651_v52 = vsel %vm3643_vm6, %v3585_v62, 0.0  ;;  %v9481_v62 = vpack.c.bf16 %v3711_v20, %v3710_v40  ;;  %v3838_v40 = vld [vmem:[%s10552_s8 + $0x58] sm:$0xff] }
0x284b   :  { %vm3578_vm7 = vcmp.eq.s32.totalorder %v3564_v27, 1  ;;  %v3661_v31 = vsel %vm36_vm9, %v3651_v52, 0.0  ;;  %v3712_v27 = vld [vmem:[%s10550_s6 + $0x40] sm:$0xff]  ;;  %v3717_v52 = vld [vmem:[%s10550_s6 + $0x68] sm:$0xff] }
0x284c   :  { %v3630_v21 = vpop.permute.xlu1 %3629  ;;  %v3586_v23 = vsel %vm3578_vm7, %v9325_v54, %v3538_v55  ;;  %v3662_v4 = vadd.f32 %v3661_v31, %v3660_v16  ;;  %v3713_v55 = vld [vmem:[%s10550_s6 + $0x48] sm:$0xff]  ;;  %7102 = vmatpush3.bf16.msra.mxu0 %v9481_v62  ;;  %v9546_v31 = vld [vmem:[%s10548_s4 + $0x10] sm:$0x3] }
0x284d   :  { %3594 = vst.msk [vmem:[#allocation2 + $0x8] sm:$0x3] %vm36_vm9, %v3586_v23  ;;  %vm3644_vm8 = vcmp.eq.s32.totalorder %v3630_v21, 1  ;;  %7103 = vmatprep.subr.bf16.mxu0 %v7626_v2  ;;  %v3715_v21 = vld [vmem:[%s10550_s6 + $0x58] sm:$0xff] }
0x284e   :  { %v3567_v17 = vpop.permute.xlu0 %3566  ;;  %v3652_v56 = vsel %vm3644_vm8, %v3586_v23, 0.0  ;;  %v9509_v23 = vpack.c.bf16 %v3715_v21, %v3714_v33 }
0x284f   :  { %vm3579_vm10 = vcmp.eq.s32.totalorder %v3567_v17, 1  ;;  %v3663_v9 = vsel %vm36_vm9, %v3652_v56, 0.0  ;;  %v9519_v17 = vpack.c.bf16 %v3717_v52, %v3716_v29  ;;  %v3839_v29 = vld [vmem:[%s10552_s8 + $0x60] sm:$0xff]  ;;  %v3841_v52 = vld [vmem:[%s10552_s8 + $0x70] sm:$0xff] }
0x2850   :  { %v3633_v63 = vpop.permute.xlu1 %3632  ;;  %v3587_v30 = vsel %vm3579_vm10, %v9325_v54, %v3539_v61  ;;  %v3664_v19 = vadd.f32 %v3663_v9, %v3662_v4  ;;  %v9530_v61 = vpack.c.bf16 %v3719_v15, %v3718_v59  ;;  %v3844_v59 = vld [vmem:[%s10552_s8 + $0x88] sm:$0xff]  ;;  %v3846_v15 = vld [vmem:[%s10552_s8 + $0x98] sm:$0xff] }
0x2851   :  { %3595 = vst.msk [vmem:[#allocation2 + $0xa] sm:$0x3] %vm36_vm9, %v3587_v30  ;;  %vm3645_vm11 = vcmp.eq.s32.totalorder %v3633_v63, 1 }
0x2852   :  { %v3653_v28 = vsel %vm3645_vm11, %v3587_v30, 0.0  ;;  %v3570_v53 = vpop.permute.xlu0 %3569 }
0x2853   :  { %vm3580_vm12 = vcmp.eq.s32.totalorder %v3570_v53, 1  ;;  %v3665_v12 = vsel %vm36_vm9, %v3653_v28, 0.0  ;;  %v9560_v53 = vld [vmem:[%s10551_s7] ss:$0 sm:$0xff] }
0x2854   :  { %v3636_v13 = vpop.permute.xlu1 %3635  ;;  %v3588_v57 = vsel %vm3580_vm12, %v9325_v54, %v3540_v10  ;;  %v3666_v26 = vadd.f32 %v3665_v12, %v3664_v19 }
0x2855   :  { %3596 = vst.msk [vmem:[#allocation2 + $0xc] sm:$0x3] %vm36_vm9, %v3588_v57  ;;  %vm3646_vm13 = vcmp.eq.s32.totalorder %v3636_v13, 1 }
0x2856   :  { %v3654_v22 = vsel %vm3646_vm13, %v3588_v57, 0.0  ;;  %v3573_v44 = vpop.permute.xlu0 %3572 }
0x2857   :  { %v3667_v3 = vsel %vm36_vm9, %v3654_v22, 0.0  ;;  %vm3581_vm14 = vcmp.eq.s32.totalorder %v3573_v44, 1  ;;  %v3828_v44 = vld [vmem:[%s10552_s8 + $0x8] sm:$0xff] }
0x2858   :  { %v3639_v41 = vpop.permute.xlu1 %3638  ;;  %v3589_v42 = vsel %vm3581_vm14, %v9325_v54, %v3541_v32  ;;  %v3668_v48 = vadd.f32 %v3667_v3, %v3666_v26  ;;  %v7115_v3 = vpack.c.bf16 %v3830_v24, %v3828_v44  ;;  %v3832_v32 = vld [vmem:[%s10552_s8 + $0x28] sm:$0xff]  ;;  %v3834_v26 = vld [vmem:[%s10552_s8 + $0x38] sm:$0xff]  ;;  %v5991_v24 = vld [vmem:[%s10547_s3 + $0x10] sm:$0x3] }
0x2859   :  { %3597 = vst.msk [vmem:[#allocation2 + $0xe] sm:$0x3] %vm36_vm9, %v3589_v42  ;;  %vm3647_vm15 = vcmp.eq.s32.totalorder %v3639_v41, 1  ;;  %vm4056_vm8 = vcmp.eq.s32.totalorder %v5991_v24, 0  ;;  %vm4057_vm10 = vcmp.eq.s32.totalorder %v5991_v24, 1  ;;  %vm4058_vm12 = vcmp.eq.s32.totalorder %v5991_v24, 2 }
0x285a   :  { %v3655_v43 = vsel %vm3647_vm15, %v3589_v42, 0.0  ;;  %v3674_v50 = vpop.permute.xlu0 %3673  ;;  %v7119_v42 = vpack.c.bf16 %v3834_v26, %v3832_v32  ;;  %7116 = vmatprep.subr.bf16.mxu1 %v7115_v3  ;;  %v4064_v32 = vsel %vm4056_vm8, 1, %v7631_v6  ;;  %v4065_v26 = vsel %vm4057_vm10, 1, %v7631_v6 }
0x285b   :  { %v3669_v46 = vsel %vm36_vm9, %v3655_v43, 0.0  ;;  %vm3675_vm4 = vcmp.eq.s32.totalorder %v3674_v50, 1  ;;  %v3833_v43 = vld [vmem:[%s10552_s8 + $0x30] sm:$0xff]  ;;  %v3836_v50 = vld [vmem:[%s10552_s8 + $0x48] sm:$0xff]  ;;  %vm4059_vm14 = vcmp.eq.s32.totalorder %v5991_v24, 3  ;;  %vm4062_vm8 = vcmp.eq.s32.totalorder %v5991_v24, 6 }
0x285c   :  { %v3670_v49 = vadd.f32 %v3669_v46, %v3668_v48  ;;  %v3680_v8 = vpop.permute.xlu1 %3679  ;;  %v3831_v48 = vld [vmem:[%s10552_s8 + $0x20] sm:$0xff]  ;;  %v7123_v46 = vpack.c.bf16 %v3838_v40, %v3836_v50 }
0x285d   :  { %vm3681_vm5 = vcmp.eq.s32.totalorder %v3680_v8, 1  ;;  %v7121_v20 = vpack.c.bf16 %v3833_v43, %v3831_v48  ;;  %v3837_v8 = vld [vmem:[%s10552_s8 + $0x50] sm:$0xff]  ;;  %v4067_v43 = vsel %vm4059_vm14, 1, %v7631_v6 }
0x285e   :  { %v3683_v45 = vsel %vm3675_vm4, %v3670_v49, %v9325_v54  ;;  %v9499_v54 = vpack.c.bf16 %v3713_v55, %v3712_v27  ;;  %v3835_v49 = vld [vmem:[%s10552_s8 + $0x40] sm:$0xff]  ;;  %v3840_v27 = vld [vmem:[%s10552_s8 + $0x68] sm:$0xff]  ;;  %v3842_v55 = vld [vmem:[%s10552_s8 + $0x78] sm:$0xff] }
0x285f   :  { %v9494_v34 = vsel %vm3681_vm5, %v9333_v39, %v3683_v45  ;;  %v7125_v33 = vpack.c.bf16 %v3837_v8, %v3835_v49  ;;  %v7127_v21 = vpack.c.bf16 %v3842_v55, %v3840_v27  ;;  %v4070_v8 = vsel %vm4062_vm8, 1, %v7631_v6  ;;  %v5982_v55 = vld [vmem:[%s10544_s0 + $0x10] sm:$0x3] }
0x2860   :  { %3698 = vrot.lane.b32.xlu0 %v9494_v34, %s7629_s23  ;;  %7105 = vmatpush3.bf16.msra.mxu0 %v9499_v54 }
0x2861   :  { %7106 = vmatprep.subr.bf16.mxu0 %v7626_v2 }
0x2864   :  { %7108 = vmatpush3.bf16.msra.mxu0 %v9509_v23 }
0x2865   :  { %7109 = vmatprep.subr.bf16.mxu0 %v7626_v2 }
0x2868   :  { %7111 = vmatpush3.bf16.msra.mxu0 %v9519_v17 }
0x2869   :  { %7112 = vmatprep.subr.bf16.mxu0 %v7626_v2 }
0x286c   :  { %7114 = vmatpush3.bf16.msra.mxu0 %v9530_v61 }
0x286d   :  { %7164 = vmatprep.subr.bf16.mxu0 %v7115_v3 }
0x28a0   :  { %v3521_v51 = vpop.permute.xlu0 %3520 }
0x28a1   :  { %v3523_v56 = vsel %vm58_vm1, %v9420_v47, %v3521_v51  ;;  %v7129_v51 = vpack.c.bf16 %v3841_v52, %v3839_v29 }
0x28a2   :  { %v3676_v63 = vsel %vm3675_vm4, %v3523_v56, %v9333_v39  ;;  %v7131_v56 = vpack.c.bf16 %v3846_v15, %v3844_v59  ;;  %vm4060_vm4 = vcmp.eq.s32.totalorder %v5991_v24, 4 }
0x28a3   :  { %v9539_v30 = vsel %vm3681_vm5, %v9340_v25, %v3676_v63  ;;  %v3843_v63 = vld [vmem:[%s10552_s8 + $0x80] sm:$0xff]  ;;  %v4068_v40 = vsel %vm4060_vm4, 1, %v7631_v6 }
0x28a4   :  { %3694 = vrot.lane.b32.xlu1 %v9539_v30, %s7625_s17 }
0x28d2   :  { %v3699_v28 = vpop.permute.xlu0 %3698 }
0x2916   :  { %v9548_v16 = vpop.permute.xlu1 %3694 }
0x2917   :  { %v3701_v47 = vsel %vm58_vm1, %v9546_v31, %v9548_v16 }
0x2918   :  { %v3702_v39 = vsel %vm60_vm2, %v3701_v47, %v3699_v28  ;;  %v3845_v28 = vld [vmem:[%s10552_s8 + $0x90] sm:$0xff]  ;;  %v3848_v47 = vld [vmem:[%s10552_s8 + $0xa8] sm:$0xff] }
0x2919   :  { %v3703_v25 = vsel %vm62_vm3, %v3702_v39, %v9358_v38  ;;  %v3850_v39 = vld [vmem:[%s10552_s8 + $0xb8] sm:$0xff] }
0x291a   :  { %6565 = vmatmul.mubr.f32.vlgmr.msra.gmra.mrb[16].mxu0 %v3703_v25  ;;  %v7133_v25 = vpack.c.bf16 %v3845_v28, %v3843_v63 }
0x291b   :  { %4386 = vmatprep.mubr.f32.mxu0 %v7628_v7 }
0x29ed   :  { %v3793_v58 = vpop.f32.mrb[16].mxu0 }
0x29ee   :  { %v3794_v60 = vadd.f32 %v9560_v53, %v3793_v58  ;;  %v6566_v11 = vpop.f32.mrb[17].mxu0  ;;  %v7135_v58 = vpack.c.bf16 %v3850_v39, %v3848_v47 }
0x29ef   :  { %v3849_v11 = vld [vmem:[%s10552_s8 + $0xb0] sm:$0xff] }
0x29f0   :  { %7501 = vtanh.f32 %v3794_v60  ;;  %v5986_v10 = vmul.f32 -1.442695, %v3794_v60  ;;  %v3847_v60 = vld [vmem:[%s10552_s8 + $0xa0] sm:$0xff] }
0x29f2   :  { %7503 = vpow2.f32 %v5986_v10 }
0x29fa   :  { %v7502_v9 = vpop.eup %7501 }
0x29fb   :  { %3806 = vrot.lane.b32.xlu1 %v7502_v9, %s7629_s23  ;;  %v7137_v9 = vpack.c.bf16 %v3849_v11, %v3847_v60 }
0x29fc   :  { %v7504_v35 = vpop.eup %7503 }
0x29fd   :  { %v3800_v38 = vadd.f32 1.0, %v7504_v35 }
0x29ff   :  { %7505 = vrcp.f32 %v3800_v38  ;;  %v3825_v38 = vsel %vm58_vm1, %v9494_v34, %v9548_v16 }
0x2a09   :  { %v9564_v4 = vpop.eup %7505 }
0x2a0a   :  { %v3804_v12 = vmul.f32 %v9564_v4, %v9352_v36  ;;  %v3829_v36 = vld [vmem:[%s10552_s8 + $0x10] sm:$0xff] }
0x2a0b   :  { %v7117_v41 = vpack.c.bf16 %v3829_v36, %v3827_v37 }
0x2a0d   :  { %7118 = vmatpush1.bf16.msra.mxu1 %v7117_v41  ;;  %7166 = vmatpush1.bf16.msra.mxu0 %v7117_v41 }
0x2a0e   :  { %7120 = vmatprep.subr.bf16.mxu1 %v7119_v42  ;;  %7168 = vmatprep.subr.bf16.mxu0 %v7119_v42  ;;  %v4066_v42 = vsel %vm4058_vm12, 1, %v7631_v6 }
0x2a11   :  { %7122 = vmatpush1.bf16.msra.mxu1 %v7121_v20  ;;  %7170 = vmatpush1.bf16.msra.mxu0 %v7121_v20 }
0x2a12   :  { %7124 = vmatprep.subr.bf16.mxu1 %v7123_v46  ;;  %7172 = vmatprep.subr.bf16.mxu0 %v7123_v46 }
0x2a15   :  { %7126 = vmatpush1.bf16.msra.mxu1 %v7125_v33  ;;  %7174 = vmatpush1.bf16.msra.mxu0 %v7125_v33 }
0x2a16   :  { %7128 = vmatprep.subr.bf16.mxu1 %v7127_v21  ;;  %7176 = vmatprep.subr.bf16.mxu0 %v7127_v21 }
0x2a19   :  { %7130 = vmatpush1.bf16.msra.mxu1 %v7129_v51  ;;  %7178 = vmatpush1.bf16.msra.mxu0 %v7129_v51 }
0x2a1a   :  { %7132 = vmatprep.subr.bf16.mxu1 %v7131_v56  ;;  %7180 = vmatprep.subr.bf16.mxu0 %v7131_v56 }
0x2a1d   :  { %7134 = vmatpush1.bf16.msra.mxu1 %v7133_v25  ;;  %7182 = vmatpush1.bf16.msra.mxu0 %v7133_v25 }
0x2a1e   :  { %7136 = vmatprep.subr.bf16.mxu1 %v7135_v58  ;;  %7184 = vmatprep.subr.bf16.mxu0 %v7135_v58 }
0x2a21   :  { %7138 = vmatpush1.bf16.msra.mxu1 %v7137_v9  ;;  %7186 = vmatpush1.bf16.msra.mxu0 %v7137_v9 }
0x2a22   :  { %7139 = vmatprep.subr.bf16.mxu1 %v7626_v2  ;;  %7187 = vmatprep.subr.bf16.mxu0 %v7626_v2 }
0x2a6d   :  { %v3807_v13 = vpop.permute.xlu1 %3806 }
0x2a6e   :  { %v3809_v57 = vmul.f32 %v9564_v4, %v3807_v13 }
0x2a70   :  { %3811 = vrot.lane.b32.xlu0 %v3809_v57, %s7625_s17 }
0x2ae2   :  { %v3812_v19 = vpop.permute.xlu0 %3811 }
0x2ae3   :  { %v9570_v22 = vadd.f32 %v3812_v19, %v3804_v12 }
0x2ae5   :  { %7507 = vtanh.f32 %v9570_v22 }
0x2aef   :  { %v7508_v45 = vpop.eup %7507 }
0x2af0   :  { %3817 = vrot.lane.b32.xlu1 %v7508_v45, %s7629_s23  ;;  %v5983_v45 = vld [vmem:[%s10545_s1 + $0x10] sm:$0x3] }
0x2af1   :  { %vm3690_vm12 = vcmp.ne.s32.totalorder %v5983_v45, 0 }
0x2af2   :  { %v4127_v21 = vsel %vm3690_vm12, 1, %v7631_v6 }
0x2af4   :  { %3949 = vrot.lane.b32.xlu1 %v9494_v34, %s7625_s17 }
0x2b62   :  { %v3818_v10 = vpop.permute.xlu1 %3817 }
0x2b63   :  { %v9651_v35 = vmul.f32 %v9564_v4, %v3818_v10 }
0x2b65   :  { %3822 = vrot.lane.b32.xlu0 %v9651_v35, %s7630_s24 }
0x2b66   :  { %v3950_v12 = vpop.permute.xlu1 %3949 }
0x2b69   :  { %3958 = vrot.lane.b32.xlu0 %v9539_v30, %s7629_s23 }
0x2bd7   :  { %v3823_v13 = vpop.permute.xlu0 %3822 }
0x2bd8   :  { %v3826_v57 = vsel %vm60_vm2, %v3825_v38, %v3823_v13  ;;  %v3990_v13 = vld [vmem:[#allocation2] sm:$0x3] }
0x2bd9   :  { %5987 = vmatmul.mubr.msk.f32.vlgmr.msra.gmra.mrb[16].mxu1 %vm62_vm3, %v3826_v57 }
0x2bda   :  { %7141 = vmatpush3.bf16.msra.mxu1 %v9448_v1  ;;  %6599 = vmatprep.mubr.msk.f32.mxu1 %vm7627_vm0, %v7628_v7  ;;  %v9682_v1 = vld [vmem:[%s10553_s9] sm:$0x3] }
0x2bdb   :  { %7142 = vmatprep.subr.bf16.mxu1 %v7626_v2  ;;  %v3959_v44 = vpop.permute.xlu0 %3958  ;;  %v3860_v52 = vrot.slane %v9682_v1, %v7994_v5 }
0x2bde   :  { %7144 = vmatpush3.bf16.msra.mxu1 %v9457_v18  ;;  %v3856_v18 = vrot.slane %v9682_v1, %v7918_v14 }
0x2bdf   :  { %7145 = vmatprep.subr.bf16.mxu1 %v7626_v2 }
0x2be2   :  { %7147 = vmatpush3.bf16.msra.mxu1 %v9470_v0 }
0x2be3   :  { %7148 = vmatprep.subr.bf16.mxu1 %v7626_v2 }
0x2be6   :  { %7150 = vmatpush3.bf16.msra.mxu1 %v9481_v62 }
0x2be7   :  { %7151 = vmatprep.subr.bf16.mxu1 %v7626_v2 }
0x2bea   :  { %7153 = vmatpush3.bf16.msra.mxu1 %v9499_v54 }
0x2beb   :  { %7154 = vmatprep.subr.bf16.mxu1 %v7626_v2 }
0x2bee   :  { %7156 = vmatpush3.bf16.msra.mxu1 %v9509_v23 }
0x2bef   :  { %7157 = vmatprep.subr.bf16.mxu1 %v7626_v2 }
0x2bf2   :  { %7159 = vmatpush3.bf16.msra.mxu1 %v9519_v17 }
0x2bf3   :  { %7160 = vmatprep.subr.bf16.mxu1 %v7626_v2 }
0x2bf6   :  { %7162 = vmatpush3.bf16.msra.mxu1 %v9530_v61  ;;  %v5990_v61 = vld [vmem:[%s10546_s2 + $0x10] sm:$0x3] }
0x2bf7   :  { %vm3982_vm6 = vcmp.eq.s32.totalorder %v5990_v61, 0  ;;  %vm3983_vm7 = vcmp.eq.s32.totalorder %v5990_v61, 1  ;;  %vm3984_vm11 = vcmp.eq.s32.totalorder %v5990_v61, 2  ;;  %vm3985_vm13 = vcmp.eq.s32.totalorder %v5990_v61, 3 }
0x2bf8   :  { %v3998_v3 = vsel %vm3982_vm6, 1, %v7631_v6  ;;  %v3999_v36 = vsel %vm3983_vm7, 1, %v7631_v6  ;;  %v4000_v41 = vsel %vm3984_vm11, 1, %v7631_v6  ;;  %v4001_v48 = vsel %vm3985_vm13, 1, %v7631_v6 }
0x2bf9   :  { %vm3986_vm15 = vcmp.eq.s32.totalorder %v5990_v61, 4  ;;  %vm3987_vm5 = vcmp.eq.s32.totalorder %v5990_v61, 5  ;;  %vm4061_vm6 = vcmp.eq.s32.totalorder %v5991_v24, 5  ;;  %vm3988_vm7 = vcmp.eq.s32.totalorder %v5990_v61, 6 }
0x2bfa   :  { %v4002_v50 = vsel %vm3986_vm15, 1, %v7631_v6  ;;  %v4003_v20 = vsel %vm3987_vm5, 1, %v7631_v6  ;;  %v4069_v46 = vsel %vm4061_vm6, 1, %v7631_v6  ;;  %v4004_v49 = vsel %vm3988_vm7, 1, %v7631_v6 }
0x2bfb   :  { %vm3989_vm10 = vcmp.eq.s32.totalorder %v5990_v61, 7  ;;  %vm4063_vm11 = vcmp.eq.s32.totalorder %v5991_v24, 7  ;;  %vm3687_vm13 = vcmp.ne.s32.totalorder %v5982_v55, 0 }
0x2bfc   :  { %v4005_v27 = vsel %vm3989_vm10, 1, %v7631_v6  ;;  %v4071_v33 = vsel %vm4063_vm11, 1, %v7631_v6  ;;  %v4133_v29 = vsel %vm3687_vm13, 1, %v7631_v6 }
0x2cac   :  { %v3932_v0 = vpop.f32.mrb[16].mxu1 }
0x2cad   :  { %v9686_v62 = vadd.f32 %v3932_v0, %v3856_v18  ;;  %v9688_v54 = vpop.f32.mrb[17].mxu1  ;;  %v3991_v18 = vld [vmem:[#allocation2 + $0x2] sm:$0x3] }
0x2cae   :  { %v3935_v59 = vadd.f32 %v9688_v54, %v3860_v52  ;;  %v3996_v52 = vld [vmem:[#allocation2 + $0xc] sm:$0x3] }
0x2caf   :  { %v5988_v23 = vmul.f32 -1.442695, %v9686_v62 }
0x2cb0   :  { %v5989_v15 = vmul.f32 -1.442695, %v3935_v59 }
0x2cb1   :  { %7509 = vpow2.f32 %v5988_v23 }
0x2cbb   :  { %v7510_v17 = vpop.eup %7509 }
0x2cbc   :  { %v3941_v16 = vadd.f32 1.0, %v7510_v17  ;;  %v3992_v17 = vld [vmem:[#allocation2 + $0x4] sm:$0x3] }
0x2cbe   :  { %7511 = vrcp.f32 %v3941_v16 }
0x2cbf   :  { %7513 = vpow2.f32 %v5989_v15 }
0x2cc0   :  { %7515 = vtanh.f32 %v9686_v62 }
0x2cc8   :  { %v7512_v4 = vpop.eup %7511 }
0x2cc9   :  { %3945 = vrot.lane.b32.xlu1 %v7512_v4, %s7630_s24  ;;  %v3952_v19 = vmul.f32 %v7512_v4, %v3950_v12  ;;  %v3961_v37 = vmul.f32 %v7512_v4, %v3959_v44  ;;  %v7514_v51 = vpop.eup %7513  ;;  %v3993_v12 = vld [vmem:[#allocation2 + $0x6] sm:$0x3] }
0x2cca   :  { %v7516_v56 = vpop.eup %7515  ;;  %v3970_v47 = vadd.f32 1.0, %v7514_v51 }
0x2ccb   :  { %3954 = vrot.lane.b32.xlu0 %v3952_v19, %s7629_s23 }
0x2ccc   :  { %7517 = vrcp.f32 %v3970_v47 }
0x2ccd   :  { %3963 = vrot.lane.b32.xlu1 %v3961_v37, %s7625_s17 }
0x2ccf   :  { %4007 = vperm.xlu0 %7340, %v3998_v3   ;;  %v3994_v3 = vld [vmem:[#allocation2 + $0x8] sm:$0x3] }
0x2cd1   :  { %4010 = vperm.xlu1 %7339, %v3999_v36  }
0x2cd3   :  { %4073 = vperm.xlu0 %7340, %v4064_v32  }
0x2cd5   :  { %4076 = vperm.xlu1 %7339, %v4065_v26  }
0x2cd6   :  { %v7518_v11 = vpop.eup %7517 }
0x2cd7   :  { %4013 = vperm.xlu0 %7340, %v4000_v41  }
0x2cd9   :  { %4079 = vperm.xlu1 %7339, %v4066_v42  }
0x2cdb   :  { %4016 = vperm.xlu0 %7340, %v4001_v48  }
0x2cdd   :  { %4082 = vperm.xlu1 %7339, %v4067_v43  }
0x2cdf   :  { %4019 = vperm.xlu0 %7340, %v4002_v50  }
0x2ce1   :  { %4085 = vperm.xlu1 %7339, %v4068_v40  }
0x2ce3   :  { %4022 = vperm.xlu0 %7340, %v4003_v20   ;;  %v3995_v20 = vld [vmem:[#allocation2 + $0xa] sm:$0x3] }
0x2ce5   :  { %4088 = vperm.xlu1 %7339, %v4069_v46  }
0x2ce7   :  { %4025 = vperm.xlu0 %7340, %v4004_v49  }
0x2ce9   :  { %4091 = vperm.xlu1 %7339, %v4070_v8  }
0x2ceb   :  { %4028 = vperm.xlu0 %7340, %v4005_v27  }
0x2ced   :  { %4094 = vperm.xlu1 %7339, %v4071_v33  }
0x2cef   :  { %4129 = vperm.xlu0 %7340, %v4127_v21  }
0x2cf1   :  { %4135 = vperm.xlu1 %7339, %v4133_v29  }
0x2d3b   :  { %v3946_v63 = vpop.permute.xlu1 %3945 }
0x2d3c   :  { %v3948_v28 = vmul.f32 %v7516_v56, %v3946_v63 }
0x2d3d   :  { %v3955_v39 = vpop.permute.xlu0 %3954 }
0x2d3e   :  { %v3957_v25 = vadd.f32 %v3955_v39, %v3948_v28 }
0x2d3f   :  { %v3964_v58 = vpop.permute.xlu1 %3963 }
0x2d40   :  { %v3966_v60 = vadd.f32 %v3964_v58, %v3957_v25  ;;  %v3997_v25 = vld [vmem:[#allocation2 + $0xe] sm:$0x3] }
0x2d42   :  { %7519 = vtanh.f32 %v3966_v60  ;;  %3976 = vrot.lane.b32.xlu0 %v3966_v60, %s7625_s17 }
0x2d4c   :  { %v7520_v9 = vpop.eup %7519 }
0x2d4d   :  { %v9729_v10 = vmul.f32 %v7520_v9, %v7518_v11 }
0x2d4e   :  { %v4008_v38 = vpop.permute.xlu0 %4007 }
0x2d4f   :  { %vm4030_vm14 = vcmp.eq.s32.totalorder %v4008_v38, 1 }
0x2d50   :  { %v4011_v57 = vpop.permute.xlu1 %4010  ;;  %v4038_v1 = vsel %vm4030_vm14, %v9494_v34, %v3990_v13 }
0x2d51   :  { %vm4031_vm15 = vcmp.eq.s32.totalorder %v4011_v57, 1  ;;  %4046 = vst.msk [vmem:[#allocation2] sm:$0x3] %vm36_vm9, %v4038_v1 }
0x2d52   :  { %v4074_v0 = vpop.permute.xlu0 %4073  ;;  %v4039_v62 = vsel %vm4031_vm15, %v9494_v34, %v3991_v18 }
0x2d53   :  { %4047 = vst.msk [vmem:[#allocation2 + $0x2] sm:$0x3] %vm36_vm9, %v4039_v62  ;;  %vm4096_vm7 = vcmp.eq.s32.totalorder %v4074_v0, 1 }
0x2d54   :  { %v4077_v54 = vpop.permute.xlu1 %4076  ;;  %v4104_v36 = vsel %vm4096_vm7, %v4038_v1, 0.0 }
0x2d55   :  { %vm4097_vm5 = vcmp.eq.s32.totalorder %v4077_v54, 1  ;;  %v4112_v50 = vsel %vm36_vm9, %v4104_v36, 0.0 }
0x2d56   :  { %v4014_v23 = vpop.permute.xlu0 %4013  ;;  %v4105_v24 = vsel %vm4097_vm5, %v4039_v62, 0.0 }
0x2d57   :  { %vm4032_vm4 = vcmp.eq.s32.totalorder %v4014_v23, 1  ;;  %v4113_v42 = vsel %vm36_vm9, %v4105_v24, 0.0 }
0x2d58   :  { %v4080_v16 = vpop.permute.xlu1 %4079  ;;  %v4040_v61 = vsel %vm4032_vm4, %v9494_v34, %v3992_v17  ;;  %v4114_v46 = vadd.f32 %v4113_v42, %v4112_v50 }
0x2d59   :  { %4048 = vst.msk [vmem:[#allocation2 + $0x4] sm:$0x3] %vm36_vm9, %v4040_v61  ;;  %vm4098_vm8 = vcmp.eq.s32.totalorder %v4080_v16, 1 }
0x2d5a   :  { %v4017_v4 = vpop.permute.xlu0 %4016  ;;  %v4106_v32 = vsel %vm4098_vm8, %v4040_v61, 0.0 }
0x2d5b   :  { %vm4033_vm6 = vcmp.eq.s32.totalorder %v4017_v4, 1  ;;  %v4115_v40 = vsel %vm36_vm9, %v4106_v32, 0.0 }
0x2d5c   :  { %v4083_v19 = vpop.permute.xlu1 %4082  ;;  %v4041_v44 = vsel %vm4033_vm6, %v9494_v34, %v3993_v12  ;;  %v4116_v55 = vadd.f32 %v4115_v40, %v4114_v46  ;;  %v9805_v46 = vld [vmem:[%s10553_s9] sm:$0x3] }
0x2d5d   :  { %4049 = vst.msk [vmem:[#allocation2 + $0x6] sm:$0x3] %vm36_vm9, %v4041_v44  ;;  %vm4099_vm10 = vcmp.eq.s32.totalorder %v4083_v19, 1 }
0x2d5e   :  { %v4020_v37 = vpop.permute.xlu0 %4019  ;;  %v4107_v48 = vsel %vm4099_vm10, %v4041_v44, 0.0 }
0x2d5f   :  { %vm4034_vm11 = vcmp.eq.s32.totalorder %v4020_v37, 1  ;;  %v4117_v27 = vsel %vm36_vm9, %v4107_v48, 0.0 }
0x2d60   :  { %v4086_v26 = vpop.permute.xlu1 %4085  ;;  %v4042_v41 = vsel %vm4034_vm11, %v9494_v34, %v3994_v3  ;;  %v4118_v59 = vadd.f32 %v4117_v27, %v4116_v55 }
0x2d61   :  { %4050 = vst.msk [vmem:[#allocation2 + $0x8] sm:$0x3] %vm36_vm9, %v4042_v41  ;;  %vm4100_vm12 = vcmp.eq.s32.totalorder %v4086_v26, 1 }
0x2d62   :  { %v4023_v43 = vpop.permute.xlu0 %4022  ;;  %v4108_v49 = vsel %vm4100_vm12, %v4042_v41, 0.0 }
0x2d63   :  { %vm4035_vm13 = vcmp.eq.s32.totalorder %v4023_v43, 1  ;;  %v4119_v29 = vsel %vm36_vm9, %v4108_v49, 0.0  ;;  %v4312_v49 = vrot.slane %v9805_v46, %v7918_v14 }
0x2d64   :  { %v4089_v8 = vpop.permute.xlu1 %4088  ;;  %v4043_v45 = vsel %vm4035_vm13, %v9494_v34, %v3995_v20  ;;  %v4120_v63 = vadd.f32 %v4119_v29, %v4118_v59  ;;  %v6000_v29 = vld [vmem:[%s10546_s2 + $0x12] sm:$0x3] }
0x2d65   :  { %4051 = vst.msk [vmem:[#allocation2 + $0xa] sm:$0x3] %vm36_vm9, %v4043_v45  ;;  %vm4101_vm14 = vcmp.eq.s32.totalorder %v4089_v8, 1  ;;  %vm4438_vm10 = vcmp.eq.s32.totalorder %v6000_v29, 0  ;;  %vm4439_vm11 = vcmp.eq.s32.totalorder %v6000_v29, 1 }
0x2d66   :  { %v4109_v33 = vsel %vm4101_vm14, %v4043_v45, 0.0  ;;  %v4026_v21 = vpop.permute.xlu0 %4025  ;;  %vm4440_vm14 = vcmp.eq.s32.totalorder %v6000_v29, 2 }
0x2d67   :  { %vm4036_vm15 = vcmp.eq.s32.totalorder %v4026_v21, 1  ;;  %v4121_v56 = vsel %vm36_vm9, %v4109_v33, 0.0 }
0x2d68   :  { %v4092_v15 = vpop.permute.xlu1 %4091  ;;  %v4044_v51 = vsel %vm4036_vm15, %v9494_v34, %v3996_v52  ;;  %v4122_v58 = vadd.f32 %v4121_v56, %v4120_v63  ;;  %v6001_v56 = vld [vmem:[%s10547_s3 + $0x12] sm:$0x3] }
0x2d69   :  { %4052 = vst.msk [vmem:[#allocation2 + $0xc] sm:$0x3] %vm36_vm9, %v4044_v51  ;;  %vm4102_vm4 = vcmp.eq.s32.totalorder %v4092_v15, 1  ;;  %vm4512_vm12 = vcmp.eq.s32.totalorder %v6001_v56, 0  ;;  %vm4513_vm13 = vcmp.eq.s32.totalorder %v6001_v56, 1  ;;  %vm4514_vm15 = vcmp.eq.s32.totalorder %v6001_v56, 2 }
0x2d6a   :  { %v4110_v28 = vsel %vm4102_vm4, %v4044_v51, 0.0  ;;  %v4029_v47 = vpop.permute.xlu0 %4028  ;;  %vm4441_vm4 = vcmp.eq.s32.totalorder %v6000_v29, 3 }
0x2d6b   :  { %v4123_v39 = vsel %vm36_vm9, %v4110_v28, 0.0  ;;  %vm4037_vm5 = vcmp.eq.s32.totalorder %v4029_v47, 1  ;;  %v4454_v28 = vsel %vm4438_vm10, 1, %v7631_v6  ;;  %v4455_v47 = vsel %vm4439_vm11, 1, %v7631_v6 }
0x2d6c   :  { %v4095_v60 = vpop.permute.xlu1 %4094  ;;  %v4045_v11 = vsel %vm4037_vm5, %v9494_v34, %v3997_v25  ;;  %v4124_v9 = vadd.f32 %v4123_v39, %v4122_v58  ;;  %v4520_v39 = vsel %vm4512_vm12, 1, %v7631_v6  ;;  %v4521_v25 = vsel %vm4513_vm13, 1, %v7631_v6 }
0x2d6d   :  { %4053 = vst.msk [vmem:[#allocation2 + $0xe] sm:$0x3] %vm36_vm9, %v4045_v11  ;;  %vm4103_vm6 = vcmp.eq.s32.totalorder %v4095_v60, 1  ;;  %v4456_v58 = vsel %vm4440_vm14, 1, %v7631_v6  ;;  %v4522_v60 = vsel %vm4514_vm15, 1, %v7631_v6  ;;  %vm4515_vm5 = vcmp.eq.s32.totalorder %v6001_v56, 3 }
0x2d6e   :  { %v4111_v38 = vsel %vm4103_vm6, %v4045_v11, 0.0  ;;  %v4130_v13 = vpop.permute.xlu0 %4129  ;;  %v4457_v11 = vsel %vm4441_vm4, 1, %v7631_v6  ;;  %vm4442_vm6 = vcmp.eq.s32.totalorder %v6000_v29, 4  ;;  %vm4517_vm10 = vcmp.eq.s32.totalorder %v6001_v56, 5 }
0x2d6f   :  { %v4125_v57 = vsel %vm36_vm9, %v4111_v38, 0.0  ;;  %vm4131_vm7 = vcmp.eq.s32.totalorder %v4130_v13, 1  ;;  %v4458_v38 = vsel %vm4442_vm6, 1, %v7631_v6  ;;  %vm4444_vm11 = vcmp.eq.s32.totalorder %v6000_v29, 6 }
0x2d70   :  { %v4126_v1 = vadd.f32 %v4125_v57, %v4124_v9  ;;  %v4136_v18 = vpop.permute.xlu1 %4135  ;;  %v4523_v9 = vsel %vm4515_vm5, 1, %v7631_v6  ;;  %vm4518_vm12 = vcmp.eq.s32.totalorder %v6001_v56, 6  ;;  %vm4445_vm13 = vcmp.eq.s32.totalorder %v6000_v29, 7 }
0x2d71   :  { %vm4137_vm8 = vcmp.eq.s32.totalorder %v4136_v18, 1  ;;  %v4460_v18 = vsel %vm4444_vm11, 1, %v7631_v6  ;;  %vm4519_vm14 = vcmp.eq.s32.totalorder %v6001_v56, 7 }
0x2d72   :  { %v4139_v0 = vsel %vm4131_vm7, %v4126_v1, %v9494_v34  ;;  %v9772_v34 = vld [vmem:[%s10548_s4 + $0x12] sm:$0x3]  ;;  %v4525_v1 = vsel %vm4517_vm10, 1, %v7631_v6 }
0x2d73   :  { %v9757_v62 = vsel %vm4137_vm8, %v9539_v30, %v4139_v0  ;;  %v4526_v0 = vsel %vm4518_vm12, 1, %v7631_v6 }
0x2d74   :  { %4154 = vrot.lane.b32.xlu0 %v9757_v62, %s7629_s23 }
0x2db4   :  { %v3977_v54 = vpop.permute.xlu0 %3976 }
0x2db5   :  { %v3979_v23 = vsel %vm58_vm1, %v9729_v10, %v3977_v54  ;;  %v5993_v54 = vld [vmem:[%s10545_s1 + $0x12] sm:$0x3] }
0x2db6   :  { %v4132_v17 = vsel %vm4131_vm7, %v3979_v23, %v9539_v30  ;;  %vm4516_vm7 = vcmp.eq.s32.totalorder %v6001_v56, 4  ;;  %v4461_v23 = vsel %vm4445_vm13, 1, %v7631_v6  ;;  %vm4146_vm15 = vcmp.ne.s32.totalorder %v5993_v54, 0 }
0x2db7   :  { %v9765_v16 = vsel %vm4137_vm8, %v9546_v31, %v4132_v17  ;;  %vm4443_vm8 = vcmp.eq.s32.totalorder %v6000_v29, 5  ;;  %v4524_v13 = vsel %vm4516_vm7, 1, %v7631_v6  ;;  %v5992_v17 = vld [vmem:[%s10544_s0 + $0x12] sm:$0x3] }
0x2db8   :  { %4150 = vrot.lane.b32.xlu1 %v9765_v16, %s7625_s17  ;;  %v4459_v57 = vsel %vm4443_vm8, 1, %v7631_v6  ;;  %vm4143_vm4 = vcmp.ne.s32.totalorder %v5992_v17, 0 }
0x2de6   :  { %v4155_v4 = vpop.permute.xlu0 %4154 }
0x2e2a   :  { %v4151_v61 = vpop.permute.xlu1 %4150 }
0x2e2b   :  { %v4157_v12 = vsel %vm58_vm1, %v9772_v34, %v4151_v61 }
0x2e2c   :  { %v4158_v10 = vsel %vm60_vm2, %v4157_v12, %v4155_v4  ;;  %v4583_v4 = vsel %vm4146_vm15, 1, %v7631_v6  ;;  %v4589_v12 = vsel %vm4143_vm4, 1, %v7631_v6 }
0x2e2d   :  { %v4159_v30 = vsel %vm62_vm3, %v4158_v10, %v9651_v35  ;;  %v4316_v10 = vrot.slane %v9805_v46, %v7994_v5  ;;  %v4447_v46 = vld [vmem:[#allocation2 + $0x2] sm:$0x3] }
0x2e2e   :  { %6600 = vmatmul.mubr.f32.vlgmr.msra.gmra.mrb[18].mxu1 %v4159_v30 }
0x2e2f   :  { %4842 = vmatprep.mubr.f32.mxu1 %v7628_v7 }
0x2f01   :  { %v4249_v31 = vpop.f32.mrb[18].mxu1 }
0x2f02   :  { %v4250_v19 = vadd.f32 %v9560_v53, %v4249_v31  ;;  %v6601_v44 = vpop.f32.mrb[19].mxu1 }
0x2f04   :  { %7521 = vtanh.f32 %v4250_v19  ;;  %v5996_v37 = vmul.f32 -1.442695, %v4250_v19 }
0x2f06   :  { %7523 = vpow2.f32 %v5996_v37 }
0x2f0e   :  { %v7522_v24 = vpop.eup %7521 }
0x2f0f   :  { %4262 = vrot.lane.b32.xlu1 %v7522_v24, %s7629_s23 }
0x2f10   :  { %v7524_v3 = vpop.eup %7523 }
0x2f11   :  { %v4256_v36 = vadd.f32 1.0, %v7524_v3 }
0x2f13   :  { %7525 = vrcp.f32 %v4256_v36 }
0x2f1d   :  { %v7526_v32 = vpop.eup %7525 }
0x2f1e   :  { %v4260_v35 = vmul.f32 %v7526_v32, %v9570_v22  ;;  %v4281_v22 = vsel %vm58_vm1, %v9757_v62, %v4151_v61  ;;  %v4527_v61 = vsel %vm4519_vm14, 1, %v7631_v6 }
0x2f81   :  { %v4263_v26 = vpop.permute.xlu1 %4262 }
0x2f82   :  { %v4265_v41 = vmul.f32 %v7526_v32, %v4263_v26 }
0x2f84   :  { %4267 = vrot.lane.b32.xlu0 %v4265_v41, %s7625_s17 }
0x2ff6   :  { %v4268_v42 = vpop.permute.xlu0 %4267 }
0x2ff7   :  { %v9784_v48 = vadd.f32 %v4268_v42, %v4260_v35 }
0x2ff9   :  { %7527 = vtanh.f32 %v9784_v48 }
0x3003   :  { %v7528_v53 = vpop.eup %7527 }
0x3004   :  { %4273 = vrot.lane.b32.xlu1 %v7528_v53, %s7629_s23 }
0x3008   :  { %4405 = vrot.lane.b32.xlu1 %v9757_v62, %s7625_s17 }
0x3076   :  { %v4274_v43 = vpop.permute.xlu1 %4273 }
0x3077   :  { %v9790_v50 = vmul.f32 %v7526_v32, %v4274_v43 }
0x3079   :  { %4278 = vrot.lane.b32.xlu0 %v9790_v50, %s7630_s24 }
0x307a   :  { %v4406_v59 = vpop.permute.xlu1 %4405 }
0x307d   :  { %4414 = vrot.lane.b32.xlu0 %v9765_v16, %s7629_s23 }
0x30eb   :  { %v4279_v40 = vpop.permute.xlu0 %4278 }
0x30ec   :  { %v4282_v20 = vsel %vm60_vm2, %v4281_v22, %v4279_v40  ;;  %v4446_v22 = vld [vmem:[#allocation2] sm:$0x3] }
0x30ed   :  { %5997 = vmatmul.mubr.msk.f32.vlgmr.msra.gmra.mrb[18].mxu0 %vm62_vm3, %v4282_v20 }
0x30ee   :  { %6634 = vmatprep.mubr.msk.f32.mxu0 %vm7627_vm0, %v7628_v7 }
0x30ef   :  { %v4415_v51 = vpop.permute.xlu0 %4414 }
0x31c0   :  { %v4388_v8 = vpop.f32.mrb[18].mxu0 }
0x31c1   :  { %v9809_v45 = vadd.f32 %v4388_v8, %v4312_v49  ;;  %v9811_v27 = vpop.f32.mrb[19].mxu0 }
0x31c2   :  { %v4391_v30 = vadd.f32 %v9811_v27, %v4316_v10  ;;  %v4618_v10 = vld [vmem:[%s10550_s6 + $0x10] sm:$0xff] }
0x31c3   :  { %v5998_v55 = vmul.f32 -1.442695, %v9809_v45 }
0x31c4   :  { %v5999_v31 = vmul.f32 -1.442695, %v4391_v30 }
0x31c5   :  { %7529 = vpow2.f32 %v5998_v55  ;;  %v4448_v55 = vld [vmem:[#allocation2 + $0x4] sm:$0x3] }
0x31cf   :  { %v7530_v33 = vpop.eup %7529 }
0x31d0   :  { %v4397_v21 = vadd.f32 1.0, %v7530_v33 }
0x31d2   :  { %7531 = vrcp.f32 %v4397_v21 }
0x31d3   :  { %7533 = vpow2.f32 %v5999_v31  ;;  %v4452_v31 = vld [vmem:[#allocation2 + $0xc] sm:$0x3] }
0x31d4   :  { %7535 = vtanh.f32 %v9809_v45 }
0x31dc   :  { %v7532_v52 = vpop.eup %7531 }
0x31dd   :  { %4401 = vrot.lane.b32.xlu1 %v7532_v52, %s7630_s24  ;;  %v4408_v15 = vmul.f32 %v7532_v52, %v4406_v59  ;;  %v4417_v63 = vmul.f32 %v7532_v52, %v4415_v51  ;;  %v7534_v19 = vpop.eup %7533  ;;  %v4449_v52 = vld [vmem:[#allocation2 + $0x6] sm:$0x3] }
0x31de   :  { %v7536_v44 = vpop.eup %7535  ;;  %v4426_v3 = vadd.f32 1.0, %v7534_v19 }
0x31df   :  { %4410 = vrot.lane.b32.xlu0 %v4408_v15, %s7629_s23 }
0x31e0   :  { %7537 = vrcp.f32 %v4426_v3 }
0x31e1   :  { %4419 = vrot.lane.b32.xlu1 %v4417_v63, %s7625_s17  ;;  %v4450_v63 = vld [vmem:[#allocation2 + $0x8] sm:$0x3] }
0x31e3   :  { %4463 = vperm.xlu0 %7340, %v4454_v28  }
0x31e5   :  { %4466 = vperm.xlu1 %7339, %v4455_v47  }
0x31e7   :  { %4529 = vperm.xlu0 %7340, %v4520_v39  }
0x31e9   :  { %4532 = vperm.xlu1 %7339, %v4521_v25  }
0x31ea   :  { %v7538_v35 = vpop.eup %7537 }
0x31eb   :  { %4469 = vperm.xlu0 %7340, %v4456_v58  }
0x31ed   :  { %4535 = vperm.xlu1 %7339, %v4522_v60  }
0x31ef   :  { %4472 = vperm.xlu0 %7340, %v4457_v11  }
0x31f1   :  { %4538 = vperm.xlu1 %7339, %v4523_v9  }
0x31f3   :  { %4475 = vperm.xlu0 %7340, %v4458_v38  }
0x31f5   :  { %4541 = vperm.xlu1 %7339, %v4524_v13   ;;  %v4451_v13 = vld [vmem:[#allocation2 + $0xa] sm:$0x3] }
0x31f7   :  { %4478 = vperm.xlu0 %7340, %v4459_v57  }
0x31f9   :  { %4544 = vperm.xlu1 %7339, %v4525_v1  }
0x31fb   :  { %4481 = vperm.xlu0 %7340, %v4460_v18  }
0x31fd   :  { %4547 = vperm.xlu1 %7339, %v4526_v0  }
0x31ff   :  { %4484 = vperm.xlu0 %7340, %v4461_v23  }
0x3201   :  { %4550 = vperm.xlu1 %7339, %v4527_v61  }
0x3203   :  { %4585 = vperm.xlu0 %7340, %v4583_v4   ;;  %v4616_v4 = vld [vmem:[%s10550_s6] sm:$0xff] }
0x3205   :  { %4591 = vperm.xlu1 %7339, %v4589_v12   ;;  %v4617_v12 = vld [vmem:[%s10550_s6 + $0x8] sm:$0xff] }
0x3206   :  { %v9880_v19 = vpack.c.bf16 %v4617_v12, %v4616_v4 }
0x3208   :  { %7189 = vmatpush3.bf16.msra.mxu0 %v9880_v19 }
0x3209   :  { %7190 = vmatprep.subr.bf16.mxu0 %v7626_v2 }
0x324f   :  { %v4402_v24 = vpop.permute.xlu1 %4401 }
0x3250   :  { %v4404_v37 = vmul.f32 %v7536_v44, %v4402_v24  ;;  %v4619_v44 = vld [vmem:[%s10550_s6 + $0x18] sm:$0xff] }
0x3251   :  { %v4411_v36 = vpop.permute.xlu0 %4410 }
0x3252   :  { %v4413_v32 = vadd.f32 %v4411_v36, %v4404_v37 }
0x3253   :  { %v4420_v26 = vpop.permute.xlu1 %4419 }
0x3254   :  { %v4422_v41 = vadd.f32 %v4420_v26, %v4413_v32  ;;  %v9889_v32 = vpack.c.bf16 %v4619_v44, %v4618_v10 }
0x3256   :  { %7539 = vtanh.f32 %v4422_v41  ;;  %4432 = vrot.lane.b32.xlu0 %v4422_v41, %s7625_s17  ;;  %7192 = vmatpush3.bf16.msra.mxu0 %v9889_v32 }
0x3257   :  { %7193 = vmatprep.subr.bf16.mxu0 %v7626_v2 }
0x3260   :  { %v7540_v42 = vpop.eup %7539 }
0x3261   :  { %v9852_v53 = vmul.f32 %v7540_v42, %v7538_v35  ;;  %v4620_v42 = vld [vmem:[%s10550_s6 + $0x20] sm:$0xff] }
0x3262   :  { %v4464_v43 = vpop.permute.xlu0 %4463 }
0x3263   :  { %vm4486_vm5 = vcmp.eq.s32.totalorder %v4464_v43, 1  ;;  %v4621_v43 = vld [vmem:[%s10550_s6 + $0x28] sm:$0xff] }
0x3264   :  { %v4467_v40 = vpop.permute.xlu1 %4466  ;;  %v4494_v20 = vsel %vm4486_vm5, %v9757_v62, %v4446_v22 }
0x3265   :  { %vm4487_vm6 = vcmp.eq.s32.totalorder %v4467_v40, 1  ;;  %4502 = vst.msk [vmem:[#allocation2] sm:$0x3] %vm36_vm9, %v4494_v20  ;;  %v4453_v40 = vld [vmem:[#allocation2 + $0xe] sm:$0x3] }
0x3266   :  { %v4530_v49 = vpop.permute.xlu0 %4529  ;;  %v4495_v8 = vsel %vm4487_vm6, %v9757_v62, %v4447_v46 }
0x3267   :  { %4503 = vst.msk [vmem:[#allocation2 + $0x2] sm:$0x3] %vm36_vm9, %v4495_v8  ;;  %vm4552_vm11 = vcmp.eq.s32.totalorder %v4530_v49, 1 }
0x3268   :  { %v4533_v45 = vpop.permute.xlu1 %4532  ;;  %v4560_v28 = vsel %vm4552_vm11, %v4494_v20, 0.0 }
0x3269   :  { %vm4553_vm8 = vcmp.eq.s32.totalorder %v4533_v45, 1  ;;  %v4568_v9 = vsel %vm36_vm9, %v4560_v28, 0.0 }
0x326a   :  { %v4470_v27 = vpop.permute.xlu0 %4469  ;;  %v4561_v51 = vsel %vm4553_vm8, %v4495_v8, 0.0  ;;  %v9902_v8 = vpack.c.bf16 %v4621_v43, %v4620_v42  ;;  %v4742_v42 = vld [vmem:[%s10552_s8 + $0x18] sm:$0xff]  ;;  %v4739_v43 = vld [vmem:[%s10552_s8] sm:$0xff] }
0x326b   :  { %vm4488_vm7 = vcmp.eq.s32.totalorder %v4470_v27, 1  ;;  %v4569_v58 = vsel %vm36_vm9, %v4561_v51, 0.0 }
0x326c   :  { %v4536_v33 = vpop.permute.xlu1 %4535  ;;  %v4496_v21 = vsel %vm4488_vm7, %v9757_v62, %v4448_v55  ;;  %v4570_v57 = vadd.f32 %v4569_v58, %v4568_v9  ;;  %7195 = vmatpush3.bf16.msra.mxu0 %v9902_v8  ;;  %v4628_v58 = vld [vmem:[%s10550_s6 + $0x60] sm:$0xff]  ;;  %v4630_v9 = vld [vmem:[%s10550_s6 + $0x70] sm:$0xff] }
0x326d   :  { %4504 = vst.msk [vmem:[#allocation2 + $0x4] sm:$0x3] %vm36_vm9, %v4496_v21  ;;  %vm4554_vm12 = vcmp.eq.s32.totalorder %v4536_v33, 1  ;;  %v4622_v33 = vld [vmem:[%s10550_s6 + $0x30] sm:$0xff]  ;;  %7196 = vmatprep.subr.bf16.mxu0 %v7626_v2 }
0x326e   :  { %v4473_v29 = vpop.permute.xlu0 %4472  ;;  %v4562_v47 = vsel %vm4554_vm12, %v4496_v21, 0.0  ;;  %v4623_v21 = vld [vmem:[%s10550_s6 + $0x38] sm:$0xff] }
0x326f   :  { %vm4489_vm10 = vcmp.eq.s32.totalorder %v4473_v29, 1  ;;  %v4571_v38 = vsel %vm36_vm9, %v4562_v47, 0.0  ;;  %v4626_v47 = vld [vmem:[%s10550_s6 + $0x50] sm:$0xff] }
0x3270   :  { %v4539_v59 = vpop.permute.xlu1 %4538  ;;  %v4497_v15 = vsel %vm4489_vm10, %v9757_v62, %v4449_v52  ;;  %v4572_v23 = vadd.f32 %v4571_v38, %v4570_v57  ;;  %v4631_v38 = vld [vmem:[%s10550_s6 + $0x78] sm:$0xff] }
0x3271   :  { %4505 = vst.msk [vmem:[#allocation2 + $0x6] sm:$0x3] %vm36_vm9, %v4497_v15  ;;  %vm4555_vm13 = vcmp.eq.s32.totalorder %v4539_v59, 1 }
0x3272   :  { %v4476_v56 = vpop.permute.xlu0 %4475  ;;  %v4563_v60 = vsel %vm4555_vm13, %v4497_v15, 0.0  ;;  %v9913_v15 = vpack.c.bf16 %v4623_v21, %v4622_v33  ;;  %v4750_v33 = vld [vmem:[%s10552_s8 + $0x58] sm:$0xff] }
0x3273   :  { %vm4490_vm14 = vcmp.eq.s32.totalorder %v4476_v56, 1  ;;  %v4573_v54 = vsel %vm36_vm9, %v4563_v60, 0.0  ;;  %v4624_v56 = vld [vmem:[%s10550_s6 + $0x40] sm:$0xff]  ;;  %v4629_v60 = vld [vmem:[%s10550_s6 + $0x68] sm:$0xff] }
0x3274   :  { %v4542_v39 = vpop.permute.xlu1 %4541  ;;  %v4498_v25 = vsel %vm4490_vm14, %v9757_v62, %v4450_v63  ;;  %v4574_v24 = vadd.f32 %v4573_v54, %v4572_v23  ;;  %v4625_v63 = vld [vmem:[%s10550_s6 + $0x48] sm:$0xff]  ;;  %7198 = vmatpush3.bf16.msra.mxu0 %v9913_v15  ;;  %v9978_v54 = vld [vmem:[%s10548_s4 + $0x14] sm:$0x3] }
0x3275   :  { %vm4556_vm15 = vcmp.eq.s32.totalorder %v4542_v39, 1  ;;  %4506 = vst.msk [vmem:[#allocation2 + $0x8] sm:$0x3] %vm36_vm9, %v4498_v25  ;;  %7199 = vmatprep.subr.bf16.mxu0 %v7626_v2  ;;  %v4627_v39 = vld [vmem:[%s10550_s6 + $0x58] sm:$0xff] }
0x3276   :  { %v4479_v11 = vpop.permute.xlu0 %4478  ;;  %v4564_v1 = vsel %vm4556_vm15, %v4498_v25, 0.0  ;;  %v9941_v25 = vpack.c.bf16 %v4627_v39, %v4626_v47 }
0x3277   :  { %vm4491_vm4 = vcmp.eq.s32.totalorder %v4479_v11, 1  ;;  %v4575_v30 = vsel %vm36_vm9, %v4564_v1, 0.0  ;;  %v9951_v11 = vpack.c.bf16 %v4629_v60, %v4628_v58  ;;  %v4751_v58 = vld [vmem:[%s10552_s8 + $0x60] sm:$0xff]  ;;  %v4753_v60 = vld [vmem:[%s10552_s8 + $0x70] sm:$0xff] }
0x3278   :  { %v4545_v18 = vpop.permute.xlu1 %4544  ;;  %v4499_v0 = vsel %vm4491_vm4, %v9757_v62, %v4451_v13  ;;  %v4576_v26 = vadd.f32 %v4575_v30, %v4574_v24  ;;  %v9962_v13 = vpack.c.bf16 %v4631_v38, %v4630_v9  ;;  %v4756_v9 = vld [vmem:[%s10552_s8 + $0x88] sm:$0xff]  ;;  %v4758_v38 = vld [vmem:[%s10552_s8 + $0x98] sm:$0xff] }
0x3279   :  { %vm4557_vm5 = vcmp.eq.s32.totalorder %v4545_v18, 1  ;;  %4507 = vst.msk [vmem:[#allocation2 + $0xa] sm:$0x3] %vm36_vm9, %v4499_v0 }
0x327a   :  { %v4565_v17 = vsel %vm4557_vm5, %v4499_v0, 0.0  ;;  %v4482_v61 = vpop.permute.xlu0 %4481 }
0x327b   :  { %vm4492_vm6 = vcmp.eq.s32.totalorder %v4482_v61, 1  ;;  %v4577_v36 = vsel %vm36_vm9, %v4565_v17, 0.0  ;;  %v9992_v61 = vld [vmem:[%s10551_s7] ss:$0 sm:$0xff] }
0x327c   :  { %v4548_v37 = vpop.permute.xlu1 %4547  ;;  %v4500_v3 = vsel %vm4492_vm6, %v9757_v62, %v4452_v31  ;;  %v4578_v20 = vadd.f32 %v4577_v36, %v4576_v26 }
0x327d   :  { %vm4558_vm7 = vcmp.eq.s32.totalorder %v4548_v37, 1  ;;  %4508 = vst.msk [vmem:[#allocation2 + $0xc] sm:$0x3] %vm36_vm9, %v4500_v3 }
0x327e   :  { %v4566_v41 = vsel %vm4558_vm7, %v4500_v3, 0.0  ;;  %v4485_v35 = vpop.permute.xlu0 %4484 }
0x327f   :  { %v4579_v22 = vsel %vm36_vm9, %v4566_v41, 0.0  ;;  %vm4493_vm8 = vcmp.eq.s32.totalorder %v4485_v35, 1  ;;  %v4740_v35 = vld [vmem:[%s10552_s8 + $0x8] sm:$0xff] }
0x3280   :  { %v4551_v46 = vpop.permute.xlu1 %4550  ;;  %v4501_v49 = vsel %vm4493_vm8, %v9757_v62, %v4453_v40  ;;  %v4580_v45 = vadd.f32 %v4579_v22, %v4578_v20  ;;  %v7211_v22 = vpack.c.bf16 %v4742_v42, %v4740_v35  ;;  %v4744_v40 = vld [vmem:[%s10552_s8 + $0x28] sm:$0xff]  ;;  %v4746_v20 = vld [vmem:[%s10552_s8 + $0x38] sm:$0xff]  ;;  %v6011_v42 = vld [vmem:[%s10547_s3 + $0x14] sm:$0x3] }
0x3281   :  { %vm4559_vm10 = vcmp.eq.s32.totalorder %v4551_v46, 1  ;;  %4509 = vst.msk [vmem:[#allocation2 + $0xe] sm:$0x3] %vm36_vm9, %v4501_v49  ;;  %vm4968_vm15 = vcmp.eq.s32.totalorder %v6011_v42, 0  ;;  %vm4969_vm4 = vcmp.eq.s32.totalorder %v6011_v42, 1  ;;  %vm4970_vm6 = vcmp.eq.s32.totalorder %v6011_v42, 2 }
0x3282   :  { %v4567_v27 = vsel %vm4559_vm10, %v4501_v49, 0.0  ;;  %v4586_v55 = vpop.permute.xlu0 %4585  ;;  %v7215_v49 = vpack.c.bf16 %v4746_v20, %v4744_v40  ;;  %7212 = vmatprep.subr.bf16.mxu1 %v7211_v22  ;;  %v4976_v40 = vsel %vm4968_vm15, 1, %v7631_v6  ;;  %v4977_v20 = vsel %vm4969_vm4, 1, %v7631_v6 }
0x3283   :  { %v4581_v29 = vsel %vm36_vm9, %v4567_v27, 0.0  ;;  %vm4587_vm11 = vcmp.eq.s32.totalorder %v4586_v55, 1  ;;  %v4745_v27 = vld [vmem:[%s10552_s8 + $0x30] sm:$0xff]  ;;  %v4748_v55 = vld [vmem:[%s10552_s8 + $0x48] sm:$0xff]  ;;  %vm4971_vm8 = vcmp.eq.s32.totalorder %v6011_v42, 3  ;;  %vm4974_vm15 = vcmp.eq.s32.totalorder %v6011_v42, 6 }
0x3284   :  { %v4582_v52 = vadd.f32 %v4581_v29, %v4580_v45  ;;  %v4592_v59 = vpop.permute.xlu1 %4591  ;;  %v4743_v45 = vld [vmem:[%s10552_s8 + $0x20] sm:$0xff]  ;;  %v7219_v29 = vpack.c.bf16 %v4750_v33, %v4748_v55 }
0x3285   :  { %vm4593_vm12 = vcmp.eq.s32.totalorder %v4592_v59, 1  ;;  %v7217_v21 = vpack.c.bf16 %v4745_v27, %v4743_v45  ;;  %v4749_v59 = vld [vmem:[%s10552_s8 + $0x50] sm:$0xff]  ;;  %v4979_v27 = vsel %vm4971_vm8, 1, %v7631_v6 }
0x3286   :  { %v4595_v51 = vsel %vm4587_vm11, %v4582_v52, %v9757_v62  ;;  %v9931_v62 = vpack.c.bf16 %v4625_v63, %v4624_v56  ;;  %v4747_v52 = vld [vmem:[%s10552_s8 + $0x40] sm:$0xff]  ;;  %v4752_v56 = vld [vmem:[%s10552_s8 + $0x68] sm:$0xff]  ;;  %v4754_v63 = vld [vmem:[%s10552_s8 + $0x78] sm:$0xff] }
0x3287   :  { %v9926_v28 = vsel %vm4593_vm12, %v9765_v16, %v4595_v51  ;;  %v7221_v47 = vpack.c.bf16 %v4749_v59, %v4747_v52  ;;  %v7223_v39 = vpack.c.bf16 %v4754_v63, %v4752_v56  ;;  %v4982_v59 = vsel %vm4974_vm15, 1, %v7631_v6  ;;  %v6002_v63 = vld [vmem:[%s10544_s0 + $0x14] sm:$0x3] }
0x3288   :  { %4610 = vrot.lane.b32.xlu0 %v9926_v28, %s7629_s23  ;;  %7201 = vmatpush3.bf16.msra.mxu0 %v9931_v62 }
0x3289   :  { %7202 = vmatprep.subr.bf16.mxu0 %v7626_v2 }
0x328c   :  { %7204 = vmatpush3.bf16.msra.mxu0 %v9941_v25 }
0x328d   :  { %7205 = vmatprep.subr.bf16.mxu0 %v7626_v2 }
0x3290   :  { %7207 = vmatpush3.bf16.msra.mxu0 %v9951_v11 }
0x3291   :  { %7208 = vmatprep.subr.bf16.mxu0 %v7626_v2 }
0x3294   :  { %7210 = vmatpush3.bf16.msra.mxu0 %v9962_v13 }
0x3295   :  { %7260 = vmatprep.subr.bf16.mxu0 %v7211_v22 }
0x32c8   :  { %v4433_v57 = vpop.permute.xlu0 %4432 }
0x32c9   :  { %v4435_v1 = vsel %vm58_vm1, %v9852_v53, %v4433_v57  ;;  %v7225_v57 = vpack.c.bf16 %v4753_v60, %v4751_v58 }
0x32ca   :  { %v4588_v18 = vsel %vm4587_vm11, %v4435_v1, %v9765_v16  ;;  %v7227_v1 = vpack.c.bf16 %v4758_v38, %v4756_v9  ;;  %vm4972_vm11 = vcmp.eq.s32.totalorder %v6011_v42, 4 }
0x32cb   :  { %v9971_v0 = vsel %vm4593_vm12, %v9772_v34, %v4588_v18  ;;  %v4755_v18 = vld [vmem:[%s10552_s8 + $0x80] sm:$0xff]  ;;  %v4980_v33 = vsel %vm4972_vm11, 1, %v7631_v6 }
0x32cc   :  { %4606 = vrot.lane.b32.xlu1 %v9971_v0, %s7625_s17 }
0x32fa   :  { %v4611_v17 = vpop.permute.xlu0 %4610 }
0x333e   :  { %v9980_v23 = vpop.permute.xlu1 %4606 }
0x333f   :  { %v4613_v53 = vsel %vm58_vm1, %v9978_v54, %v9980_v23 }
0x3340   :  { %v4614_v16 = vsel %vm60_vm2, %v4613_v53, %v4611_v17  ;;  %v4757_v17 = vld [vmem:[%s10552_s8 + $0x90] sm:$0xff]  ;;  %v4760_v53 = vld [vmem:[%s10552_s8 + $0xa8] sm:$0xff] }
0x3341   :  { %v4615_v34 = vsel %vm62_vm3, %v4614_v16, %v9790_v50  ;;  %v4762_v16 = vld [vmem:[%s10552_s8 + $0xb8] sm:$0xff] }
0x3342   :  { %6635 = vmatmul.mubr.f32.vlgmr.msra.gmra.mrb[20].mxu0 %v4615_v34  ;;  %v7229_v34 = vpack.c.bf16 %v4757_v17, %v4755_v18 }
0x3343   :  { %5298 = vmatprep.mubr.f32.mxu0 %v7628_v7 }
0x3415   :  { %v4705_v4 = vpop.f32.mrb[20].mxu0 }
0x3416   :  { %v4706_v12 = vadd.f32 %v9992_v61, %v4705_v4  ;;  %v6636_v10 = vpop.f32.mrb[21].mxu0  ;;  %v7231_v4 = vpack.c.bf16 %v4762_v16, %v4760_v53 }
0x3417   :  { %v4761_v10 = vld [vmem:[%s10552_s8 + $0xb0] sm:$0xff] }
0x3418   :  { %7541 = vtanh.f32 %v4706_v12  ;;  %v6006_v31 = vmul.f32 -1.442695, %v4706_v12  ;;  %v4759_v12 = vld [vmem:[%s10552_s8 + $0xa0] sm:$0xff] }
0x341a   :  { %7543 = vpow2.f32 %v6006_v31 }
0x3422   :  { %v7542_v30 = vpop.eup %7541 }
0x3423   :  { %4718 = vrot.lane.b32.xlu1 %v7542_v30, %s7629_s23  ;;  %v7233_v30 = vpack.c.bf16 %v4761_v10, %v4759_v12 }
0x3424   :  { %v7544_v44 = vpop.eup %7543 }
0x3425   :  { %v4712_v50 = vadd.f32 1.0, %v7544_v44 }
0x3427   :  { %7545 = vrcp.f32 %v4712_v50  ;;  %v4737_v50 = vsel %vm58_vm1, %v9926_v28, %v9980_v23 }
0x3431   :  { %v9996_v24 = vpop.eup %7545 }
0x3432   :  { %v4716_v36 = vmul.f32 %v9996_v24, %v9784_v48  ;;  %v4741_v48 = vld [vmem:[%s10552_s8 + $0x10] sm:$0xff] }
0x3433   :  { %v7213_v46 = vpack.c.bf16 %v4741_v48, %v4739_v43 }
0x3435   :  { %7214 = vmatpush1.bf16.msra.mxu1 %v7213_v46  ;;  %7262 = vmatpush1.bf16.msra.mxu0 %v7213_v46 }
0x3436   :  { %7216 = vmatprep.subr.bf16.mxu1 %v7215_v49  ;;  %7264 = vmatprep.subr.bf16.mxu0 %v7215_v49  ;;  %v4978_v49 = vsel %vm4970_vm6, 1, %v7631_v6 }
0x3439   :  { %7218 = vmatpush1.bf16.msra.mxu1 %v7217_v21  ;;  %7266 = vmatpush1.bf16.msra.mxu0 %v7217_v21 }
0x343a   :  { %7220 = vmatprep.subr.bf16.mxu1 %v7219_v29  ;;  %7268 = vmatprep.subr.bf16.mxu0 %v7219_v29 }
0x343d   :  { %7222 = vmatpush1.bf16.msra.mxu1 %v7221_v47  ;;  %7270 = vmatpush1.bf16.msra.mxu0 %v7221_v47 }
0x343e   :  { %7224 = vmatprep.subr.bf16.mxu1 %v7223_v39  ;;  %7272 = vmatprep.subr.bf16.mxu0 %v7223_v39 }
0x3441   :  { %7226 = vmatpush1.bf16.msra.mxu1 %v7225_v57  ;;  %7274 = vmatpush1.bf16.msra.mxu0 %v7225_v57 }
0x3442   :  { %7228 = vmatprep.subr.bf16.mxu1 %v7227_v1  ;;  %7276 = vmatprep.subr.bf16.mxu0 %v7227_v1 }
0x3445   :  { %7230 = vmatpush1.bf16.msra.mxu1 %v7229_v34  ;;  %7278 = vmatpush1.bf16.msra.mxu0 %v7229_v34 }
0x3446   :  { %7232 = vmatprep.subr.bf16.mxu1 %v7231_v4  ;;  %7280 = vmatprep.subr.bf16.mxu0 %v7231_v4 }
0x3449   :  { %7234 = vmatpush1.bf16.msra.mxu1 %v7233_v30  ;;  %7282 = vmatpush1.bf16.msra.mxu0 %v7233_v30 }
0x344a   :  { %7235 = vmatprep.subr.bf16.mxu1 %v7626_v2  ;;  %7283 = vmatprep.subr.bf16.mxu0 %v7626_v2 }
0x3495   :  { %v4719_v37 = vpop.permute.xlu1 %4718 }
0x3496   :  { %v4721_v3 = vmul.f32 %v9996_v24, %v4719_v37 }
0x3498   :  { %4723 = vrot.lane.b32.xlu0 %v4721_v3, %s7625_s17 }
0x350a   :  { %v4724_v26 = vpop.permute.xlu0 %4723 }
0x350b   :  { %v10002_v41 = vadd.f32 %v4724_v26, %v4716_v36 }
0x350d   :  { %7547 = vtanh.f32 %v10002_v41 }
0x3517   :  { %v7548_v51 = vpop.eup %7547 }
0x3518   :  { %4729 = vrot.lane.b32.xlu1 %v7548_v51, %s7629_s23  ;;  %v6003_v51 = vld [vmem:[%s10545_s1 + $0x14] sm:$0x3] }
0x3519   :  { %vm4602_vm6 = vcmp.ne.s32.totalorder %v6003_v51, 0 }
0x351a   :  { %v5039_v39 = vsel %vm4602_vm6, 1, %v7631_v6 }
0x351c   :  { %4861 = vrot.lane.b32.xlu1 %v9926_v28, %s7625_s17 }
0x358a   :  { %v4730_v31 = vpop.permute.xlu1 %4729 }
0x358b   :  { %v10083_v44 = vmul.f32 %v9996_v24, %v4730_v31 }
0x358d   :  { %4734 = vrot.lane.b32.xlu0 %v10083_v44, %s7630_s24 }
0x358e   :  { %v4862_v36 = vpop.permute.xlu1 %4861 }
0x3591   :  { %4870 = vrot.lane.b32.xlu0 %v9971_v0, %s7629_s23 }
0x35ff   :  { %v4735_v37 = vpop.permute.xlu0 %4734 }
0x3600   :  { %v4738_v3 = vsel %vm60_vm2, %v4737_v50, %v4735_v37  ;;  %v4902_v37 = vld [vmem:[#allocation2] sm:$0x3] }
0x3601   :  { %6007 = vmatmul.mubr.msk.f32.vlgmr.msra.gmra.mrb[20].mxu1 %vm62_vm3, %v4738_v3 }
0x3602   :  { %7237 = vmatpush3.bf16.msra.mxu1 %v9880_v19  ;;  %6669 = vmatprep.mubr.msk.f32.mxu1 %vm7627_vm0, %v7628_v7  ;;  %v10114_v19 = vld [vmem:[%s10553_s9] sm:$0x3] }
0x3603   :  { %7238 = vmatprep.subr.bf16.mxu1 %v7626_v2  ;;  %v4871_v35 = vpop.permute.xlu0 %4870  ;;  %v4772_v60 = vrot.slane %v10114_v19, %v7994_v5 }
0x3606   :  { %7240 = vmatpush3.bf16.msra.mxu1 %v9889_v32  ;;  %v4768_v32 = vrot.slane %v10114_v19, %v7918_v14 }
0x3607   :  { %7241 = vmatprep.subr.bf16.mxu1 %v7626_v2 }
0x360a   :  { %7243 = vmatpush3.bf16.msra.mxu1 %v9902_v8 }
0x360b   :  { %7244 = vmatprep.subr.bf16.mxu1 %v7626_v2 }
0x360e   :  { %7246 = vmatpush3.bf16.msra.mxu1 %v9913_v15 }
0x360f   :  { %7247 = vmatprep.subr.bf16.mxu1 %v7626_v2 }
0x3612   :  { %7249 = vmatpush3.bf16.msra.mxu1 %v9931_v62 }
0x3613   :  { %7250 = vmatprep.subr.bf16.mxu1 %v7626_v2 }
0x3616   :  { %7252 = vmatpush3.bf16.msra.mxu1 %v9941_v25 }
0x3617   :  { %7253 = vmatprep.subr.bf16.mxu1 %v7626_v2 }
0x361a   :  { %7255 = vmatpush3.bf16.msra.mxu1 %v9951_v11 }
0x361b   :  { %7256 = vmatprep.subr.bf16.mxu1 %v7626_v2 }
0x361e   :  { %7258 = vmatpush3.bf16.msra.mxu1 %v9962_v13  ;;  %v6010_v13 = vld [vmem:[%s10546_s2 + $0x14] sm:$0x3] }
0x361f   :  { %vm4894_vm13 = vcmp.eq.s32.totalorder %v6010_v13, 0  ;;  %vm4895_vm14 = vcmp.eq.s32.totalorder %v6010_v13, 1  ;;  %vm4896_vm5 = vcmp.eq.s32.totalorder %v6010_v13, 2  ;;  %vm4897_vm7 = vcmp.eq.s32.totalorder %v6010_v13, 3 }
0x3620   :  { %v4910_v22 = vsel %vm4894_vm13, 1, %v7631_v6  ;;  %v4911_v48 = vsel %vm4895_vm14, 1, %v7631_v6  ;;  %v4912_v46 = vsel %vm4896_vm5, 1, %v7631_v6  ;;  %v4913_v45 = vsel %vm4897_vm7, 1, %v7631_v6 }
0x3621   :  { %vm4898_vm10 = vcmp.eq.s32.totalorder %v6010_v13, 4  ;;  %vm4899_vm12 = vcmp.eq.s32.totalorder %v6010_v13, 5  ;;  %vm4973_vm13 = vcmp.eq.s32.totalorder %v6011_v42, 5  ;;  %vm4900_vm14 = vcmp.eq.s32.totalorder %v6010_v13, 6 }
0x3622   :  { %v4914_v55 = vsel %vm4898_vm10, 1, %v7631_v6  ;;  %v4915_v21 = vsel %vm4899_vm12, 1, %v7631_v6  ;;  %v4981_v29 = vsel %vm4973_vm13, 1, %v7631_v6  ;;  %v4916_v52 = vsel %vm4900_vm14, 1, %v7631_v6 }
0x3623   :  { %vm4901_vm4 = vcmp.eq.s32.totalorder %v6010_v13, 7  ;;  %vm4975_vm5 = vcmp.eq.s32.totalorder %v6011_v42, 7  ;;  %vm4599_vm7 = vcmp.ne.s32.totalorder %v6002_v63, 0 }
0x3624   :  { %v4917_v56 = vsel %vm4901_vm4, 1, %v7631_v6  ;;  %v4983_v47 = vsel %vm4975_vm5, 1, %v7631_v6  ;;  %v5045_v58 = vsel %vm4599_vm7, 1, %v7631_v6 }
0x36d4   :  { %v4844_v8 = vpop.f32.mrb[20].mxu1 }
0x36d5   :  { %v10118_v15 = vadd.f32 %v4844_v8, %v4768_v32  ;;  %v10120_v62 = vpop.f32.mrb[21].mxu1  ;;  %v4903_v32 = vld [vmem:[#allocation2 + $0x2] sm:$0x3] }
0x36d6   :  { %v4847_v9 = vadd.f32 %v10120_v62, %v4772_v60  ;;  %v4908_v60 = vld [vmem:[#allocation2 + $0xc] sm:$0x3] }
0x36d7   :  { %v6008_v25 = vmul.f32 -1.442695, %v10118_v15 }
0x36d8   :  { %v6009_v38 = vmul.f32 -1.442695, %v4847_v9 }
0x36d9   :  { %7549 = vpow2.f32 %v6008_v25 }
0x36e3   :  { %v7550_v11 = vpop.eup %7549 }
0x36e4   :  { %v4853_v23 = vadd.f32 1.0, %v7550_v11  ;;  %v4904_v11 = vld [vmem:[#allocation2 + $0x4] sm:$0x3] }
0x36e6   :  { %7551 = vrcp.f32 %v4853_v23 }
0x36e7   :  { %7553 = vpow2.f32 %v6009_v38 }
0x36e8   :  { %7555 = vtanh.f32 %v10118_v15 }
0x36f0   :  { %v7552_v24 = vpop.eup %7551 }
0x36f1   :  { %4857 = vrot.lane.b32.xlu1 %v7552_v24, %s7630_s24  ;;  %v4864_v26 = vmul.f32 %v7552_v24, %v4862_v36  ;;  %v4873_v43 = vmul.f32 %v7552_v24, %v4871_v35  ;;  %v7554_v57 = vpop.eup %7553  ;;  %v4905_v36 = vld [vmem:[#allocation2 + $0x6] sm:$0x3] }
0x36f2   :  { %v7556_v1 = vpop.eup %7555  ;;  %v4882_v53 = vadd.f32 1.0, %v7554_v57 }
0x36f3   :  { %4866 = vrot.lane.b32.xlu0 %v4864_v26, %s7629_s23 }
0x36f4   :  { %7557 = vrcp.f32 %v4882_v53 }
0x36f5   :  { %4875 = vrot.lane.b32.xlu1 %v4873_v43, %s7625_s17 }
0x36f7   :  { %4919 = vperm.xlu0 %7340, %v4910_v22   ;;  %v4906_v22 = vld [vmem:[#allocation2 + $0x8] sm:$0x3] }
0x36f9   :  { %4922 = vperm.xlu1 %7339, %v4911_v48  }
0x36fb   :  { %4985 = vperm.xlu0 %7340, %v4976_v40  }
0x36fd   :  { %4988 = vperm.xlu1 %7339, %v4977_v20  }
0x36fe   :  { %v7558_v10 = vpop.eup %7557 }
0x36ff   :  { %4925 = vperm.xlu0 %7340, %v4912_v46  }
0x3701   :  { %4991 = vperm.xlu1 %7339, %v4978_v49  }
0x3703   :  { %4928 = vperm.xlu0 %7340, %v4913_v45  }
0x3705   :  { %4994 = vperm.xlu1 %7339, %v4979_v27  }
0x3707   :  { %4931 = vperm.xlu0 %7340, %v4914_v55  }
0x3709   :  { %4997 = vperm.xlu1 %7339, %v4980_v33  }
0x370b   :  { %4934 = vperm.xlu0 %7340, %v4915_v21   ;;  %v4907_v21 = vld [vmem:[#allocation2 + $0xa] sm:$0x3] }
0x370d   :  { %5000 = vperm.xlu1 %7339, %v4981_v29  }
0x370f   :  { %4937 = vperm.xlu0 %7340, %v4916_v52  }
0x3711   :  { %5003 = vperm.xlu1 %7339, %v4982_v59  }
0x3713   :  { %4940 = vperm.xlu0 %7340, %v4917_v56  }
0x3715   :  { %5006 = vperm.xlu1 %7339, %v4983_v47  }
0x3717   :  { %5041 = vperm.xlu0 %7340, %v5039_v39  }
0x3719   :  { %5047 = vperm.xlu1 %7339, %v5045_v58  }
0x3763   :  { %v4858_v18 = vpop.permute.xlu1 %4857 }
0x3764   :  { %v4860_v17 = vmul.f32 %v7556_v1, %v4858_v18 }
0x3765   :  { %v4867_v16 = vpop.permute.xlu0 %4866 }
0x3766   :  { %v4869_v34 = vadd.f32 %v4867_v16, %v4860_v17 }
0x3767   :  { %v4876_v4 = vpop.permute.xlu1 %4875 }
0x3768   :  { %v4878_v12 = vadd.f32 %v4876_v4, %v4869_v34  ;;  %v4909_v34 = vld [vmem:[#allocation2 + $0xe] sm:$0x3] }
0x376a   :  { %7559 = vtanh.f32 %v4878_v12  ;;  %4888 = vrot.lane.b32.xlu0 %v4878_v12, %s7625_s17 }
0x3774   :  { %v7560_v30 = vpop.eup %7559 }
0x3775   :  { %v10161_v31 = vmul.f32 %v7560_v30, %v7558_v10 }
0x3776   :  { %v4920_v50 = vpop.permute.xlu0 %4919 }
0x3777   :  { %vm4942_vm8 = vcmp.eq.s32.totalorder %v4920_v50, 1 }
0x3778   :  { %v4923_v3 = vpop.permute.xlu1 %4922  ;;  %v4950_v19 = vsel %vm4942_vm8, %v9926_v28, %v4902_v37 }
0x3779   :  { %vm4943_vm10 = vcmp.eq.s32.totalorder %v4923_v3, 1  ;;  %4958 = vst.msk [vmem:[#allocation2] sm:$0x3] %vm36_vm9, %v4950_v19 }
0x377a   :  { %v4986_v8 = vpop.permute.xlu0 %4985  ;;  %v4951_v15 = vsel %vm4943_vm10, %v9926_v28, %v4903_v32 }
0x377b   :  { %4959 = vst.msk [vmem:[#allocation2 + $0x2] sm:$0x3] %vm36_vm9, %v4951_v15  ;;  %vm5008_vm14 = vcmp.eq.s32.totalorder %v4986_v8, 1 }
0x377c   :  { %v4989_v62 = vpop.permute.xlu1 %4988  ;;  %v5016_v48 = vsel %vm5008_vm14, %v4950_v19, 0.0 }
0x377d   :  { %vm5009_vm12 = vcmp.eq.s32.totalorder %v4989_v62, 1  ;;  %v5024_v55 = vsel %vm36_vm9, %v5016_v48, 0.0 }
0x377e   :  { %v4926_v25 = vpop.permute.xlu0 %4925  ;;  %v5017_v42 = vsel %vm5009_vm12, %v4951_v15, 0.0 }
0x377f   :  { %vm4944_vm11 = vcmp.eq.s32.totalorder %v4926_v25, 1  ;;  %v5025_v49 = vsel %vm36_vm9, %v5017_v42, 0.0 }
0x3780   :  { %v4992_v23 = vpop.permute.xlu1 %4991  ;;  %v4952_v13 = vsel %vm4944_vm11, %v9926_v28, %v4904_v11  ;;  %v5026_v29 = vadd.f32 %v5025_v49, %v5024_v55 }
0x3781   :  { %4960 = vst.msk [vmem:[#allocation2 + $0x4] sm:$0x3] %vm36_vm9, %v4952_v13  ;;  %vm5010_vm15 = vcmp.eq.s32.totalorder %v4992_v23, 1 }
0x3782   :  { %v4929_v24 = vpop.permute.xlu0 %4928  ;;  %v5018_v40 = vsel %vm5010_vm15, %v4952_v13, 0.0 }
0x3783   :  { %vm4945_vm13 = vcmp.eq.s32.totalorder %v4929_v24, 1  ;;  %v5027_v33 = vsel %vm36_vm9, %v5018_v40, 0.0 }
0x3784   :  { %v4995_v26 = vpop.permute.xlu1 %4994  ;;  %v4953_v35 = vsel %vm4945_vm13, %v9926_v28, %v4905_v36  ;;  %v5028_v63 = vadd.f32 %v5027_v33, %v5026_v29  ;;  %v10237_v29 = vld [vmem:[%s10553_s9] sm:$0x3] }
0x3785   :  { %4961 = vst.msk [vmem:[#allocation2 + $0x6] sm:$0x3] %vm36_vm9, %v4953_v35  ;;  %vm5011_vm4 = vcmp.eq.s32.totalorder %v4995_v26, 1 }
0x3786   :  { %v4932_v43 = vpop.permute.xlu0 %4931  ;;  %v5019_v45 = vsel %vm5011_vm4, %v4953_v35, 0.0 }
0x3787   :  { %vm4946_vm5 = vcmp.eq.s32.totalorder %v4932_v43, 1  ;;  %v5029_v56 = vsel %vm36_vm9, %v5019_v45, 0.0 }
0x3788   :  { %v4998_v20 = vpop.permute.xlu1 %4997  ;;  %v4954_v46 = vsel %vm4946_vm5, %v9926_v28, %v4906_v22  ;;  %v5030_v9 = vadd.f32 %v5029_v56, %v5028_v63 }
0x3789   :  { %vm5012_vm6 = vcmp.eq.s32.totalorder %v4998_v20, 1  ;;  %4962 = vst.msk [vmem:[#allocation2 + $0x8] sm:$0x3] %vm36_vm9, %v4954_v46 }
0x378a   :  { %v4935_v27 = vpop.permute.xlu0 %4934  ;;  %v5020_v52 = vsel %vm5012_vm6, %v4954_v46, 0.0 }
0x378b   :  { %vm4947_vm7 = vcmp.eq.s32.totalorder %v4935_v27, 1  ;;  %v5031_v58 = vsel %vm36_vm9, %v5020_v52, 0.0  ;;  %v5224_v52 = vrot.slane %v10237_v29, %v7918_v14 }
0x378c   :  { %v5001_v59 = vpop.permute.xlu1 %5000  ;;  %v4955_v51 = vsel %vm4947_vm7, %v9926_v28, %v4907_v21  ;;  %v5032_v18 = vadd.f32 %v5031_v58, %v5030_v9 }
0x378d   :  { %vm5013_vm8 = vcmp.eq.s32.totalorder %v5001_v59, 1  ;;  %4963 = vst.msk [vmem:[#allocation2 + $0xa] sm:$0x3] %vm36_vm9, %v4955_v51 }
0x378e   :  { %v5021_v47 = vsel %vm5013_vm8, %v4955_v51, 0.0  ;;  %v4938_v39 = vpop.permute.xlu0 %4937 }
0x378f   :  { %vm4948_vm10 = vcmp.eq.s32.totalorder %v4938_v39, 1  ;;  %v5033_v1 = vsel %vm36_vm9, %v5021_v47, 0.0 }
0x3790   :  { %v5004_v38 = vpop.permute.xlu1 %5003  ;;  %v4956_v57 = vsel %vm4948_vm10, %v9926_v28, %v4908_v60  ;;  %v5034_v4 = vadd.f32 %v5033_v1, %v5032_v18 }
0x3791   :  { %vm5014_vm11 = vcmp.eq.s32.totalorder %v5004_v38, 1  ;;  %4964 = vst.msk [vmem:[#allocation2 + $0xc] sm:$0x3] %vm36_vm9, %v4956_v57 }
0x3792   :  { %v5022_v17 = vsel %vm5014_vm11, %v4956_v57, 0.0  ;;  %v4941_v53 = vpop.permute.xlu0 %4940  ;;  %v6021_v57 = vld [vmem:[%s10547_s3 + $0x16] sm:$0x3] }
0x3793   :  { %v5035_v16 = vsel %vm36_vm9, %v5022_v17, 0.0  ;;  %vm4949_vm12 = vcmp.eq.s32.totalorder %v4941_v53, 1  ;;  %vm5424_vm5 = vcmp.eq.s32.totalorder %v6021_v57, 0  ;;  %vm5425_vm6 = vcmp.eq.s32.totalorder %v6021_v57, 1 }
0x3794   :  { %v5007_v12 = vpop.permute.xlu1 %5006  ;;  %v4957_v10 = vsel %vm4949_vm12, %v9926_v28, %v4909_v34  ;;  %v5036_v30 = vadd.f32 %v5035_v16, %v5034_v4  ;;  %v5432_v53 = vsel %vm5424_vm5, 1, %v7631_v6  ;;  %v5433_v16 = vsel %vm5425_vm6, 1, %v7631_v6 }
0x3795   :  { %vm5015_vm13 = vcmp.eq.s32.totalorder %v5007_v12, 1  ;;  %4965 = vst.msk [vmem:[#allocation2 + $0xe] sm:$0x3] %vm36_vm9, %v4957_v10  ;;  %vm5426_vm8 = vcmp.eq.s32.totalorder %v6021_v57, 2  ;;  %vm5427_vm11 = vcmp.eq.s32.totalorder %v6021_v57, 3  ;;  %vm5431_vm6 = vcmp.eq.s32.totalorder %v6021_v57, 7 }
0x3796   :  { %v5023_v50 = vsel %vm5015_vm13, %v4957_v10, 0.0  ;;  %v5042_v37 = vpop.permute.xlu0 %5041  ;;  %v5434_v4 = vsel %vm5426_vm8, 1, %v7631_v6  ;;  %v5435_v10 = vsel %vm5427_vm11, 1, %v7631_v6  ;;  %vm5428_vm13 = vcmp.eq.s32.totalorder %v6021_v57, 4 }
0x3797   :  { %v5037_v3 = vsel %vm36_vm9, %v5023_v50, 0.0  ;;  %vm5043_vm14 = vcmp.eq.s32.totalorder %v5042_v37, 1  ;;  %v5436_v50 = vsel %vm5428_vm13, 1, %v7631_v6 }
0x3798   :  { %v5038_v19 = vadd.f32 %v5037_v3, %v5036_v30  ;;  %v5048_v32 = vpop.permute.xlu1 %5047 }
0x3799   :  { %vm5049_vm15 = vcmp.eq.s32.totalorder %v5048_v32, 1 }
0x379a   :  { %v5051_v8 = vsel %vm5043_vm14, %v5038_v19, %v9926_v28  ;;  %v10204_v28 = vld [vmem:[%s10548_s4 + $0x16] sm:$0x3] }
0x379b   :  { %v10189_v15 = vsel %vm5049_vm15, %v9971_v0, %v5051_v8  ;;  %v6013_v8 = vld [vmem:[%s10545_s1 + $0x16] sm:$0x3] }
0x379c   :  { %5066 = vrot.lane.b32.xlu0 %v10189_v15, %s7629_s23 }
0x37dc   :  { %v4889_v62 = vpop.permute.xlu0 %4888 }
0x37dd   :  { %v4891_v25 = vsel %vm58_vm1, %v10161_v31, %v4889_v62 }
0x37de   :  { %v5044_v11 = vsel %vm5043_vm14, %v4891_v25, %v9971_v0  ;;  %v6012_v25 = vld [vmem:[%s10544_s0 + $0x16] sm:$0x3] }
0x37df   :  { %v10197_v23 = vsel %vm5049_vm15, %v9978_v54, %v5044_v11  ;;  %vm5429_vm15 = vcmp.eq.s32.totalorder %v6021_v57, 5  ;;  %v5439_v11 = vsel %vm5431_vm6, 1, %v7631_v6  ;;  %vm5055_vm8 = vcmp.ne.s32.totalorder %v6012_v25, 0 }
0x37e0   :  { %5062 = vrot.lane.b32.xlu1 %v10197_v23, %s7625_s17  ;;  %v5437_v3 = vsel %vm5429_vm15, 1, %v7631_v6 }
0x380e   :  { %v5067_v24 = vpop.permute.xlu0 %5066 }
0x3852   :  { %v5063_v13 = vpop.permute.xlu1 %5062 }
0x3853   :  { %v5069_v36 = vsel %vm58_vm1, %v10204_v28, %v5063_v13 }
0x3854   :  { %v5070_v31 = vsel %vm60_vm2, %v5069_v36, %v5067_v24  ;;  %v5501_v24 = vsel %vm5055_vm8, 1, %v7631_v6  ;;  %v5228_v36 = vrot.slane %v10237_v29, %v7994_v5 }
0x3855   :  { %v5071_v0 = vsel %vm62_vm3, %v5070_v31, %v10083_v44 }
0x3856   :  { %6670 = vmatmul.mubr.f32.vlgmr.msra.gmra.mrb[22].mxu1 %v5071_v0 }
0x3857   :  { %5754 = vmatprep.mubr.f32.mxu1 %v7628_v7 }
0x3929   :  { %v5161_v54 = vpop.f32.mrb[22].mxu1 }
0x392a   :  { %v5162_v26 = vadd.f32 %v9992_v61, %v5161_v54  ;;  %v6671_v35 = vpop.f32.mrb[23].mxu1 }
0x392c   :  { %7561 = vtanh.f32 %v5162_v26  ;;  %v6016_v43 = vmul.f32 -1.442695, %v5162_v26 }
0x392e   :  { %7563 = vpow2.f32 %v6016_v43 }
0x3936   :  { %v7562_v42 = vpop.eup %7561 }
0x3937   :  { %5174 = vrot.lane.b32.xlu1 %v7562_v42, %s7629_s23 }
0x3938   :  { %v7564_v22 = vpop.eup %7563 }
0x3939   :  { %v5168_v48 = vadd.f32 1.0, %v7564_v22 }
0x393b   :  { %7565 = vrcp.f32 %v5168_v48 }
0x3945   :  { %v7566_v40 = vpop.eup %7565 }
0x3946   :  { %v5172_v44 = vmul.f32 %v7566_v40, %v10002_v41  ;;  %v5193_v41 = vsel %vm58_vm1, %v10189_v15, %v5063_v13 }
0x39a9   :  { %v5175_v20 = vpop.permute.xlu1 %5174 }
0x39aa   :  { %v5177_v46 = vmul.f32 %v7566_v40, %v5175_v20 }
0x39ac   :  { %5179 = vrot.lane.b32.xlu0 %v5177_v46, %s7625_s17 }
0x3a1e   :  { %v5180_v49 = vpop.permute.xlu0 %5179 }
0x3a1f   :  { %v10216_v45 = vadd.f32 %v5180_v49, %v5172_v44 }
0x3a21   :  { %7567 = vtanh.f32 %v10216_v45 }
0x3a2b   :  { %v7568_v61 = vpop.eup %7567 }
0x3a2c   :  { %5185 = vrot.lane.b32.xlu1 %v7568_v61, %s7629_s23 }
0x3a30   :  { %5317 = vrot.lane.b32.xlu1 %v10189_v15, %s7625_s17 }
0x3a9e   :  { %v5186_v27 = vpop.permute.xlu1 %5185 }
0x3a9f   :  { %v10222_v55 = vmul.f32 %v7566_v40, %v5186_v27  ;;  %v5358_v27 = vld [vmem:[#allocation2] sm:$0x3] }
0x3aa1   :  { %5190 = vrot.lane.b32.xlu0 %v10222_v55, %s7630_s24 }
0x3aa2   :  { %v5318_v60 = vpop.permute.xlu1 %5317 }
0x3aa5   :  { %5326 = vrot.lane.b32.xlu0 %v10197_v23, %s7629_s23 }
0x3b13   :  { %v5191_v33 = vpop.permute.xlu0 %5190 }
0x3b14   :  { %v5194_v21 = vsel %vm60_vm2, %v5193_v41, %v5191_v33 }
0x3b15   :  { %6017 = vmatmul.mubr.msk.f32.vlgmr.msra.gmra.mrb[22].mxu0 %vm62_vm3, %v5194_v21  ;;  %v5359_v21 = vld [vmem:[#allocation2 + $0x2] sm:$0x3] }
0x3b16   :  { %6704 = vmatprep.mubr.msk.f32.mxu0 %vm7627_vm0, %v7628_v7  ;;  %v6020_v7 = vld [vmem:[%s10546_s2 + $0x16] sm:$0x3] }
0x3b17   :  { %vm5350_vm0 = vcmp.eq.s32.totalorder %v6020_v7, 0  ;;  %v5327_v38 = vpop.permute.xlu0 %5326  ;;  %vm5351_vm4 = vcmp.eq.s32.totalorder %v6020_v7, 1  ;;  %vm5352_vm7 = vcmp.eq.s32.totalorder %v6020_v7, 2  ;;  %vm5353_vm10 = vcmp.eq.s32.totalorder %v6020_v7, 3 }
0x3b18   :  { %v5366_v18 = vsel %vm5350_vm0, 1, %v7631_v6  ;;  %v5367_v17 = vsel %vm5351_vm4, 1, %v7631_v6  ;;  %v5368_v34 = vsel %vm5352_vm7, 1, %v7631_v6  ;;  %v5369_v12 = vsel %vm5353_vm10, 1, %v7631_v6 }
0x3b19   :  { %vm5354_vm12 = vcmp.eq.s32.totalorder %v6020_v7, 4  ;;  %vm5355_vm14 = vcmp.eq.s32.totalorder %v6020_v7, 5  ;;  %vm5356_vm0 = vcmp.eq.s32.totalorder %v6020_v7, 6  ;;  %vm5430_vm4 = vcmp.eq.s32.totalorder %v6021_v57, 6  ;;  %v5362_v57 = vld [vmem:[#allocation2 + $0x8] sm:$0x3] }
0x3b1a   :  { %v5370_v30 = vsel %vm5354_vm12, 1, %v7631_v6  ;;  %v5371_v37 = vsel %vm5355_vm14, 1, %v7631_v6  ;;  %v5372_v19 = vsel %vm5356_vm0, 1, %v7631_v6  ;;  %vm5357_vm5 = vcmp.eq.s32.totalorder %v6020_v7, 7  ;;  %v5361_v7 = vld [vmem:[#allocation2 + $0x6] sm:$0x3] }
0x3b1b   :  { %v5438_v32 = vsel %vm5430_vm4, 1, %v7631_v6  ;;  %v5373_v62 = vsel %vm5357_vm5, 1, %v7631_v6  ;;  %vm5058_vm7 = vcmp.ne.s32.totalorder %v6013_v8, 0 }
0x3b1c   :  { %v5495_v13 = vsel %vm5058_vm7, 1, %v7631_v6 }
0x3be8   :  { %v5300_v59 = vpop.f32.mrb[22].mxu0 }
0x3be9   :  { %v10241_v51 = vadd.f32 %v5300_v59, %v5224_v52  ;;  %v10243_v56 = vpop.f32.mrb[23].mxu0 }
0x3bea   :  { %v5303_v31 = vadd.f32 %v10243_v56, %v5228_v36  ;;  %v5360_v56 = vld [vmem:[#allocation2 + $0x4] sm:$0x3] }
0x3beb   :  { %v6018_v63 = vmul.f32 -1.442695, %v10241_v51 }
0x3bec   :  { %v6019_v0 = vmul.f32 -1.442695, %v5303_v31  ;;  %v5364_v31 = vld [vmem:[#allocation2 + $0xc] sm:$0x3] }
0x3bed   :  { %7569 = vpow2.f32 %v6018_v63 }
0x3bf7   :  { %v7570_v47 = vpop.eup %7569 }
0x3bf8   :  { %v5309_v39 = vadd.f32 1.0, %v7570_v47 }
0x3bfa   :  { %7571 = vrcp.f32 %v5309_v39 }
0x3bfb   :  { %7573 = vpow2.f32 %v6019_v0 }
0x3bfc   :  { %7575 = vtanh.f32 %v10241_v51 }
0x3c04   :  { %v7572_v58 = vpop.eup %7571 }
0x3c05   :  { %5313 = vrot.lane.b32.xlu1 %v7572_v58, %s7630_s24  ;;  %v5320_v9 = vmul.f32 %v7572_v58, %v5318_v60  ;;  %v5329_v1 = vmul.f32 %v7572_v58, %v5327_v38  ;;  %v7574_v54 = vpop.eup %7573 }
0x3c06   :  { %v7576_v26 = vpop.eup %7575  ;;  %v5338_v43 = vadd.f32 1.0, %v7574_v54  ;;  %v5531_v54 = vld [vmem:[%s10550_s6 + $0x18] sm:$0xff] }
0x3c07   :  { %5322 = vrot.lane.b32.xlu0 %v5320_v9, %s7629_s23 }
0x3c08   :  { %7577 = vrcp.f32 %v5338_v43 }
0x3c09   :  { %5331 = vrot.lane.b32.xlu1 %v5329_v1, %s7625_s17 }
0x3c0b   :  { %5375 = vperm.xlu0 %7340, %v5366_v18  }
0x3c0d   :  { %5378 = vperm.xlu1 %7339, %v5367_v17  }
0x3c0f   :  { %5441 = vperm.xlu0 %7340, %v5432_v53  }
0x3c11   :  { %5444 = vperm.xlu1 %7339, %v5433_v16  }
0x3c12   :  { %v7578_v46 = vpop.eup %7577 }
0x3c13   :  { %5381 = vperm.xlu0 %7340, %v5368_v34  }
0x3c15   :  { %5447 = vperm.xlu1 %7339, %v5434_v4  }
0x3c17   :  { %5384 = vperm.xlu0 %7340, %v5369_v12  }
0x3c19   :  { %5450 = vperm.xlu1 %7339, %v5435_v10  }
0x3c1b   :  { %5387 = vperm.xlu0 %7340, %v5370_v30   ;;  %v5363_v30 = vld [vmem:[#allocation2 + $0xa] sm:$0x3] }
0x3c1d   :  { %5453 = vperm.xlu1 %7339, %v5436_v50  }
0x3c1f   :  { %5390 = vperm.xlu0 %7340, %v5371_v37  }
0x3c21   :  { %5456 = vperm.xlu1 %7339, %v5437_v3  }
0x3c23   :  { %5393 = vperm.xlu0 %7340, %v5372_v19  }
0x3c25   :  { %5459 = vperm.xlu1 %7339, %v5438_v32  }
0x3c27   :  { %5396 = vperm.xlu0 %7340, %v5373_v62  }
0x3c29   :  { %5462 = vperm.xlu1 %7339, %v5439_v11   ;;  %v5528_v11 = vld [vmem:[%s10550_s6] sm:$0xff] }
0x3c2b   :  { %5497 = vperm.xlu0 %7340, %v5495_v13   ;;  %v5529_v13 = vld [vmem:[%s10550_s6 + $0x8] sm:$0xff] }
0x3c2c   :  { %v7284_v0 = vpack.c.bf16 %v5529_v13, %v5528_v11 }
0x3c2d   :  { %5503 = vperm.xlu1 %7339, %v5501_v24   ;;  %v5530_v24 = vld [vmem:[%s10550_s6 + $0x10] sm:$0xff] }
0x3c2e   :  { %7285 = vmatpush3.bf16.msra.mxu0 %v7284_v0 }
0x3c2f   :  { %7286 = vmatprep.subr.bf16.mxu0 %v7626_v2 }
0x3c77   :  { %v5314_v35 = vpop.permute.xlu1 %5313 }
0x3c78   :  { %v5316_v42 = vmul.f32 %v7576_v26, %v5314_v35 }
0x3c79   :  { %v5323_v22 = vpop.permute.xlu0 %5322 }
0x3c7a   :  { %v5325_v48 = vadd.f32 %v5323_v22, %v5316_v42  ;;  %v7287_v22 = vpack.c.bf16 %v5531_v54, %v5530_v24 }
0x3c7b   :  { %v5332_v40 = vpop.permute.xlu1 %5331 }
0x3c7c   :  { %v5334_v20 = vadd.f32 %v5332_v40, %v5325_v48  ;;  %7288 = vmatpush3.bf16.msra.mxu0 %v7287_v22  ;;  %v5654_v22 = vld [vmem:[%s10552_s8 + $0x18] sm:$0xff] }
0x3c7d   :  { %7289 = vmatprep.subr.bf16.mxu0 %v7626_v2 }
0x3c7e   :  { %7579 = vtanh.f32 %v5334_v20  ;;  %5344 = vrot.lane.b32.xlu0 %v5334_v20, %s7625_s17 }
0x3c88   :  { %v7580_v44 = vpop.eup %7579 }
0x3c89   :  { %v10284_v49 = vmul.f32 %v7580_v44, %v7578_v46  ;;  %v5532_v46 = vld [vmem:[%s10550_s6 + $0x20] sm:$0xff]  ;;  %v5533_v44 = vld [vmem:[%s10550_s6 + $0x28] sm:$0xff] }
0x3c8a   :  { %v5376_v61 = vpop.permute.xlu0 %5375 }
0x3c8b   :  { %vm5398_vm10 = vcmp.eq.s32.totalorder %v5376_v61, 1 }
0x3c8c   :  { %v5379_v41 = vpop.permute.xlu1 %5378  ;;  %v5406_v33 = vsel %vm5398_vm10, %v10189_v15, %v5358_v27  ;;  %v5365_v27 = vld [vmem:[#allocation2 + $0xe] sm:$0x3] }
0x3c8d   :  { %vm5399_vm11 = vcmp.eq.s32.totalorder %v5379_v41, 1  ;;  %5414 = vst.msk [vmem:[#allocation2] sm:$0x3] %vm36_vm9, %v5406_v33 }
0x3c8e   :  { %v5442_v29 = vpop.permute.xlu0 %5441  ;;  %v5407_v52 = vsel %vm5399_vm11, %v10189_v15, %v5359_v21 }
0x3c8f   :  { %5415 = vst.msk [vmem:[#allocation2 + $0x2] sm:$0x3] %vm36_vm9, %v5407_v52  ;;  %vm5464_vm15 = vcmp.eq.s32.totalorder %v5442_v29, 1  ;;  %v7290_v29 = vpack.c.bf16 %v5533_v44, %v5532_v46  ;;  %v5658_v46 = vld [vmem:[%s10552_s8 + $0x38] sm:$0xff] }
0x3c90   :  { %v5445_v59 = vpop.permute.xlu1 %5444  ;;  %v5472_v1 = vsel %vm5464_vm15, %v5406_v33, 0.0 }
0x3c91   :  { %vm5465_vm13 = vcmp.eq.s32.totalorder %v5445_v59, 1  ;;  %v5480_v12 = vsel %vm36_vm9, %v5472_v1, 0.0  ;;  %7291 = vmatpush3.bf16.msra.mxu0 %v7290_v29 }
0x3c92   :  { %v5382_v51 = vpop.permute.xlu0 %5381  ;;  %v5473_v9 = vsel %vm5465_vm13, %v5407_v52, 0.0  ;;  %7292 = vmatprep.subr.bf16.mxu0 %v7626_v2 }
0x3c93   :  { %vm5400_vm12 = vcmp.eq.s32.totalorder %v5382_v51, 1  ;;  %v5481_v16 = vsel %vm36_vm9, %v5473_v9, 0.0  ;;  %v5536_v9 = vld [vmem:[%s10550_s6 + $0x40] sm:$0xff] }
0x3c94   :  { %v5448_v63 = vpop.permute.xlu1 %5447  ;;  %v5408_v47 = vsel %vm5400_vm12, %v10189_v15, %v5360_v56  ;;  %v5482_v50 = vadd.f32 %v5481_v16, %v5480_v12  ;;  %v5534_v56 = vld [vmem:[%s10550_s6 + $0x30] sm:$0xff]  ;;  %v5541_v16 = vld [vmem:[%s10550_s6 + $0x68] sm:$0xff]  ;;  %v5543_v12 = vld [vmem:[%s10550_s6 + $0x78] sm:$0xff] }
0x3c95   :  { %5416 = vst.msk [vmem:[#allocation2 + $0x4] sm:$0x3] %vm36_vm9, %v5408_v47  ;;  %vm5466_vm0 = vcmp.eq.s32.totalorder %v5448_v63, 1  ;;  %v5535_v63 = vld [vmem:[%s10550_s6 + $0x38] sm:$0xff] }
0x3c96   :  { %v5385_v39 = vpop.permute.xlu0 %5384  ;;  %v5474_v18 = vsel %vm5466_vm0, %v5408_v47, 0.0 }
0x3c97   :  { %vm5401_vm14 = vcmp.eq.s32.totalorder %v5385_v39, 1  ;;  %v5483_v10 = vsel %vm36_vm9, %v5474_v18, 0.0  ;;  %v5539_v18 = vld [vmem:[%s10550_s6 + $0x58] sm:$0xff] }
0x3c98   :  { %v5451_v58 = vpop.permute.xlu1 %5450  ;;  %v5409_v60 = vsel %vm5401_vm14, %v10189_v15, %v5361_v7  ;;  %v5484_v8 = vadd.f32 %v5483_v10, %v5482_v50 }
0x3c99   :  { %5417 = vst.msk [vmem:[#allocation2 + $0x6] sm:$0x3] %vm36_vm9, %v5409_v60  ;;  %vm5467_vm4 = vcmp.eq.s32.totalorder %v5451_v58, 1  ;;  %v7293_v58 = vpack.c.bf16 %v5535_v63, %v5534_v56  ;;  %v5664_v63 = vld [vmem:[%s10552_s8 + $0x68] sm:$0xff] }
0x3c9a   :  { %v5388_v38 = vpop.permute.xlu0 %5387  ;;  %v5475_v34 = vsel %vm5467_vm4, %v5409_v60, 0.0 }
0x3c9b   :  { %vm5402_vm5 = vcmp.eq.s32.totalorder %v5388_v38, 1  ;;  %v5485_v32 = vsel %vm36_vm9, %v5475_v34, 0.0  ;;  %v5537_v38 = vld [vmem:[%s10550_s6 + $0x48] sm:$0xff]  ;;  %7294 = vmatpush3.bf16.msra.mxu0 %v7293_v58  ;;  %v5663_v58 = vld [vmem:[%s10552_s8 + $0x60] sm:$0xff] }
0x3c9c   :  { %v5454_v17 = vpop.permute.xlu1 %5453  ;;  %v5410_v53 = vsel %vm5402_vm5, %v10189_v15, %v5362_v57  ;;  %v5486_v26 = vadd.f32 %v5485_v32, %v5484_v8  ;;  %v7296_v1 = vpack.c.bf16 %v5537_v38, %v5536_v9  ;;  %7295 = vmatprep.subr.bf16.mxu0 %v7626_v2  ;;  %v6025_v8 = vld [vmem:[%s10551_s7] ss:$0 sm:$0xff]  ;;  %v5668_v9 = vld [vmem:[%s10552_s8 + $0x88] sm:$0xff]  ;;  %v5670_v38 = vld [vmem:[%s10552_s8 + $0x98] sm:$0xff] }
0x3c9d   :  { %vm5468_vm6 = vcmp.eq.s32.totalorder %v5454_v17, 1  ;;  %5418 = vst.msk [vmem:[#allocation2 + $0x8] sm:$0x3] %vm36_vm9, %v5410_v53 }
0x3c9e   :  { %v5391_v4 = vpop.permute.xlu0 %5390  ;;  %v5476_v37 = vsel %vm5468_vm6, %v5410_v53, 0.0  ;;  %v5540_v53 = vld [vmem:[%s10550_s6 + $0x60] sm:$0xff] }
0x3c9f   :  { %vm5403_vm7 = vcmp.eq.s32.totalorder %v5391_v4, 1  ;;  %v5487_v36 = vsel %vm36_vm9, %v5476_v37, 0.0  ;;  %7297 = vmatpush3.bf16.msra.mxu0 %v7296_v1  ;;  %v7302_v34 = vpack.c.bf16 %v5541_v16, %v5540_v53  ;;  %v5542_v4 = vld [vmem:[%s10550_s6 + $0x70] sm:$0xff]  ;;  %v5672_v53 = vld [vmem:[%s10552_s8 + $0xa8] sm:$0xff]  ;;  %v5674_v16 = vld [vmem:[%s10552_s8 + $0xb8] sm:$0xff] }
0x3ca0   :  { %v5457_v3 = vpop.permute.xlu1 %5456  ;;  %v5411_v19 = vsel %vm5403_vm7, %v10189_v15, %v5363_v30  ;;  %v5488_v48 = vadd.f32 %v5487_v36, %v5486_v26  ;;  %7298 = vmatprep.subr.bf16.mxu0 %v7626_v2  ;;  %v7305_v10 = vpack.c.bf16 %v5543_v12, %v5542_v4  ;;  %v7327_v4 = vpack.c.bf16 %v5674_v16, %v5672_v53  ;;  %v5671_v12 = vld [vmem:[%s10552_s8 + $0xa0] sm:$0xff] }
0x3ca1   :  { %vm5469_vm8 = vcmp.eq.s32.totalorder %v5457_v3, 1  ;;  %5419 = vst.msk [vmem:[#allocation2 + $0xa] sm:$0x3] %vm36_vm9, %v5411_v19  ;;  %v10386_v3 = vld [vmem:[%s10548_s4 + $0x18] sm:$0x3] }
0x3ca2   :  { %v5477_v62 = vsel %vm5469_vm8, %v5411_v19, 0.0  ;;  %v5394_v25 = vpop.permute.xlu0 %5393  ;;  %v5816_v16 = vld [vmem:[#allocation2 + $0x4] sm:$0x3] }
0x3ca3   :  { %vm5404_vm10 = vcmp.eq.s32.totalorder %v5394_v25, 1  ;;  %v5489_v43 = vsel %vm36_vm9, %v5477_v62, 0.0 }
0x3ca4   :  { %v5460_v35 = vpop.permute.xlu1 %5459  ;;  %v5412_v42 = vsel %vm5404_vm10, %v10189_v15, %v5364_v31  ;;  %v5490_v41 = vadd.f32 %v5489_v43, %v5488_v48  ;;  %v5652_v43 = vld [vmem:[%s10552_s8 + $0x8] sm:$0xff]  ;;  %v5651_v48 = vld [vmem:[%s10552_s8] sm:$0xff] }
0x3ca5   :  { %vm5470_vm11 = vcmp.eq.s32.totalorder %v5460_v35, 1  ;;  %5420 = vst.msk [vmem:[#allocation2 + $0xc] sm:$0x3] %vm36_vm9, %v5412_v42 }
0x3ca6   :  { %v5478_v40 = vsel %vm5470_vm11, %v5412_v42, 0.0  ;;  %v5397_v20 = vpop.permute.xlu0 %5396 }
0x3ca7   :  { %v5491_v61 = vsel %vm36_vm9, %v5478_v40, 0.0  ;;  %vm5405_vm12 = vcmp.eq.s32.totalorder %v5397_v20, 1  ;;  %v7307_v40 = vpack.c.bf16 %v5654_v22, %v5652_v43  ;;  %v5656_v20 = vld [vmem:[%s10552_s8 + $0x28] sm:$0xff] }
0x3ca8   :  { %v5463_v33 = vpop.permute.xlu1 %5462  ;;  %v5413_v21 = vsel %vm5405_vm12, %v10189_v15, %v5365_v27  ;;  %v5492_v52 = vadd.f32 %v5491_v61, %v5490_v41  ;;  %v7311_v61 = vpack.c.bf16 %v5658_v46, %v5656_v20  ;;  %v5655_v27 = vld [vmem:[%s10552_s8 + $0x20] sm:$0xff]  ;;  %v5657_v41 = vld [vmem:[%s10552_s8 + $0x30] sm:$0xff] }
0x3ca9   :  { %vm5471_vm13 = vcmp.eq.s32.totalorder %v5463_v33, 1  ;;  %5421 = vst.msk [vmem:[#allocation2 + $0xe] sm:$0x3] %vm36_vm9, %v5413_v21  ;;  %v5660_v33 = vld [vmem:[%s10552_s8 + $0x48] sm:$0xff]  ;;  %7308 = vmatprep.subr.bf16.mxu1 %v7307_v40  ;;  %v7313_v29 = vpack.c.bf16 %v5657_v41, %v5655_v27 }
0x3caa   :  { %v5479_v59 = vsel %vm5471_vm13, %v5413_v21, 0.0  ;;  %v5498_v51 = vpop.permute.xlu0 %5497  ;;  %v5662_v21 = vld [vmem:[%s10552_s8 + $0x58] sm:$0xff] }
0x3cab   :  { %v5493_v47 = vsel %vm36_vm9, %v5479_v59, 0.0  ;;  %vm5499_vm14 = vcmp.eq.s32.totalorder %v5498_v51, 1  ;;  %v5659_v59 = vld [vmem:[%s10552_s8 + $0x40] sm:$0xff]  ;;  %v5661_v51 = vld [vmem:[%s10552_s8 + $0x50] sm:$0xff] }
0x3cac   :  { %v5494_v39 = vadd.f32 %v5493_v47, %v5492_v52  ;;  %v5504_v7 = vpop.permute.xlu1 %5503  ;;  %v7315_v52 = vpack.c.bf16 %v5662_v21, %v5660_v33  ;;  %v5666_v47 = vld [vmem:[%s10552_s8 + $0x78] sm:$0xff] }
0x3cad   :  { %vm5505_vm15 = vcmp.eq.s32.totalorder %v5504_v7, 1  ;;  %v7319_v7 = vpack.c.bf16 %v5666_v47, %v5664_v63 }
0x3cae   :  { %v5507_v60 = vsel %vm5499_vm14, %v5494_v39, %v10189_v15  ;;  %v5538_v15 = vld [vmem:[%s10550_s6 + $0x50] sm:$0xff]  ;;  %v7317_v39 = vpack.c.bf16 %v5661_v51, %v5659_v59 }
0x3caf   :  { %v10347_v57 = vsel %vm5505_vm15, %v10197_v23, %v5507_v60  ;;  %v7299_v17 = vpack.c.bf16 %v5539_v18, %v5538_v15  ;;  %v5665_v60 = vld [vmem:[%s10552_s8 + $0x70] sm:$0xff]  ;;  %v7323_v15 = vpack.c.bf16 %v5670_v38, %v5668_v9  ;;  %v5667_v18 = vld [vmem:[%s10552_s8 + $0x80] sm:$0xff] }
0x3cb0   :  { %5522 = vrot.lane.b32.xlu0 %v10347_v57, %s7629_s23  ;;  %v7321_v1 = vpack.c.bf16 %v5665_v60, %v5663_v58  ;;  %v5814_v38 = vld [vmem:[#allocation2] sm:$0x3] }
0x3cb1   :  { %7300 = vmatpush3.bf16.msra.mxu0 %v7299_v17  ;;  %v5669_v17 = vld [vmem:[%s10552_s8 + $0x90] sm:$0xff] }
0x3cb2   :  { %7301 = vmatprep.subr.bf16.mxu0 %v7626_v2 }
0x3cb5   :  { %7303 = vmatpush3.bf16.msra.mxu0 %v7302_v34  ;;  %v7325_v34 = vpack.c.bf16 %v5669_v17, %v5667_v18  ;;  %v5815_v18 = vld [vmem:[#allocation2 + $0x2] sm:$0x3] }
0x3cb6   :  { %7304 = vmatprep.subr.bf16.mxu0 %v7626_v2 }
0x3cb9   :  { %7306 = vmatpush3.bf16.msra.mxu0 %v7305_v10  ;;  %v5673_v10 = vld [vmem:[%s10552_s8 + $0xb0] sm:$0xff] }
0x3cf0   :  { %v5345_v30 = vpop.permute.xlu0 %5344 }
0x3cf1   :  { %v5347_v50 = vsel %vm58_vm1, %v10284_v49, %v5345_v30  ;;  %v7329_v30 = vpack.c.bf16 %v5673_v10, %v5671_v12  ;;  %v5817_v12 = vld [vmem:[#allocation2 + $0x6] sm:$0x3] }
0x3cf2   :  { %v5500_v37 = vsel %vm5499_vm14, %v5347_v50, %v10197_v23 }
0x3cf3   :  { %v10379_v2 = vsel %vm5505_vm15, %v10204_v28, %v5500_v37 }
0x3cf4   :  { %5518 = vrot.lane.b32.xlu1 %v10379_v2, %s7625_s17 }
0x3d22   :  { %v5523_v32 = vpop.permute.xlu0 %5522 }
0x3d66   :  { %v10388_v19 = vpop.permute.xlu1 %5518 }
0x3d67   :  { %v5525_v49 = vsel %vm58_vm1, %v10386_v3, %v10388_v19 }
0x3d68   :  { %v5526_v23 = vsel %vm60_vm2, %v5525_v49, %v5523_v32  ;;  %v5649_v32 = vsel %vm58_vm1, %v10347_v57, %v10388_v19  ;;  %v6023_v19 = vld [vmem:[%s10545_s1 + $0x18] sm:$0x3] }
0x3d69   :  { %v5527_v28 = vsel %vm62_vm3, %v5526_v23, %v10222_v55 }
0x3d6a   :  { %6705 = vmatmul.mubr.f32.vlgmr.msra.gmra.mrb[24].mxu0 %v5527_v28  ;;  %v5675_v28 = vld [vmem:[%s10553_s9] sm:$0x3] }
0x3d6b   :  { %v5684_v27 = vrot.slane %v5675_v28, %v7994_v5 }
0x3e3d   :  { %v5617_v62 = vpop.f32.mrb[24].mxu0 }
0x3e3e   :  { %v5618_v25 = vadd.f32 %v6025_v8, %v5617_v62  ;;  %v6706_v11 = vpop.f32.mrb[25].mxu0  ;;  %v5680_v8 = vrot.slane %v5675_v28, %v7918_v14 }
0x3e40   :  { %7581 = vtanh.f32 %v5618_v25  ;;  %v6026_v24 = vmul.f32 -1.442695, %v5618_v25 }
0x3e42   :  { %7583 = vpow2.f32 %v6026_v24 }
0x3e4a   :  { %v7582_v13 = vpop.eup %7581 }
0x3e4b   :  { %5630 = vrot.lane.b32.xlu1 %v7582_v13, %s7629_s23 }
0x3e4c   :  { %v7584_v36 = vpop.eup %7583 }
0x3e4d   :  { %v5624_v31 = vadd.f32 1.0, %v7584_v36 }
0x3e4f   :  { %7585 = vrcp.f32 %v5624_v31 }
0x3e59   :  { %v7586_v0 = vpop.eup %7585 }
0x3e5a   :  { %v5628_v26 = vmul.f32 %v7586_v0, %v10216_v45  ;;  %v5653_v45 = vld [vmem:[%s10552_s8 + $0x10] sm:$0xff] }
0x3e5b   :  { %v7309_v44 = vpack.c.bf16 %v5653_v45, %v5651_v48 }
0x3e5d   :  { %7310 = vmatpush1.bf16.msra.mxu1 %v7309_v44 }
0x3e5e   :  { %7312 = vmatprep.subr.bf16.mxu1 %v7311_v61 }
0x3e61   :  { %7314 = vmatpush1.bf16.msra.mxu1 %v7313_v29 }
0x3e62   :  { %7316 = vmatprep.subr.bf16.mxu1 %v7315_v52 }
0x3e65   :  { %7318 = vmatpush1.bf16.msra.mxu1 %v7317_v39 }
0x3e66   :  { %7320 = vmatprep.subr.bf16.mxu1 %v7319_v7 }
0x3e69   :  { %7322 = vmatpush1.bf16.msra.mxu1 %v7321_v1 }
0x3e6a   :  { %7324 = vmatprep.subr.bf16.mxu1 %v7323_v15 }
0x3e6d   :  { %7326 = vmatpush1.bf16.msra.mxu1 %v7325_v34 }
0x3e6e   :  { %7328 = vmatprep.subr.bf16.mxu1 %v7327_v4 }
0x3e71   :  { %7330 = vmatpush1.bf16.msra.mxu1 %v7329_v30 }
0x3ebd   :  { %v5631_v54 = vpop.permute.xlu1 %5630 }
0x3ebe   :  { %v5633_v55 = vmul.f32 %v7586_v0, %v5631_v54  ;;  %v6022_v54 = vld [vmem:[%s10544_s0 + $0x18] sm:$0x3]  ;;  %s7632_s0 = smov [#allocation3]  }
0x3ebf   :  { %s5898_s1 = sshll.u32 %s7632_s0, 4  ;;  %s5899_s1 = int_to_ptr.vmem [resolvable:$true] %s5898_s1 }
0x3ec0   :  { %5635 = vrot.lane.b32.xlu0 %v5633_v55, %s7625_s17  ;;  %p7606_p1 = scmp.lt.s32.totalorder %s5899_s1, %s5899_s1 }
0x3f32   :  { %v5636_v35 = vpop.permute.xlu0 %5635 }
0x3f33   :  { %v5638_v42 = vadd.f32 %v5636_v35, %v5628_v26  ;;  %v6030_v26 = vld [vmem:[%s10546_s2 + $0x18] sm:$0x3]  ;;  %s7601_s2 = scalar_lea.vmem %s5899_s1, 32 }
0x3f34   :  { %vm5806_vm0 = vcmp.eq.s32.totalorder %v6030_v26, 0  ;;  %vm5807_vm4 = vcmp.eq.s32.totalorder %v6030_v26, 1  ;;  %vm5808_vm5 = vcmp.eq.s32.totalorder %v6030_v26, 2  ;;  %vm5809_vm6 = vcmp.eq.s32.totalorder %v6030_v26, 3  ;;  %p7602_p0 = scmp.ne.s32.totalorder %s5899_s1, %s7601_s2  ;;  %p7607_p2 = scmp.lt.s32.totalorder %s7601_s2, %s7601_s2 }
0x3f35   :  { %7587 = vtanh.f32 %v5638_v42  ;;  %v5822_v22 = vsel %vm5806_vm0, 1, %v7631_v6  ;;  %v5823_v48 = vsel %vm5807_vm4, 1, %v7631_v6  ;;  %v5824_v40 = vsel %vm5808_vm5, 1, %v7631_v6 }
0x3f36   :  { %vm5810_vm7 = vcmp.eq.s32.totalorder %v6030_v26, 4  ;;  %v5825_v45 = vsel %vm5809_vm6, 1, %v7631_v6  ;;  %vm5811_vm8 = vcmp.eq.s32.totalorder %v6030_v26, 5  ;;  %vm5812_vm10 = vcmp.eq.s32.totalorder %v6030_v26, 6  ;;  %p7608_p3 = por %p7607_p2, %p7606_p1 }
0x3f37   :  { %v5826_v20 = vsel %vm5810_vm7, 1, %v7631_v6  ;;  %v5827_v46 = vsel %vm5811_vm8, 1, %v7631_v6  ;;  %vm5813_vm11 = vcmp.eq.s32.totalorder %v6030_v26, 7  ;;  %v5828_v44 = vsel %vm5812_vm10, 1, %v7631_v6 }
0x3f38   :  { %v5829_v61 = vsel %vm5813_vm11, 1, %v7631_v6  ;;  %vm5890_vm6 = vcmask 254976   ;;  %p7609_p4 = pnand %p7608_p3, %p7602_p0 }
0x3f3f   :  { %v7588_v56 = vpop.eup %7587 }
0x3f40   :  { %5641 = vrot.lane.b32.xlu1 %v7588_v56, %s7629_s23 }
0x3f44   :  { %5773 = vrot.lane.b32.xlu1 %v10347_v57, %s7625_s17 }
0x3fb2   :  { %v5642_v50 = vpop.permute.xlu1 %5641 }
0x3fb3   :  { %v5644_v37 = vmul.f32 %v7586_v0, %v5642_v50  ;;  %v5818_v50 = vld [vmem:[#allocation2 + $0x8] sm:$0x3] }
0x3fb5   :  { %5646 = vrot.lane.b32.xlu0 %v5644_v37, %s7630_s24 }
0x3fb6   :  { %v5774_v0 = vpop.permute.xlu1 %5773 }
0x3fb9   :  { %5782 = vrot.lane.b32.xlu0 %v10379_v2, %s7629_s23 }
0x4027   :  { %v5647_v49 = vpop.permute.xlu0 %5646 }
0x4028   :  { %v5650_v23 = vsel %vm60_vm2, %v5649_v32, %v5647_v49  ;;  %vm5514_vm2 = vcmp.ne.s32.totalorder %v6023_v19, 0  ;;  %v5819_v49 = vld [vmem:[#allocation2 + $0xa] sm:$0x3] }
0x4029   :  { %6027 = vmatmul.mubr.msk.f32.vlgmr.msra.gmra.mrb[24].mxu1 %vm62_vm3, %v5650_v23  ;;  %vm5511_vm3 = vcmp.ne.s32.totalorder %v6022_v54, 0  ;;  %v5878_v42 = vsel %vm5514_vm2, 1, %v7631_v6 }
0x402a   :  { %v5884_v43 = vsel %vm5511_vm3, 1, %v7631_v6 }
0x402b   :  { %v5783_v55 = vpop.permute.xlu0 %5782 }
0x40fc   :  { %v5756_v62 = vpop.f32.mrb[24].mxu1 }
0x40fd   :  { %v5757_v25 = vadd.f32 %v5756_v62, %v5680_v8  ;;  %v5758_v11 = vpop.f32.mrb[25].mxu1  ;;  %v5820_v8 = vld [vmem:[#allocation2 + $0xc] sm:$0x3] }
0x40fe   :  { %v5759_v41 = vadd.f32 %v5758_v11, %v5684_v27  ;;  %v5821_v11 = vld [vmem:[#allocation2 + $0xe] sm:$0x3] }
0x40ff   :  { %v6028_v13 = vmul.f32 -1.442695, %v5757_v25 }
0x4100   :  { %v6029_v33 = vmul.f32 -1.442695, %v5759_v41 }
0x4101   :  { %7589 = vpow2.f32 %v6028_v13 }
0x410b   :  { %v7590_v24 = vpop.eup %7589 }
0x410c   :  { %v5765_v36 = vadd.f32 1.0, %v7590_v24 }
0x410e   :  { %7591 = vrcp.f32 %v5765_v36 }
0x410f   :  { %7593 = vpow2.f32 %v6029_v33 }
0x4110   :  { %7595 = vtanh.f32 %v5757_v25 }
0x4118   :  { %v7592_v31 = vpop.eup %7591 }
0x4119   :  { %5769 = vrot.lane.b32.xlu1 %v7592_v31, %s7630_s24  ;;  %v5776_v14 = vmul.f32 %v7592_v31, %v5774_v0  ;;  %v5785_v35 = vmul.f32 %v7592_v31, %v5783_v55  ;;  %v7594_v21 = vpop.eup %7593 }
0x411a   :  { %v7596_v29 = vpop.eup %7595  ;;  %v5794_v51 = vadd.f32 1.0, %v7594_v21 }
0x411b   :  { %5778 = vrot.lane.b32.xlu0 %v5776_v14, %s7629_s23 }
0x411c   :  { %7597 = vrcp.f32 %v5794_v51 }
0x411d   :  { %5787 = vrot.lane.b32.xlu1 %v5785_v35, %s7625_s17 }
0x411f   :  { %5880 = vperm.xlu0 %7340, %v5878_v42  }
0x4121   :  { %5886 = vperm.xlu1 %7339, %v5884_v43  }
0x4123   :  { %5831 = vperm.xlu0 %7340, %v5822_v22  }
0x4125   :  { %5834 = vperm.xlu1 %7339, %v5823_v48  }
0x4126   :  { %v7598_v6 = vpop.eup %7597 }
0x4127   :  { %5837 = vperm.xlu0 %7340, %v5824_v40  }
0x4129   :  { %5840 = vperm.xlu1 %7339, %v5825_v45  }
0x412b   :  { %5843 = vperm.xlu0 %7340, %v5826_v20  }
0x412d   :  { %5846 = vperm.xlu1 %7339, %v5827_v46  }
0x412f   :  { %5849 = vperm.xlu0 %7340, %v5828_v44  }
0x4131   :  { %5852 = vperm.xlu1 %7339, %v5829_v61  }
0x418b   :  { %v5770_v52 = vpop.permute.xlu1 %5769 }
0x418c   :  { %v5772_v59 = vmul.f32 %v7596_v29, %v5770_v52 }
0x418d   :  { %v5779_v56 = vpop.permute.xlu0 %5778 }
0x418e   :  { %v5781_v63 = vadd.f32 %v5779_v56, %v5772_v59 }
0x418f   :  { %v5788_v47 = vpop.permute.xlu1 %5787 }
0x4190   :  { %v5790_v39 = vadd.f32 %v5788_v47, %v5781_v63 }
0x4192   :  { %7599 = vtanh.f32 %v5790_v39  ;;  %5800 = vrot.lane.b32.xlu0 %v5790_v39, %s7625_s17 }
0x419c   :  { %v7600_v7 = vpop.eup %7599 }
0x419d   :  { %v5798_v5 = vmul.f32 %v7600_v7, %v7598_v6 }
0x419e   :  { %v5881_v58 = vpop.permute.xlu0 %5880 }
0x419f   :  { %vm5882_vm5 = vcmp.eq.s32.totalorder %v5881_v58, 1 }
0x41a0   :  { %v5887_v60 = vpop.permute.xlu1 %5886 }
0x41a1   :  { %vm5888_vm7 = vcmp.eq.s32.totalorder %v5887_v60, 1 }
0x41a2   :  { %v5832_v9 = vpop.permute.xlu0 %5831 }
0x41a3   :  { %vm5854_vm12 = vcmp.eq.s32.totalorder %v5832_v9, 1 }
0x41a4   :  { %v5862_v1 = vsel %vm5854_vm12, %v10347_v57, %v5814_v38  ;;  %v5835_v15 = vpop.permute.xlu1 %5834 }
0x41a5   :  { %5870 = vst.msk [vmem:[#allocation2] sm:$0x3] %vm36_vm9, %v5862_v1  ;;  %vm5855_vm13 = vcmp.eq.s32.totalorder %v5835_v15, 1 }
0x41a6   :  { %v5863_v17 = vsel %vm5855_vm13, %v10347_v57, %v5815_v18  ;;  %v5838_v53 = vpop.permute.xlu0 %5837 }
0x41a7   :  { %5871 = vst.msk [vmem:[#allocation2 + $0x2] sm:$0x3] %vm36_vm9, %v5863_v17  ;;  %vm5856_vm14 = vcmp.eq.s32.totalorder %v5838_v53, 1 }
0x41a8   :  { %v5864_v34 = vsel %vm5856_vm14, %v10347_v57, %v5816_v16  ;;  %v5841_v4 = vpop.permute.xlu1 %5840 }
0x41a9   :  { %5872 = vst.msk [vmem:[#allocation2 + $0x4] sm:$0x3] %vm36_vm9, %v5864_v34  ;;  %vm5857_vm15 = vcmp.eq.s32.totalorder %v5841_v4, 1 }
0x41aa   :  { %v5865_v10 = vsel %vm5857_vm15, %v10347_v57, %v5817_v12  ;;  %v5844_v30 = vpop.permute.xlu0 %5843 }
0x41ab   :  { %5873 = vst.msk [vmem:[#allocation2 + $0x6] sm:$0x3] %vm36_vm9, %v5865_v10  ;;  %vm5858_vm2 = vcmp.eq.s32.totalorder %v5844_v30, 1 }
0x41ac   :  { %v5866_v37 = vsel %vm5858_vm2, %v10347_v57, %v5818_v50  ;;  %v5847_v32 = vpop.permute.xlu1 %5846 }
0x41ad   :  { %5874 = vst.msk [vmem:[#allocation2 + $0x8] sm:$0x3] %vm36_vm9, %v5866_v37  ;;  %vm5859_vm3 = vcmp.eq.s32.totalorder %v5847_v32, 1 }
0x41ae   :  { %v5867_v23 = vsel %vm5859_vm3, %v10347_v57, %v5819_v49  ;;  %v5850_v28 = vpop.permute.xlu0 %5849 }
0x41af   :  { %5875 = vst.msk [vmem:[#allocation2 + $0xa] sm:$0x3] %vm36_vm9, %v5867_v23  ;;  %vm5860_vm0 = vcmp.eq.s32.totalorder %v5850_v28, 1 }
0x41b0   :  { %v5868_v62 = vsel %vm5860_vm0, %v10347_v57, %v5820_v8  ;;  %v5853_v25 = vpop.permute.xlu1 %5852 }
0x41b1   :  { %5876 = vst.msk [vmem:[#allocation2 + $0xc] sm:$0x3] %vm36_vm9, %v5868_v62  ;;  %vm5861_vm4 = vcmp.eq.s32.totalorder %v5853_v25, 1 }
0x41b2   :  { %v5869_v13 = vsel %vm5861_vm4, %v10347_v57, %v5821_v11 }
0x41b3   :  { %5877 = vst.msk [vmem:[#allocation2 + $0xe] sm:$0x3] %vm36_vm9, %v5869_v13 }
0x4204   :  { %v5801_v24 = vpop.permute.xlu0 %5800 }
0x4205   :  { %v5803_v36 = vsel %vm58_vm1, %v5798_v5, %v5801_v24 }
0x4206   :  { %v5883_v19 = vsel %vm5882_vm5, %v5803_v36, %v10379_v2 }
0x4207   :  { %v5889_v31 = vsel %vm5888_vm7, %v10386_v3, %v5883_v19 }
0x4208   :  { %5891 = vst.msk [vmem:[#allocation3] sm:$0x3] %vm5890_vm6, %v5889_v31 }
0x4209   :  { %7612 = shalt.err (!%p7609_p4)
}
0x420a   :  { %s7613_s24 = scalar_lea.hbm %s10554_s10, 32 }
0x420b   :  { %p7614_p5 = scmp.ne.s32.totalorder %s10554_s10, %s7613_s24  ;;  %p7617_p6 = scmp.lt.u32.totalorder %s7613_s24, %s10554_s10 }
0x420d   :  { %p7619_p7 = pnand %p7617_p6, %p7614_p5 }
0x420f   :  { %7622 = shalt.err (!%p7619_p7)
}
0x4210   :  { %5901 = dma.vmem_to_hbm [thread:$0]  %s5899_s1, 32, %s10554_s10, [#allocation4]  }
0x4211   :  { %7623 = dma.done.wait [#allocation4], 32  }
0x4212   :  { %7624 = vsyncadd [#allocation4], 4294967264 }
0x4213   :  { %5905 = vsyncpa [#allocation4], 1 }

</bundles_post_ra>
